<compile_context>
chip_gen: v5e
topology: v5e:2x2
jax: 0.10.0
libtpu: 0.0.40
codegen_flags: <defaults>
</compile_context>

<pallas_src>
import jax
import jax.numpy as jnp
import numpy as np
from jax.experimental import pallas as pl
from jax.experimental.pallas import tpu as pltpu

TOP_K = 10
SORT_TAU = 1e-4   # soft_rank regularization strength (tau -> 0 limit => hard ranks)
EPS = 1e-8


def _round_up(x, m):
    return (x + m - 1) // m * m


def _pick_rank_chunk(tu, n):
    """Largest item-chunk jc such that the (tu, jc, n) f32 comparison block stays
    around <= 24 vregs (96 KiB) of live data."""
    for c in (32, 16, 8, 4, 2, 1):
        if n % c == 0 and tu * c * n <= 24 * 1024:
            return c
    return 1


def _make_diversity_kernel(tu, n, jc, top_k):
    shift = float(n - top_k)
    n_chunks = n // jc

    def kernel(r_ref, d_ref, out_ref, w_ref):
        # r_ref : (tu, n) f32   user tile of predictions
        # d_ref : (n, n)  bf16  distance matrix (resident across the user grid)
        # out_ref: (tu, 2) f32  col 0 = approx distance, col 1 = exact distance
        # w_ref : (2*tu, n) f32 scratch, rows [0:tu) = approx gate, [tu:2tu) = hard gate
        R = r_ref[...].astype(jnp.float32)                                  # (tu, n)

        # ---- ranks + top-k gates, chunked over the item (rank) axis --------
        # rank[i, j] = 1 + #{k : R[i, k] < R[i, j]}
        # TODO(synk): torchsort.soft_rank (isotonic/PAV projection) breaks ties;
        # with regularization_strength=1e-4 and tie-free scores it equals these
        # hard ranks, which is what we implement.
        for c in range(n_chunks):
            j0 = c * jc
            r_chunk = r_ref[:, j0:j0 + jc].astype(jnp.float32)              # (tu, jc)
            cmp = (r_chunk[:, :, None] > R[:, None, :]).astype(jnp.float32)  # (tu, jc, n)
            ranks = 1.0 + jnp.sum(cmp, axis=-1)                              # (tu, jc)
            # approx top-k gate (sigmoid of shifted ranks)
            w_ref[0:tu, j0:j0 + jc] = jax.nn.sigmoid(ranks - shift)
            # exact top-k indicator (== torch.topk + scatter, cast to float)
            w_ref[tu:2 * tu, j0:j0 + jc] = (ranks > shift).astype(jnp.float32)

        # ---- fused weighted-average pairwise distance for both gates --------
        W = w_ref[...]                                                       # (2tu, n) f32
        # One MXU pass over D for both gates; bf16 operands, f32 accumulation.
        RM = jnp.dot(W.astype(jnp.bfloat16), d_ref[...],
                     preferred_element_type=jnp.float32)                     # (2tu, n)
        numerator = jnp.sum(RM * W, axis=1, keepdims=True)                   # (2tu, 1)
        w_sum = jnp.sum(W, axis=1, keepdims=True)
        w_sq_sum = jnp.sum(W * W, axis=1, keepdims=True)
        denominator = w_sum * w_sum - w_sq_sum
        avg = numerator * pl.reciprocal(denominator + EPS, approx=True)
        avg = jnp.where(denominator == 0.0, 0.0, avg)                        # (2tu, 1)

        # Fused output: one array, col 0 = approx, col 1 = exact.
        out_ref[:, 0:1] = avg[0:tu]
        out_ref[:, 1:2] = avg[tu:2 * tu]

    return kernel


def cosine_distance_diversity(R, dist_mat, *, top_k=TOP_K, user_tile=None):
    """Returns (approx_distance, real_distance), each shape (U,), like the module."""
    U, N = R.shape
    assert dist_mat.shape == (N, N)
    assert 0 < top_k < N

    if user_tile is None:
        user_tile = min(_round_up(U, 8), 32)
    tu = max(8, _round_up(user_tile, 8))
    U_pad = _round_up(U, tu)
    jc = _pick_rank_chunk(tu, N)

    # Padded users have all-zero scores -> zero gates -> zero outputs (sliced off).
    R_p = jnp.pad(R.astype(jnp.float32), ((0, U_pad - U), (0, 0)))
    # bf16 distance matrix: MXU-native and halves the resident (N, N) block.
    D_b = dist_mat.astype(jnp.bfloat16)

    kernel = _make_diversity_kernel(tu, N, jc, top_k)

    # TODO(synk): for very large N (>~4K on v7x's 64 MiB VMEM) the (N, N) D block
    # should additionally be tiled over its column axis and vmem_limit_bytes raised.
    out = pl.pallas_call(
        kernel,
        out_shape=jax.ShapeDtypeStruct((U_pad, 2), jnp.float32),
        grid=(U_pad // tu,),
        in_specs=[
            pl.BlockSpec((tu, N), lambda u: (u, 0)),   # user tile of R (double-buffered)
            pl.BlockSpec((N, N), lambda u: (0, 0)),    # D resident across the user grid
        ],
        out_specs=pl.BlockSpec((tu, 2), lambda u: (u, 0)),
        scratch_shapes=[pltpu.VMEM((2 * tu, N), jnp.float32)],  # fused [approx; exact] gates
        compiler_params=pltpu.CompilerParams(
            dimension_semantics=("parallel",)),        # user tiles shard across TCs on v7x
    )(R_p, D_b)

    return out[:U, 0], out[:U, 1]


def _reference(R, D, top_k=TOP_K):
    """Plain-JAX f32 reference with the same (tau->0) rank semantics."""
    N = R.shape[1]
    order = jnp.argsort(R, axis=1)
    ranks = jnp.argsort(order, axis=1).astype(jnp.float32) + 1.0
    approx_top_k = jax.nn.sigmoid(ranks - (N - top_k))
    real_top_k = (ranks > (N - top_k)).astype(jnp.float32)

    def wad(W):
        RM = W @ D
        num = jnp.sum(RM * W, axis=1)
        ws = jnp.sum(W, axis=1)
        wsq = jnp.sum(W * W, axis=1)
        den = ws * ws - wsq
        avg = num / (den + EPS)
        return jnp.where(den == 0.0, 0.0, avg)

    return wad(approx_top_k), wad(real_top_k)


if __name__ == "__main__":
    key = jax.random.PRNGKey(0)
    k_r, k_d = jax.random.split(key)

    U, N = 8, 128  # num_users, num_items (top_k=10 items per user)
    R = jax.random.uniform(k_r, (U, N), dtype=jnp.float32)

    # Symmetric "jaccard distance" matrix in [0, 1] with zero diagonal.
    D = jax.random.uniform(k_d, (N, N), dtype=jnp.float32)
    D = 0.5 * (D + D.T)
    D = D * (1.0 - jnp.eye(N, dtype=jnp.float32))

    approx_dist, real_dist = cosine_distance_diversity(R, D)
    jax.block_until_ready((approx_dist, real_dist))

    ref_approx, ref_real = _reference(R, D)
    # Tolerance reflects bf16 MXU operands (D and the sigmoid gate) + approx
    # reciprocal; all accumulation is f32, so errors stay well under 1%.
    np.testing.assert_allclose(np.asarray(approx_dist), np.asarray(ref_approx),
                               rtol=2e-2, atol=2e-3)
    np.testing.assert_allclose(np.asarray(real_dist), np.asarray(ref_real),
                               rtol=2e-2, atol=2e-3)

    print("KERNEL_OK")
</pallas_src>

<mosaic_0001>
module attributes {stable_mosaic.version = 11 : i64} {
  func.func @kernel(%arg0: i32, %arg1: memref<8x128xf32, #tpu.memory_space<vmem>>, %arg2: memref<128x128xbf16, #tpu.memory_space<vmem>>, %arg3: memref<8x2xf32, #tpu.memory_space<vmem>>, %arg4: memref<16x128xf32, #tpu.memory_space<vmem>>) attributes {dimension_semantics = [#tpu.dimension_semantics<parallel>], iteration_bounds = array<i64: 1>, scalar_prefetch = 0 : i64, scratch_operands = 1 : i64, tpu.core_type = #tpu.core_type<tc>, window_params = [{transform_indices = @transform_0, window_bounds = array<i64: 8, 128>}, {pipeline_mode = #tpu.pipeline_mode<synchronous>, transform_indices = @transform_1, window_bounds = array<i64: 128, 128>}, {transform_indices = @transform_2, window_bounds = array<i64: 8, 2>}]} {
    %c0 = arith.constant 0 : index
    %c0_0 = arith.constant 0 : index
    %0 = vector.load %arg1[%c0, %c0_0] : memref<8x128xf32, #tpu.memory_space<vmem>>, vector<8x128xf32>
    %c0_1 = arith.constant 0 : index
    %c0_2 = arith.constant 0 : index
    %1 = vector.load %arg1[%c0_1, %c0_2] : memref<8x128xf32, #tpu.memory_space<vmem>>, vector<8x16xf32>
    %2 = vector.shape_cast %1 : vector<8x16xf32> to vector<8x16x1xf32>
    %3 = vector.shape_cast %0 : vector<8x128xf32> to vector<8x1x128xf32>
    %4 = vector.broadcast %2 : vector<8x16x1xf32> to vector<8x16x128xf32>
    %5 = vector.broadcast %3 : vector<8x1x128xf32> to vector<8x16x128xf32>
    %6 = arith.cmpf ogt, %4, %5 : vector<8x16x128xf32>
    %7 = arith.extui %6 : vector<8x16x128xi1> to vector<8x16x128xi32>
    %8 = arith.sitofp %7 : vector<8x16x128xi32> to vector<8x16x128xf32>
    %cst = arith.constant dense<0.000000e+00> : vector<8x16xf32>
    %9 = vector.multi_reduction <add>, %8, %cst [2] : vector<8x16x128xf32> to vector<8x16xf32>
    %cst_3 = arith.constant 1.000000e+00 : f32
    %10 = vector.broadcast %cst_3 : f32 to vector<8x16xf32>
    %11 = arith.addf %10, %9 : vector<8x16xf32>
    %cst_4 = arith.constant 1.180000e+02 : f32
    %12 = vector.broadcast %cst_4 : f32 to vector<8x16xf32>
    %13 = arith.subf %11, %12 : vector<8x16xf32>
    %14 = arith.negf %13 : vector<8x16xf32>
    %15 = math.exp %14 : vector<8x16xf32>
    %cst_5 = arith.constant 1.000000e+00 : f32
    %16 = vector.broadcast %cst_5 : f32 to vector<8x16xf32>
    %17 = arith.addf %16, %15 : vector<8x16xf32>
    %18 = arith.divf %16, %17 : vector<8x16xf32>
    %c0_6 = arith.constant 0 : index
    %c0_7 = arith.constant 0 : index
    %19 = vector.load %arg4[%c0_6, %c0_7] : memref<16x128xf32, #tpu.memory_space<vmem>>, vector<8x16xf32>
    tpu.vector_store %arg4[%c0_6, %c0_7], %18 {strides = array<i32>} : memref<16x128xf32, #tpu.memory_space<vmem>>, vector<8x16xf32>,
    %cst_8 = arith.constant 1.180000e+02 : f32
    %20 = vector.broadcast %cst_8 : f32 to vector<8x16xf32>
    %21 = arith.cmpf ogt, %11, %20 : vector<8x16xf32>
    %22 = arith.extui %21 : vector<8x16xi1> to vector<8x16xi32>
    %23 = arith.sitofp %22 : vector<8x16xi32> to vector<8x16xf32>
    %c8 = arith.constant 8 : index
    %c0_9 = arith.constant 0 : index
    %24 = vector.load %arg4[%c8, %c0_9] : memref<16x128xf32, #tpu.memory_space<vmem>>, vector<8x16xf32>
    tpu.vector_store %arg4[%c8, %c0_9], %23 {strides = array<i32>} : memref<16x128xf32, #tpu.memory_space<vmem>>, vector<8x16xf32>,
    %c0_10 = arith.constant 0 : index
    %c16 = arith.constant 16 : index
    %25 = vector.load %arg1[%c0_10, %c16] : memref<8x128xf32, #tpu.memory_space<vmem>>, vector<8x16xf32>
    %26 = vector.shape_cast %25 : vector<8x16xf32> to vector<8x16x1xf32>
    %27 = vector.shape_cast %0 : vector<8x128xf32> to vector<8x1x128xf32>
    %28 = vector.broadcast %26 : vector<8x16x1xf32> to vector<8x16x128xf32>
    %29 = vector.broadcast %27 : vector<8x1x128xf32> to vector<8x16x128xf32>
    %30 = arith.cmpf ogt, %28, %29 : vector<8x16x128xf32>
    %31 = arith.extui %30 : vector<8x16x128xi1> to vector<8x16x128xi32>
    %32 = arith.sitofp %31 : vector<8x16x128xi32> to vector<8x16x128xf32>
    %cst_11 = arith.constant dense<0.000000e+00> : vector<8x16xf32>
    %33 = vector.multi_reduction <add>, %32, %cst_11 [2] : vector<8x16x128xf32> to vector<8x16xf32>
    %cst_12 = arith.constant 1.000000e+00 : f32
    %34 = vector.broadcast %cst_12 : f32 to vector<8x16xf32>
    %35 = arith.addf %34, %33 : vector<8x16xf32>
    %cst_13 = arith.constant 1.180000e+02 : f32
    %36 = vector.broadcast %cst_13 : f32 to vector<8x16xf32>
    %37 = arith.subf %35, %36 : vector<8x16xf32>
    %38 = arith.negf %37 : vector<8x16xf32>
    %39 = math.exp %38 : vector<8x16xf32>
    %cst_14 = arith.constant 1.000000e+00 : f32
    %40 = vector.broadcast %cst_14 : f32 to vector<8x16xf32>
    %41 = arith.addf %40, %39 : vector<8x16xf32>
    %42 = arith.divf %40, %41 : vector<8x16xf32>
    %c0_15 = arith.constant 0 : index
    %c16_16 = arith.constant 16 : index
    %43 = vector.load %arg4[%c0_15, %c16_16] : memref<16x128xf32, #tpu.memory_space<vmem>>, vector<8x16xf32>
    tpu.vector_store %arg4[%c0_15, %c16_16], %42 {strides = array<i32>} : memref<16x128xf32, #tpu.memory_space<vmem>>, vector<8x16xf32>,
    %cst_17 = arith.constant 1.180000e+02 : f32
    %44 = vector.broadcast %cst_17 : f32 to vector<8x16xf32>
    %45 = arith.cmpf ogt, %35, %44 : vector<8x16xf32>
    %46 = arith.extui %45 : vector<8x16xi1> to vector<8x16xi32>
    %47 = arith.sitofp %46 : vector<8x16xi32> to vector<8x16xf32>
    %c8_18 = arith.constant 8 : index
    %c16_19 = arith.constant 16 : index
    %48 = vector.load %arg4[%c8_18, %c16_19] : memref<16x128xf32, #tpu.memory_space<vmem>>, vector<8x16xf32>
    tpu.vector_store %arg4[%c8_18, %c16_19], %47 {strides = array<i32>} : memref<16x128xf32, #tpu.memory_space<vmem>>, vector<8x16xf32>,
    %c0_20 = arith.constant 0 : index
    %c32 = arith.constant 32 : index
    %49 = vector.load %arg1[%c0_20, %c32] : memref<8x128xf32, #tpu.memory_space<vmem>>, vector<8x16xf32>
    %50 = vector.shape_cast %49 : vector<8x16xf32> to vector<8x16x1xf32>
    %51 = vector.shape_cast %0 : vector<8x128xf32> to vector<8x1x128xf32>
    %52 = vector.broadcast %50 : vector<8x16x1xf32> to vector<8x16x128xf32>
    %53 = vector.broadcast %51 : vector<8x1x128xf32> to vector<8x16x128xf32>
    %54 = arith.cmpf ogt, %52, %53 : vector<8x16x128xf32>
    %55 = arith.extui %54 : vector<8x16x128xi1> to vector<8x16x128xi32>
    %56 = arith.sitofp %55 : vector<8x16x128xi32> to vector<8x16x128xf32>
    %cst_21 = arith.constant dense<0.000000e+00> : vector<8x16xf32>
    %57 = vector.multi_reduction <add>, %56, %cst_21 [2] : vector<8x16x128xf32> to vector<8x16xf32>
    %cst_22 = arith.constant 1.000000e+00 : f32
    %58 = vector.broadcast %cst_22 : f32 to vector<8x16xf32>
    %59 = arith.addf %58, %57 : vector<8x16xf32>
    %cst_23 = arith.constant 1.180000e+02 : f32
    %60 = vector.broadcast %cst_23 : f32 to vector<8x16xf32>
    %61 = arith.subf %59, %60 : vector<8x16xf32>
    %62 = arith.negf %61 : vector<8x16xf32>
    %63 = math.exp %62 : vector<8x16xf32>
    %cst_24 = arith.constant 1.000000e+00 : f32
    %64 = vector.broadcast %cst_24 : f32 to vector<8x16xf32>
    %65 = arith.addf %64, %63 : vector<8x16xf32>
    %66 = arith.divf %64, %65 : vector<8x16xf32>
    %c0_25 = arith.constant 0 : index
    %c32_26 = arith.constant 32 : index
    %67 = vector.load %arg4[%c0_25, %c32_26] : memref<16x128xf32, #tpu.memory_space<vmem>>, vector<8x16xf32>
    tpu.vector_store %arg4[%c0_25, %c32_26], %66 {strides = array<i32>} : memref<16x128xf32, #tpu.memory_space<vmem>>, vector<8x16xf32>,
    %cst_27 = arith.constant 1.180000e+02 : f32
    %68 = vector.broadcast %cst_27 : f32 to vector<8x16xf32>
    %69 = arith.cmpf ogt, %59, %68 : vector<8x16xf32>
    %70 = arith.extui %69 : vector<8x16xi1> to vector<8x16xi32>
    %71 = arith.sitofp %70 : vector<8x16xi32> to vector<8x16xf32>
    %c8_28 = arith.constant 8 : index
    %c32_29 = arith.constant 32 : index
    %72 = vector.load %arg4[%c8_28, %c32_29] : memref<16x128xf32, #tpu.memory_space<vmem>>, vector<8x16xf32>
    tpu.vector_store %arg4[%c8_28, %c32_29], %71 {strides = array<i32>} : memref<16x128xf32, #tpu.memory_space<vmem>>, vector<8x16xf32>,
    %c0_30 = arith.constant 0 : index
    %c48 = arith.constant 48 : index
    %73 = vector.load %arg1[%c0_30, %c48] : memref<8x128xf32, #tpu.memory_space<vmem>>, vector<8x16xf32>
    %74 = vector.shape_cast %73 : vector<8x16xf32> to vector<8x16x1xf32>
    %75 = vector.shape_cast %0 : vector<8x128xf32> to vector<8x1x128xf32>
    %76 = vector.broadcast %74 : vector<8x16x1xf32> to vector<8x16x128xf32>
    %77 = vector.broadcast %75 : vector<8x1x128xf32> to vector<8x16x128xf32>
    %78 = arith.cmpf ogt, %76, %77 : vector<8x16x128xf32>
    %79 = arith.extui %78 : vector<8x16x128xi1> to vector<8x16x128xi32>
    %80 = arith.sitofp %79 : vector<8x16x128xi32> to vector<8x16x128xf32>
    %cst_31 = arith.constant dense<0.000000e+00> : vector<8x16xf32>
    %81 = vector.multi_reduction <add>, %80, %cst_31 [2] : vector<8x16x128xf32> to vector<8x16xf32>
    %cst_32 = arith.constant 1.000000e+00 : f32
    %82 = vector.broadcast %cst_32 : f32 to vector<8x16xf32>
    %83 = arith.addf %82, %81 : vector<8x16xf32>
    %cst_33 = arith.constant 1.180000e+02 : f32
    %84 = vector.broadcast %cst_33 : f32 to vector<8x16xf32>
    %85 = arith.subf %83, %84 : vector<8x16xf32>
    %86 = arith.negf %85 : vector<8x16xf32>
    %87 = math.exp %86 : vector<8x16xf32>
    %cst_34 = arith.constant 1.000000e+00 : f32
    %88 = vector.broadcast %cst_34 : f32 to vector<8x16xf32>
    %89 = arith.addf %88, %87 : vector<8x16xf32>
    %90 = arith.divf %88, %89 : vector<8x16xf32>
    %c0_35 = arith.constant 0 : index
    %c48_36 = arith.constant 48 : index
    %91 = vector.load %arg4[%c0_35, %c48_36] : memref<16x128xf32, #tpu.memory_space<vmem>>, vector<8x16xf32>
    tpu.vector_store %arg4[%c0_35, %c48_36], %90 {strides = array<i32>} : memref<16x128xf32, #tpu.memory_space<vmem>>, vector<8x16xf32>,
    %cst_37 = arith.constant 1.180000e+02 : f32
    %92 = vector.broadcast %cst_37 : f32 to vector<8x16xf32>
    %93 = arith.cmpf ogt, %83, %92 : vector<8x16xf32>
    %94 = arith.extui %93 : vector<8x16xi1> to vector<8x16xi32>
    %95 = arith.sitofp %94 : vector<8x16xi32> to vector<8x16xf32>
    %c8_38 = arith.constant 8 : index
    %c48_39 = arith.constant 48 : index
    %96 = vector.load %arg4[%c8_38, %c48_39] : memref<16x128xf32, #tpu.memory_space<vmem>>, vector<8x16xf32>
    tpu.vector_store %arg4[%c8_38, %c48_39], %95 {strides = array<i32>} : memref<16x128xf32, #tpu.memory_space<vmem>>, vector<8x16xf32>,
    %c0_40 = arith.constant 0 : index
    %c64 = arith.constant 64 : index
    %97 = vector.load %arg1[%c0_40, %c64] : memref<8x128xf32, #tpu.memory_space<vmem>>, vector<8x16xf32>
    %98 = vector.shape_cast %97 : vector<8x16xf32> to vector<8x16x1xf32>
    %99 = vector.shape_cast %0 : vector<8x128xf32> to vector<8x1x128xf32>
    %100 = vector.broadcast %98 : vector<8x16x1xf32> to vector<8x16x128xf32>
    %101 = vector.broadcast %99 : vector<8x1x128xf32> to vector<8x16x128xf32>
    %102 = arith.cmpf ogt, %100, %101 : vector<8x16x128xf32>
    %103 = arith.extui %102 : vector<8x16x128xi1> to vector<8x16x128xi32>
    %104 = arith.sitofp %103 : vector<8x16x128xi32> to vector<8x16x128xf32>
    %cst_41 = arith.constant dense<0.000000e+00> : vector<8x16xf32>
    %105 = vector.multi_reduction <add>, %104, %cst_41 [2] : vector<8x16x128xf32> to vector<8x16xf32>
    %cst_42 = arith.constant 1.000000e+00 : f32
    %106 = vector.broadcast %cst_42 : f32 to vector<8x16xf32>
    %107 = arith.addf %106, %105 : vector<8x16xf32>
    %cst_43 = arith.constant 1.180000e+02 : f32
    %108 = vector.broadcast %cst_43 : f32 to vector<8x16xf32>
    %109 = arith.subf %107, %108 : vector<8x16xf32>
    %110 = arith.negf %109 : vector<8x16xf32>
    %111 = math.exp %110 : vector<8x16xf32>
    %cst_44 = arith.constant 1.000000e+00 : f32
    %112 = vector.broadcast %cst_44 : f32 to vector<8x16xf32>
    %113 = arith.addf %112, %111 : vector<8x16xf32>
    %114 = arith.divf %112, %113 : vector<8x16xf32>
    %c0_45 = arith.constant 0 : index
    %c64_46 = arith.constant 64 : index
    %115 = vector.load %arg4[%c0_45, %c64_46] : memref<16x128xf32, #tpu.memory_space<vmem>>, vector<8x16xf32>
    tpu.vector_store %arg4[%c0_45, %c64_46], %114 {strides = array<i32>} : memref<16x128xf32, #tpu.memory_space<vmem>>, vector<8x16xf32>,
    %cst_47 = arith.constant 1.180000e+02 : f32
    %116 = vector.broadcast %cst_47 : f32 to vector<8x16xf32>
    %117 = arith.cmpf ogt, %107, %116 : vector<8x16xf32>
    %118 = arith.extui %117 : vector<8x16xi1> to vector<8x16xi32>
    %119 = arith.sitofp %118 : vector<8x16xi32> to vector<8x16xf32>
    %c8_48 = arith.constant 8 : index
    %c64_49 = arith.constant 64 : index
    %120 = vector.load %arg4[%c8_48, %c64_49] : memref<16x128xf32, #tpu.memory_space<vmem>>, vector<8x16xf32>
    tpu.vector_store %arg4[%c8_48, %c64_49], %119 {strides = array<i32>} : memref<16x128xf32, #tpu.memory_space<vmem>>, vector<8x16xf32>,
    %c0_50 = arith.constant 0 : index
    %c80 = arith.constant 80 : index
    %121 = vector.load %arg1[%c0_50, %c80] : memref<8x128xf32, #tpu.memory_space<vmem>>, vector<8x16xf32>
    %122 = vector.shape_cast %121 : vector<8x16xf32> to vector<8x16x1xf32>
    %123 = vector.shape_cast %0 : vector<8x128xf32> to vector<8x1x128xf32>
    %124 = vector.broadcast %122 : vector<8x16x1xf32> to vector<8x16x128xf32>
    %125 = vector.broadcast %123 : vector<8x1x128xf32> to vector<8x16x128xf32>
    %126 = arith.cmpf ogt, %124, %125 : vector<8x16x128xf32>
    %127 = arith.extui %126 : vector<8x16x128xi1> to vector<8x16x128xi32>
    %128 = arith.sitofp %127 : vector<8x16x128xi32> to vector<8x16x128xf32>
    %cst_51 = arith.constant dense<0.000000e+00> : vector<8x16xf32>
    %129 = vector.multi_reduction <add>, %128, %cst_51 [2] : vector<8x16x128xf32> to vector<8x16xf32>
    %cst_52 = arith.constant 1.000000e+00 : f32
    %130 = vector.broadcast %cst_52 : f32 to vector<8x16xf32>
    %131 = arith.addf %130, %129 : vector<8x16xf32>
    %cst_53 = arith.constant 1.180000e+02 : f32
    %132 = vector.broadcast %cst_53 : f32 to vector<8x16xf32>
    %133 = arith.subf %131, %132 : vector<8x16xf32>
    %134 = arith.negf %133 : vector<8x16xf32>
    %135 = math.exp %134 : vector<8x16xf32>
    %cst_54 = arith.constant 1.000000e+00 : f32
    %136 = vector.broadcast %cst_54 : f32 to vector<8x16xf32>
    %137 = arith.addf %136, %135 : vector<8x16xf32>
    %138 = arith.divf %136, %137 : vector<8x16xf32>
    %c0_55 = arith.constant 0 : index
    %c80_56 = arith.constant 80 : index
    %139 = vector.load %arg4[%c0_55, %c80_56] : memref<16x128xf32, #tpu.memory_space<vmem>>, vector<8x16xf32>
    tpu.vector_store %arg4[%c0_55, %c80_56], %138 {strides = array<i32>} : memref<16x128xf32, #tpu.memory_space<vmem>>, vector<8x16xf32>,
    %cst_57 = arith.constant 1.180000e+02 : f32
    %140 = vector.broadcast %cst_57 : f32 to vector<8x16xf32>
    %141 = arith.cmpf ogt, %131, %140 : vector<8x16xf32>
    %142 = arith.extui %141 : vector<8x16xi1> to vector<8x16xi32>
    %143 = arith.sitofp %142 : vector<8x16xi32> to vector<8x16xf32>
    %c8_58 = arith.constant 8 : index
    %c80_59 = arith.constant 80 : index
    %144 = vector.load %arg4[%c8_58, %c80_59] : memref<16x128xf32, #tpu.memory_space<vmem>>, vector<8x16xf32>
    tpu.vector_store %arg4[%c8_58, %c80_59], %143 {strides = array<i32>} : memref<16x128xf32, #tpu.memory_space<vmem>>, vector<8x16xf32>,
    %c0_60 = arith.constant 0 : index
    %c96 = arith.constant 96 : index
    %145 = vector.load %arg1[%c0_60, %c96] : memref<8x128xf32, #tpu.memory_space<vmem>>, vector<8x16xf32>
    %146 = vector.shape_cast %145 : vector<8x16xf32> to vector<8x16x1xf32>
    %147 = vector.shape_cast %0 : vector<8x128xf32> to vector<8x1x128xf32>
    %148 = vector.broadcast %146 : vector<8x16x1xf32> to vector<8x16x128xf32>
    %149 = vector.broadcast %147 : vector<8x1x128xf32> to vector<8x16x128xf32>
    %150 = arith.cmpf ogt, %148, %149 : vector<8x16x128xf32>
    %151 = arith.extui %150 : vector<8x16x128xi1> to vector<8x16x128xi32>
    %152 = arith.sitofp %151 : vector<8x16x128xi32> to vector<8x16x128xf32>
    %cst_61 = arith.constant dense<0.000000e+00> : vector<8x16xf32>
    %153 = vector.multi_reduction <add>, %152, %cst_61 [2] : vector<8x16x128xf32> to vector<8x16xf32>
    %cst_62 = arith.constant 1.000000e+00 : f32
    %154 = vector.broadcast %cst_62 : f32 to vector<8x16xf32>
    %155 = arith.addf %154, %153 : vector<8x16xf32>
    %cst_63 = arith.constant 1.180000e+02 : f32
    %156 = vector.broadcast %cst_63 : f32 to vector<8x16xf32>
    %157 = arith.subf %155, %156 : vector<8x16xf32>
    %158 = arith.negf %157 : vector<8x16xf32>
    %159 = math.exp %158 : vector<8x16xf32>
    %cst_64 = arith.constant 1.000000e+00 : f32
    %160 = vector.broadcast %cst_64 : f32 to vector<8x16xf32>
    %161 = arith.addf %160, %159 : vector<8x16xf32>
    %162 = arith.divf %160, %161 : vector<8x16xf32>
    %c0_65 = arith.constant 0 : index
    %c96_66 = arith.constant 96 : index
    %163 = vector.load %arg4[%c0_65, %c96_66] : memref<16x128xf32, #tpu.memory_space<vmem>>, vector<8x16xf32>
    tpu.vector_store %arg4[%c0_65, %c96_66], %162 {strides = array<i32>} : memref<16x128xf32, #tpu.memory_space<vmem>>, vector<8x16xf32>,
    %cst_67 = arith.constant 1.180000e+02 : f32
    %164 = vector.broadcast %cst_67 : f32 to vector<8x16xf32>
    %165 = arith.cmpf ogt, %155, %164 : vector<8x16xf32>
    %166 = arith.extui %165 : vector<8x16xi1> to vector<8x16xi32>
    %167 = arith.sitofp %166 : vector<8x16xi32> to vector<8x16xf32>
    %c8_68 = arith.constant 8 : index
    %c96_69 = arith.constant 96 : index
    %168 = vector.load %arg4[%c8_68, %c96_69] : memref<16x128xf32, #tpu.memory_space<vmem>>, vector<8x16xf32>
    tpu.vector_store %arg4[%c8_68, %c96_69], %167 {strides = array<i32>} : memref<16x128xf32, #tpu.memory_space<vmem>>, vector<8x16xf32>,
    %c0_70 = arith.constant 0 : index
    %c112 = arith.constant 112 : index
    %169 = vector.load %arg1[%c0_70, %c112] : memref<8x128xf32, #tpu.memory_space<vmem>>, vector<8x16xf32>
    %170 = vector.shape_cast %169 : vector<8x16xf32> to vector<8x16x1xf32>
    %171 = vector.shape_cast %0 : vector<8x128xf32> to vector<8x1x128xf32>
    %172 = vector.broadcast %170 : vector<8x16x1xf32> to vector<8x16x128xf32>
    %173 = vector.broadcast %171 : vector<8x1x128xf32> to vector<8x16x128xf32>
    %174 = arith.cmpf ogt, %172, %173 : vector<8x16x128xf32>
    %175 = arith.extui %174 : vector<8x16x128xi1> to vector<8x16x128xi32>
    %176 = arith.sitofp %175 : vector<8x16x128xi32> to vector<8x16x128xf32>
    %cst_71 = arith.constant dense<0.000000e+00> : vector<8x16xf32>
    %177 = vector.multi_reduction <add>, %176, %cst_71 [2] : vector<8x16x128xf32> to vector<8x16xf32>
    %cst_72 = arith.constant 1.000000e+00 : f32
    %178 = vector.broadcast %cst_72 : f32 to vector<8x16xf32>
    %179 = arith.addf %178, %177 : vector<8x16xf32>
    %cst_73 = arith.constant 1.180000e+02 : f32
    %180 = vector.broadcast %cst_73 : f32 to vector<8x16xf32>
    %181 = arith.subf %179, %180 : vector<8x16xf32>
    %182 = arith.negf %181 : vector<8x16xf32>
    %183 = math.exp %182 : vector<8x16xf32>
    %cst_74 = arith.constant 1.000000e+00 : f32
    %184 = vector.broadcast %cst_74 : f32 to vector<8x16xf32>
    %185 = arith.addf %184, %183 : vector<8x16xf32>
    %186 = arith.divf %184, %185 : vector<8x16xf32>
    %c0_75 = arith.constant 0 : index
    %c112_76 = arith.constant 112 : index
    %187 = vector.load %arg4[%c0_75, %c112_76] : memref<16x128xf32, #tpu.memory_space<vmem>>, vector<8x16xf32>
    tpu.vector_store %arg4[%c0_75, %c112_76], %186 {strides = array<i32>} : memref<16x128xf32, #tpu.memory_space<vmem>>, vector<8x16xf32>,
    %cst_77 = arith.constant 1.180000e+02 : f32
    %188 = vector.broadcast %cst_77 : f32 to vector<8x16xf32>
    %189 = arith.cmpf ogt, %179, %188 : vector<8x16xf32>
    %190 = arith.extui %189 : vector<8x16xi1> to vector<8x16xi32>
    %191 = arith.sitofp %190 : vector<8x16xi32> to vector<8x16xf32>
    %c8_78 = arith.constant 8 : index
    %c112_79 = arith.constant 112 : index
    %192 = vector.load %arg4[%c8_78, %c112_79] : memref<16x128xf32, #tpu.memory_space<vmem>>, vector<8x16xf32>
    tpu.vector_store %arg4[%c8_78, %c112_79], %191 {strides = array<i32>} : memref<16x128xf32, #tpu.memory_space<vmem>>, vector<8x16xf32>,
    %c0_80 = arith.constant 0 : index
    %c0_81 = arith.constant 0 : index
    %193 = vector.load %arg4[%c0_80, %c0_81] : memref<16x128xf32, #tpu.memory_space<vmem>>, vector<16x128xf32>
    %194 = arith.truncf %193 : vector<16x128xf32> to vector<16x128xbf16>
    %c0_82 = arith.constant 0 : index
    %c0_83 = arith.constant 0 : index
    %195 = vector.load %arg2[%c0_82, %c0_83] : memref<128x128xbf16, #tpu.memory_space<vmem>>, vector<128x128xbf16>
    %cst_84 = arith.constant dense<0.000000e+00> : vector<16x128xf32>
    %196 = tpu.matmul %194, %195, %cst_84 {dimension_numbers = #tpu.dot_dimension_numbers<[1], [0], [0], [1], [0, 0, 1, 1], [], []>} : vector<16x128xbf16>, vector<128x128xbf16>, vector<16x128xf32> -> vector<16x128xf32>
    %197 = arith.mulf %196, %193 : vector<16x128xf32>
    %cst_85 = arith.constant dense<0.000000e+00> : vector<16xf32>
    %198 = vector.multi_reduction <add>, %197, %cst_85 [1] : vector<16x128xf32> to vector<16xf32>
    %199 = vector.shape_cast %198 : vector<16xf32> to vector<16x1xf32>
    %cst_86 = arith.constant dense<0.000000e+00> : vector<16xf32>
    %200 = vector.multi_reduction <add>, %193, %cst_86 [1] : vector<16x128xf32> to vector<16xf32>
    %201 = vector.shape_cast %200 : vector<16xf32> to vector<16x1xf32>
    %202 = arith.mulf %193, %193 : vector<16x128xf32>
    %cst_87 = arith.constant dense<0.000000e+00> : vector<16xf32>
    %203 = vector.multi_reduction <add>, %202, %cst_87 [1] : vector<16x128xf32> to vector<16xf32>
    %204 = vector.shape_cast %203 : vector<16xf32> to vector<16x1xf32>
    %205 = arith.mulf %201, %201 : vector<16x1xf32>
    %206 = arith.subf %205, %204 : vector<16x1xf32>
    %cst_88 = arith.constant 9.99999993E-9 : f32
    %207 = vector.broadcast %cst_88 : f32 to vector<16x1xf32>
    %208 = arith.addf %206, %207 : vector<16x1xf32>
    %209 = tpu.reciprocal %208 {approx = true} : vector<16x1xf32> -> vector<16x1xf32>
    %210 = arith.mulf %199, %209 : vector<16x1xf32>
    %cst_89 = arith.constant 0.000000e+00 : f32
    %211 = vector.broadcast %cst_89 : f32 to vector<16x1xf32>
    %212 = arith.cmpf oeq, %206, %211 : vector<16x1xf32>
    %cst_90 = arith.constant 0.000000e+00 : f32
    %213 = vector.broadcast %cst_90 : f32 to vector<16x1xf32>
    %214 = arith.select %212, %213, %210 : vector<16x1xi1>, vector<16x1xf32>
    %215 = vector.extract_strided_slice %214 {offsets = [0, 0], sizes = [8, 1], strides = [1, 1]} : vector<16x1xf32> to vector<8x1xf32>
    %c0_91 = arith.constant 0 : index
    %c0_92 = arith.constant 0 : index
    %216 = vector.load %arg3[%c0_91, %c0_92] : memref<8x2xf32, #tpu.memory_space<vmem>>, vector<8x1xf32>
    tpu.vector_store %arg3[%c0_91, %c0_92], %215 {strides = array<i32>} : memref<8x2xf32, #tpu.memory_space<vmem>>, vector<8x1xf32>,
    %217 = vector.extract_strided_slice %214 {offsets = [8, 0], sizes = [8, 1], strides = [1, 1]} : vector<16x1xf32> to vector<8x1xf32>
    %c0_93 = arith.constant 0 : index
    %c1 = arith.constant 1 : index
    %218 = vector.load %arg3[%c0_93, %c1] : memref<8x2xf32, #tpu.memory_space<vmem>>, vector<8x1xf32>
    tpu.vector_store %arg3[%c0_93, %c1], %217 {strides = array<i32>} : memref<8x2xf32, #tpu.memory_space<vmem>>, vector<8x1xf32>,
    return
  }
  func.func @transform_0(%arg0: i32) -> (i32, i32) {
    %c0_i32 = arith.constant 0 : i32
    %c0_i32_0 = arith.constant 0 : i32
    return %arg0, %c0_i32 : i32, i32
  }
  func.func @transform_1(%arg0: i32) -> (i32, i32) {
    %c0_i32 = arith.constant 0 : i32
    %c0_i32_0 = arith.constant 0 : i32
    %c0_i32_1 = arith.constant 0 : i32
    return %c0_i32, %c0_i32_0 : i32, i32
  }
  func.func @transform_2(%arg0: i32) -> (i32, i32) {
    %c0_i32 = arith.constant 0 : i32
    %c0_i32_0 = arith.constant 0 : i32
    return %arg0, %c0_i32 : i32, i32
  }
}

</mosaic_0001>

<bundles_post_ra>
// kernel: tpu_custom_call.1
= control target key start
LH: loop header
LB: loop body
LE: loop exit
PB: predicated region body
PF: predicated region fallthrough
CT: control target
= control target key end

     0   :  { %7 = vsyncpa [#allocation4], 0  ;;  %s12695_s0 = inlined_call_operand.hbm [shape: f32[8,128], index: 0, kind: input, shape index: {}]   ;;  %s12696_s1 = inlined_call_operand.hbm [shape: bf16[128,128], index: 1, kind: input, shape index: {}]   ;;  %s12697_s2 = inlined_call_operand.vmem [shape: f32[8,2], index: 2, kind: output, shape index: {}]  }
   0x1   :  { %s14_s11 = sshll.u32 %s12695_s0, 4  ;;  %s15_s11 = int_to_ptr.hbm [resolvable:$true] %s14_s11 }
   0x2   :  { %8 = vsyncpa [#allocation6], 0  ;;  %s6771_s12 = smov [#allocation3]   ;;  %s24_s16 = sshll.u32 %s12696_s1, 4  ;;  %s25_s16 = int_to_ptr.hbm [resolvable:$true] %s24_s16 }
   0x3   :  { %s16_s13 = sshll.u32 %s6771_s12, 4  ;;  %s6772_s17 = smov [#allocation5]   ;;  %s17_s13 = int_to_ptr.vmem [resolvable:$true] %s16_s13 }
   0x4   :  { %19 = dma.hbm_to_vmem [thread:$0]  %s15_s11, 128, %s17_s13, [#allocation4]  }
   0x5   :  { %s26_s18 = sshll.u32 %s6772_s17, 4  ;;  %s6773_s19 = smov 64   ;;  %s27_s18 = int_to_ptr.vmem [resolvable:$true] %s26_s18 }
   0x6   :  { %s6774_s20 = smov 4  }
   0x7   :  { %32 = dma.hbm_to_vmem [thread:$0]  %s25_s16, 1024, %s27_s18, [#allocation6], %s6773_s19, %s6773_s19, %s6774_s20  }
   0x8   :  { %6767 = dma.done.wait [#allocation4], 128  }
   0x9   :  { %6768 = vsyncadd [#allocation4], 4294967168 }
   0xa   :  { %6769 = dma.done.wait [#allocation6], 1024  }
   0xb   :  { %6770 = vsyncadd [#allocation6], 4294966272  ;;  %v43_v0 = vlaneseq  ;;  %v6803_v2 = vld [vmem:[#allocation3] sm:$0xff]  ;;  %v12707_v21 = vmov 0.0  }
   0xc   :  { %v6806_v3 = vperm.slane %v6803_v2, 1  ;;  %v6809_v4 = vperm.slane %v6803_v2, 0  ;;  %v6813_v5 = vperm.slane %v6803_v2, 2  ;;  %v6819_v7 = vperm.slane %v6803_v2, 4 }
   0xd   :  { %v6798_v1 = vshrl.u32 %v43_v0, 7  ;;  %v6825_v8 = vperm.slane %v6803_v2, 3  ;;  %v6831_v9 = vperm.slane %v6803_v2, 6  ;;  %v6837_v10 = vperm.slane %v6803_v2, 5 }
   0xe   :  { %v6845_v11 = vperm.slane %v6803_v2, 7  ;;  %v147_v13 = vrot.slane %v6803_v2, 1  ;;  %v148_v15 = vrot.slane %v6803_v2, 2  ;;  %v150_v19 = vrot.slane %v6803_v2, 4 }
   0xf   :  { %6120 = vset.pattern.permute.xlu1 %v6798_v1  ;;  %6121 = vset.pattern.permute.xlu2 %v6798_v1  ;;  %v51_v6 = vadd.s32 8, %v6798_v1  ;;  %v151_v28 = vrot.slane %v6803_v2, 5  ;;  %v149_v30 = vrot.slane %v6803_v2, 3  ;;  %v152_v38 = vrot.slane %v6803_v2, 6 }
  0x10   :  { %6119 = vset.pattern.permute.xlu0 %v6798_v1  ;;  %v6850_v14 = vperm.slane %v147_v13, 0  ;;  %v6857_v20 = vperm.slane %v148_v15, 0  ;;  %v6862_v24 = vperm.slane %v150_v19, 0  ;;  %v748_v46 = vadd.s32 16, %v6798_v1 }
  0x11   :  { %v6870_v31 = vperm.slane %v151_v28, 0  ;;  %v6872_v33 = vperm.slane %v149_v30, 0  ;;  %v6879_v39 = vperm.slane %v152_v38, 0  ;;  %v153_v47 = vrot.slane %v6803_v2, 7 }
  0x12   :  { %v6896_v53 = vadd.s32 24, %v6798_v1 }
  0x13   :  { %12731 = vst [vmem:[#allocation9_spill] sm:$0xff] %v6870_v31  ;;  %v6889_v49 = vperm.slane %v153_v47, 0 }
  0x14   :  { %12732 = vst [vmem:[#allocation10_spill] sm:$0xff] %v6879_v39 }
  0x15   :  { %12733 = vst [vmem:[#allocation11_spill] sm:$0xff] %v6889_v49 }
  0x17   :  { %60 = vperm.xlu1 %6120, %v6806_v3   ;;  %73 = vperm.xlu2 %6121, %v6813_v5  }
  0x18   :  { %47 = vperm.xlu0 %6119, %v6809_v4  }
  0x1f   :  { %6122 = vset.pattern.permute.xlu1 %v51_v6  ;;  %6124 = vset.pattern.permute.xlu2 %v51_v6 }
  0x20   :  { %99 = vperm.xlu0 %6119, %v6819_v7  }
  0x27   :  { %66 = vperm.xlu1 %6122, %v6806_v3   ;;  %79 = vperm.xlu2 %6124, %v6813_v5  }
  0x28   :  { %6125 = vset.pattern.permute.xlu0 %v51_v6 }
  0x2f   :  { %6123 = vset.pattern.permute.xlu1 %v6798_v1  ;;  %92 = vperm.xlu2 %6124, %v6825_v8  }
  0x30   :  { %53 = vperm.xlu0 %6125, %v6809_v4  }
  0x37   :  { %86 = vperm.xlu1 %6123, %v6825_v8   ;;  %6127 = vset.pattern.permute.xlu2 %v6798_v1 }
  0x38   :  { %131 = vperm.xlu0 %6125, %v6831_v9  }
  0x3f   :  { %6126 = vset.pattern.permute.xlu1 %v51_v6  ;;  %112 = vperm.xlu2 %6127, %v6837_v10  }
  0x40   :  { %6134 = vset.pattern.permute.xlu0 %v6896_v53 }
  0x47   :  { %105 = vperm.xlu1 %6126, %v6819_v7   ;;  %125 = vperm.xlu2 %6127, %v6831_v9  }
  0x4f   :  { %118 = vperm.xlu1 %6126, %v6837_v10   ;;  %6129 = vset.pattern.permute.xlu2 %v51_v6 }
  0x57   :  { %6128 = vset.pattern.permute.xlu1 %v6798_v1  ;;  %144 = vperm.xlu2 %6129, %v6845_v11  }
  0x5f   :  { %138 = vperm.xlu1 %6128, %v6845_v11   ;;  %6131 = vset.pattern.permute.xlu2 %v6896_v53 }
  0x67   :  { %6130 = vset.pattern.permute.xlu1 %v748_v46 }
  0x71   :  { %v74_v12 = vpop.permute.xlu2 %73 }
  0x72   :  { %vm174_vm2 = vcmp.gt.f32.partialorder %v74_v12, %v6857_v20 }
  0x73   :  { %v5566_v26 = vsel %vm174_vm2, 1.0, %v12707_v21 }
  0x81   :  { %v6853_v16 = vpop.permute.xlu2 %79 }
  0x82   :  { %vm175_vm14 = vcmp.gt.f32.partialorder %v6853_v16, %v6857_v20 }
  0x83   :  { %v5567_v59 = vsel %vm175_vm14, 1.0, %v12707_v21 }
  0x89   :  { %v61_v17 = vpop.permute.xlu1 %60  ;;  %v93_v25 = vpop.permute.xlu2 %92 }
  0x8a   :  { %v48_v18 = vpop.permute.xlu0 %47  ;;  %vm172_vm0 = vcmp.gt.f32.partialorder %v61_v17, %v6850_v14  ;;  %vm177_vm5 = vcmp.gt.f32.partialorder %v93_v25, %v6872_v33 }
  0x8b   :  { %v5564_v22 = vsel %vm172_vm0, 1.0, %v12707_v21  ;;  %vm170_vm1 = vcmp.gt.f32.partialorder %v48_v18, %v6809_v4  ;;  %v5569_v37 = vsel %vm177_vm5, 1.0, %v12707_v21 }
  0x8c   :  { %222 = vadd.xlane.f32.xlu0 %v5564_v22  ;;  %v5562_v23 = vsel %vm170_vm1, 1.0, %v12707_v21 }
  0x8d   :  { %218 = vadd.xlane.f32.xlu1 %v5562_v23 }
  0x92   :  { %v100_v27 = vpop.permute.xlu0 %99 }
  0x93   :  { %vm178_vm3 = vcmp.gt.f32.partialorder %v100_v27, %v6862_v24 }
  0x94   :  { %v5570_v29 = vsel %vm178_vm3, 1.0, %v12707_v21 }
  0x95   :  { %226 = vadd.xlane.f32.xlu1 %v5566_v26  ;;  %234 = vadd.xlane.f32.xlu2 %v5570_v29 }
  0x99   :  { %v113_v32 = vpop.permute.xlu2 %112  ;;  %v67_v35 = vpop.permute.xlu1 %66 }
  0x9a   :  { %vm180_vm4 = vcmp.gt.f32.partialorder %v113_v32, %v6870_v31  ;;  %vm173_vm13 = vcmp.gt.f32.partialorder %v67_v35, %v6850_v14 }
  0x9b   :  { %v5572_v34 = vsel %vm180_vm4, 1.0, %v12707_v21  ;;  %v5565_v58 = vsel %vm173_vm13, 1.0, %v12707_v21 }
  0x9d   :  { %238 = vadd.xlane.f32.xlu1 %v5572_v34 }
  0xa1   :  { %v126_v43 = vpop.permute.xlu2 %125 }
  0xa2   :  { %v54_v36 = vpop.permute.xlu0 %53  ;;  %vm182_vm8 = vcmp.gt.f32.partialorder %v126_v43, %v6879_v39 }
  0xa3   :  { %v5574_v45 = vsel %vm182_vm8, 1.0, %v12707_v21  ;;  %vm171_vm12 = vcmp.gt.f32.partialorder %v54_v36, %v6809_v4 }
  0xa4   :  { %v5563_v57 = vsel %vm171_vm12, 1.0, %v12707_v21 }
  0xa5   :  { %232 = vadd.xlane.f32.xlu1 %v5569_v37 }
  0xa9   :  { %v87_v40 = vpop.permute.xlu1 %86 }
  0xaa   :  { %vm176_vm6 = vcmp.gt.f32.partialorder %v87_v40, %v6872_v33  ;;  %v132_v41 = vpop.permute.xlu0 %131 }
  0xab   :  { %v5568_v42 = vsel %vm176_vm6, 1.0, %v12707_v21  ;;  %vm183_vm7 = vcmp.gt.f32.partialorder %v132_v41, %v6879_v39 }
  0xac   :  { %230 = vadd.xlane.f32.xlu0 %v5568_v42  ;;  %v5575_v44 = vsel %vm183_vm7, 1.0, %v12707_v21 }
  0xad   :  { %244 = vadd.xlane.f32.xlu1 %v5575_v44 }
  0xb1   :  { %v145_v51 = vpop.permute.xlu2 %144 }
  0xb2   :  { %vm185_vm10 = vcmp.gt.f32.partialorder %v145_v51, %v6889_v49 }
  0xb3   :  { %v5577_v52 = vsel %vm185_vm10, 1.0, %v12707_v21 }
  0xb4   :  { %242 = vadd.xlane.f32.xlu0 %v5574_v45 }
  0xb9   :  { %v106_v48 = vpop.permute.xlu1 %105 }
  0xba   :  { %vm179_vm9 = vcmp.gt.f32.partialorder %v106_v48, %v6862_v24 }
  0xbb   :  { %v5571_v50 = vsel %vm179_vm9, 1.0, %v12707_v21 }
  0xbc   :  { %236 = vadd.xlane.f32.xlu0 %v5571_v50 }
  0xc1   :  { %v119_v54 = vpop.permute.xlu1 %118 }
  0xc2   :  { %vm181_vm15 = vcmp.gt.f32.partialorder %v119_v54, %v6870_v31 }
  0xc3   :  { %v5573_v60 = vsel %vm181_vm15, 1.0, %v12707_v21 }
  0xc4   :  { %248 = vadd.xlane.f32.xlu0 %v5577_v52 }
  0xc6   :  { %750 = vperm.xlu1 %6130, %v6809_v4  }
  0xce   :  { %6132 = vset.pattern.permute.xlu1 %v6896_v53 }
  0xd1   :  { %v139_v55 = vpop.permute.xlu1 %138 }
  0xd2   :  { %vm184_vm11 = vcmp.gt.f32.partialorder %v139_v55, %v6889_v49 }
  0xd3   :  { %v5576_v56 = vsel %vm184_vm11, 1.0, %v12707_v21 }
  0xd4   :  { %246 = vadd.xlane.f32.xlu2 %v5576_v56  ;;  %v6970_v56 = vand.u32 127, %v43_v0 }
  0xd6   :  { %769 = vperm.xlu1 %6132, %v6806_v3   ;;  %12734 = vst [vmem:[#allocation12_spill] sm:$0xff] %v6970_v56 }
  0xd8   :  { %808 = vperm.xlu0 %6134, %v6819_v7  }
  0xdc   :  { %220 = vadd.xlane.f32.xlu2 %v5563_v57 }
  0xde   :  { %782 = vperm.xlu1 %6132, %v6813_v5  }
  0xe0   :  { %6135 = vset.pattern.permute.xlu0 %v748_v46 }
  0xe4   :  { %224 = vadd.xlane.f32.xlu2 %v5565_v58 }
  0xe6   :  { %795 = vperm.xlu1 %6132, %v6825_v8  }
  0xe8   :  { %763 = vperm.xlu0 %6135, %v6806_v3  }
  0xec   :  { %228 = vadd.xlane.f32.xlu2 %v5567_v59 }
  0xee   :  { %6136 = vset.pattern.permute.xlu1 %v748_v46 }
  0xf0   :  { %841 = vperm.xlu0 %6135, %v6845_v11  }
  0xf4   :  { %240 = vadd.xlane.f32.xlu2 %v5573_v60 }
  0xf6   :  { %815 = vperm.xlu1 %6136, %v6837_v10  }
  0xfe   :  { %828 = vperm.xlu1 %6136, %v6831_v9  }
  0xff   :  { %v223_v62 = vpop.xlane.xlu0 %222 }
 0x100   :  { %v219_v61 = vpop.xlane.xlu1 %218  ;;  %v6922_v63 = vadd.f32 1.0, %v223_v62 }
 0x101   :  { %v6926_v6 = vadd.f32 1.0, %v219_v61 }
 0x102   :  { %v5580_v3 = vadd.f32 -118.0, %v6922_v63  ;;  %vm649_vm0 = vcmp.gt.f32.partialorder %v6922_v63, 118.0  ;;  %v6992_v63 = vadd.s32 4294967288, %v6970_v56 }
 0x103   :  { %v5578_v13 = vadd.f32 -118.0, %v6926_v6  ;;  %vm647_vm1 = vcmp.gt.f32.partialorder %v6926_v6, 118.0  ;;  %v6986_v61 = vsel %vm649_vm0, 1.0, %v12707_v21 }
 0x104   :  { %v5596_v12 = vmul.f32 -1.442695, %v5580_v3  ;;  %v6989_v62 = vsel %vm647_vm1, 1.0, %v12707_v21  ;;  %vm607_vm1 = vcmask 130112  }
 0x105   :  { %v5594_v18 = vmul.f32 -1.442695, %v5578_v13 }
 0x106   :  { %6138 = vset.pattern.permute.xlu1 %v6896_v53  ;;  %6203 = vpow2.f32 %v5596_v12 }
 0x107   :  { %6205 = vpow2.f32 %v5594_v18 }
 0x108   :  { %v227_v2 = vpop.xlane.xlu1 %226  ;;  %v235_v17 = vpop.xlane.xlu2 %234 }
 0x109   :  { %v6930_v15 = vadd.f32 1.0, %v227_v2  ;;  %v6933_v22 = vadd.f32 1.0, %v235_v17 }
 0x10b   :  { %v5582_v19 = vadd.f32 -118.0, %v6930_v15  ;;  %vm651_vm2 = vcmp.gt.f32.partialorder %v6930_v15, 118.0  ;;  %vm655_vm10 = vcmp.gt.f32.partialorder %v6933_v22, 118.0 }
 0x10c   :  { %756 = vperm.xlu2 %6131, %v6809_v4   ;;  %v6204_v25 = vpop.eup %6203  ;;  %v6997_v12 = vsel %vm651_vm2, 1.0, %v12707_v21 }
 0x10d   :  { %v5598_v26 = vmul.f32 -1.442695, %v5582_v19  ;;  %v6939_v27 = vadd.f32 1.0, %v6204_v25  ;;  %v6206_v32 = vpop.eup %6205  ;;  %v714_v19 = vperm.slane %v6986_v61, %v6970_v56  ;;  %v711_v25 = vperm.slane %v6989_v62, %v6970_v56 }
 0x10e   :  { %847 = vperm.xlu1 %6138, %v6845_v11   ;;  %v5586_v11 = vadd.f32 -118.0, %v6933_v22  ;;  %v6945_v36 = vadd.f32 1.0, %v6206_v32 }
 0x10f   :  { %6207 = vpow2.f32 %v5598_v26  ;;  %v385_v3 = vand.u32 2147483647, %v6939_v27  ;;  %v387_v6 = vand.u32 2147483648, %v6939_v27  ;;  %vm381_vm4 = vweird.f32 %v6939_v27 }
 0x110   :  { %v239_v16 = vpop.xlane.xlu1 %238  ;;  %v5602_v30 = vmul.f32 -1.442695, %v5586_v11  ;;  %6209 = vrcp.f32 %v6939_v27  ;;  %v717_v11 = vperm.slane %v6997_v12, %v6970_v56  ;;  %vm351_vm6 = vweird.f32 %v6945_v36 }
 0x111   :  { %v6935_v23 = vadd.f32 1.0, %v239_v16  ;;  %vm7019_vm5 = vcmp.eq.f32.partialorder %v385_v3, 8.507059e+37  ;;  %v357_v32 = vand.u32 2147483648, %v6945_v36 }
 0x112   :  { %6211 = vpow2.f32 %v5602_v30 }
 0x113   :  { %v5588_v28 = vadd.f32 -118.0, %v6935_v23  ;;  %vm657_vm9 = vcmp.gt.f32.partialorder %v6935_v23, 118.0 }
 0x114   :  { %6133 = vset.pattern.permute.xlu2 %v748_v46 }
 0x115   :  { %v5604_v34 = vmul.f32 -1.442695, %v5588_v28 }
 0x117   :  { %6213 = vpow2.f32 %v5604_v34 }
 0x118   :  { %v233_v29 = vpop.xlane.xlu1 %232  ;;  %6215 = vrcp.f32 %v6945_v36 }
 0x119   :  { %v6943_v35 = vadd.f32 1.0, %v233_v29 }
 0x11b   :  { %v5585_v38 = vadd.f32 -118.0, %v6943_v35  ;;  %vm654_vm14 = vcmp.gt.f32.partialorder %v6943_v35, 118.0 }
 0x11c   :  { %776 = vperm.xlu2 %6133, %v6813_v5   ;;  %v6208_v5 = vpop.eup %6207 }
 0x11d   :  { %v6949_v40 = vpop.eup %6209  ;;  %v6952_v41 = vadd.f32 1.0, %v6208_v5  ;;  %v5601_v45 = vmul.f32 -1.442695, %v5585_v38  ;;  %v388_v5 = vor.u32 1.1754944e-38, %v387_v6 }
 0x11e   :  { %v6212_v43 = vpop.eup %6211  ;;  %v377_v44 = vmul.f32 %v6949_v40, %v6939_v27  ;;  %vm382_vm3 = vweird.f32 %v6949_v40 }
 0x11f   :  { %v231_v37 = vpop.xlane.xlu0 %230  ;;  %v6214_v47 = vpop.eup %6213  ;;  %6217 = vrcp.f32 %v6952_v41  ;;  %v6961_v48 = vadd.f32 1.0, %v6212_v43  ;;  %vm7025_vm7 = vmor %vm381_vm4, %vm382_vm3  ;;  %v415_v23 = vand.u32 2147483647, %v6952_v41  ;;  %v417_v22 = vand.u32 2147483648, %v6952_v41 }
 0x120   :  { %v6954_v42 = vadd.f32 1.0, %v231_v37  ;;  %v245_v46 = vpop.xlane.xlu1 %244  ;;  %v6965_v51 = vpop.eup %6215  ;;  %v378_v52 = vsub.f32 1.0, %v377_v44  ;;  %v6967_v54 = vadd.f32 1.0, %v6214_v47  ;;  %6219 = vpow2.f32 %v5601_v45 }
 0x121   :  { %v6963_v50 = vadd.f32 1.0, %v245_v46  ;;  %v347_v57 = vmul.f32 %v6965_v51, %v6945_v36  ;;  %6221 = vrcp.f32 %v6961_v48  ;;  %vm352_vm8 = vweird.f32 %v6965_v51 }
 0x122   :  { %v379_v0 = vmul.f32 %v6949_v40, %v378_v52  ;;  %6223 = vrcp.f32 %v6967_v54  ;;  %v358_v52 = vor.u32 1.1754944e-38, %v357_v32  ;;  %vm7066_vm12 = vmor %vm351_vm6, %vm352_vm8  ;;  %vm411_vm13 = vweird.f32 %v6952_v41 }
 0x123   :  { %v5591_v59 = vadd.f32 -118.0, %v6963_v50  ;;  %v348_v15 = vsub.f32 1.0, %v347_v57  ;;  %vm7076_vm0 = vcmp.eq.f32.partialorder %v415_v23, 8.507059e+37  ;;  %v5617_v32 = vsel %vm654_vm14, 1.0, %v12707_v21 }
 0x124   :  { %789 = vperm.xlu2 %6133, %v6825_v8   ;;  %v5584_v8 = vadd.f32 -118.0, %v6954_v42  ;;  %v380_v18 = vadd.f32 %v6949_v40, %v379_v0  ;;  %vm653_vm2 = vcmp.gt.f32.partialorder %v6954_v42, 118.0  ;;  %vm501_vm4 = vweird.f32 %v6967_v54 }
 0x125   :  { %v6981_v60 = vpop.eup %6217  ;;  %v5607_v17 = vmul.f32 -1.442695, %v5591_v59  ;;  %v349_v38 = vmul.f32 %v6965_v51, %v348_v15  ;;  %v7056_v59 = vsel %vm655_vm10, 1.0, %v12707_v21 }
 0x126   :  { %v5600_v58 = vmul.f32 -1.442695, %v5584_v8  ;;  %v6220_v2 = vpop.eup %6219  ;;  %v407_v16 = vmul.f32 %v6981_v60, %v6952_v41  ;;  %v384_v44 = vsel %vm7025_vm7, %v6949_v40, %v380_v18  ;;  %vm412_vm15 = vweird.f32 %v6981_v60 }
 0x127   :  { %v243_v55 = vpop.xlane.xlu0 %242  ;;  %v7009_v26 = vpop.eup %6221  ;;  %v7015_v28 = vadd.f32 1.0, %v6220_v2  ;;  %v7060_v0 = vsel %vm7019_vm5, %v388_v5, %v384_v44  ;;  %v723_v35 = vperm.slane %v7056_v59, %v6970_v56  ;;  %vm7098_vm3 = vmor %vm411_vm13, %vm412_vm15  ;;  %v505_v5 = vand.u32 2147483647, %v6967_v54 }
 0x128   :  { %6225 = vpow2.f32 %v5600_v58  ;;  %v7017_v29 = vpop.eup %6223  ;;  %v408_v43 = vsub.f32 1.0, %v407_v16  ;;  %v467_v8 = vmul.f32 %v7009_v26, %v6961_v48  ;;  %v7053_v58 = vsel %vm657_vm9, 1.0, %v12707_v21 }
 0x129   :  { %6227 = vpow2.f32 %v5607_v17  ;;  %v497_v47 = vmul.f32 %v7017_v29, %v6967_v54  ;;  %v726_v17 = vperm.slane %v7053_v58, %v6970_v56  ;;  %v507_v44 = vand.u32 2147483648, %v6967_v54 }
 0x12a   :  { %6229 = vrcp.f32 %v7015_v28  ;;  %v409_v57 = vmul.f32 %v6981_v60, %v408_v43  ;;  %v5616_v41 = vsel %vm653_vm2, 1.0, %v12707_v21  ;;  %vm471_vm5 = vweird.f32 %v6961_v48 }
 0x12b   :  { %v498_v6 = vsub.f32 1.0, %v497_v47  ;;  %vm472_vm6 = vweird.f32 %v7009_v26  ;;  %vm502_vm7 = vweird.f32 %v7017_v29  ;;  %vm7150_vm10 = vcmp.eq.f32.partialorder %v505_v5, 8.507059e+37 }
 0x12c   :  { %802 = vperm.xlu2 %6133, %v6819_v7   ;;  %v6975_v7 = vadd.f32 1.0, %v243_v55  ;;  %v350_v55 = vadd.f32 %v6965_v51, %v349_v38  ;;  %v410_v30 = vadd.f32 %v6981_v60, %v409_v57  ;;  %vm7131_vm8 = vmor %vm471_vm5, %vm472_vm6  ;;  %v460_v16 = vand.u32 2147483647, %v7015_v28 }
 0x12d   :  { %v499_v42 = vmul.f32 %v7017_v29, %v498_v6  ;;  %vm7146_vm9 = vmor %vm501_vm4, %vm502_vm7  ;;  %v462_v54 = vand.u32 2147483648, %v7015_v28  ;;  %vm456_vm14 = vweird.f32 %v7015_v28 }
 0x12e   :  { %v5590_v13 = vadd.f32 -118.0, %v6975_v7  ;;  %v6226_v45 = vpop.eup %6225  ;;  %vm7181_vm15 = vcmp.eq.f32.partialorder %v460_v16, 8.507059e+37 }
 0x12f   :  { %v237_v37 = vpop.xlane.xlu0 %236  ;;  %v7072_v2 = vadd.f32 1.0, %v6226_v45  ;;  %v6228_v3 = vpop.eup %6227  ;;  %v414_v45 = vsel %vm7098_vm3, %v6981_v60, %v410_v30  ;;  %v500_v60 = vadd.f32 %v7017_v29, %v499_v42 }
 0x130   :  { %v5606_v34 = vmul.f32 -1.442695, %v5590_v13  ;;  %v7045_v40 = vadd.f32 1.0, %v237_v37  ;;  %v468_v13 = vsub.f32 1.0, %v467_v8  ;;  %v7084_v18 = vpop.eup %6229 }
 0x131   :  { %v452_v47 = vmul.f32 %v7084_v18, %v7015_v28  ;;  %vm441_vm4 = vweird.f32 %v7072_v2 }
 0x132   :  { %6231 = vpow2.f32 %v5606_v34  ;;  %v5587_v15 = vadd.f32 -118.0, %v7045_v40  ;;  %v469_v38 = vmul.f32 %v7009_v26, %v468_v13  ;;  %vm656_vm2 = vcmp.gt.f32.partialorder %v7045_v40, 118.0 }
 0x133   :  { %6233 = vrcp.f32 %v7072_v2  ;;  %v453_v30 = vsub.f32 1.0, %v452_v47 }
 0x134   :  { %6137 = vset.pattern.permute.xlu2 %v6896_v53  ;;  %v355_v53 = vand.u32 2147483647, %v6945_v36  ;;  %v418_v36 = vor.u32 1.1754944e-38, %v417_v22  ;;  %v5603_v43 = vmul.f32 -1.442695, %v5587_v15  ;;  %v721_v22 = vperm.slane %v5617_v32, %v6992_v63 }
 0x135   :  { %v470_v57 = vadd.f32 %v7009_v26, %v469_v38 }
 0x136   :  { %vm7036_vm11 = vcmp.eq.f32.partialorder %v355_v53, 8.507059e+37  ;;  %v354_v53 = vsel %vm7066_vm12, %v6965_v51, %v350_v55  ;;  %v7104_v51 = vadd.f32 1.0, %v6228_v3  ;;  %v477_v55 = vand.u32 2147483648, %v6961_v48 }
 0x137   :  { %v7124_v23 = vsel %vm7036_vm11, %v358_v52, %v354_v53  ;;  %v475_v3 = vand.u32 2147483647, %v6961_v48  ;;  %v7140_v6 = vsel %vm7076_vm0, %v418_v36, %v414_v45  ;;  %v508_v48 = vor.u32 1.1754944e-38, %v507_v44 }
 0x138   :  { %v6232_v34 = vpop.eup %6231  ;;  %6235 = vrcp.f32 %v7104_v51  ;;  %v720_v53 = vperm.slane %v5616_v41, %v6970_v56  ;;  %v478_v32 = vor.u32 1.1754944e-38, %v477_v55  ;;  %vm659_vm11 = vcmp.gt.f32.partialorder %v6975_v7, 118.0 }
 0x139   :  { %v7120_v8 = vadd.f32 1.0, %v6232_v34  ;;  %6237 = vpow2.f32 %v5603_v43  ;;  %v7136_v52 = vpop.eup %6233  ;;  %vm660_vm12 = vcmp.gt.f32.partialorder %v6963_v50, 118.0  ;;  %v504_v34 = vsel %vm7146_vm9, %v7017_v29, %v500_v60 }
 0x13a   :  { %v437_v27 = vmul.f32 %v7136_v52, %v7072_v2  ;;  %v474_v42 = vsel %vm7131_vm8, %v7009_v26, %v470_v57  ;;  %vm476_vm13 = vcmp.eq.f32.partialorder %v475_v3, 8.507059e+37  ;;  %v7178_v7 = vsel %vm607_vm1, %v721_v22, %v720_v53 }
 0x13b   :  { %6239 = vrcp.f32 %v7120_v8  ;;  %v454_v43 = vmul.f32 %v7084_v18, %v453_v30  ;;  %v5622_v26 = vsel %vm659_vm11, 1.0, %v12707_v21  ;;  %v5623_v41 = vsel %vm660_vm12, 1.0, %v12707_v21 }
 0x13c   :  { %821 = vperm.xlu2 %6137, %v6837_v10   ;;  %v7190_v47 = vsel %vm7150_vm10, %v508_v48, %v504_v34  ;;  %v463_v55 = vor.u32 1.1754944e-38, %v462_v54  ;;  %v447_v22 = vand.u32 2147483648, %v7072_v2  ;;  %vm457_vm0 = vweird.f32 %v7084_v18 }
 0x13d   :  { %v438_v57 = vsub.f32 1.0, %v437_v27  ;;  %v729_v13 = vperm.slane %v5622_v26, %v6970_v56  ;;  %v730_v48 = vperm.slane %v5623_v41, %v6992_v63  ;;  %v455_v16 = vadd.f32 %v7084_v18, %v454_v43  ;;  %vm7215_vm3 = vmor %vm456_vm14, %vm457_vm0 }
 0x13e   :  { %v7170_v5 = vpop.eup %6235  ;;  %v445_v54 = vand.u32 2147483647, %v7072_v2  ;;  %v448_v41 = vor.u32 1.1754944e-38, %v447_v22  ;;  %vm442_vm6 = vweird.f32 %v7136_v52  ;;  %vm546_vm7 = vweird.f32 %v7104_v51 }
 0x13f   :  { %v6238_v29 = vpop.eup %6237  ;;  %v542_v10 = vmul.f32 %v7170_v5, %v7104_v51  ;;  %v439_v26 = vmul.f32 %v7136_v52, %v438_v57  ;;  %v459_v27 = vsel %vm7215_vm3, %v7084_v18, %v455_v16  ;;  %v537_v34 = vand.u32 2147483648, %v7120_v8  ;;  %vm7270_vm10 = vmor %vm441_vm4, %vm442_vm6 }
 0x140   :  { %v7202_v15 = vadd.f32 1.0, %v6238_v29  ;;  %v5619_v29 = vsel %vm656_vm2, 1.0, %v12707_v21  ;;  %vm7236_vm5 = vcmp.eq.f32.partialorder %v445_v54, 8.507059e+37  ;;  %v7248_v54 = vpop.permute.xlu1 %750  ;;  %vm531_vm8 = vweird.f32 %v7120_v8 }
 0x141   :  { %v7195_v60 = vpop.eup %6239  ;;  %v543_v28 = vsub.f32 1.0, %v542_v10  ;;  %v724_v57 = vperm.slane %v5619_v29, %v6992_v63  ;;  %v550_v10 = vand.u32 2147483647, %v7104_v51  ;;  %vm547_vm9 = vweird.f32 %v7170_v5 }
 0x142   :  { %6241 = vrcp.f32 %v7202_v15  ;;  %vm532_vm2 = vweird.f32 %v7195_v60 }
 0x143   :  { %v544_v18 = vmul.f32 %v7170_v5, %v543_v28  ;;  %vm7275_vm11 = vcmp.eq.f32.partialorder %v550_v10, 8.507059e+37 }
 0x144   :  { %834 = vperm.xlu2 %6137, %v6831_v9   ;;  %v249_v9 = vpop.xlane.xlu0 %248 }
 0x145   :  { %v7157_v36 = vadd.f32 1.0, %v249_v9  ;;  %v7193_v9 = vsel %vm476_vm13, %v478_v32, %v474_v42  ;;  %v527_v42 = vmul.f32 %v7195_v60, %v7120_v8 }
 0x147   :  { %v247_v46 = vpop.xlane.xlu2 %246  ;;  %v5593_v45 = vadd.f32 -118.0, %v7157_v36  ;;  %v528_v22 = vsub.f32 1.0, %v527_v42  ;;  %v552_v42 = vand.u32 2147483648, %v7104_v51  ;;  %vm662_vm12 = vcmp.gt.f32.partialorder %v7157_v36, 118.0 }
 0x148   :  { %v7211_v32 = vadd.f32 1.0, %v247_v46  ;;  %v7264_v28 = vpop.eup %6241 }
 0x149   :  { %v5609_v40 = vmul.f32 -1.442695, %v5593_v45  ;;  %v7231_v45 = vsel %vm607_vm1, %v730_v48, %v729_v13  ;;  %v440_v13 = vadd.f32 %v7136_v52, %v439_v26  ;;  %v535_v48 = vand.u32 2147483647, %v7120_v8 }
 0x14a   :  { %v5592_v46 = vadd.f32 -118.0, %v7211_v32  ;;  %v553_v44 = vor.u32 1.1754944e-38, %v552_v42  ;;  %v482_v42 = vmul.f32 %v7264_v28, %v7202_v15  ;;  %vm661_vm4 = vcmp.gt.f32.partialorder %v7211_v32, 118.0 }
 0x14b   :  { %6243 = vpow2.f32 %v5609_v40  ;;  %v7252_v40 = vsel %vm7181_vm15, %v463_v55, %v459_v27  ;;  %v529_v55 = vmul.f32 %v7195_v60, %v528_v22  ;;  %v444_v2 = vsel %vm7270_vm10, %v7136_v52, %v440_v13  ;;  %vm7295_vm15 = vmor %vm546_vm7, %vm547_vm9 }
 0x14c   :  { %v7207_v30 = vpop.permute.xlu0 %808  ;;  %v5608_v26 = vmul.f32 -1.442695, %v5592_v46  ;;  %vm7287_vm14 = vcmp.eq.f32.partialorder %v535_v48, 8.507059e+37  ;;  %v7303_v48 = vsel %vm662_vm12, 1.0, %v12707_v21  ;;  %v449_v51 = vsel %vm7236_vm5, %v448_v41, %v444_v2  ;;  %vm7325_vm5 = vmor %vm531_vm8, %vm532_vm2 }
 0x14d   :  { %v733_v32 = vperm.slane %v7303_v48, %v6992_v63  ;;  %vm12704_vm7 = vcmask 1041409   ;;  %vm487_vm8 = vweird.f32 %v7264_v28  ;;  %vm12727_vm9 = vcmask 1042434  }
 0x14e   :  { %vm486_vm10 = vweird.f32 %v7202_v15  ;;  %vm12725_vm12 = vcmask 1043459  }
 0x14f   :  { %v221_v3 = vpop.xlane.xlu2 %220 }
 0x150   :  { %v7205_v53 = vadd.f32 1.0, %v221_v3 }
 0x151   :  { %v6244_v46 = vpop.eup %6243 }
 0x152   :  { %v5579_v43 = vadd.f32 -118.0, %v7205_v53  ;;  %vm648_vm3 = vcmp.gt.f32.partialorder %v7205_v53, 118.0  ;;  %v492_v53 = vand.u32 2147483648, %v7202_v15 }
 0x153   :  { %v5611_v2 = vsel %vm648_vm3, 1.0, %v12707_v21  ;;  %vm12699_vm3 = vcmask 1047559  }
 0x154   :  { %v5595_v3 = vmul.f32 -1.442695, %v5579_v43  ;;  %v7261_v43 = vsel %vm607_vm1, %v724_v57, %v723_v35  ;;  %v545_v57 = vadd.f32 %v7170_v5, %v544_v18 }
 0x156   :  { %6245 = vpow2.f32 %v5595_v3  ;;  %v616_v3 = vperm.slane %v7252_v40, %v6992_v63  ;;  %v549_v36 = vsel %vm7295_vm15, %v7170_v5, %v545_v57  ;;  %v490_v5 = vand.u32 2147483647, %v7202_v15 }
 0x157   :  { %v225_v16 = vpop.xlane.xlu2 %224  ;;  %6247 = vpow2.f32 %v5608_v26  ;;  %v7316_v26 = vadd.f32 1.0, %v6244_v46  ;;  %v7337_v46 = vsel %vm7275_vm11, %v553_v44, %v549_v36  ;;  %v483_v44 = vsub.f32 1.0, %v482_v42 }
 0x158   :  { %v253_v29 = vadd.f32 1.0, %v225_v16  ;;  %v538_v16 = vor.u32 1.1754944e-38, %v537_v34  ;;  %v530_v34 = vadd.f32 %v7195_v60, %v529_v55  ;;  %v615_v55 = vperm.slane %v449_v51, %v6970_v56 }
 0x159   :  { %vm849_vm11 = vcmp.gt.f32.partialorder %v7248_v54, %v6809_v4  ;;  %v582_v12 = vand.u32 2147483648, %v7316_v26  ;;  %vm12701_vm15 = vcmask 1045509  }
 0x15a   :  { %v5581_v35 = vadd.f32 -118.0, %v253_v29  ;;  %v764_v27 = vpop.permute.xlu0 %763  ;;  %vm650_vm0 = vcmp.gt.f32.partialorder %v253_v29, 118.0  ;;  %v534_v59 = vsel %vm7325_vm5, %v7195_v60, %v530_v34  ;;  %v7349_v36 = vsel %vm607_vm1, %v616_v3, %v615_v55  ;;  %vm7432_vm5 = vmor %vm486_vm10, %vm487_vm8 }
 0x15b   :  { %vm851_vm13 = vcmp.gt.f32.partialorder %v764_v27, %v6850_v14  ;;  %v5613_v38 = vsel %vm650_vm0, 1.0, %v12707_v21  ;;  %v7333_v27 = vpop.permute.xlu1 %769  ;;  %v7363_v60 = vsel %vm7287_vm14, %v538_v16, %v534_v59  ;;  %v625_v3 = vperm.slane %v7337_v46, %v6992_v63 }
 0x15c   :  { %v6246_v22 = vpop.eup %6245  ;;  %v5597_v52 = vmul.f32 -1.442695, %v5581_v35  ;;  %v5628_v13 = vsel %vm851_vm13, 1.0, %v12707_v21  ;;  %v715_v40 = vperm.slane %v5613_v38, %v6992_v63  ;;  %v484_v55 = vmul.f32 %v7264_v28, %v483_v44 }
 0x15d   :  { %v7305_v18 = vadd.f32 1.0, %v6246_v22  ;;  %901 = vadd.xlane.f32.xlu0 %v5628_v13  ;;  %v6248_v57 = vpop.eup %6247  ;;  %v5624_v22 = vsel %vm661_vm4, 1.0, %v12707_v21  ;;  %vm12703_vm14 = vcmask 1044484   ;;  %vm12700_vm0 = vcmask 1046534  }
 0x15e   :  { %6249 = vpow2.f32 %v5597_v52  ;;  %v7358_v37 = vadd.f32 1.0, %v6248_v57  ;;  %v732_v35 = vperm.slane %v5624_v22, %v6970_v56  ;;  %v716_v34 = vsel %vm607_vm1, %v715_v40, %v714_v19 }
 0x15f   :  { %v229_v29 = vpop.xlane.xlu2 %228  ;;  %6251 = vrcp.f32 %v7305_v18  ;;  %vm852_vm2 = vcmp.gt.f32.partialorder %v7333_v27, %v6850_v14  ;;  %vm7450_vm8 = vcmp.eq.f32.partialorder %v490_v5, 8.507059e+37  ;;  %vm576_vm10 = vweird.f32 %v7316_v26 }
 0x160   :  { %v255_v41 = vadd.f32 1.0, %v229_v29  ;;  %6253 = vrcp.f32 %v7316_v26  ;;  %v7351_v29 = vor.u32 1.1754944e-38, %v492_v53  ;;  %v580_v53 = vand.u32 2147483647, %v7316_v26 }
 0x162   :  { %v5583_v8 = vadd.f32 -118.0, %v255_v41  ;;  %vm652_vm6 = vcmp.gt.f32.partialorder %v255_v41, 118.0  ;;  %v712_v41 = vperm.slane %v5611_v2, %v6992_v63 }
 0x163   :  { %v5615_v52 = vsel %vm652_vm6, 1.0, %v12707_v21  ;;  %v7395_v62 = vpop.permute.xlu1 %782  ;;  %vm12698_vm6 = vcmask 130048  }
 0x164   :  { %v6250_v13 = vpop.eup %6249  ;;  %v5599_v48 = vmul.f32 -1.442695, %v5583_v8  ;;  %v718_v51 = vperm.slane %v5615_v52, %v6992_v63  ;;  %v713_v19 = vsel %vm607_vm1, %v712_v41, %v711_v25  ;;  %v5626_v52 = vsel %vm849_vm11, 1.0, %v12707_v21 }
 0x165   :  { %v7354_v50 = vadd.f32 1.0, %v6250_v13  ;;  %v7356_v38 = vpop.eup %6251  ;;  %v735_v8 = vsel %vm12704_vm7, %v716_v34, %v713_v19  ;;  %v7409_v41 = vor.u32 1.1754944e-38, %v582_v12 }
 0x166   :  { %6255 = vpow2.f32 %v5599_v48  ;;  %v719_v10 = vsel %vm607_vm1, %v718_v51, %v717_v11  ;;  %v7379_v16 = vpop.eup %6253  ;;  %v362_v61 = vmul.f32 %v7356_v38, %v7305_v18  ;;  %v734_v11 = vsel %vm607_vm1, %v733_v32, %v732_v35 }
 0x167   :  { %6257 = vrcp.f32 %v7354_v50  ;;  %v241_v42 = vpop.xlane.xlu2 %240  ;;  %v736_v57 = vsel %vm12727_vm9, %v719_v10, %v735_v8  ;;  %v572_v40 = vmul.f32 %v7379_v16, %v7316_v26  ;;  %v7407_v51 = vadd.f32 %v7264_v28, %v484_v55 }
 0x168   :  { %v261_v2 = vadd.f32 1.0, %v241_v42  ;;  %6259 = vrcp.f32 %v7358_v37  ;;  %v363_v32 = vsub.f32 1.0, %v362_v61  ;;  %v737_v34 = vsel %vm12725_vm12, %v7178_v7, %v736_v57 }
 0x169   :  { %v573_v55 = vsub.f32 1.0, %v572_v40  ;;  %v402_v5 = vand.u32 2147483648, %v7354_v50  ;;  %v567_v26 = vand.u32 2147483648, %v7358_v37 }
 0x16a   :  { %v5589_v22 = vadd.f32 -118.0, %v261_v2  ;;  %vm658_vm13 = vcmp.gt.f32.partialorder %v261_v2, 118.0  ;;  %v364_v19 = vmul.f32 %v7356_v38, %v363_v32  ;;  %v738_v2 = vsel %vm12703_vm14, %v7261_v43, %v737_v34 }
 0x16b   :  { %v5621_v54 = vsel %vm658_vm13, 1.0, %v12707_v21  ;;  %v489_v43 = vsel %vm7432_vm5, %v7264_v28, %v7407_v51  ;;  %v400_v28 = vand.u32 2147483647, %v7354_v50  ;;  %vm367_vm13 = vweird.f32 %v7356_v38  ;;  %v7464_v32 = vpop.permute.xlu1 %795 }
 0x16c   :  { %v6256_v25 = vpop.eup %6255  ;;  %v5605_v44 = vmul.f32 -1.442695, %v5589_v22  ;;  %v727_v48 = vperm.slane %v5621_v54, %v6992_v63  ;;  %v365_v15 = vadd.f32 %v7356_v38, %v364_v19  ;;  %vm854_vm5 = vcmp.gt.f32.partialorder %v7395_v62, %v6857_v20 }
 0x16d   :  { %v7401_v13 = vpop.eup %6257  ;;  %v7403_v59 = vadd.f32 1.0, %v6256_v25  ;;  %897 = vadd.xlane.f32.xlu2 %v5626_v52  ;;  %v574_v52 = vmul.f32 %v7379_v16, %v573_v55  ;;  %v370_v51 = vand.u32 2147483647, %v7305_v18 }
 0x16e   :  { %v392_v35 = vmul.f32 %v7401_v13, %v7354_v50  ;;  %v7418_v10 = vpop.eup %6259  ;;  %v728_v7 = vsel %vm607_vm1, %v727_v48, %v726_v17  ;;  %v5629_v17 = vsel %vm852_vm2, 1.0, %v12707_v21  ;;  %vm397_vm11 = vweird.f32 %v7401_v13 }
 0x16f   :  { %6261 = vrcp.f32 %v7403_v59  ;;  %v757_v42 = vpop.permute.xlu2 %756  ;;  %v739_v58 = vsel %vm12701_vm15, %v728_v7, %v738_v2  ;;  %v557_v8 = vmul.f32 %v7418_v10, %v7358_v37  ;;  %vm366_vm2 = vweird.f32 %v7305_v18 }
 0x170   :  { %v393_v61 = vsub.f32 1.0, %v392_v35  ;;  %6263 = vpow2.f32 %v5605_v44  ;;  %vm850_vm4 = vcmp.gt.f32.partialorder %v757_v42, %v6809_v4  ;;  %v740_v57 = vsel %vm12700_vm0, %v7231_v45, %v739_v58 }
 0x171   :  { %v5627_v22 = vsel %vm850_vm4, 1.0, %v12707_v21  ;;  %v741_v54 = vsel %vm12699_vm3, %v734_v11, %v740_v57  ;;  %vm396_vm4 = vweird.f32 %v7354_v50  ;;  %v558_v48 = vsub.f32 1.0, %v557_v8  ;;  %vm7483_vm3 = vmor %vm366_vm2, %vm367_vm13 }
 0x172   :  { %v394_v12 = vmul.f32 %v7401_v13, %v393_v61  ;;  %899 = vadd.xlane.f32.xlu1 %v5627_v22  ;;  %743 = vst.msk [vmem:[#allocation2 + $0x8] sm:$0xff] %vm12698_vm6, %v741_v54  ;;  %v372_v35 = vand.u32 2147483648, %v7305_v18  ;;  %vm7475_vm6 = vmor %vm396_vm4, %vm397_vm11  ;;  %vm401_vm0 = vcmp.eq.f32.partialorder %v400_v28, 8.507059e+37  ;;  %v369_v19 = vsel %vm7483_vm3, %v7356_v38, %v365_v15 }
 0x173   :  { %v403_v7 = vor.u32 1.1754944e-38, %v402_v5  ;;  %v432_v2 = vand.u32 2147483648, %v7403_v59  ;;  %vm7502_vm3 = vcmp.eq.f32.partialorder %v580_v53, 8.507059e+37  ;;  %vm371_vm2 = vcmp.eq.f32.partialorder %v370_v51, 8.507059e+37  ;;  %v816_v54 = vpop.permute.xlu1 %815 }
 0x174   :  { %v395_v40 = vadd.f32 %v7401_v13, %v394_v12  ;;  %v430_v12 = vand.u32 2147483647, %v7403_v59  ;;  %vm426_vm4 = vweird.f32 %v7403_v59  ;;  %v5631_v22 = vsel %vm854_vm5, 1.0, %v12707_v21 }
 0x175   :  { %v6262_v45 = vpop.eup %6261  ;;  %903 = vadd.xlane.f32.xlu2 %v5629_v17  ;;  %v373_v17 = vor.u32 1.1754944e-38, %v372_v35  ;;  %v433_v28 = vor.u32 1.1754944e-38, %v432_v2  ;;  %v7540_v35 = vadd.s32 40, %v6798_v1 }
 0x176   :  { %v6264_v44 = vpop.eup %6263  ;;  %v422_v11 = vmul.f32 %v6262_v45, %v7403_v59  ;;  %v399_v61 = vsel %vm7475_vm6, %v7401_v13, %v395_v40  ;;  %vm427_vm13 = vweird.f32 %v6262_v45  ;;  %v559_v13 = vmul.f32 %v7418_v10, %v558_v48 }
 0x177   :  { %v7479_v42 = vadd.f32 1.0, %v6264_v44  ;;  %v777_v55 = vpop.permute.xlu2 %776  ;;  %vm577_vm6 = vweird.f32 %v7379_v16  ;;  %v404_v8 = vsel %vm401_vm0, %v403_v7, %v399_v61  ;;  %v7514_v40 = vsel %vm7450_vm8, %v7351_v29, %v489_v43  ;;  %6143 = vset.pattern.permute.xlu0 %v7540_v35  ;;  %6140 = vset.pattern.permute.xlu2 %v7540_v35 }
 0x178   :  { %v423_v18 = vsub.f32 1.0, %v422_v11  ;;  %vm853_vm11 = vcmp.gt.f32.partialorder %v777_v55, %v6857_v20  ;;  %vm561_vm0 = vweird.f32 %v7358_v37  ;;  %v374_v53 = vsel %vm371_vm2, %v373_v17, %v369_v19  ;;  %vm7526_vm5 = vmor %vm576_vm10, %vm577_vm6 }
 0x179   :  { %6265 = vrcp.f32 %v7479_v42  ;;  %v5630_v58 = vsel %vm853_vm11, 1.0, %v12707_v21  ;;  %vm428_vm11 = vmor %vm426_vm4, %vm427_vm13  ;;  %v575_v59 = vadd.f32 %v7379_v16, %v574_v52  ;;  %v610_v15 = vperm.slane %v404_v8, %v6992_v63 }
 0x17a   :  { %v424_v27 = vmul.f32 %v6262_v45, %v423_v18  ;;  %905 = vadd.xlane.f32.xlu1 %v5630_v58  ;;  %vm431_vm15 = vcmp.eq.f32.partialorder %v430_v12, 8.507059e+37  ;;  %v560_v44 = vadd.f32 %v7418_v10, %v559_v13  ;;  %vm562_vm8 = vweird.f32 %v7418_v10 }
 0x17b   :  { %vm856_vm13 = vcmp.gt.f32.partialorder %v7464_v32, %v6872_v33  ;;  %v565_v48 = vand.u32 2147483647, %v7358_v37  ;;  %v579_v34 = vsel %vm7526_vm5, %v7379_v16, %v575_v59  ;;  %v12783_v55 = vperm.slane %v7060_v0, %v6970_v56 }
 0x17c   :  { %v425_v57 = vadd.f32 %v6262_v45, %v424_v27  ;;  %v5633_v18 = vsel %vm856_vm13, 1.0, %v12707_v21  ;;  %v12784_v19 = vperm.slane %v7140_v6, %v6970_v56  ;;  %v522_v16 = vand.u32 2147483648, %v7479_v42 }
 0x17d   :  { %907 = vadd.xlane.f32.xlu2 %v5631_v22  ;;  %v611_v50 = vsel %vm607_vm1, %v610_v15, %v12783_v55  ;;  %vm858_vm10 = vcmp.gt.f32.partialorder %v7207_v30, %v6862_v24  ;;  %v12785_v0 = vperm.slane %v7124_v23, %v6970_v56  ;;  %v520_v6 = vand.u32 2147483647, %v7479_v42  ;;  %v7625_v55 = vld [vmem:[#allocation3] sm:$0xff] }
 0x17e   :  { %v429_v5 = vsel %vm428_vm11, %v6262_v45, %v425_v57  ;;  %v606_v45 = vperm.slane %v374_v53, %v6992_v63  ;;  %v619_v27 = vperm.slane %v7514_v40, %v6992_v63  ;;  %vm566_vm4 = vcmp.eq.f32.partialorder %v565_v48, 8.507059e+37  ;;  %v829_v53 = vpop.permute.xlu1 %828 }
 0x17f   :  { %v6266_v62 = vpop.eup %6265  ;;  %v434_v43 = vsel %vm431_vm15, %v433_v28, %v429_v5  ;;  %v790_v25 = vpop.permute.xlu2 %789  ;;  %vm7544_vm15 = vmor %vm561_vm0, %vm562_vm8  ;;  %v568_v12 = vor.u32 1.1754944e-38, %v567_v26  ;;  %vm516_vm0 = vweird.f32 %v7479_v42  ;;  %vm859_vm11 = vcmp.gt.f32.partialorder %v816_v54, %v6870_v31 }
 0x180   :  { %v613_v52 = vperm.slane %v434_v43, %v6992_v63  ;;  %v512_v11 = vmul.f32 %v6266_v62, %v7479_v42  ;;  %vm855_vm2 = vcmp.gt.f32.partialorder %v790_v25, %v6872_v33  ;;  %v564_v37 = vsel %vm7544_vm15, %v7418_v10, %v560_v44  ;;  %v842_v26 = vpop.permute.xlu0 %841 }
 0x181   :  { %v5632_v51 = vsel %vm855_vm2, 1.0, %v12707_v21  ;;  %v608_v2 = vsel %vm607_vm1, %v606_v45, %v12785_v0  ;;  %vm517_vm6 = vweird.f32 %v6266_v62  ;;  %v569_v23 = vsel %vm566_vm4, %v568_v12, %v564_v37 }
 0x182   :  { %v513_v61 = vsub.f32 1.0, %v512_v11  ;;  %909 = vadd.xlane.f32.xlu0 %v5632_v51  ;;  %v614_v7 = vsel %vm607_vm1, %v613_v52, %v12784_v19  ;;  %911 = vadd.xlane.f32.xlu1 %v5633_v18  ;;  %v631_v58 = vsel %vm12704_vm7, %v611_v50, %v608_v2  ;;  %v584_v8 = vsel %vm7502_vm3, %v7409_v41, %v579_v34  ;;  %vm518_vm8 = vmor %vm516_vm0, %vm517_vm6 }
 0x183   :  { %v633_v13 = vsel %vm12727_vm9, %v614_v7, %v631_v58  ;;  %v523_v57 = vor.u32 1.1754944e-38, %v522_v16  ;;  %v5635_v40 = vsel %vm858_vm10, 1.0, %v12707_v21  ;;  %v624_v28 = vperm.slane %v7363_v60, %v6970_v56 }
 0x184   :  { %v514_v10 = vmul.f32 %v6266_v62, %v513_v61  ;;  %vm521_vm5 = vcmp.eq.f32.partialorder %v520_v6, 8.507059e+37  ;;  %v635_v38 = vsel %vm12725_vm12, %v7349_v36, %v633_v13  ;;  %v5636_v59 = vsel %vm859_vm11, 1.0, %v12707_v21 }
 0x185   :  { %v627_v15 = vperm.slane %v569_v23, %v6970_v56  ;;  %v628_v30 = vperm.slane %v584_v8, %v6992_v63  ;;  %v12786_v60 = vperm.slane %v7193_v9, %v6970_v56  ;;  %v12787_v36 = vperm.slane %v7190_v47, %v6970_v56 }
 0x186   :  { %v515_v17 = vadd.f32 %v6266_v62, %v514_v10  ;;  %vm861_vm3 = vcmp.gt.f32.partialorder %v829_v53, %v6879_v39  ;;  %v626_v43 = vsel %vm607_vm1, %v625_v3, %v624_v28  ;;  %vm12788_vm2 = vcmask 1045509   ;;  %v848_v48 = vpop.permute.xlu1 %847 }
 0x187   :  { %v803_v22 = vpop.permute.xlu2 %802  ;;  %v629_v9 = vsel %vm607_vm1, %v628_v30, %v627_v15  ;;  %vm12789_vm15 = vcmask 1046534   ;;  %v1419_v47 = vadd.s32 32, %v6798_v1  ;;  %vm12790_vm10 = vcmask 1047559  }
 0x188   :  { %v519_v42 = vsel %vm518_vm8, %v6266_v62, %v515_v17  ;;  %vm857_vm13 = vcmp.gt.f32.partialorder %v803_v22, %v6862_v24  ;;  %v620_v62 = vsel %vm607_vm1, %v619_v27, %v12786_v60  ;;  %v5638_v11 = vsel %vm861_vm3, 1.0, %v12707_v21 }
 0x189   :  { %v524_v41 = vsel %vm521_vm5, %v523_v57, %v519_v42  ;;  %v5634_v54 = vsel %vm857_vm13, 1.0, %v12707_v21  ;;  %v637_v29 = vsel %vm12703_vm14, %v620_v62, %v635_v38  ;;  %vm12791_vm6 = vcmask 130048   ;;  %6139 = vset.pattern.permute.xlu1 %v1419_v47 }
 0x18a   :  { %v622_v5 = vperm.slane %v524_v41, %v6992_v63  ;;  %913 = vadd.xlane.f32.xlu2 %v5634_v54  ;;  %915 = vadd.xlane.f32.xlu0 %v5635_v40  ;;  %vm864_vm4 = vcmp.gt.f32.partialorder %v848_v48, %v6889_v49  ;;  %v1468_v50 = vperm.slane %v7625_v55, 4  ;;  %v1416_v61 = vperm.slane %v7625_v55, 0 }
 0x18b   :  { %917 = vadd.xlane.f32.xlu1 %v5636_v59  ;;  %v5641_v46 = vsel %vm864_vm4, 1.0, %v12707_v21  ;;  %v1429_v18 = vperm.slane %v7625_v55, 1  ;;  %v1442_v37 = vperm.slane %v7625_v55, 2  ;;  %v1455_v19 = vperm.slane %v7625_v55, 3 }
 0x18c   :  { %v623_v44 = vsel %vm607_vm1, %v622_v5, %v12787_v36  ;;  %vm863_vm1 = vcmp.gt.f32.partialorder %v842_v26, %v6889_v49  ;;  %v1507_v2 = vperm.slane %v7625_v55, 7  ;;  %v1481_v23 = vperm.slane %v7625_v55, 5 }
 0x18d   :  { %v639_v25 = vsel %vm12788_vm2, %v623_v44, %v637_v29  ;;  %v5640_v32 = vsel %vm863_vm1, 1.0, %v12707_v21  ;;  %v1494_v59 = vperm.slane %v7625_v55, 6 }
 0x18e   :  { %v641_v45 = vsel %vm12789_vm15, %v626_v43, %v639_v25 }
 0x18f   :  { %v643_v52 = vsel %vm12790_vm10, %v629_v9, %v641_v45 }
 0x190   :  { %646 = vst.msk [vmem:[#allocation2] sm:$0xff] %vm12791_vm6, %v643_v52 }
 0x192   :  { %921 = vadd.xlane.f32.xlu0 %v5638_v11 }
 0x196   :  { %v822_v63 = vpop.permute.xlu2 %821 }
 0x197   :  { %vm860_vm0 = vcmp.gt.f32.partialorder %v822_v63, %v6870_v31 }
 0x198   :  { %v5637_v3 = vsel %vm860_vm0, 1.0, %v12707_v21  ;;  %vm1285_vm0 = vcmask 261312  }
 0x199   :  { %919 = vadd.xlane.f32.xlu2 %v5637_v3 }
 0x19a   :  { %927 = vadd.xlane.f32.xlu0 %v5641_v46  ;;  %v7675_v46 = vadd.s32 4294967280, %v6970_v56 }
 0x19e   :  { %v835_v51 = vpop.permute.xlu2 %834 }
 0x19f   :  { %vm862_vm11 = vcmp.gt.f32.partialorder %v835_v51, %v6879_v39 }
 0x1a0   :  { %v5639_v34 = vsel %vm862_vm11, 1.0, %v12707_v21 }
 0x1a1   :  { %923 = vadd.xlane.f32.xlu1 %v5639_v34  ;;  %925 = vadd.xlane.f32.xlu2 %v5640_v32 }
 0x1ae   :  { %1479 = vperm.xlu0 %6143, %v1468_v50  }
 0x1b6   :  { %6144 = vset.pattern.permute.xlu0 %v1419_v47 }
 0x1b9   :  { %1427 = vperm.xlu2 %6140, %v1416_v61  }
 0x1ba   :  { %1421 = vperm.xlu1 %6139, %v1416_v61  }
 0x1be   :  { %1434 = vperm.xlu0 %6144, %v1429_v18  }
 0x1c1   :  { %6142 = vset.pattern.permute.xlu2 %v1419_v47 }
 0x1c2   :  { %6141 = vset.pattern.permute.xlu1 %v7540_v35 }
 0x1c6   :  { %1512 = vperm.xlu0 %6144, %v1507_v2  }
 0x1c9   :  { %1447 = vperm.xlu2 %6142, %v1442_v37  }
 0x1ca   :  { %1440 = vperm.xlu1 %6141, %v1429_v18  }
 0x1d0   :  { %v902_v7 = vpop.xlane.xlu0 %901 }
 0x1d1   :  { %1460 = vperm.xlu2 %6142, %v1455_v19   ;;  %v7633_v16 = vadd.f32 1.0, %v902_v7 }
 0x1d2   :  { %1453 = vperm.xlu1 %6141, %v1442_v37  }
 0x1d3   :  { %v5644_v0 = vadd.f32 -118.0, %v7633_v16  ;;  %vm1320_vm8 = vcmp.gt.f32.partialorder %v7633_v16, 118.0 }
 0x1d4   :  { %v5676_v26 = vsel %vm1320_vm8, 1.0, %v12707_v21 }
 0x1d5   :  { %v5660_v10 = vmul.f32 -1.442695, %v5644_v0 }
 0x1d7   :  { %6267 = vpow2.f32 %v5660_v10 }
 0x1d9   :  { %1473 = vperm.xlu2 %6142, %v1468_v50  }
 0x1da   :  { %1466 = vperm.xlu1 %6141, %v1455_v19  }
 0x1dd   :  { %v6268_v6 = vpop.eup %6267 }
 0x1de   :  { %v7642_v58 = vadd.f32 1.0, %v6268_v6  ;;  %v1385_v6 = vperm.slane %v5676_v26, %v7675_v46 }
 0x1e0   :  { %v898_v27 = vpop.xlane.xlu2 %897  ;;  %6269 = vrcp.f32 %v7642_v58  ;;  %vm1060_vm13 = vweird.f32 %v7642_v58  ;;  %v1064_v32 = vand.u32 2147483647, %v7642_v58  ;;  %v1066_v34 = vand.u32 2147483648, %v7642_v58 }
 0x1e1   :  { %v7639_v12 = vadd.f32 1.0, %v898_v27  ;;  %6146 = vset.pattern.permute.xlu2 %v7540_v35 }
 0x1e2   :  { %6145 = vset.pattern.permute.xlu1 %v1419_v47  ;;  %vm7715_vm6 = vcmp.eq.f32.partialorder %v1064_v32, 8.507059e+37 }
 0x1e3   :  { %v5642_v13 = vadd.f32 -118.0, %v7639_v12  ;;  %vm1318_vm2 = vcmp.gt.f32.partialorder %v7639_v12, 118.0 }
 0x1e4   :  { %v5674_v10 = vsel %vm1318_vm2, 1.0, %v12707_v21 }
 0x1e5   :  { %v5658_v17 = vmul.f32 -1.442695, %v5642_v13  ;;  %v900_v8 = vpop.xlane.xlu1 %899 }
 0x1e6   :  { %v7647_v57 = vadd.f32 1.0, %v900_v8  ;;  %v7650_v42 = vpop.eup %6269 }
 0x1e7   :  { %6271 = vpow2.f32 %v5658_v17  ;;  %v1056_v5 = vmul.f32 %v7650_v42, %v7642_v58  ;;  %vm1061_vm3 = vweird.f32 %v7650_v42 }
 0x1e8   :  { %v904_v22 = vpop.xlane.xlu2 %903  ;;  %v5643_v53 = vadd.f32 -118.0, %v7647_v57  ;;  %vm1319_vm15 = vcmp.gt.f32.partialorder %v7647_v57, 118.0  ;;  %vm7700_vm10 = vmor %vm1060_vm13, %vm1061_vm3 }
 0x1e9   :  { %v932_v40 = vadd.f32 1.0, %v904_v22  ;;  %1492 = vperm.xlu2 %6146, %v1481_v23   ;;  %v1057_v25 = vsub.f32 1.0, %v1056_v5  ;;  %v5675_v13 = vsel %vm1319_vm15, 1.0, %v12707_v21 }
 0x1ea   :  { %1486 = vperm.xlu1 %6145, %v1481_v23   ;;  %v5659_v38 = vmul.f32 -1.442695, %v5643_v53  ;;  %v1067_v23 = vor.u32 1.1754944e-38, %v1066_v34 }
 0x1eb   :  { %v5645_v28 = vadd.f32 -118.0, %v932_v40  ;;  %v1058_v48 = vmul.f32 %v7650_v42, %v1057_v25  ;;  %vm1321_vm5 = vcmp.gt.f32.partialorder %v932_v40, 118.0 }
 0x1ec   :  { %6273 = vpow2.f32 %v5659_v38  ;;  %v5677_v61 = vsel %vm1321_vm5, 1.0, %v12707_v21 }
 0x1ed   :  { %v6272_v41 = vpop.eup %6271  ;;  %v5661_v54 = vmul.f32 -1.442695, %v5645_v28  ;;  %v906_v30 = vpop.xlane.xlu1 %905  ;;  %v1059_v18 = vadd.f32 %v7650_v42, %v1058_v48 }
 0x1ee   :  { %v7653_v15 = vadd.f32 1.0, %v6272_v41  ;;  %v7657_v62 = vadd.f32 1.0, %v906_v30 }
 0x1ef   :  { %6275 = vpow2.f32 %v5661_v54  ;;  %v1063_v40 = vsel %vm7700_vm10, %v7650_v42, %v1059_v18  ;;  %v1382_v54 = vperm.slane %v5674_v10, %v7675_v46 }
 0x1f0   :  { %v908_v60 = vpop.xlane.xlu2 %907  ;;  %6277 = vrcp.f32 %v7653_v15  ;;  %v5646_v44 = vadd.f32 -118.0, %v7657_v62  ;;  %vm1322_vm4 = vcmp.gt.f32.partialorder %v7657_v62, 118.0  ;;  %v1034_v30 = vand.u32 2147483647, %v7653_v15 }
 0x1f1   :  { %v7659_v36 = vadd.f32 1.0, %v908_v60  ;;  %1505 = vperm.xlu2 %6146, %v1494_v59   ;;  %v1036_v60 = vand.u32 2147483648, %v7653_v15  ;;  %vm1030_vm11 = vweird.f32 %v7653_v15 }
 0x1f2   :  { %1499 = vperm.xlu1 %6145, %v1494_v59   ;;  %v6274_v43 = vpop.eup %6273  ;;  %v5662_v47 = vmul.f32 -1.442695, %v5646_v44  ;;  %v7743_v44 = vsel %vm7715_vm6, %v1067_v23, %v1063_v40  ;;  %vm7756_vm8 = vcmp.eq.f32.partialorder %v1034_v30, 8.507059e+37 }
 0x1f3   :  { %v5647_v29 = vadd.f32 -118.0, %v7659_v36  ;;  %v7664_v45 = vadd.f32 1.0, %v6274_v43  ;;  %vm1323_vm1 = vcmp.gt.f32.partialorder %v7659_v36, 118.0  ;;  %v1037_v26 = vor.u32 1.1754944e-38, %v1036_v60 }
 0x1f5   :  { %v6276_v9 = vpop.eup %6275  ;;  %v5663_v11 = vmul.f32 -1.442695, %v5647_v29  ;;  %6279 = vrcp.f32 %v7664_v45  ;;  %v912_v3 = vpop.xlane.xlu1 %911  ;;  %v5678_v29 = vsel %vm1322_vm4, 1.0, %v12707_v21  ;;  %vm1045_vm13 = vweird.f32 %v7664_v45 }
 0x1f6   :  { %v7666_v52 = vadd.f32 1.0, %v6276_v9  ;;  %v7672_v63 = vpop.eup %6277  ;;  %v910_v51 = vpop.xlane.xlu0 %909  ;;  %v7689_v37 = vadd.f32 1.0, %v912_v3  ;;  %v1388_v32 = vperm.slane %v5678_v29, %v7675_v46 }
 0x1f7   :  { %v1026_v50 = vmul.f32 %v7672_v63, %v7653_v15  ;;  %v7704_v16 = vadd.f32 1.0, %v910_v51  ;;  %v1287_v51 = vperm.slane %v7743_v44, %v7675_v46  ;;  %vm1031_vm5 = vweird.f32 %v7672_v63 }
 0x1f8   :  { %6281 = vrcp.f32 %v7666_v52  ;;  %v5649_v27 = vadd.f32 -118.0, %v7689_v37  ;;  %vm1075_vm3 = vweird.f32 %v7666_v52  ;;  %v1079_v17 = vand.u32 2147483647, %v7666_v52  ;;  %vm7783_vm2 = vmor %vm1030_vm11, %vm1031_vm5 }
 0x1f9   :  { %6283 = vpow2.f32 %v5662_v47  ;;  %v1027_v22 = vsub.f32 1.0, %v1026_v50  ;;  %v5648_v41 = vadd.f32 -118.0, %v7704_v16  ;;  %vm1325_vm10 = vcmp.gt.f32.partialorder %v7689_v37, 118.0 }
 0x1fa   :  { %6285 = vpow2.f32 %v5663_v11  ;;  %6147 = vset.pattern.permute.xlu1 %v7540_v35  ;;  %v7694_v35 = vadd.s32 4294967272, %v6970_v56  ;;  %v5665_v38 = vmul.f32 -1.442695, %v5649_v27  ;;  %v5679_v11 = vsel %vm1323_vm1, 1.0, %v12707_v21 }
 0x1fb   :  { %v7691_v19 = vpop.eup %6279  ;;  %v5664_v25 = vmul.f32 -1.442695, %v5648_v41  ;;  %vm1324_vm6 = vcmp.gt.f32.partialorder %v7704_v16, 118.0  ;;  %v5681_v16 = vsel %vm1325_vm10, 1.0, %v12707_v21 }
 0x1fc   :  { %v1386_v58 = vperm.slane %v5677_v61, %v7694_v35  ;;  %v1041_v57 = vmul.f32 %v7691_v19, %v7664_v45  ;;  %v1383_v59 = vperm.slane %v5675_v13, %v7694_v35  ;;  %v1389_v7 = vperm.slane %v5679_v11, %v7694_v35 }
 0x1fd   :  { %v914_v55 = vpop.xlane.xlu2 %913  ;;  %vm1046_vm15 = vweird.f32 %v7691_v19  ;;  %v1392_v37 = vperm.slane %v5681_v16, %v7694_v35 }
 0x1fe   :  { %v7706_v0 = vpop.eup %6281  ;;  %v1387_v5 = vsel %vm1285_vm0, %v1386_v58, %v1385_v6  ;;  %v1042_v43 = vsub.f32 1.0, %v1041_v57  ;;  %v916_v9 = vpop.xlane.xlu0 %915  ;;  %v1384_v36 = vsel %vm1285_vm0, %v1383_v59, %v1382_v54  ;;  %v7754_v62 = vadd.f32 1.0, %v914_v55  ;;  %vm7813_vm11 = vmor %vm1045_vm13, %vm1046_vm15 }
 0x1ff   :  { %v6284_v12 = vpop.eup %6283  ;;  %v1071_v42 = vmul.f32 %v7706_v0, %v7666_v52  ;;  %v1406_v48 = vsel %vm12704_vm7, %v1387_v5, %v1384_v36  ;;  %v7763_v34 = vadd.f32 1.0, %v916_v9  ;;  %v1049_v6 = vand.u32 2147483647, %v7664_v45 }
 0x200   :  { %v6286_v8 = vpop.eup %6285  ;;  %v7722_v53 = vadd.f32 1.0, %v6284_v12  ;;  %v1043_v18 = vmul.f32 %v7691_v19, %v1042_v43  ;;  %v5650_v12 = vadd.f32 -118.0, %v7754_v62  ;;  %v1051_v58 = vand.u32 2147483648, %v7664_v45  ;;  %v918_v43 = vpop.xlane.xlu1 %917 }
 0x201   :  { %v7727_v28 = vadd.f32 1.0, %v6286_v8  ;;  %v1072_v47 = vsub.f32 1.0, %v1071_v42  ;;  %v5651_v23 = vadd.f32 -118.0, %v7763_v34  ;;  %vm1076_vm4 = vweird.f32 %v7706_v0 }
 0x202   :  { %1518 = vperm.xlu1 %6147, %v1507_v2   ;;  %6287 = vrcp.f32 %v7722_v53  ;;  %v1028_v2 = vmul.f32 %v7672_v63, %v1027_v22  ;;  %v5666_v22 = vmul.f32 -1.442695, %v5650_v12  ;;  %vm7802_vm1 = vcmp.eq.f32.partialorder %v1049_v6, 8.507059e+37  ;;  %vm7830_vm5 = vmor %vm1075_vm3, %vm1076_vm4 }
 0x203   :  { %6289 = vrcp.f32 %v7727_v28  ;;  %v1073_v27 = vmul.f32 %v7706_v0, %v1072_v47  ;;  %v5667_v15 = vmul.f32 -1.442695, %v5651_v23  ;;  %v1052_v29 = vor.u32 1.1754944e-38, %v1051_v58 }
 0x204   :  { %6291 = vpow2.f32 %v5665_v38  ;;  %v1029_v61 = vadd.f32 %v7672_v63, %v1028_v2  ;;  %v1044_v38 = vadd.f32 %v7691_v19, %v1043_v18  ;;  %v1390_v55 = vsel %vm1285_vm0, %v1389_v7, %v1388_v32 }
 0x205   :  { %6293 = vpow2.f32 %v5664_v25  ;;  %v1074_v54 = vadd.f32 %v7706_v0, %v1073_v27  ;;  %v5680_v2 = vsel %vm1324_vm6, 1.0, %v12707_v21  ;;  %v1096_v11 = vand.u32 2147483648, %v7722_v53 }
 0x206   :  { %v1033_v57 = vsel %vm7783_vm2, %v7672_v63, %v1029_v61  ;;  %v1081_v63 = vand.u32 2147483648, %v7666_v52  ;;  %6295 = vpow2.f32 %v5666_v22  ;;  %v1048_v45 = vsel %vm7813_vm11, %v7691_v19, %v1044_v38 }
 0x207   :  { %6297 = vpow2.f32 %v5667_v15  ;;  %v1038_v25 = vsel %vm7756_vm8, %v1037_v26, %v1033_v57  ;;  %v1078_v36 = vsel %vm7830_vm5, %v7706_v0, %v1074_v54  ;;  %vm1080_vm8 = vcmp.eq.f32.partialorder %v1079_v17, 8.507059e+37 }
 0x208   :  { %v7765_v50 = vpop.eup %6287  ;;  %v1082_v52 = vor.u32 1.1754944e-38, %v1081_v63  ;;  %v7843_v3 = vadd.f32 1.0, %v918_v43  ;;  %v1094_v26 = vand.u32 2147483647, %v7722_v53  ;;  %v1407_v32 = vsel %vm12727_vm9, %v1390_v55, %v1406_v48 }
 0x209   :  { %v7771_v10 = vpop.eup %6289  ;;  %v1086_v59 = vmul.f32 %v7765_v50, %v7722_v53  ;;  %v1391_v61 = vperm.slane %v5680_v2, %v7675_v46  ;;  %v1282_v0 = vperm.slane %v1038_v25, %v7675_v46  ;;  %v1053_v7 = vsel %vm7802_vm1, %v1052_v29, %v1048_v45  ;;  %v922_v29 = vpop.xlane.xlu0 %921 }
 0x20a   :  { %v6292_v13 = vpop.eup %6291  ;;  %v1101_v42 = vmul.f32 %v7771_v10, %v7727_v28  ;;  %v1083_v6 = vsel %vm1080_vm8, %v1082_v52, %v1078_v36  ;;  %vm1090_vm13 = vweird.f32 %v7722_v53  ;;  %vm1105_vm3 = vweird.f32 %v7727_v28 }
 0x20b   :  { %v6294_v40 = vpop.eup %6293  ;;  %v7794_v41 = vadd.f32 1.0, %v6292_v13  ;;  %v1087_v47 = vsub.f32 1.0, %v1086_v59  ;;  %v1097_v17 = vor.u32 1.1754944e-38, %v1096_v11  ;;  %v1109_v23 = vand.u32 2147483647, %v7727_v28 }
 0x20c   :  { %v7807_v5 = vadd.f32 1.0, %v6294_v40  ;;  %v1102_v19 = vsub.f32 1.0, %v1101_v42  ;;  %v6296_v18 = vpop.eup %6295  ;;  %v1111_v8 = vand.u32 2147483648, %v7727_v28  ;;  %v5652_v22 = vadd.f32 -118.0, %v7843_v3  ;;  %v920_v59 = vpop.xlane.xlu2 %919 }
 0x20d   :  { %6299 = vrcp.f32 %v7794_v41  ;;  %v6298_v27 = vpop.eup %6297  ;;  %v1088_v12 = vmul.f32 %v7765_v50, %v1087_v47  ;;  %v7856_v48 = vadd.f32 1.0, %v6296_v18  ;;  %v1284_v57 = vperm.slane %v1053_v7, %v7694_v35 }
 0x20e   :  { %6301 = vrcp.f32 %v7807_v5  ;;  %v1103_v13 = vmul.f32 %v7771_v10, %v1102_v19  ;;  %v1288_v38 = vperm.slane %v1083_v6, %v7694_v35  ;;  %vm7867_vm2 = vcmp.eq.f32.partialorder %v1094_v26, 8.507059e+37 }
 0x20f   :  { %v1393_v54 = vsel %vm1285_vm0, %v1392_v37, %v1391_v61  ;;  %6303 = vrcp.f32 %v7856_v48  ;;  %vm1091_vm15 = vweird.f32 %v7765_v50  ;;  %vm1106_vm10 = vweird.f32 %v7771_v10 }
 0x210   :  { %vm1326_vm6 = vcmp.gt.f32.partialorder %v7754_v62, 118.0  ;;  %v7876_v42 = vadd.f32 1.0, %v6298_v27  ;;  %v1089_v30 = vadd.f32 %v7765_v50, %v1088_v12  ;;  %v1104_v63 = vadd.f32 %v7771_v10, %v1103_v13  ;;  %vm7902_vm11 = vmor %vm1090_vm13, %vm1091_vm15 }
 0x211   :  { %vm1327_vm4 = vcmp.gt.f32.partialorder %v7763_v34, 118.0  ;;  %vm7883_vm1 = vcmp.eq.f32.partialorder %v1109_v23, 8.507059e+37  ;;  %v1112_v2 = vor.u32 1.1754944e-38, %v1111_v8  ;;  %v5668_v43 = vmul.f32 -1.442695, %v5652_v22  ;;  %vm7912_vm5 = vmor %vm1105_vm3, %vm1106_vm10 }
 0x212   :  { %v7890_v25 = vsel %vm1285_vm0, %v1284_v57, %v1282_v0  ;;  %v7896_v45 = vsel %vm1285_vm0, %v1288_v38, %v1287_v51  ;;  %v1408_v9 = vsel %vm12725_vm12, %v1393_v54, %v1407_v32  ;;  %v5682_v16 = vsel %vm1326_vm6, 1.0, %v12707_v21  ;;  %v7952_v38 = vpop.xlane.xlu0 %927 }
 0x213   :  { %v7858_v58 = vpop.eup %6299  ;;  %v1141_v51 = vand.u32 2147483648, %v7794_v41  ;;  %6305 = vrcp.f32 %v7876_v42  ;;  %v5683_v53 = vsel %vm1327_vm4, 1.0, %v12707_v21  ;;  %v7919_v47 = vadd.f32 1.0, %v922_v29 }
 0x214   :  { %v7863_v40 = vpop.eup %6301  ;;  %v1131_v60 = vmul.f32 %v7858_v58, %v7794_v41  ;;  %v924_v36 = vpop.xlane.xlu1 %923  ;;  %v1093_v52 = vsel %vm7902_vm11, %v7765_v50, %v1089_v30  ;;  %v1108_v28 = vsel %vm7912_vm5, %v7771_v10, %v1104_v63  ;;  %v7929_v26 = vadd.f32 1.0, %v920_v59 }
 0x215   :  { %v1116_v62 = vmul.f32 %v7863_v40, %v7807_v5  ;;  %v7921_v19 = vpop.eup %6303  ;;  %6307 = vpow2.f32 %v5668_v43  ;;  %v5654_v37 = vadd.f32 -118.0, %v7919_v47  ;;  %v7932_v61 = vadd.f32 1.0, %v924_v36  ;;  %v926_v57 = vpop.xlane.xlu2 %925 }
 0x216   :  { %v1132_v11 = vsub.f32 1.0, %v1131_v60  ;;  %vm1135_vm8 = vweird.f32 %v7794_v41  ;;  %v1139_v18 = vand.u32 2147483647, %v7794_v41  ;;  %v1146_v50 = vmul.f32 %v7921_v19, %v7856_v48 }
 0x217   :  { %v1117_v32 = vsub.f32 1.0, %v1116_v62  ;;  %v1394_v0 = vperm.slane %v5682_v16, %v7675_v46  ;;  %v1395_v10 = vperm.slane %v5683_v53, %v7694_v35  ;;  %v7942_v7 = vsel %vm7867_vm2, %v1097_v17, %v1093_v52 }
 0x218   :  { %v1142_v6 = vor.u32 1.1754944e-38, %v1141_v51  ;;  %v1126_v27 = vand.u32 2147483648, %v7807_v5  ;;  %v5670_v12 = vmul.f32 -1.442695, %v5654_v37  ;;  %v7947_v13 = vsel %vm7883_vm1, %v1112_v2, %v1108_v28 }
 0x219   :  { %v1133_v23 = vmul.f32 %v7858_v58, %v1132_v11  ;;  %v1124_v8 = vand.u32 2147483647, %v7807_v5  ;;  %v5653_v22 = vadd.f32 -118.0, %v7929_v26  ;;  %v7954_v15 = vpop.eup %6305  ;;  %v1118_v17 = vmul.f32 %v7863_v40, %v1117_v32 }
 0x21a   :  { %vm1328_vm13 = vcmp.gt.f32.partialorder %v7843_v3, 118.0  ;;  %6309 = vpow2.f32 %v5670_v12  ;;  %v5655_v54 = vadd.f32 -118.0, %v7932_v61  ;;  %vm7959_vm3 = vcmp.eq.f32.partialorder %v1139_v18, 8.507059e+37 }
 0x21b   :  { %vm1120_vm2 = vweird.f32 %v7807_v5  ;;  %v1147_v30 = vsub.f32 1.0, %v1146_v50  ;;  %v1396_v63 = vsel %vm1285_vm0, %v1395_v10, %v1394_v0  ;;  %v5669_v60 = vmul.f32 -1.442695, %v5653_v22  ;;  %v6308_v29 = vpop.eup %6307 }
 0x21c   :  { %v1290_v55 = vperm.slane %v7942_v7, %v7675_v46  ;;  %v1291_v2 = vperm.slane %v7947_v13, %v7694_v35  ;;  %v1127_v62 = vor.u32 1.1754944e-38, %v1126_v27  ;;  %v5671_v43 = vmul.f32 -1.442695, %v5655_v54 }
 0x21d   :  { %v1134_v34 = vadd.f32 %v7858_v58, %v1133_v23  ;;  %vm1136_vm15 = vweird.f32 %v7858_v58  ;;  %vm7971_vm10 = vcmp.eq.f32.partialorder %v1124_v8, 8.507059e+37  ;;  %v1161_v36 = vmul.f32 %v7954_v15, %v7876_v42  ;;  %v1428_v10 = vpop.permute.xlu2 %1427 }
 0x21e   :  { %v7980_v44 = vsel %vm1328_vm13, 1.0, %v12707_v21  ;;  %v1119_v51 = vadd.f32 %v7863_v40, %v1118_v17  ;;  %vm1121_vm6 = vweird.f32 %v7863_v40  ;;  %v7985_v53 = vsel %vm12703_vm14, %v1396_v63, %v1408_v9  ;;  %vm7994_vm4 = vmor %vm1135_vm8, %vm1136_vm15 }
 0x21f   :  { %6311 = vpow2.f32 %v5669_v60  ;;  %v1148_v52 = vmul.f32 %v7921_v19, %v1147_v30  ;;  %v7988_v28 = vadd.f32 1.0, %v6308_v29  ;;  %v7990_v11 = vadd.f32 1.0, %v926_v57  ;;  %vm8007_vm5 = vmor %vm1120_vm2, %vm1121_vm6 }
 0x220   :  { %6313 = vpow2.f32 %v5671_v43  ;;  %v6310_v32 = vpop.eup %6309  ;;  %vm1150_vm1 = vweird.f32 %v7856_v48  ;;  %v1154_v9 = vand.u32 2147483647, %v7856_v48  ;;  %v1156_v37 = vand.u32 2147483648, %v7856_v48  ;;  %v8014_v27 = vpop.permute.xlu0 %1479 }
 0x221   :  { %vm1165_vm11 = vweird.f32 %v7876_v42  ;;  %v1138_v18 = vsel %vm7994_vm4, %v7858_v58, %v1134_v34  ;;  %v1162_v50 = vsub.f32 1.0, %v1161_v36  ;;  %v8011_v0 = vadd.f32 1.0, %v6310_v32 }
 0x222   :  { %vm1329_vm8 = vcmp.gt.f32.partialorder %v7929_v26, 118.0  ;;  %v1123_v12 = vsel %vm8007_vm5, %v7863_v40, %v1119_v51  ;;  %vm1151_vm13 = vweird.f32 %v7921_v19  ;;  %v1169_v5 = vand.u32 2147483647, %v7876_v42 }
 0x223   :  { %v1171_v58 = vand.u32 2147483648, %v7876_v42  ;;  %v1149_v23 = vadd.f32 %v7921_v19, %v1148_v52  ;;  %6315 = vrcp.f32 %v7988_v28  ;;  %vm1330_vm2 = vcmp.gt.f32.partialorder %v7919_v47, 118.0 }
 0x224   :  { %v5656_v26 = vadd.f32 -118.0, %v7990_v11  ;;  %v8028_v22 = vsel %vm7959_vm3, %v1142_v6, %v1138_v18  ;;  %vm8030_vm15 = vcmp.eq.f32.partialorder %v1154_v9, 8.507059e+37  ;;  %v1397_v57 = vperm.slane %v7980_v44, %v7675_v46  ;;  %vm8050_vm3 = vmor %vm1150_vm1, %vm1151_vm13 }
 0x225   :  { %v6312_v8 = vpop.eup %6311  ;;  %v5685_v17 = vsel %vm1329_vm8, 1.0, %v12707_v21  ;;  %v1163_v30 = vmul.f32 %v7954_v15, %v1162_v50  ;;  %6317 = vrcp.f32 %v8011_v0  ;;  %vm1331_vm6 = vcmp.gt.f32.partialorder %v7932_v61, 118.0 }
 0x226   :  { %v6314_v54 = vpop.eup %6313  ;;  %v8039_v47 = vadd.f32 1.0, %v6312_v8  ;;  %v8044_v6 = vsel %vm7971_vm10, %v1127_v62, %v1123_v12  ;;  %vm1166_vm4 = vweird.f32 %v7954_v15  ;;  %v5686_v63 = vsel %vm1330_vm2, 1.0, %v12707_v21  ;;  %v1448_v12 = vpop.permute.xlu2 %1447 }
 0x227   :  { %v8056_v60 = vadd.f32 1.0, %v6314_v54  ;;  %v1153_v61 = vsel %vm8050_vm3, %v7921_v19, %v1149_v23  ;;  %v1398_v29 = vperm.slane %v5685_v17, %v7694_v35  ;;  %v5672_v62 = vmul.f32 -1.442695, %v5656_v26  ;;  %vm8085_vm5 = vmor %vm1165_vm11, %vm1166_vm4 }
 0x228   :  { %6319 = vrcp.f32 %v8039_v47  ;;  %v1157_v48 = vor.u32 1.1754944e-38, %v1156_v37  ;;  %vm8063_vm10 = vcmp.eq.f32.partialorder %v1169_v5, 8.507059e+37  ;;  %v5687_v34 = vsel %vm1331_vm6, 1.0, %v12707_v21 }
 0x229   :  { %6321 = vrcp.f32 %v8056_v60  ;;  %v8069_v16 = vpop.eup %6315  ;;  %v1294_v36 = vperm.slane %v8028_v22, %v7694_v35  ;;  %v1164_v19 = vadd.f32 %v7954_v15, %v1163_v30  ;;  %v1172_v44 = vor.u32 1.1754944e-38, %v1171_v58 }
 0x22a   :  { %vm1332_vm1 = vcmp.gt.f32.partialorder %v7990_v11, 118.0  ;;  %v1293_v51 = vperm.slane %v8044_v6, %v7675_v46  ;;  %v8079_v52 = vsel %vm8030_vm15, %v1157_v48, %v1153_v61  ;;  %v1184_v3 = vand.u32 2147483647, %v7988_v28 }
 0x22b   :  { %v1400_v9 = vperm.slane %v5686_v63, %v7675_v46  ;;  %v8091_v37 = vpop.eup %6317  ;;  %v1186_v18 = vand.u32 2147483648, %v7988_v28  ;;  %v1399_v41 = vsel %vm1285_vm0, %v1398_v29, %v1397_v57  ;;  %v1401_v50 = vperm.slane %v5687_v34, %v7694_v35 }
 0x22c   :  { %v1422_v11 = vpop.permute.xlu1 %1421  ;;  %6323 = vpow2.f32 %v5672_v62  ;;  %v1176_v5 = vmul.f32 %v8069_v16, %v7988_v28  ;;  %v5688_v58 = vsel %vm1332_vm1, 1.0, %v12707_v21  ;;  %v944_v23 = vadd.f32 1.0, %v7952_v38 }
 0x22d   :  { %vm1521_vm11 = vcmp.gt.f32.partialorder %v1428_v10, %v6809_v4  ;;  %v1296_v8 = vperm.slane %v8079_v52, %v7675_v46  ;;  %v1168_v40 = vsel %vm8085_vm5, %v7954_v15, %v1164_v19  ;;  %vm1520_vm8 = vcmp.gt.f32.partialorder %v1422_v11, %v6809_v4 }
 0x22e   :  { %v8101_v26 = vpop.eup %6319  ;;  %v5691_v57 = vsel %vm1521_vm11, 1.0, %v12707_v21  ;;  %v1206_v38 = vmul.f32 %v8091_v37, %v8011_v0  ;;  %vm12830_vm13 = vcmask 1045509   ;;  %vm1180_vm15 = vweird.f32 %v7988_v28 }
 0x22f   :  { %v8110_v17 = vpop.eup %6321  ;;  %v1191_v10 = vmul.f32 %v8101_v26, %v8039_v47  ;;  %v1410_v54 = vsel %vm12830_vm13, %v1399_v41, %v7985_v53  ;;  %1570 = vadd.xlane.f32.xlu1 %v5691_v57  ;;  %v1402_v15 = vsel %vm1285_vm0, %v1401_v50, %v1400_v9  ;;  %v1403_v30 = vperm.slane %v5688_v58, %v7675_v46 }
 0x230   :  { %v1435_v42 = vpop.permute.xlu0 %1434  ;;  %v5657_v59 = vadd.f32 -118.0, %v944_v23  ;;  %vm1333_vm6 = vcmp.gt.f32.partialorder %v944_v23, 118.0  ;;  %v1177_v63 = vsub.f32 1.0, %v1176_v5  ;;  %v1221_v61 = vmul.f32 %v8110_v17, %v8056_v60 }
 0x231   :  { %vm1522_vm2 = vcmp.gt.f32.partialorder %v1435_v42, %v6850_v14  ;;  %v5689_v29 = vsel %vm1333_vm6, 1.0, %v12707_v21  ;;  %v5690_v62 = vsel %vm1520_vm8, 1.0, %v12707_v21  ;;  %v1192_v48 = vsub.f32 1.0, %v1191_v10 }
 0x232   :  { %v6324_v53 = vpop.eup %6323  ;;  %v5673_v34 = vmul.f32 -1.442695, %v5657_v59  ;;  %v1404_v19 = vperm.slane %v5689_v29, %v7694_v35  ;;  %1568 = vadd.xlane.f32.xlu2 %v5690_v62  ;;  %v5692_v32 = vsel %vm1522_vm2, 1.0, %v12707_v21  ;;  %v8130_v9 = vsel %vm8063_vm10, %v1172_v44, %v1168_v40 }
 0x233   :  { %v1207_v11 = vsub.f32 1.0, %v1206_v38  ;;  %vm12831_vm3 = vcmask 1046534   ;;  %v8133_v50 = vadd.f32 1.0, %v6324_v53  ;;  %1572 = vadd.xlane.f32.xlu0 %v5692_v32  ;;  %vm12702_vm4 = vcmask 261248   ;;  %v1461_v38 = vpop.permute.xlu2 %1460 }
 0x234   :  { %v1411_v41 = vsel %vm12831_vm3, %v1402_v15, %v1410_v54  ;;  %6325 = vpow2.f32 %v5673_v34  ;;  %v1405_v42 = vsel %vm1285_vm0, %v1404_v19, %v1403_v30  ;;  %vm1524_vm1 = vcmp.gt.f32.partialorder %v1448_v12, %v6857_v20 }
 0x235   :  { %v8137_v58 = vor.u32 1.1754944e-38, %v1186_v18  ;;  %vm1210_vm5 = vweird.f32 %v8011_v0  ;;  %v1222_v43 = vsub.f32 1.0, %v1221_v61  ;;  %6327 = vrcp.f32 %v8133_v50 }
 0x236   :  { %v1178_v44 = vmul.f32 %v8069_v16, %v1177_v63  ;;  %v1214_v23 = vand.u32 2147483647, %v8011_v0  ;;  %v1193_v40 = vmul.f32 %v8101_v26, %v1192_v48  ;;  %vm12832_vm10 = vcmask 1047559  }
 0x237   :  { %v1412_v57 = vsel %vm12832_vm10, %v1405_v42, %v1411_v41  ;;  %v1208_v10 = vmul.f32 %v8091_v37, %v1207_v11  ;;  %v5694_v18 = vsel %vm1524_vm1, 1.0, %v12707_v21  ;;  %vm1526_vm11 = vcmp.gt.f32.partialorder %v1461_v38, %v6872_v33 }
 0x238   :  { %1414 = vst.msk [vmem:[#allocation2 + $0x8] sm:$0xff] %vm12702_vm4, %v1412_v57  ;;  %vm1181_vm13 = vweird.f32 %v8069_v16  ;;  %vm8153_vm2 = vcmp.eq.f32.partialorder %v1184_v3, 8.507059e+37  ;;  %v1216_v54 = vand.u32 2147483648, %v8011_v0  ;;  %v1199_v15 = vand.u32 2147483647, %v8039_v47  ;;  %1576 = vadd.xlane.f32.xlu1 %v5694_v18 }
 0x239   :  { %v1201_v30 = vand.u32 2147483648, %v8039_v47  ;;  %vm1195_vm6 = vweird.f32 %v8039_v47  ;;  %v1223_v59 = vmul.f32 %v8110_v17, %v1222_v43  ;;  %v5696_v63 = vsel %vm1526_vm11, 1.0, %v12707_v21  ;;  %vm8174_vm10 = vmor %vm1180_vm15, %vm1181_vm13 }
 0x23a   :  { %v6326_v29 = vpop.eup %6325  ;;  %v1179_v3 = vadd.f32 %v8069_v16, %v1178_v44  ;;  %v1194_v62 = vadd.f32 %v8101_v26, %v1193_v40  ;;  %vm1196_vm3 = vweird.f32 %v8101_v26  ;;  %vm1225_vm1 = vweird.f32 %v8056_v60 }
 0x23b   :  { %v8168_v53 = vpop.eup %6327  ;;  %v1209_v34 = vadd.f32 %v8091_v37, %v1208_v10  ;;  %vm1211_vm11 = vweird.f32 %v8091_v37  ;;  %v1229_v19 = vand.u32 2147483647, %v8056_v60  ;;  %v8181_v32 = vadd.f32 1.0, %v6326_v29  ;;  %1580 = vadd.xlane.f32.xlu0 %v5696_v63  ;;  %vm8194_vm15 = vmor %vm1195_vm6, %vm1196_vm3  ;;  %v1474_v63 = vpop.permute.xlu2 %1473 }
 0x23c   :  { %v1441_v5 = vpop.permute.xlu1 %1440  ;;  %v1202_v41 = vor.u32 1.1754944e-38, %v1201_v30  ;;  %v1231_v28 = vand.u32 2147483648, %v8056_v60  ;;  %v1236_v42 = vmul.f32 %v8168_v53, %v8133_v50  ;;  %v1224_v44 = vadd.f32 %v8110_v17, %v1223_v59  ;;  %vm8210_vm6 = vmor %vm1210_vm5, %vm1211_vm11 }
 0x23d   :  { %vm1523_vm8 = vcmp.gt.f32.partialorder %v1441_v5, %v6850_v14  ;;  %vm1226_vm13 = vweird.f32 %v8110_v17  ;;  %6329 = vrcp.f32 %v8181_v32  ;;  %vm1529_vm4 = vcmp.gt.f32.partialorder %v8014_v27, %v6862_v24 }
 0x23e   :  { %v5693_v61 = vsel %vm1523_vm8, 1.0, %v12707_v21  ;;  %vm8183_vm8 = vcmp.eq.f32.partialorder %v1199_v15, 8.507059e+37  ;;  %v1183_v40 = vsel %vm8174_vm10, %v8069_v16, %v1179_v3  ;;  %v1198_v57 = vsel %vm8194_vm15, %v8101_v26, %v1194_v62  ;;  %vm8226_vm5 = vmor %vm1225_vm1, %vm1226_vm13 }
 0x23f   :  { %1574 = vadd.xlane.f32.xlu2 %v5693_v61  ;;  %v1237_v38 = vsub.f32 1.0, %v1236_v42  ;;  %v1213_v27 = vsel %vm8210_vm6, %v8091_v37, %v1209_v34  ;;  %v1244_v16 = vand.u32 2147483647, %v8133_v50  ;;  %v1246_v10 = vand.u32 2147483648, %v8133_v50 }
 0x240   :  { %vm1240_vm10 = vweird.f32 %v8133_v50  ;;  %vm1241_vm11 = vweird.f32 %v8168_v53  ;;  %v5699_v37 = vsel %vm1529_vm4, 1.0, %v12707_v21  ;;  %v1297_v15 = vperm.slane %v8130_v9, %v7694_v35 }
 0x241   :  { %v1238_v26 = vmul.f32 %v8168_v53, %v1237_v38  ;;  %v1217_v30 = vor.u32 1.1754944e-38, %v1216_v54  ;;  %v1203_v59 = vsel %vm8183_vm8, %v1202_v41, %v1198_v57  ;;  %v1228_v60 = vsel %vm8226_vm5, %v8110_v17, %v1224_v44  ;;  %vm8249_vm4 = vmor %vm1240_vm10, %vm1241_vm11 }
 0x242   :  { %vm1215_vm1 = vcmp.eq.f32.partialorder %v1214_v23, 8.507059e+37  ;;  %vm1230_vm15 = vcmp.eq.f32.partialorder %v1229_v19, 8.507059e+37  ;;  %v1232_v61 = vor.u32 1.1754944e-38, %v1231_v28  ;;  %v1188_v9 = vsel %vm8153_vm2, %v8137_v58, %v1183_v40 }
 0x243   :  { %v1239_v29 = vadd.f32 %v8168_v53, %v1238_v26  ;;  %v6330_v3 = vpop.eup %6329  ;;  %v1218_v54 = vsel %vm1215_vm1, %v1217_v30, %v1213_v27  ;;  %vm8253_vm8 = vcmp.eq.f32.partialorder %v1244_v16, 8.507059e+37  ;;  %v1247_v23 = vor.u32 1.1754944e-38, %v1246_v10  ;;  %1586 = vadd.xlane.f32.xlu0 %v5699_v37 }
 0x244   :  { %v1454_v5 = vpop.permute.xlu1 %1453  ;;  %v1300_v48 = vperm.slane %v1203_v59, %v7694_v35  ;;  %v1233_v34 = vsel %vm1230_vm15, %v1232_v61, %v1228_v60  ;;  %v1251_v58 = vmul.f32 %v6330_v3, %v8181_v32  ;;  %vm1528_vm2 = vcmp.gt.f32.partialorder %v1474_v63, %v6862_v24 }
 0x245   :  { %vm1525_vm3 = vcmp.gt.f32.partialorder %v1454_v5, %v6857_v20  ;;  %vm1255_vm13 = vweird.f32 %v8181_v32  ;;  %v1259_v50 = vand.u32 2147483647, %v8181_v32  ;;  %v1261_v19 = vand.u32 2147483648, %v8181_v32 }
 0x246   :  { %v5695_v0 = vsel %vm1525_vm3, 1.0, %v12707_v21  ;;  %v1243_v11 = vsel %vm8249_vm4, %v8168_v53, %v1239_v29  ;;  %v1252_v41 = vsub.f32 1.0, %v1251_v58  ;;  %vm1256_vm3 = vweird.f32 %v6330_v3 }
 0x247   :  { %1578 = vadd.xlane.f32.xlu2 %v5695_v0  ;;  %v1308_v42 = vsel %vm12704_vm7, %v7896_v45, %v7890_v25  ;;  %v1292_v5 = vsel %vm1285_vm0, %v1291_v2, %v1290_v55  ;;  %v1303_v43 = vperm.slane %v1233_v34, %v7694_v35  ;;  %v1295_v53 = vsel %vm1285_vm0, %v1294_v36, %v1293_v51  ;;  %vm8296_vm5 = vmor %vm1255_vm13, %vm1256_vm3  ;;  %v1493_v36 = vpop.permute.xlu2 %1492 }
 0x248   :  { %v1298_v25 = vsel %vm1285_vm0, %v1297_v15, %v1296_v8  ;;  %v1299_v45 = vperm.slane %v1188_v9, %v7675_v46  ;;  %v1253_v7 = vmul.f32 %v6330_v3, %v1252_v41  ;;  %v1302_v13 = vperm.slane %v1218_v54, %v7675_v46  ;;  %v1513_v15 = vpop.permute.xlu0 %1512  ;;  %v8334_v9 = vld [vmem:[#allocation3] sm:$0xff] }
 0x249   :  { %v1248_v55 = vsel %vm8253_vm8, %v1247_v23, %v1243_v11  ;;  %v1262_v22 = vor.u32 1.1754944e-38, %v1261_v19  ;;  %v5698_v6 = vsel %vm1528_vm2, 1.0, %v12707_v21  ;;  %v1309_v51 = vsel %vm12727_vm9, %v1292_v5, %v1308_v42 }
 0x24a   :  { %v1301_v52 = vsel %vm1285_vm0, %v1300_v48, %v1299_v45  ;;  %v1254_v8 = vadd.f32 %v6330_v3, %v1253_v7  ;;  %vm1260_vm10 = vcmp.eq.f32.partialorder %v1259_v50, 8.507059e+37  ;;  %v1310_v44 = vsel %vm12725_vm12, %v1295_v53, %v1309_v51 }
 0x24b   :  { %v1304_v32 = vsel %vm1285_vm0, %v1303_v43, %v1302_v13  ;;  %v1311_v40 = vsel %vm12703_vm14, %v1298_v25, %v1310_v44  ;;  %v1305_v47 = vperm.slane %v1248_v55, %v7675_v46  ;;  %vm1531_vm11 = vcmp.gt.f32.partialorder %v1493_v36, %v6870_v31 }
 0x24c   :  { %v1467_v12 = vpop.permute.xlu1 %1466  ;;  %v1258_v57 = vsel %vm8296_vm5, %v6330_v3, %v1254_v8  ;;  %vm12851_vm1 = vcmask 1045509   ;;  %vm12852_vm15 = vcmask 1046534   ;;  %v5701_v0 = vsel %vm1531_vm11, 1.0, %v12707_v21 }
 0x24d   :  { %vm1527_vm6 = vcmp.gt.f32.partialorder %v1467_v12, %v6872_v33  ;;  %v1312_v38 = vsel %vm12851_vm1, %v1301_v52, %v1311_v40  ;;  %v1263_v27 = vsel %vm1260_vm10, %v1262_v22, %v1258_v57  ;;  %v2090_v18 = vadd.s32 48, %v6798_v1 }
 0x24e   :  { %v5697_v28 = vsel %vm1527_vm6, 1.0, %v12707_v21  ;;  %v1313_v16 = vsel %vm12852_vm15, %v1304_v32, %v1312_v38  ;;  %v1306_v10 = vperm.slane %v1263_v27, %v7694_v35  ;;  %v8318_v26 = vadd.s32 56, %v6798_v1 }
 0x24f   :  { %1582 = vadd.xlane.f32.xlu1 %v5697_v28  ;;  %1584 = vadd.xlane.f32.xlu2 %v5698_v6  ;;  %vm12853_vm4 = vcmask 1047559   ;;  %vm12854_vm8 = vcmask 261248   ;;  %vm1534_vm2 = vcmp.gt.f32.partialorder %v1513_v15, %v6889_v49  ;;  %v1506_v60 = vpop.permute.xlu2 %1505  ;;  %v2087_v62 = vperm.slane %v8334_v9, 0 }
 0x250   :  { %v1307_v46 = vsel %vm1285_vm0, %v1306_v10, %v1305_v47  ;;  %6148 = vset.pattern.permute.xlu1 %v2090_v18  ;;  %6149 = vset.pattern.permute.xlu2 %v8318_v26  ;;  %v5704_v59 = vsel %vm1534_vm2, 1.0, %v12707_v21  ;;  %vm1533_vm0 = vcmp.gt.f32.partialorder %v1506_v60, %v6879_v39  ;;  %v2113_v17 = vperm.slane %v8334_v9, 2 }
 0x251   :  { %v1314_v37 = vsel %vm12853_vm4, %v1307_v46, %v1313_v16  ;;  %6152 = vset.pattern.permute.xlu0 %v8318_v26  ;;  %v5703_v61 = vsel %vm1533_vm0, 1.0, %v12707_v21  ;;  %v2139_v23 = vperm.slane %v8334_v9, 4  ;;  %v2100_v48 = vperm.slane %v8334_v9, 1 }
 0x252   :  { %1317 = vst.msk [vmem:[#allocation2] sm:$0xff] %vm12854_vm8, %v1314_v37  ;;  %v2126_v34 = vperm.slane %v8334_v9, 3  ;;  %v2152_v42 = vperm.slane %v8334_v9, 5  ;;  %v2178_v5 = vperm.slane %v8334_v9, 7  ;;  %v2165_v36 = vperm.slane %v8334_v9, 6 }
 0x253   :  { %vm1956_vm11 = vcmask 392512  }
 0x257   :  { %1590 = vadd.xlane.f32.xlu2 %v5701_v0 }
 0x25c   :  { %v1487_v35 = vpop.permute.xlu1 %1486 }
 0x25d   :  { %vm1530_vm13 = vcmp.gt.f32.partialorder %v1487_v35, %v6870_v31 }
 0x25e   :  { %v5700_v30 = vsel %vm1530_vm13, 1.0, %v12707_v21 }
 0x25f   :  { %1588 = vadd.xlane.f32.xlu1 %v5700_v30  ;;  %1596 = vadd.xlane.f32.xlu2 %v5704_v59  ;;  %v8374_v30 = vadd.s32 4294967256, %v6970_v56  ;;  %v8377_v59 = vadd.s32 4294967264, %v6970_v56 }
 0x264   :  { %v1500_v63 = vpop.permute.xlu1 %1499 }
 0x265   :  { %vm1532_vm6 = vcmp.gt.f32.partialorder %v1500_v63, %v6879_v39 }
 0x266   :  { %v5702_v29 = vsel %vm1532_vm6, 1.0, %v12707_v21 }
 0x267   :  { %1594 = vadd.xlane.f32.xlu1 %v5703_v61  ;;  %1592 = vadd.xlane.f32.xlu0 %v5702_v29 }
 0x274   :  { %v1519_v3 = vpop.permute.xlu1 %1518 }
 0x275   :  { %vm1535_vm3 = vcmp.gt.f32.partialorder %v1519_v3, %v6889_v49 }
 0x276   :  { %v5705_v54 = vsel %vm1535_vm3, 1.0, %v12707_v21 }
 0x277   :  { %1598 = vadd.xlane.f32.xlu0 %v5705_v54  ;;  %2098 = vperm.xlu2 %6149, %v2087_v62  }
 0x27f   :  { %6151 = vset.pattern.permute.xlu2 %v2090_v18 }
 0x280   :  { %2092 = vperm.xlu1 %6148, %v2087_v62  }
 0x287   :  { %2118 = vperm.xlu2 %6151, %v2113_v17  }
 0x288   :  { %6150 = vset.pattern.permute.xlu1 %v8318_v26 }
 0x28b   :  { %2150 = vperm.xlu0 %6152, %v2139_v23  }
 0x28f   :  { %2131 = vperm.xlu2 %6151, %v2126_v34  }
 0x290   :  { %2111 = vperm.xlu1 %6150, %v2100_v48  }
 0x293   :  { %6153 = vset.pattern.permute.xlu0 %v2090_v18 }
 0x297   :  { %2144 = vperm.xlu2 %6151, %v2139_v23  }
 0x298   :  { %2124 = vperm.xlu1 %6150, %v2113_v17  }
 0x29b   :  { %2105 = vperm.xlu0 %6153, %v2100_v48  }
 0x29f   :  { %6155 = vset.pattern.permute.xlu2 %v8318_v26 }
 0x2a0   :  { %2137 = vperm.xlu1 %6150, %v2126_v34  }
 0x2a2   :  { %v1571_v58 = vpop.xlane.xlu1 %1570 }
 0x2a3   :  { %v1601_v12 = vadd.f32 1.0, %v1571_v58  ;;  %2183 = vperm.xlu0 %6153, %v2178_v5  }
 0x2a5   :  { %v5707_v50 = vadd.f32 -118.0, %v1601_v12  ;;  %v1569_v19 = vpop.xlane.xlu2 %1568  ;;  %vm1990_vm5 = vcmp.gt.f32.partialorder %v1601_v12, 118.0 }
 0x2a6   :  { %v1600_v11 = vadd.f32 1.0, %v1569_v19  ;;  %v1573_v41 = vpop.xlane.xlu0 %1572  ;;  %v5739_v60 = vsel %vm1990_vm5, 1.0, %v12707_v21 }
 0x2a7   :  { %v5723_v28 = vmul.f32 -1.442695, %v5707_v50  ;;  %v8345_v53 = vadd.f32 1.0, %v1573_v41  ;;  %2163 = vperm.xlu2 %6155, %v2152_v42   ;;  %v2054_v9 = vperm.slane %v5739_v60, %v8374_v30 }
 0x2a8   :  { %6154 = vset.pattern.permute.xlu1 %v2090_v18  ;;  %v5706_v43 = vadd.f32 -118.0, %v1600_v11  ;;  %vm1989_vm10 = vcmp.gt.f32.partialorder %v1600_v11, 118.0 }
 0x2a9   :  { %6331 = vpow2.f32 %v5723_v28  ;;  %v5708_v45 = vadd.f32 -118.0, %v8345_v53  ;;  %v5738_v63 = vsel %vm1989_vm10, 1.0, %v12707_v21  ;;  %vm1991_vm1 = vcmp.gt.f32.partialorder %v8345_v53, 118.0 }
 0x2aa   :  { %v5722_v25 = vmul.f32 -1.442695, %v5706_v43  ;;  %v2053_v54 = vperm.slane %v5738_v63, %v8377_v59  ;;  %v5740_v50 = vsel %vm1991_vm1, 1.0, %v12707_v21 }
 0x2ab   :  { %v1577_v7 = vpop.xlane.xlu1 %1576  ;;  %v5724_v13 = vmul.f32 -1.442695, %v5708_v45 }
 0x2ac   :  { %6333 = vpow2.f32 %v5722_v25  ;;  %v8349_v55 = vadd.f32 1.0, %v1577_v7  ;;  %v2055_v12 = vsel %vm1956_vm11, %v2054_v9, %v2053_v54  ;;  %v2056_v7 = vperm.slane %v5740_v50, %v8377_v59 }
 0x2ad   :  { %6335 = vpow2.f32 %v5724_v13 }
 0x2ae   :  { %v5710_v51 = vadd.f32 -118.0, %v8349_v55  ;;  %v1581_v52 = vpop.xlane.xlu0 %1580  ;;  %vm1993_vm15 = vcmp.gt.f32.partialorder %v8349_v55, 118.0 }
 0x2af   :  { %v6332_v6 = vpop.eup %6331  ;;  %v8358_v40 = vadd.f32 1.0, %v1581_v52  ;;  %2176 = vperm.xlu2 %6155, %v2165_v36   ;;  %v8403_v41 = vsel %vm1993_vm15, 1.0, %v12707_v21 }
 0x2b0   :  { %2157 = vperm.xlu1 %6154, %v2152_v42   ;;  %v8355_v44 = vadd.f32 1.0, %v6332_v6  ;;  %v5726_v47 = vmul.f32 -1.442695, %v5710_v51  ;;  %v2059_v13 = vperm.slane %v8403_v41, %v8377_v59 }
 0x2b1   :  { %v5712_v0 = vadd.f32 -118.0, %v8358_v40  ;;  %vm1995_vm8 = vcmp.gt.f32.partialorder %v8358_v40, 118.0 }
 0x2b2   :  { %v1575_v2 = vpop.xlane.xlu2 %1574  ;;  %v6334_v8 = vpop.eup %6333  ;;  %6337 = vrcp.f32 %v8355_v44  ;;  %v1720_v11 = vand.u32 2147483647, %v8355_v44  ;;  %v1722_v42 = vand.u32 2147483648, %v8355_v44  ;;  %vm1716_vm2 = vweird.f32 %v8355_v44 }
 0x2b3   :  { %v8351_v22 = vadd.f32 1.0, %v1575_v2  ;;  %v8360_v57 = vadd.f32 1.0, %v6334_v8  ;;  %v6336_v27 = vpop.eup %6335  ;;  %6339 = vpow2.f32 %v5726_v47  ;;  %v5728_v37 = vmul.f32 -1.442695, %v5712_v0 }
 0x2b4   :  { %v8367_v18 = vadd.f32 1.0, %v6336_v27  ;;  %v8421_v2 = vsel %vm1995_vm8, 1.0, %v12707_v21  ;;  %vm8429_vm13 = vcmp.eq.f32.partialorder %v1720_v11, 8.507059e+37  ;;  %v1723_v8 = vor.u32 1.1754944e-38, %v1722_v42 }
 0x2b5   :  { %v5709_v32 = vadd.f32 -118.0, %v8351_v22  ;;  %6341 = vrcp.f32 %v8360_v57  ;;  %vm1992_vm4 = vcmp.gt.f32.partialorder %v8351_v22, 118.0  ;;  %v1705_v6 = vand.u32 2147483647, %v8360_v57 }
 0x2b6   :  { %v5741_v28 = vsel %vm1992_vm4, 1.0, %v12707_v21  ;;  %v1737_v51 = vand.u32 2147483648, %v8367_v18  ;;  %v1735_v27 = vand.u32 2147483647, %v8367_v18  ;;  %vm1701_vm6 = vweird.f32 %v8360_v57 }
 0x2b7   :  { %v5725_v16 = vmul.f32 -1.442695, %v5709_v32  ;;  %v2057_v22 = vperm.slane %v5741_v28, %v8374_v30  ;;  %v2062_v0 = vperm.slane %v8421_v2, %v8377_v59  ;;  %vm8446_vm3 = vcmp.eq.f32.partialorder %v1705_v6, 8.507059e+37 }
 0x2b8   :  { %2170 = vperm.xlu1 %6154, %v2165_v36   ;;  %v8371_v35 = vpop.eup %6337  ;;  %v1707_v36 = vand.u32 2147483648, %v8360_v57  ;;  %vm1731_vm5 = vweird.f32 %v8367_v18  ;;  %vm8472_vm4 = vcmp.eq.f32.partialorder %v1735_v27, 8.507059e+37 }
 0x2b9   :  { %6343 = vpow2.f32 %v5725_v16  ;;  %v1712_v29 = vmul.f32 %v8371_v35, %v8355_v44  ;;  %vm1717_vm0 = vweird.f32 %v8371_v35 }
 0x2ba   :  { %v1579_v38 = vpop.xlane.xlu2 %1578  ;;  %6345 = vrcp.f32 %v8367_v18  ;;  %v1708_v63 = vor.u32 1.1754944e-38, %v1707_v36  ;;  %vm8457_vm10 = vmor %vm1716_vm2, %vm1717_vm0 }
 0x2bb   :  { %v8363_v10 = vadd.f32 1.0, %v1579_v38  ;;  %v1713_v48 = vsub.f32 1.0, %v1712_v29 }
 0x2bd   :  { %v5711_v46 = vadd.f32 -118.0, %v8363_v10  ;;  %v1714_v25 = vmul.f32 %v8371_v35, %v1713_v48  ;;  %vm1994_vm15 = vcmp.gt.f32.partialorder %v8363_v10, 118.0 }
 0x2bf   :  { %v5727_v15 = vmul.f32 -1.442695, %v5711_v46  ;;  %v1715_v47 = vadd.f32 %v8371_v35, %v1714_v25  ;;  %v2058_v46 = vsel %vm1956_vm11, %v2057_v22, %v2056_v7 }
 0x2c0   :  { %6156 = vset.pattern.permute.xlu1 %v8318_v26  ;;  %v6340_v26 = vpop.eup %6339  ;;  %v8477_v50 = vsel %vm12704_vm7, %v2058_v46, %v2055_v12 }
 0x2c1   :  { %6347 = vpow2.f32 %v5727_v15  ;;  %v8382_v61 = vpop.eup %6341  ;;  %v8391_v17 = vadd.f32 1.0, %v6340_v26  ;;  %v1738_v26 = vor.u32 1.1754944e-38, %v1737_v51  ;;  %v1719_v48 = vsel %vm8457_vm10, %v8371_v35, %v1715_v47 }
 0x2c2   :  { %6349 = vpow2.f32 %v5728_v37  ;;  %v6344_v3 = vpop.eup %6343  ;;  %v1697_v62 = vmul.f32 %v8382_v61, %v8360_v57  ;;  %v1585_v53 = vpop.xlane.xlu2 %1584  ;;  %vm1702_vm1 = vweird.f32 %v8382_v61  ;;  %v8505_v57 = vsel %vm8429_vm13, %v1723_v8, %v1719_v48 }
 0x2c3   :  { %v8395_v23 = vpop.eup %6345  ;;  %v8397_v34 = vadd.f32 1.0, %v6344_v3  ;;  %6351 = vrcp.f32 %v8391_v17  ;;  %v1583_v40 = vpop.xlane.xlu1 %1582  ;;  %v8464_v54 = vadd.f32 1.0, %v1585_v53  ;;  %vm8489_vm8 = vmor %vm1701_vm6, %vm1702_vm1  ;;  %v1765_v12 = vand.u32 2147483647, %v8391_v17 }
 0x2c4   :  { %v1727_v45 = vmul.f32 %v8395_v23, %v8367_v18  ;;  %v1587_v37 = vpop.xlane.xlu0 %1586  ;;  %v8451_v29 = vadd.f32 1.0, %v1583_v40  ;;  %vm1732_vm2 = vweird.f32 %v8395_v23  ;;  %v1767_v25 = vand.u32 2147483648, %v8391_v17 }
 0x2c5   :  { %6353 = vrcp.f32 %v8397_v34  ;;  %v5714_v35 = vadd.f32 -118.0, %v8464_v54  ;;  %vm1761_vm0 = vweird.f32 %v8391_v17  ;;  %vm8521_vm13 = vmor %vm1731_vm5, %vm1732_vm2  ;;  %v1955_v18 = vperm.slane %v8505_v57, %v8374_v30 }
 0x2c6   :  { %v1728_v38 = vsub.f32 1.0, %v1727_v45  ;;  %v5713_v42 = vadd.f32 -118.0, %v8451_v29  ;;  %v8499_v45 = vsel %vm1994_vm15, 1.0, %v12707_v21  ;;  %v8526_v27 = vor.u32 1.1754944e-38, %v1767_v25 }
 0x2c7   :  { %v6348_v58 = vpop.eup %6347  ;;  %v5730_v10 = vmul.f32 -1.442695, %v5714_v35  ;;  %vm1746_vm6 = vweird.f32 %v8397_v34  ;;  %v1752_v25 = vand.u32 2147483648, %v8397_v34  ;;  %vm8570_vm15 = vcmp.eq.f32.partialorder %v1765_v12, 8.507059e+37 }
 0x2c8   :  { %2189 = vperm.xlu1 %6156, %v2178_v5   ;;  %v6350_v19 = vpop.eup %6349  ;;  %v1698_v5 = vsub.f32 1.0, %v1697_v62  ;;  %v8409_v43 = vadd.f32 1.0, %v6348_v58  ;;  %v1729_v44 = vmul.f32 %v8395_v23, %v1728_v38  ;;  %v5729_v36 = vmul.f32 -1.442695, %v5713_v42 }
 0x2c9   :  { %v8418_v55 = vadd.f32 1.0, %v6350_v19  ;;  %v8437_v16 = vpop.eup %6351  ;;  %v8479_v19 = vadd.f32 1.0, %v1587_v37 }
 0x2ca   :  { %6355 = vrcp.f32 %v8409_v43  ;;  %v1699_v32 = vmul.f32 %v8382_v61, %v1698_v5  ;;  %v1757_v11 = vmul.f32 %v8437_v16, %v8391_v17  ;;  %v1591_v5 = vpop.xlane.xlu2 %1590  ;;  %vm1762_vm5 = vweird.f32 %v8437_v16 }
 0x2cb   :  { %6357 = vrcp.f32 %v8418_v55  ;;  %v8444_v15 = vpop.eup %6353  ;;  %v5715_v40 = vadd.f32 -118.0, %v8479_v19  ;;  %v8515_v47 = vadd.f32 1.0, %v1591_v5  ;;  %v1797_v8 = vand.u32 2147483648, %v8418_v55  ;;  %vm8584_vm2 = vmor %vm1761_vm0, %vm1762_vm5 }
 0x2cc   :  { %v1700_v9 = vadd.f32 %v8382_v61, %v1699_v32  ;;  %v1742_v28 = vmul.f32 %v8444_v15, %v8397_v34  ;;  %v1730_v32 = vadd.f32 %v8395_v23, %v1729_v44  ;;  %v1758_v52 = vsub.f32 1.0, %v1757_v11 }
 0x2cd   :  { %6359 = vpow2.f32 %v5729_v36  ;;  %v1795_v37 = vand.u32 2147483647, %v8418_v55  ;;  %v5731_v44 = vmul.f32 -1.442695, %v5715_v40  ;;  %v5717_v42 = vadd.f32 -118.0, %v8515_v47 }
 0x2ce   :  { %v1704_v22 = vsel %vm8489_vm8, %v8382_v61, %v1700_v9  ;;  %v1743_v38 = vsub.f32 1.0, %v1742_v28  ;;  %v1734_v11 = vsel %vm8521_vm13, %v8395_v23, %v1730_v32  ;;  %v1750_v28 = vand.u32 2147483647, %v8397_v34 }
 0x2cf   :  { %v8537_v9 = vsel %vm8446_vm3, %v1708_v63, %v1704_v22  ;;  %6361 = vpow2.f32 %v5730_v10  ;;  %v1759_v35 = vmul.f32 %v8437_v16, %v1758_v52  ;;  %v8547_v60 = vor.u32 1.1754944e-38, %v1797_v8 }
 0x2d0   :  { %v8466_v62 = vpop.eup %6355  ;;  %v1744_v63 = vmul.f32 %v8444_v15, %v1743_v38  ;;  %v1953_v5 = vperm.slane %v8537_v9, %v8377_v59  ;;  %6363 = vpow2.f32 %v5731_v44  ;;  %vm1791_vm3 = vweird.f32 %v8418_v55 }
 0x2d1   :  { %v8501_v7 = vpop.eup %6357  ;;  %v1772_v6 = vmul.f32 %v8466_v62, %v8409_v43  ;;  %vm8561_vm1 = vcmp.eq.f32.partialorder %v1750_v28, 8.507059e+37  ;;  %v2060_v10 = vperm.slane %v8499_v45, %v8374_v30  ;;  %vm1996_vm8 = vcmp.gt.f32.partialorder %v8451_v29, 118.0 }
 0x2d2   :  { %v1589_v51 = vpop.xlane.xlu1 %1588  ;;  %v1787_v46 = vmul.f32 %v8501_v7, %v8418_v55  ;;  %vm1792_vm10 = vweird.f32 %v8501_v7  ;;  %v1597_v58 = vpop.xlane.xlu2 %1596  ;;  %v1745_v52 = vadd.f32 %v8444_v15, %v1744_v63  ;;  %vm1777_vm13 = vweird.f32 %v8466_v62 }
 0x2d3   :  { %v8531_v3 = vadd.f32 1.0, %v1589_v51  ;;  %v1773_v48 = vsub.f32 1.0, %v1772_v6  ;;  %v6360_v22 = vpop.eup %6359  ;;  %v8556_v6 = vsel %vm8472_vm4, %v1738_v26, %v1734_v11  ;;  %v5733_v51 = vmul.f32 -1.442695, %v5717_v42 }
 0x2d4   :  { %v1788_v53 = vsub.f32 1.0, %v1787_v46  ;;  %v8567_v40 = vadd.f32 1.0, %v6360_v22  ;;  %v1760_v26 = vadd.f32 %v8437_v16, %v1759_v35  ;;  %vm1747_vm4 = vweird.f32 %v8444_v15 }
 0x2d5   :  { %v5716_v23 = vadd.f32 -118.0, %v8531_v3  ;;  %v1774_v36 = vmul.f32 %v8466_v62, %v1773_v48  ;;  %v6362_v8 = vpop.eup %6361  ;;  %v1958_v38 = vperm.slane %v8556_v6, %v8377_v59  ;;  %v1753_v46 = vor.u32 1.1754944e-38, %v1752_v25  ;;  %vm8594_vm14 = vmor %vm1746_vm6, %vm1747_vm4 }
 0x2d6   :  { %v1789_v45 = vmul.f32 %v8501_v7, %v1788_v53  ;;  %6365 = vpow2.f32 %v5733_v51  ;;  %v8590_v29 = vadd.f32 1.0, %v1597_v58  ;;  %v1780_v28 = vand.u32 2147483647, %v8409_v43  ;;  %v6364_v35 = vpop.eup %6363 }
 0x2d7   :  { %v5732_v48 = vmul.f32 -1.442695, %v5716_v23  ;;  %v1775_v44 = vadd.f32 %v8466_v62, %v1774_v36  ;;  %v1782_v17 = vand.u32 2147483648, %v8409_v43  ;;  %6367 = vrcp.f32 %v8567_v40 }
 0x2d8   :  { %v5745_v42 = vsel %vm1996_vm8, 1.0, %v12707_v21  ;;  %v1764_v63 = vsel %vm8584_vm2, %v8437_v16, %v1760_v26  ;;  %vm8605_vm0 = vcmp.eq.f32.partialorder %v1795_v37, 8.507059e+37  ;;  %v1749_v34 = vsel %vm8594_vm14, %v8444_v15, %v1745_v52  ;;  %vm8641_vm2 = vmor %vm1791_vm3, %vm1792_vm10 }
 0x2d9   :  { %vm1776_vm6 = vweird.f32 %v8409_v43  ;;  %v8613_v25 = vadd.f32 1.0, %v6362_v8  ;;  %v1790_v23 = vadd.f32 %v8501_v7, %v1789_v45  ;;  %vm1997_vm4 = vcmp.gt.f32.partialorder %v8464_v54, 118.0 }
 0x2da   :  { %vm8618_vm5 = vmor %vm1776_vm6, %vm1777_vm13  ;;  %vm1998_vm8 = vcmp.gt.f32.partialorder %v8479_v19, 118.0  ;;  %6369 = vpow2.f32 %v5732_v48  ;;  %v2061_v43 = vsel %vm1956_vm11, %v2060_v10, %v2059_v13  ;;  %v2063_v15 = vperm.slane %v5745_v42, %v8374_v30  ;;  %v1595_v51 = vpop.xlane.xlu1 %1594 }
 0x2db   :  { %v1779_v16 = vsel %vm8618_vm5, %v8466_v62, %v1775_v44  ;;  %v5720_v37 = vadd.f32 -118.0, %v8590_v29  ;;  %v1754_v36 = vsel %vm8561_vm1, %v1753_v46, %v1749_v34  ;;  %vm1781_vm14 = vcmp.eq.f32.partialorder %v1780_v28, 8.507059e+37 }
 0x2dc   :  { %v1783_v54 = vor.u32 1.1754944e-38, %v1782_v17  ;;  %v8635_v19 = vadd.f32 1.0, %v6364_v35  ;;  %v6366_v58 = vpop.eup %6365  ;;  %6371 = vrcp.f32 %v8613_v25  ;;  %v5746_v13 = vsel %vm1997_vm4, 1.0, %v12707_v21 }
 0x2dd   :  { %v5747_v62 = vsel %vm1998_vm8, 1.0, %v12707_v21  ;;  %vm2000_vm1 = vcmp.gt.f32.partialorder %v8515_v47, 118.0  ;;  %v8649_v32 = vpop.eup %6367  ;;  %v1769_v10 = vsel %vm8570_vm15, %v8526_v27, %v1764_v63  ;;  %v1794_v55 = vsel %vm8641_vm2, %v8501_v7, %v1790_v23 }
 0x2de   :  { %v1784_v26 = vsel %vm1781_vm14, %v1783_v54, %v1779_v16  ;;  %vm1999_vm3 = vcmp.gt.f32.partialorder %v8531_v3, 118.0  ;;  %v1959_v52 = vperm.slane %v1754_v36, %v8374_v30  ;;  %v2064_v47 = vsel %vm1956_vm11, %v2063_v15, %v2062_v0 }
 0x2df   :  { %v5736_v8 = vmul.f32 -1.442695, %v5720_v37  ;;  %v8663_v45 = vadd.f32 1.0, %v1595_v51  ;;  %v2065_v27 = vperm.slane %v5746_v13, %v8377_v59  ;;  %6373 = vrcp.f32 %v8635_v19 }
 0x2e0   :  { %v6370_v46 = vpop.eup %6369  ;;  %v2066_v7 = vperm.slane %v5747_v62, %v8374_v30  ;;  %v5749_v61 = vsel %vm2000_vm1, 1.0, %v12707_v21  ;;  %v1962_v3 = vperm.slane %v1784_v26, %v8374_v30  ;;  %v1802_v48 = vmul.f32 %v8649_v32, %v8567_v40 }
 0x2e1   :  { %v8672_v2 = vadd.f32 1.0, %v6366_v58  ;;  %v5748_v0 = vsel %vm1999_vm3, 1.0, %v12707_v21  ;;  %v1957_v12 = vsel %vm1956_vm11, %v1955_v18, %v1953_v5  ;;  %v1961_v44 = vperm.slane %v1769_v10, %v8377_v59  ;;  %v8722_v58 = vpop.permute.xlu2 %2098 }
 0x2e2   :  { %v8686_v11 = vsel %vm8605_vm0, %v8547_v60, %v1794_v55  ;;  %v2078_v28 = vsel %vm12727_vm9, %v2061_v43, %v8477_v50  ;;  %v8690_v17 = vpop.eup %6371  ;;  %v1960_v9 = vsel %vm1956_vm11, %v1959_v52, %v1958_v38  ;;  %v8696_v57 = vadd.f32 1.0, %v6370_v46  ;;  %v1593_v38 = vpop.xlane.xlu0 %1592 }
 0x2e3   :  { %6375 = vpow2.f32 %v5736_v8  ;;  %v5719_v18 = vadd.f32 -118.0, %v8663_v45  ;;  %v2079_v5 = vsel %vm12725_vm12, %v2064_v47, %v2078_v28  ;;  %v2067_v60 = vsel %vm1956_vm11, %v2066_v7, %v2065_v27 }
 0x2e4   :  { %v2069_v42 = vperm.slane %v5749_v61, %v8374_v30  ;;  %v2068_v50 = vperm.slane %v5748_v0, %v8377_v59  ;;  %v1963_v35 = vsel %vm1956_vm11, %v1962_v3, %v1961_v44  ;;  %v1803_v63 = vsub.f32 1.0, %v1802_v48 }
 0x2e5   :  { %6377 = vrcp.f32 %v8672_v2  ;;  %v5735_v6 = vmul.f32 -1.442695, %v5719_v18  ;;  %v8705_v53 = vpop.eup %6373  ;;  %v1964_v34 = vperm.slane %v8686_v11, %v8377_v59  ;;  %v1979_v23 = vsel %vm12704_vm7, %v1960_v9, %v1957_v12 }
 0x2e6   :  { %v1812_v22 = vand.u32 2147483648, %v8567_v40  ;;  %v1817_v16 = vmul.f32 %v8690_v17, %v8613_v25  ;;  %v1810_v43 = vand.u32 2147483647, %v8567_v40  ;;  %v1827_v15 = vand.u32 2147483648, %v8613_v25 }
 0x2e7   :  { %v1842_v37 = vand.u32 2147483648, %v8635_v19  ;;  %6379 = vrcp.f32 %v8696_v57  ;;  %v8718_v36 = vsel %vm12727_vm9, %v1963_v35, %v1979_v23  ;;  %vm12881_vm10 = vcmask 1044484  }
 0x2e8   :  { %v2080_v54 = vsel %vm12881_vm10, %v2067_v60, %v2079_v5  ;;  %v2070_v51 = vsel %vm1956_vm11, %v2069_v42, %v2068_v50  ;;  %6381 = vpow2.f32 %v5735_v6  ;;  %v1804_v13 = vmul.f32 %v8649_v32, %v1803_v63 }
 0x2e9   :  { %v6376_v41 = vpop.eup %6375  ;;  %v1832_v62 = vmul.f32 %v8705_v53, %v8635_v19  ;;  %vm2003_vm15 = vcmp.gt.f32.partialorder %v8590_v29, 118.0  ;;  %v1612_v10 = vadd.f32 1.0, %v1593_v38  ;;  %vm1806_vm13 = vweird.f32 %v8567_v40 }
 0x2ea   :  { %v1813_v55 = vor.u32 1.1754944e-38, %v1812_v22  ;;  %v1818_v26 = vsub.f32 1.0, %v1817_v16  ;;  %v1825_v52 = vand.u32 2147483647, %v8613_v25  ;;  %vm8732_vm0 = vcmp.eq.f32.partialorder %v1810_v43, 8.507059e+37  ;;  %v1599_v9 = vpop.xlane.xlu0 %1598 }
 0x2eb   :  { %v8730_v47 = vpop.eup %6377  ;;  %v8736_v46 = vor.u32 1.1754944e-38, %v1827_v15  ;;  %v1840_v27 = vand.u32 2147483647, %v8635_v19  ;;  %v8739_v7 = vor.u32 1.1754944e-38, %v1842_v37  ;;  %vm12884_vm6 = vcmask 1045509  }
 0x2ec   :  { %v8742_v29 = vsel %vm12884_vm6, %v2070_v51, %v2080_v54  ;;  %vm1836_vm5 = vweird.f32 %v8635_v19  ;;  %v8745_v61 = vadd.f32 1.0, %v6376_v41  ;;  %v8748_v3 = vsel %vm2003_vm15, 1.0, %v12707_v21  ;;  %v2119_v41 = vpop.permute.xlu2 %2118 }
 0x2ed   :  { %vm2002_vm4 = vcmp.gt.f32.partialorder %v8663_v45, 118.0  ;;  %v5718_v48 = vadd.f32 -118.0, %v1612_v10  ;;  %v8751_v12 = vpop.eup %6379  ;;  %v1805_v44 = vadd.f32 %v8649_v32, %v1804_v13  ;;  %vm1807_vm8 = vweird.f32 %v8649_v32 }
 0x2ee   :  { %vm1821_vm14 = vweird.f32 %v8613_v25  ;;  %v1833_v28 = vsub.f32 1.0, %v1832_v62  ;;  %vm2001_vm2 = vcmp.gt.f32.partialorder %v1612_v10, 118.0  ;;  %v6382_v18 = vpop.eup %6381  ;;  %v1819_v5 = vmul.f32 %v8690_v17, %v1818_v26  ;;  %vm8769_vm3 = vmor %vm1806_vm13, %vm1807_vm8 }
 0x2ef   :  { %vm1822_vm1 = vweird.f32 %v8690_v17  ;;  %v1862_v60 = vmul.f32 %v8730_v47, %v8672_v2  ;;  %v1870_v42 = vand.u32 2147483647, %v8672_v2  ;;  %v8761_v50 = vadd.f32 1.0, %v6382_v18 }
 0x2f0   :  { %v5751_v35 = vsel %vm2002_vm4, 1.0, %v12707_v21  ;;  %v5734_v63 = vmul.f32 -1.442695, %v5718_v48  ;;  %v5750_v6 = vsel %vm2001_vm2, 1.0, %v12707_v21  ;;  %v1872_v23 = vand.u32 2147483648, %v8672_v2 }
 0x2f1   :  { %v1847_v22 = vmul.f32 %v8751_v12, %v8696_v57  ;;  %6383 = vrcp.f32 %v8745_v61  ;;  %v1615_v16 = vadd.f32 1.0, %v1599_v9  ;;  %v1809_v45 = vsel %vm8769_vm3, %v8649_v32, %v1805_v44 }
 0x2f2   :  { %v2093_v0 = vpop.permute.xlu1 %2092  ;;  %v1834_v43 = vmul.f32 %v8705_v53, %v1833_v28  ;;  %v1855_v40 = vand.u32 2147483647, %v8696_v57  ;;  %6385 = vrcp.f32 %v8761_v50  ;;  %vm8783_vm10 = vcmp.eq.f32.partialorder %v1825_v52, 8.507059e+37 }
 0x2f3   :  { %vm8787_vm15 = vcmp.eq.f32.partialorder %v1840_v27, 8.507059e+37  ;;  %v1857_v54 = vand.u32 2147483648, %v8696_v57  ;;  %v2072_v51 = vperm.slane %v5751_v35, %v8374_v30  ;;  %6387 = vpow2.f32 %v5734_v63 }
 0x2f4   :  { %v2071_v32 = vperm.slane %v5750_v6, %v8377_v59  ;;  %v1820_v13 = vadd.f32 %v8690_v17, %v1819_v5  ;;  %vm1837_vm13 = vweird.f32 %v8705_v53  ;;  %v1863_v62 = vsub.f32 1.0, %v1862_v60 }
 0x2f5   :  { %v2074_v10 = vperm.slane %v8748_v3, %v8377_v59  ;;  %v1814_v26 = vsel %vm8732_vm0, %v1813_v55, %v1809_v45  ;;  %v1848_v52 = vsub.f32 1.0, %v1847_v22  ;;  %v5721_v27 = vadd.f32 -118.0, %v1615_v16  ;;  %vm8812_vm0 = vmor %vm1821_vm14, %vm1822_vm1 }
 0x2f6   :  { %vm2004_vm6 = vcmp.gt.f32.partialorder %v1615_v16, 118.0  ;;  %v1835_v44 = vadd.f32 %v8705_v53, %v1834_v43  ;;  %vm1866_vm4 = vweird.f32 %v8672_v2  ;;  %vm2192_vm8 = vcmp.gt.f32.partialorder %v8722_v58, %v6809_v4  ;;  %vm8832_vm14 = vmor %vm1836_vm5, %vm1837_vm13 }
 0x2f7   :  { %v5753_v28 = vsel %vm2004_vm6, 1.0, %v12707_v21  ;;  %vm2191_vm2 = vcmp.gt.f32.partialorder %v2093_v0, %v6809_v4  ;;  %v8806_v9 = vpop.eup %6383  ;;  %vm1851_vm3 = vweird.f32 %v8696_v57  ;;  %v2073_v8 = vsel %vm1956_vm11, %v2072_v51, %v2071_v32 }
 0x2f8   :  { %v5737_v3 = vmul.f32 -1.442695, %v5721_v27  ;;  %v2075_v18 = vperm.slane %v5753_v28, %v8374_v30  ;;  %v5755_v58 = vsel %vm2192_vm8, 1.0, %v12707_v21  ;;  %v8822_v5 = vpop.eup %6385  ;;  %v1965_v60 = vperm.slane %v1814_v26, %v8374_v30 }
 0x2f9   :  { %v1824_v25 = vsel %vm8812_vm0, %v8690_v17, %v1820_v13  ;;  %v1864_v63 = vmul.f32 %v8730_v47, %v1863_v62  ;;  %2241 = vadd.xlane.f32.xlu1 %v5755_v58  ;;  %v5754_v6 = vsel %vm2191_vm2, 1.0, %v12707_v21  ;;  %v6388_v38 = vpop.eup %6387  ;;  %v1849_v22 = vmul.f32 %v8751_v12, %v1848_v52 }
 0x2fa   :  { %v1892_v16 = vmul.f32 %v8822_v5, %v8761_v50  ;;  %vm1987_vm1 = vcmask 392448   ;;  %6389 = vpow2.f32 %v5737_v3  ;;  %2239 = vadd.xlane.f32.xlu2 %v5754_v6  ;;  %v8841_v17 = vadd.f32 1.0, %v6388_v38 }
 0x2fb   :  { %vm12895_vm5 = vcmask 1046534   ;;  %v2076_v45 = vsel %vm1956_vm11, %v2075_v18, %v2074_v10  ;;  %vm2195_vm13 = vcmp.gt.f32.partialorder %v2119_v41, %v6857_v20  ;;  %v1839_v43 = vsel %vm8832_vm14, %v8705_v53, %v1835_v44 }
 0x2fc   :  { %v2082_v19 = vsel %vm12895_vm5, %v2073_v8, %v8742_v29  ;;  %v1893_v51 = vsub.f32 1.0, %v1892_v16  ;;  %vm12896_vm6 = vcmask 1047559   ;;  %v8855_v13 = vsel %vm8783_vm10, %v8736_v46, %v1824_v25 }
 0x2fd   :  { %v8820_v0 = vpop.permute.xlu0 %2150  ;;  %v2083_v32 = vsel %vm12896_vm6, %v2076_v45, %v2082_v19  ;;  %v8857_v62 = vor.u32 1.1754944e-38, %v1872_v23  ;;  %v1907_v29 = vmul.f32 %v8806_v9, %v8745_v61  ;;  %6391 = vrcp.f32 %v8841_v17  ;;  %v8870_v23 = vpop.permute.xlu2 %2131 }
 0x2fe   :  { %2085 = vst.msk [vmem:[#allocation2 + $0x8] sm:$0xff] %vm1987_vm1, %v2083_v32  ;;  %v1966_v53 = vsel %vm1956_vm11, %v1965_v60, %v1964_v34  ;;  %v1850_v41 = vadd.f32 %v8751_v12, %v1849_v22  ;;  %vm1852_vm2 = vweird.f32 %v8751_v12  ;;  %v5758_v46 = vsel %vm2195_vm13, 1.0, %v12707_v21 }
 0x2ff   :  { %v8875_v10 = vsel %vm8787_vm15, %v8739_v7, %v1839_v43  ;;  %v8878_v26 = vadd.f32 %v8730_v47, %v1864_v63  ;;  %vm1867_vm10 = vweird.f32 %v8730_v47  ;;  %v1967_v52 = vperm.slane %v8855_v13, %v8377_v59  ;;  %vm8901_vm15 = vmor %vm1851_vm3, %vm1852_vm2 }
 0x300   :  { %v6390_v34 = vpop.eup %6389  ;;  %vm8886_vm0 = vcmp.eq.f32.partialorder %v1855_v40, 8.507059e+37  ;;  %v1858_v7 = vor.u32 1.1754944e-38, %v1857_v54  ;;  %v1894_v37 = vmul.f32 %v8822_v5, %v1893_v51  ;;  %v8895_v44 = vsel %vm12725_vm12, %v1966_v53, %v8718_v36  ;;  %vm8914_vm5 = vmor %vm1866_vm4, %vm1867_vm10 }
 0x301   :  { %v1908_v40 = vsub.f32 1.0, %v1907_v29  ;;  %v8905_v55 = vadd.f32 1.0, %v6390_v34  ;;  %2247 = vadd.xlane.f32.xlu1 %v5758_v46  ;;  %v1968_v54 = vperm.slane %v8875_v10, %v8374_v30  ;;  %v1854_v57 = vsel %vm8901_vm15, %v8751_v12, %v1850_v41  ;;  %v9054_v46 = vld [vmem:[#allocation3] sm:$0xff] }
 0x302   :  { %v2112_v48 = vpop.permute.xlu1 %2111  ;;  %vm1911_vm3 = vweird.f32 %v8745_v61  ;;  %v1869_v18 = vsel %vm8914_vm5, %v8730_v47, %v8878_v26  ;;  %v1915_v58 = vand.u32 2147483647, %v8745_v61  ;;  %v1917_v60 = vand.u32 2147483648, %v8745_v61 }
 0x303   :  { %vm2194_vm8 = vcmp.gt.f32.partialorder %v2112_v48, %v6850_v14  ;;  %v6392_v3 = vpop.eup %6391  ;;  %6393 = vrcp.f32 %v8905_v55  ;;  %vm8932_vm4 = vcmp.eq.f32.partialorder %v1870_v42, 8.507059e+37  ;;  %v1895_v25 = vadd.f32 %v8822_v5, %v1894_v37 }
 0x304   :  { %v5757_v11 = vsel %vm2194_vm8, 1.0, %v12707_v21  ;;  %vm1897_vm13 = vweird.f32 %v8822_v5  ;;  %v1877_v35 = vmul.f32 %v6392_v3, %v8841_v17  ;;  %v8942_v47 = vsel %vm8886_vm0, %v1858_v7, %v1854_v57 }
 0x305   :  { %2245 = vadd.xlane.f32.xlu2 %v5757_v11  ;;  %v1909_v63 = vmul.f32 %v8806_v9, %v1908_v40  ;;  %v1900_v2 = vand.u32 2147483647, %v8761_v50  ;;  %v1902_v42 = vand.u32 2147483648, %v8761_v50  ;;  %vm1912_vm8 = vweird.f32 %v8806_v9  ;;  %v2145_v51 = vpop.permute.xlu2 %2144 }
 0x306   :  { %vm1896_vm2 = vweird.f32 %v8761_v50  ;;  %v1878_v6 = vsub.f32 1.0, %v1877_v35  ;;  %v1885_v38 = vand.u32 2147483647, %v8841_v17  ;;  %v1887_v19 = vand.u32 2147483648, %v8841_v17 }
 0x307   :  { %vm8950_vm10 = vmor %vm1896_vm2, %vm1897_vm13  ;;  %vm2197_vm15 = vcmp.gt.f32.partialorder %v8870_v23, %v6872_v33  ;;  %v1910_v53 = vadd.f32 %v8806_v9, %v1909_v63  ;;  %vm1901_vm5 = vcmp.eq.f32.partialorder %v1900_v2, 8.507059e+37  ;;  %v1903_v41 = vor.u32 1.1754944e-38, %v1902_v42 }
 0x308   :  { %v1899_v50 = vsel %vm8950_vm10, %v8822_v5, %v1895_v25  ;;  %v1879_v43 = vmul.f32 %v6392_v3, %v1878_v6  ;;  %vm1881_vm13 = vweird.f32 %v8841_v17  ;;  %vm8973_vm2 = vcmp.eq.f32.partialorder %v1885_v38, 8.507059e+37 }
 0x309   :  { %v6394_v29 = vpop.eup %6393  ;;  %v5760_v17 = vsel %vm2197_vm15, 1.0, %v12707_v21  ;;  %v1904_v11 = vsel %vm1901_vm5, %v1903_v41, %v1899_v50  ;;  %v1888_v61 = vor.u32 1.1754944e-38, %v1887_v19  ;;  %v1932_v34 = vand.u32 2147483648, %v8905_v55 }
 0x30a   :  { %v2125_v15 = vpop.permute.xlu1 %2124  ;;  %v1880_v5 = vadd.f32 %v6392_v3, %v1879_v43  ;;  %v1922_v26 = vmul.f32 %v6394_v29, %v8905_v55  ;;  %v1930_v37 = vand.u32 2147483647, %v8905_v55  ;;  %v1918_v28 = vor.u32 1.1754944e-38, %v1917_v60 }
 0x30b   :  { %vm2196_vm6 = vcmp.gt.f32.partialorder %v2125_v15, %v6857_v20  ;;  %v1970_v36 = vperm.slane %v8942_v47, %v8377_v59  ;;  %vm2199_vm15 = vcmp.gt.f32.partialorder %v2145_v51, %v6862_v24  ;;  %v9024_v47 = vadd.s32 72, %v6798_v1 }
 0x30c   :  { %v5759_v45 = vsel %vm2196_vm6, 1.0, %v12707_v21  ;;  %vm8969_vm6 = vmor %vm1911_vm3, %vm1912_vm8  ;;  %vm1926_vm3 = vweird.f32 %v8905_v55  ;;  %v1923_v7 = vsub.f32 1.0, %v1922_v26  ;;  %vm1927_vm8 = vweird.f32 %v6394_v29 }
 0x30d   :  { %v2106_v48 = vpop.permute.xlu0 %2105  ;;  %2249 = vadd.xlane.f32.xlu2 %v5759_v45  ;;  %v1914_v57 = vsel %vm8969_vm6, %v8806_v9, %v1910_v53  ;;  %v1969_v9 = vsel %vm1956_vm11, %v1968_v54, %v1967_v52  ;;  %vm1931_vm5 = vcmp.eq.f32.partialorder %v1930_v37, 8.507059e+37  ;;  %v2164_v55 = vpop.permute.xlu2 %2163  ;;  %v5762_v35 = vsel %vm2199_vm15, 1.0, %v12707_v21  ;;  %6161 = vset.pattern.permute.xlu0 %v9024_v47 }
 0x30e   :  { %vm2193_vm14 = vcmp.gt.f32.partialorder %v2106_v48, %v6850_v14  ;;  %v1874_v48 = vsel %vm8932_vm4, %v8857_v62, %v1869_v18  ;;  %v1974_v62 = vperm.slane %v1904_v11, %v8374_v30  ;;  %vm9005_vm4 = vmor %vm1926_vm3, %vm1927_vm8  ;;  %vm2202_vm6 = vcmp.gt.f32.partialorder %v2164_v55, %v6870_v31  ;;  %6158 = vset.pattern.permute.xlu2 %v9024_v47 }
 0x30f   :  { %v5756_v8 = vsel %vm2193_vm14, 1.0, %v12707_v21  ;;  %vm1882_vm14 = vweird.f32 %v6392_v3  ;;  %v1971_v60 = vperm.slane %v1874_v48, %v8374_v30  ;;  %vm12918_vm3 = vcmask 1047559  }
 0x310   :  { %2243 = vadd.xlane.f32.xlu0 %v5756_v8  ;;  %vm1883_vm10 = vmor %vm1881_vm13, %vm1882_vm14  ;;  %v1924_v8 = vmul.f32 %v6394_v29, %v1923_v7  ;;  %vm2200_vm14 = vcmp.gt.f32.partialorder %v8820_v0, %v6862_v24  ;;  %v2761_v0 = vadd.s32 64, %v6798_v1  ;;  %vm12915_vm13 = vcmask 1044484  }
 0x311   :  { %v1884_v27 = vsel %vm1883_vm10, %v6392_v3, %v1880_v5  ;;  %v1972_v13 = vsel %vm1956_vm11, %v1971_v60, %v1970_v36  ;;  %v5763_v52 = vsel %vm2200_vm14, 1.0, %v12707_v21  ;;  %v1982_v54 = vsel %vm12915_vm13, %v1969_v9, %v8895_v44 }
 0x312   :  { %v2138_v22 = vpop.permute.xlu1 %2137  ;;  %v1889_v40 = vsel %vm8973_vm2, %v1888_v61, %v1884_v27  ;;  %v1925_v12 = vadd.f32 %v6394_v29, %v1924_v8  ;;  %6157 = vset.pattern.permute.xlu1 %v2761_v0  ;;  %vm12916_vm2 = vcmask 1045509   ;;  %vm12917_vm10 = vcmask 1046534  }
 0x313   :  { %vm2198_vm0 = vcmp.gt.f32.partialorder %v2138_v22, %v6872_v33  ;;  %v1973_v3 = vperm.slane %v1889_v40, %v8377_v59  ;;  %v1983_v38 = vsel %vm12916_vm2, %v1972_v13, %v1982_v54  ;;  %v5765_v45 = vsel %vm2202_vm6, 1.0, %v12707_v21 }
 0x314   :  { %v5761_v32 = vsel %vm2198_vm0, 1.0, %v12707_v21  ;;  %vm8989_vm0 = vcmp.eq.f32.partialorder %v1915_v58, 8.507059e+37  ;;  %v1933_v58 = vor.u32 1.1754944e-38, %v1932_v34  ;;  %v1929_v10 = vsel %vm9005_vm4, %v6394_v29, %v1925_v12 }
 0x315   :  { %2253 = vadd.xlane.f32.xlu1 %v5761_v32  ;;  %v1919_v25 = vsel %vm8989_vm0, %v1918_v28, %v1914_v57  ;;  %2255 = vadd.xlane.f32.xlu2 %v5762_v35  ;;  %v1975_v63 = vsel %vm1956_vm11, %v1974_v62, %v1973_v3  ;;  %v2177_v50 = vpop.permute.xlu2 %2176  ;;  %v2758_v5 = vperm.slane %v9054_v46, 0  ;;  %v2810_v15 = vperm.slane %v9054_v46, 4 }
 0x316   :  { %v1934_v2 = vsel %vm1931_vm5, %v1933_v58, %v1929_v10  ;;  %v1976_v42 = vperm.slane %v1919_v25, %v8377_v59  ;;  %v1984_v22 = vsel %vm12917_vm10, %v1975_v63, %v1983_v38  ;;  %v2184_v59 = vpop.permute.xlu0 %2183  ;;  %vm2204_vm15 = vcmp.gt.f32.partialorder %v2177_v50, %v6879_v39 }
 0x317   :  { %v1977_v6 = vperm.slane %v1934_v2, %v8374_v30  ;;  %vm2205_vm0 = vcmp.gt.f32.partialorder %v2184_v59, %v6889_v49  ;;  %v5767_v32 = vsel %vm2204_vm15, 1.0, %v12707_v21  ;;  %v2771_v26 = vperm.slane %v9054_v46, 1 }
 0x318   :  { %2251 = vadd.xlane.f32.xlu0 %v5760_v17  ;;  %v5768_v51 = vsel %vm2205_vm0, 1.0, %v12707_v21  ;;  %v2784_v17 = vperm.slane %v9054_v46, 2  ;;  %v2797_v11 = vperm.slane %v9054_v46, 3  ;;  %v2849_v61 = vperm.slane %v9054_v46, 7 }
 0x319   :  { %v1978_v44 = vsel %vm1956_vm11, %v1977_v6, %v1976_v42  ;;  %v2823_v34 = vperm.slane %v9054_v46, 5  ;;  %v2836_v40 = vperm.slane %v9054_v46, 6  ;;  %v9086_v59 = vadd.s32 4294967240, %v6970_v56 }
 0x31a   :  { %v1985_v19 = vsel %vm12918_vm3, %v1978_v44, %v1984_v22  ;;  %vm2627_vm2 = vcmask 523712  }
 0x31b   :  { %1988 = vst.msk [vmem:[#allocation2] sm:$0xff] %vm1987_vm1, %v1985_v19 }
 0x31d   :  { %2261 = vadd.xlane.f32.xlu2 %v5765_v45 }
 0x320   :  { %2257 = vadd.xlane.f32.xlu0 %v5763_v52 }
 0x322   :  { %v2158_v16 = vpop.permute.xlu1 %2157 }
 0x323   :  { %vm2201_vm8 = vcmp.gt.f32.partialorder %v2158_v16, %v6870_v31 }
 0x324   :  { %v5764_v30 = vsel %vm2201_vm8, 1.0, %v12707_v21 }
 0x325   :  { %2259 = vadd.xlane.f32.xlu1 %v5764_v30  ;;  %2267 = vadd.xlane.f32.xlu2 %v5768_v51 }
 0x32a   :  { %v2171_v43 = vpop.permute.xlu1 %2170 }
 0x32b   :  { %vm2203_vm11 = vcmp.gt.f32.partialorder %v2171_v43, %v6879_v39  ;;  %v9090_v43 = vadd.s32 4294967248, %v6970_v56 }
 0x32c   :  { %v5766_v29 = vsel %vm2203_vm11, 1.0, %v12707_v21 }
 0x32d   :  { %2265 = vadd.xlane.f32.xlu1 %v5767_v32  ;;  %2263 = vadd.xlane.f32.xlu0 %v5766_v29 }
 0x33a   :  { %v2190_v53 = vpop.permute.xlu1 %2189 }
 0x33b   :  { %vm2206_vm1 = vcmp.gt.f32.partialorder %v2190_v53, %v6889_v49 }
 0x33c   :  { %v5769_v41 = vsel %vm2206_vm1, 1.0, %v12707_v21 }
 0x33d   :  { %2269 = vadd.xlane.f32.xlu0 %v5769_v41  ;;  %2769 = vperm.xlu2 %6158, %v2758_v5  }
 0x345   :  { %6160 = vset.pattern.permute.xlu2 %v2761_v0 }
 0x346   :  { %2763 = vperm.xlu1 %6157, %v2758_v5  }
 0x34d   :  { %2789 = vperm.xlu2 %6160, %v2784_v17  }
 0x34e   :  { %6159 = vset.pattern.permute.xlu1 %v9024_v47 }
 0x351   :  { %2821 = vperm.xlu0 %6161, %v2810_v15  }
 0x355   :  { %2802 = vperm.xlu2 %6160, %v2797_v11  }
 0x356   :  { %2782 = vperm.xlu1 %6159, %v2771_v26  }
 0x359   :  { %6162 = vset.pattern.permute.xlu0 %v2761_v0 }
 0x35d   :  { %2815 = vperm.xlu2 %6160, %v2810_v15  }
 0x35e   :  { %2795 = vperm.xlu1 %6159, %v2784_v17  }
 0x361   :  { %2776 = vperm.xlu0 %6162, %v2771_v26  }
 0x365   :  { %6164 = vset.pattern.permute.xlu2 %v9024_v47 }
 0x366   :  { %2808 = vperm.xlu1 %6159, %v2797_v11  }
 0x369   :  { %2854 = vperm.xlu0 %6162, %v2849_v61  }
 0x36c   :  { %v2242_v27 = vpop.xlane.xlu1 %2241 }
 0x36d   :  { %2834 = vperm.xlu2 %6164, %v2823_v34   ;;  %v2272_v7 = vadd.f32 1.0, %v2242_v27  ;;  %v2240_v37 = vpop.xlane.xlu2 %2239 }
 0x36e   :  { %6163 = vset.pattern.permute.xlu1 %v2761_v0  ;;  %v2271_v48 = vadd.f32 1.0, %v2240_v37 }
 0x36f   :  { %v5771_v23 = vadd.f32 -118.0, %v2272_v7  ;;  %vm2661_vm4 = vcmp.gt.f32.partialorder %v2272_v7, 118.0 }
 0x370   :  { %v5770_v28 = vadd.f32 -118.0, %v2271_v48  ;;  %vm2660_vm14 = vcmp.gt.f32.partialorder %v2271_v48, 118.0  ;;  %v5803_v50 = vsel %vm2661_vm4, 1.0, %v12707_v21 }
 0x371   :  { %v5787_v36 = vmul.f32 -1.442695, %v5771_v23  ;;  %v5802_v29 = vsel %vm2660_vm14, 1.0, %v12707_v21  ;;  %v2725_v15 = vperm.slane %v5803_v50, %v9086_v59 }
 0x372   :  { %v5786_v57 = vmul.f32 -1.442695, %v5770_v28  ;;  %v2724_v26 = vperm.slane %v5802_v29, %v9090_v43 }
 0x373   :  { %6395 = vpow2.f32 %v5787_v36 }
 0x374   :  { %v2248_v8 = vpop.xlane.xlu1 %2247  ;;  %6397 = vpow2.f32 %v5786_v57 }
 0x375   :  { %2847 = vperm.xlu2 %6164, %v2836_v40   ;;  %v2275_v62 = vadd.f32 1.0, %v2248_v8 }
 0x376   :  { %2828 = vperm.xlu1 %6163, %v2823_v34  }
 0x377   :  { %v5774_v18 = vadd.f32 -118.0, %v2275_v62  ;;  %vm2664_vm5 = vcmp.gt.f32.partialorder %v2275_v62, 118.0  ;;  %v2726_v62 = vsel %vm2627_vm2, %v2725_v15, %v2724_v26 }
 0x378   :  { %v2246_v3 = vpop.xlane.xlu2 %2245  ;;  %v9105_v17 = vsel %vm2664_vm5, 1.0, %v12707_v21 }
 0x379   :  { %v2274_v60 = vadd.f32 1.0, %v2246_v3  ;;  %v6396_v12 = vpop.eup %6395  ;;  %v5790_v25 = vmul.f32 -1.442695, %v5774_v18  ;;  %v2730_v3 = vperm.slane %v9105_v17, %v9090_v43 }
 0x37a   :  { %v6398_v55 = vpop.eup %6397  ;;  %v9067_v0 = vadd.f32 1.0, %v6396_v12 }
 0x37b   :  { %v5773_v13 = vadd.f32 -118.0, %v2274_v60  ;;  %v9069_v52 = vadd.f32 1.0, %v6398_v55  ;;  %6399 = vpow2.f32 %v5790_v25  ;;  %vm2663_vm6 = vcmp.gt.f32.partialorder %v2274_v60, 118.0 }
 0x37c   :  { %6401 = vrcp.f32 %v9067_v0  ;;  %v5805_v27 = vsel %vm2663_vm6, 1.0, %v12707_v21  ;;  %v2391_v48 = vand.u32 2147483647, %v9067_v0  ;;  %v2393_v23 = vand.u32 2147483648, %v9067_v0 }
 0x37d   :  { %v5789_v42 = vmul.f32 -1.442695, %v5773_v13  ;;  %6403 = vrcp.f32 %v9069_v52  ;;  %v2376_v36 = vand.u32 2147483647, %v9069_v52  ;;  %v2378_v57 = vand.u32 2147483648, %v9069_v52 }
 0x37e   :  { %2841 = vperm.xlu1 %6163, %v2836_v40   ;;  %vm2387_vm3 = vweird.f32 %v9067_v0  ;;  %v2728_v18 = vperm.slane %v5805_v27, %v9086_v59  ;;  %vm2372_vm8 = vweird.f32 %v9069_v52  ;;  %vm9138_vm0 = vcmp.eq.f32.partialorder %v2391_v48, 8.507059e+37 }
 0x37f   :  { %vm9142_vm15 = vcmp.eq.f32.partialorder %v2376_v36, 8.507059e+37 }
 0x380   :  { %v2250_v10 = vpop.xlane.xlu2 %2249 }
 0x381   :  { %v9071_v54 = vadd.f32 1.0, %v2250_v10  ;;  %v6400_v38 = vpop.eup %6399 }
 0x382   :  { %v9079_v44 = vpop.eup %6401  ;;  %v9083_v45 = vadd.f32 1.0, %v6400_v38 }
 0x383   :  { %v2244_v58 = vpop.xlane.xlu0 %2243  ;;  %v5775_v6 = vadd.f32 -118.0, %v9071_v54  ;;  %v9081_v19 = vpop.eup %6403  ;;  %v2383_v53 = vmul.f32 %v9079_v44, %v9067_v0  ;;  %vm2665_vm10 = vcmp.gt.f32.partialorder %v9071_v54, 118.0  ;;  %vm2388_vm11 = vweird.f32 %v9079_v44 }
 0x384   :  { %v2273_v9 = vadd.f32 1.0, %v2244_v58  ;;  %v2368_v41 = vmul.f32 %v9081_v19, %v9069_v52  ;;  %v5807_v55 = vsel %vm2665_vm10, 1.0, %v12707_v21  ;;  %vm2373_vm1 = vweird.f32 %v9081_v19  ;;  %vm9166_vm4 = vmor %vm2387_vm3, %vm2388_vm11 }
 0x385   :  { %v5791_v16 = vmul.f32 -1.442695, %v5775_v6  ;;  %v2731_v38 = vperm.slane %v5807_v55, %v9086_v59  ;;  %vm2432_vm14 = vweird.f32 %v9083_v45  ;;  %v2436_v26 = vand.u32 2147483647, %v9083_v45  ;;  %vm9176_vm5 = vmor %vm2372_vm8, %vm2373_vm1 }
 0x386   :  { %6165 = vset.pattern.permute.xlu1 %v9024_v47  ;;  %v5772_v35 = vadd.f32 -118.0, %v2273_v9  ;;  %vm2662_vm13 = vcmp.gt.f32.partialorder %v2273_v9, 118.0  ;;  %v2369_v34 = vsub.f32 1.0, %v2368_v41  ;;  %v2438_v17 = vand.u32 2147483648, %v9083_v45 }
 0x387   :  { %v5804_v11 = vsel %vm2662_vm13, 1.0, %v12707_v21  ;;  %vm9207_vm6 = vcmp.eq.f32.partialorder %v2436_v26, 8.507059e+37 }
 0x388   :  { %v5788_v63 = vmul.f32 -1.442695, %v5772_v35  ;;  %v2254_v2 = vpop.xlane.xlu1 %2253  ;;  %v2256_v28 = vpop.xlane.xlu2 %2255  ;;  %v2727_v8 = vperm.slane %v5804_v11, %v9090_v43  ;;  %v2370_v60 = vmul.f32 %v9081_v19, %v2369_v34 }
 0x389   :  { %v9075_v47 = vadd.f32 1.0, %v2254_v2  ;;  %v9132_v35 = vadd.f32 1.0, %v2256_v28 }
 0x38a   :  { %6405 = vpow2.f32 %v5788_v63  ;;  %v2394_v63 = vor.u32 1.1754944e-38, %v2393_v23  ;;  %v2729_v6 = vsel %vm2627_vm2, %v2728_v18, %v2727_v8  ;;  %v9190_v23 = vsel %vm2627_vm2, %v2731_v38, %v2730_v3 }
 0x38b   :  { %6407 = vpow2.f32 %v5789_v42  ;;  %v5777_v22 = vadd.f32 -118.0, %v9075_v47  ;;  %v2252_v7 = vpop.xlane.xlu0 %2251  ;;  %v2379_v42 = vor.u32 1.1754944e-38, %v2378_v57  ;;  %vm2667_vm13 = vcmp.gt.f32.partialorder %v9075_v47, 118.0 }
 0x38c   :  { %6409 = vpow2.f32 %v5791_v16  ;;  %v9134_v13 = vadd.f32 1.0, %v2252_v7  ;;  %v5778_v16 = vadd.f32 -118.0, %v9132_v35  ;;  %v9217_v54 = vsel %vm2667_vm13, 1.0, %v12707_v21 }
 0x38d   :  { %v5793_v51 = vmul.f32 -1.442695, %v5777_v22  ;;  %6411 = vrcp.f32 %v9083_v45 }
 0x38e   :  { %2860 = vperm.xlu1 %6165, %v2849_v61   ;;  %v2384_v61 = vsub.f32 1.0, %v2383_v53  ;;  %v9161_v53 = vsel %vm12704_vm7, %v2729_v6, %v2726_v62  ;;  %v5776_v41 = vadd.f32 -118.0, %v9134_v13  ;;  %v5794_v27 = vmul.f32 -1.442695, %v5778_v16 }
 0x38f   :  { %6413 = vpow2.f32 %v5793_v51  ;;  %v2371_v51 = vadd.f32 %v9081_v19, %v2370_v60  ;;  %v2439_v62 = vor.u32 1.1754944e-38, %v2438_v17 }
 0x390   :  { %v6406_v30 = vpop.eup %6405  ;;  %v2385_v9 = vmul.f32 %v9079_v44, %v2384_v61  ;;  %v5792_v7 = vmul.f32 -1.442695, %v5776_v41 }
 0x391   :  { %v6408_v32 = vpop.eup %6407  ;;  %v9098_v46 = vadd.f32 1.0, %v6406_v30  ;;  %v2375_v52 = vsel %vm9176_vm5, %v9081_v19, %v2371_v51 }
 0x392   :  { %v9100_v5 = vadd.f32 1.0, %v6408_v32  ;;  %v6410_v37 = vpop.eup %6409  ;;  %v2386_v50 = vadd.f32 %v9079_v44, %v2385_v9  ;;  %v2380_v3 = vsel %vm9142_vm15, %v2379_v42, %v2375_v52 }
 0x393   :  { %6415 = vrcp.f32 %v9098_v46  ;;  %v9113_v40 = vpop.eup %6411  ;;  %v9126_v12 = vadd.f32 1.0, %v6410_v37  ;;  %v2258_v61 = vpop.xlane.xlu0 %2257  ;;  %vm2402_vm3 = vweird.f32 %v9098_v46  ;;  %v2408_v15 = vand.u32 2147483648, %v9098_v46 }
 0x394   :  { %6417 = vrcp.f32 %v9100_v5  ;;  %v2428_v25 = vmul.f32 %v9113_v40, %v9083_v45  ;;  %v2423_v11 = vand.u32 2147483648, %v9100_v5  ;;  %v2262_v37 = vpop.xlane.xlu2 %2261  ;;  %v2390_v48 = vsel %vm9166_vm4, %v9079_v44, %v2386_v50 }
 0x395   :  { %v6414_v58 = vpop.eup %6413  ;;  %6419 = vrcp.f32 %v9126_v12  ;;  %v9194_v57 = vadd.f32 1.0, %v2258_v61  ;;  %v2421_v44 = vand.u32 2147483647, %v9100_v5  ;;  %v2395_v19 = vsel %vm9138_vm0, %v2394_v63, %v2390_v48 }
 0x396   :  { %v9149_v22 = vadd.f32 1.0, %v6414_v58  ;;  %v2429_v32 = vsub.f32 1.0, %v2428_v25  ;;  %v9199_v18 = vor.u32 1.1754944e-38, %v2423_v11  ;;  %v9201_v58 = vadd.f32 1.0, %v2262_v37 }
 0x397   :  { %vm2433_vm10 = vweird.f32 %v9113_v40  ;;  %v2406_v25 = vand.u32 2147483647, %v9098_v46  ;;  %vm2417_vm8 = vweird.f32 %v9100_v5  ;;  %v5779_v38 = vadd.f32 -118.0, %v9194_v57 }
 0x398   :  { %6421 = vrcp.f32 %v9149_v22  ;;  %v2430_v28 = vmul.f32 %v9113_v40, %v2429_v32  ;;  %v2260_v55 = vpop.xlane.xlu1 %2259  ;;  %v2626_v16 = vperm.slane %v2395_v19, %v9086_v59  ;;  %v2624_v50 = vperm.slane %v2380_v3, %v9090_v43  ;;  %vm9240_vm15 = vmor %vm2432_vm14, %vm2433_vm10 }
 0x399   :  { %v9136_v10 = vpop.eup %6415  ;;  %6423 = vpow2.f32 %v5792_v7  ;;  %v5781_v47 = vadd.f32 -118.0, %v9201_v58  ;;  %v9230_v51 = vadd.f32 1.0, %v2260_v55  ;;  %v2453_v41 = vand.u32 2147483648, %v9126_v12 }
 0x39a   :  { %v9152_v30 = vpop.eup %6417  ;;  %v2398_v29 = vmul.f32 %v9136_v10, %v9098_v46  ;;  %6425 = vpow2.f32 %v5794_v27  ;;  %v2431_v2 = vadd.f32 %v9113_v40, %v2430_v28  ;;  %vm2403_vm0 = vweird.f32 %v9136_v10 }
 0x39b   :  { %v2413_v0 = vmul.f32 %v9152_v30, %v9100_v5  ;;  %v9196_v8 = vpop.eup %6419  ;;  %vm2418_vm11 = vweird.f32 %v9152_v30  ;;  %vm9245_vm1 = vcmp.eq.f32.partialorder %v2406_v25, 8.507059e+37  ;;  %v5795_v61 = vmul.f32 -1.442695, %v5779_v38  ;;  %vm9269_vm14 = vmor %vm2402_vm3, %vm2403_vm0 }
 0x39c   :  { %v2399_v36 = vsub.f32 1.0, %v2398_v29  ;;  %v2443_v42 = vmul.f32 %v9196_v8, %v9126_v12  ;;  %vm9254_vm4 = vcmp.eq.f32.partialorder %v2421_v44, 8.507059e+37  ;;  %v9262_v48 = vsel %vm2627_vm2, %v2626_v16, %v2624_v50  ;;  %v2268_v55 = vpop.xlane.xlu2 %2267  ;;  %vm9295_vm13 = vmor %vm2417_vm8, %vm2418_vm11 }
 0x39d   :  { %v2414_v60 = vsub.f32 1.0, %v2413_v0  ;;  %v2435_v0 = vsel %vm9240_vm15, %v9113_v40, %v2431_v2  ;;  %v2451_v52 = vand.u32 2147483647, %v9126_v12  ;;  %v5797_v28 = vmul.f32 -1.442695, %v5781_v47 }
 0x39e   :  { %v9219_v63 = vpop.eup %6421  ;;  %v2400_v6 = vmul.f32 %v9136_v10, %v2399_v36  ;;  %v2444_v27 = vsub.f32 1.0, %v2443_v42  ;;  %v5780_v36 = vadd.f32 -118.0, %v9230_v51  ;;  %vm2447_vm5 = vweird.f32 %v9126_v12 }
 0x39f   :  { %v6424_v32 = vpop.eup %6423  ;;  %v2415_v29 = vmul.f32 %v9152_v30, %v2414_v60  ;;  %v2473_v11 = vmul.f32 %v9219_v63, %v9149_v22  ;;  %v9276_v19 = vor.u32 1.1754944e-38, %v2453_v41  ;;  %v2409_v3 = vor.u32 1.1754944e-38, %v2408_v15 }
 0x3a0   :  { %v6426_v34 = vpop.eup %6425  ;;  %v2401_v7 = vadd.f32 %v9136_v10, %v2400_v6  ;;  %v9259_v37 = vadd.f32 1.0, %v6424_v32  ;;  %v2734_v60 = vperm.slane %v9217_v54, %v9086_v59  ;;  %v9282_v46 = vsel %vm9207_vm6, %v2439_v62, %v2435_v0  ;;  %v2266_v32 = vpop.xlane.xlu1 %2265 }
 0x3a1   :  { %v2416_v44 = vadd.f32 %v9152_v30, %v2415_v29  ;;  %v2474_v25 = vsub.f32 1.0, %v2473_v11  ;;  %v9284_v2 = vadd.f32 1.0, %v6426_v34  ;;  %6427 = vpow2.f32 %v5795_v61 }
 0x3a2   :  { %v2445_v42 = vmul.f32 %v9196_v8, %v2444_v27  ;;  %v2405_v6 = vsel %vm9269_vm14, %v9136_v10, %v2401_v7  ;;  %6429 = vrcp.f32 %v9259_v37  ;;  %v5796_v38 = vmul.f32 -1.442695, %v5780_v36 }
 0x3a3   :  { %vm2477_vm6 = vweird.f32 %v9149_v22  ;;  %vm2666_vm10 = vcmp.gt.f32.partialorder %v9134_v13, 118.0  ;;  %6431 = vpow2.f32 %v5797_v28  ;;  %v9301_v9 = vadd.f32 1.0, %v2268_v55 }
 0x3a4   :  { %v2632_v10 = vperm.slane %v9282_v46, %v9090_v43  ;;  %v2420_v16 = vsel %vm9295_vm13, %v9152_v30, %v2416_v44  ;;  %vm9308_vm3 = vcmp.eq.f32.partialorder %v2451_v52, 8.507059e+37  ;;  %v2481_v50 = vand.u32 2147483647, %v9149_v22  ;;  %v9373_v62 = vpop.permute.xlu2 %2769 }
 0x3a5   :  { %v2483_v47 = vand.u32 2147483648, %v9149_v22  ;;  %v2410_v13 = vsel %vm9245_vm1, %v2409_v3, %v2405_v6  ;;  %v2475_v29 = vmul.f32 %v9219_v63, %v2474_v25  ;;  %6433 = vrcp.f32 %v9284_v2 }
 0x3a6   :  { %vm2668_vm8 = vcmp.gt.f32.partialorder %v9132_v35, 118.0  ;;  %v2446_v30 = vadd.f32 %v9196_v8, %v2445_v42  ;;  %vm2448_vm0 = vweird.f32 %v9196_v8  ;;  %v5808_v41 = vsel %vm2666_vm10, 1.0, %v12707_v21 }
 0x3a7   :  { %6435 = vpow2.f32 %v5796_v38  ;;  %v6428_v15 = vpop.eup %6427  ;;  %v2425_v26 = vsel %vm9254_vm4, %v9199_v18, %v2420_v16  ;;  %vm2669_vm15 = vcmp.gt.f32.partialorder %v9194_v57, 118.0  ;;  %v5784_v17 = vadd.f32 -118.0, %v9301_v9  ;;  %vm9339_vm1 = vmor %vm2447_vm5, %vm2448_vm0 }
 0x3a8   :  { %v9327_v11 = vadd.f32 1.0, %v2266_v32  ;;  %v9329_v61 = vpop.eup %6429  ;;  %v2629_v35 = vperm.slane %v2410_v13, %v9090_v43  ;;  %vm9332_vm11 = vcmp.eq.f32.partialorder %v2481_v50, 8.507059e+37  ;;  %v2484_v0 = vor.u32 1.1754944e-38, %v2483_v47 }
 0x3a9   :  { %v5810_v27 = vsel %vm2668_vm8, 1.0, %v12707_v21  ;;  %v6432_v7 = vpop.eup %6431  ;;  %v2476_v45 = vadd.f32 %v9219_v63, %v2475_v29  ;;  %vm2478_vm4 = vweird.f32 %v9219_v63  ;;  %v2733_v52 = vperm.slane %v5808_v41, %v9090_v43 }
 0x3aa   :  { %vm2671_vm14 = vcmp.gt.f32.partialorder %v9201_v58, 118.0  ;;  %v2630_v40 = vperm.slane %v2425_v26, %v9086_v59  ;;  %v2450_v28 = vsel %vm9339_vm1, %v9196_v8, %v2446_v30  ;;  %v9351_v36 = vadd.f32 1.0, %v6428_v15  ;;  %vm9365_vm13 = vmor %vm2477_vm6, %vm2478_vm4 }
 0x3ab   :  { %v5811_v12 = vsel %vm2669_vm15, 1.0, %v12707_v21  ;;  %v9356_v44 = vpop.eup %6433  ;;  %v2458_v3 = vmul.f32 %v9329_v61, %v9259_v37  ;;  %vm2670_vm5 = vcmp.gt.f32.partialorder %v9230_v51, 118.0  ;;  %v5800_v58 = vmul.f32 -1.442695, %v5784_v17 }
 0x3ac   :  { %v5783_v55 = vadd.f32 -118.0, %v9327_v11  ;;  %v2631_v42 = vsel %vm2627_vm2, %v2630_v40, %v2629_v35  ;;  %v2736_v57 = vperm.slane %v5810_v27, %v9090_v43  ;;  %v9370_v6 = vadd.f32 1.0, %v6432_v7  ;;  %v9441_v8 = vpop.permute.xlu2 %2789 }
 0x3ad   :  { %v6436_v25 = vpop.eup %6435  ;;  %v5813_v38 = vsel %vm2671_vm14, 1.0, %v12707_v21  ;;  %v9378_v16 = vsel %vm9308_vm3, %v9276_v19, %v2450_v28  ;;  %v2480_v22 = vsel %vm9365_vm13, %v9219_v63, %v2476_v45  ;;  %v2735_v50 = vsel %vm2627_vm2, %v2734_v60, %v2733_v52 }
 0x3ae   :  { %v2737_v47 = vperm.slane %v5811_v12, %v9086_v59  ;;  %v2488_v32 = vmul.f32 %v9356_v44, %v9284_v2  ;;  %6437 = vrcp.f32 %v9351_v36  ;;  %v5812_v19 = vsel %vm2670_vm5, 1.0, %v12707_v21 }
 0x3af   :  { %v5799_v5 = vmul.f32 -1.442695, %v5783_v55  ;;  %v2459_v13 = vsub.f32 1.0, %v2458_v3  ;;  %v2740_v63 = vperm.slane %v5813_v38, %v9086_v59  ;;  %v9395_v29 = vadd.f32 1.0, %v6436_v25 }
 0x3b0   :  { %6439 = vpow2.f32 %v5800_v58  ;;  %v9399_v54 = vsel %vm9332_vm11, %v2484_v0, %v2480_v22  ;;  %v2498_v60 = vand.u32 2147483648, %v9284_v2  ;;  %v2466_v30 = vand.u32 2147483647, %v9259_v37  ;;  %v2264_v0 = vpop.xlane.xlu0 %2263 }
 0x3b1   :  { %6441 = vrcp.f32 %v9370_v6  ;;  %v2468_v51 = vand.u32 2147483648, %v9259_v37  ;;  %v2738_v41 = vsel %vm2627_vm2, %v2737_v47, %v2736_v57  ;;  %v2739_v15 = vperm.slane %v5812_v19, %v9090_v43 }
 0x3b2   :  { %6443 = vpow2.f32 %v5799_v5  ;;  %v2633_v26 = vperm.slane %v9378_v16, %v9086_v59  ;;  %v9411_v17 = vsel %vm12704_vm7, %v2631_v42, %v9262_v48  ;;  %v2489_v35 = vsub.f32 1.0, %v2488_v32 }
 0x3b3   :  { %v2749_v34 = vsel %vm12727_vm9, %v9190_v23, %v9161_v53  ;;  %v2636_v27 = vperm.slane %v9399_v54, %v9086_v59  ;;  %v2460_v7 = vmul.f32 %v9329_v61, %v2459_v13  ;;  %6445 = vrcp.f32 %v9395_v29 }
 0x3b4   :  { %v2750_v18 = vsel %vm12725_vm12, %v2735_v50, %v2749_v34  ;;  %v9421_v45 = vpop.eup %6437  ;;  %vm2492_vm6 = vweird.f32 %v9284_v2  ;;  %v2496_v48 = vand.u32 2147483647, %v9284_v2  ;;  %v9425_v52 = vor.u32 1.1754944e-38, %v2498_v60 }
 0x3b5   :  { %vm2462_vm10 = vweird.f32 %v9259_v37  ;;  %vm12947_vm3 = vcmask 1044484   ;;  %vm2493_vm8 = vweird.f32 %v9356_v44  ;;  %vm9430_vm0 = vcmp.eq.f32.partialorder %v2466_v30, 8.507059e+37 }
 0x3b6   :  { %v2751_v53 = vsel %vm12947_vm3, %v2738_v41, %v2750_v18  ;;  %v6440_v23 = vpop.eup %6439  ;;  %v2469_v28 = vor.u32 1.1754944e-38, %v2468_v51  ;;  %v2543_v12 = vand.u32 2147483648, %v9370_v6  ;;  %v2741_v3 = vsel %vm2627_vm2, %v2740_v63, %v2739_v15  ;;  %vm9493_vm3 = vmor %vm2492_vm6, %vm2493_vm8 }
 0x3b7   :  { %v9436_v58 = vpop.eup %6441  ;;  %v2490_v55 = vmul.f32 %v9356_v44, %v2489_v35  ;;  %vm2463_vm15 = vweird.f32 %v9329_v61  ;;  %v2541_v25 = vand.u32 2147483647, %v9370_v6  ;;  %v2283_v42 = vadd.f32 1.0, %v2264_v0 }
 0x3b8   :  { %v6444_v57 = vpop.eup %6443  ;;  %v2461_v38 = vadd.f32 %v9329_v61, %v2460_v7  ;;  %v2503_v22 = vmul.f32 %v9421_v45, %v9351_v36  ;;  %v2513_v50 = vand.u32 2147483648, %v9351_v36  ;;  %vm2674_vm11 = vcmp.gt.f32.partialorder %v9301_v9, 118.0  ;;  %v2764_v51 = vpop.permute.xlu1 %2763  ;;  %vm9472_vm5 = vmor %vm2462_vm10, %vm2463_vm15 }
 0x3b9   :  { %vm9448_vm1 = vcmp.eq.f32.partialorder %v2496_v48, 8.507059e+37  ;;  %vm12952_vm4 = vcmask 1045509   ;;  %v9455_v19 = vadd.f32 1.0, %v6440_v23  ;;  %v9457_v5 = vadd.f32 1.0, %v6444_v57  ;;  %v9459_v63 = vpop.eup %6445  ;;  %v2270_v34 = vpop.xlane.xlu0 %2269 }
 0x3ba   :  { %v9453_v32 = vsel %vm12952_vm4, %v2741_v3, %v2751_v53  ;;  %v5782_v13 = vadd.f32 -118.0, %v2283_v42  ;;  %v2533_v60 = vmul.f32 %v9436_v58, %v9370_v6  ;;  %v9463_v30 = vor.u32 1.1754944e-38, %v2543_v12 }
 0x3bb   :  { %v2511_v9 = vand.u32 2147483647, %v9351_v36  ;;  %vm2673_vm14 = vcmp.gt.f32.partialorder %v9327_v11, 118.0  ;;  %v2491_v41 = vadd.f32 %v9356_v44, %v2490_v55  ;;  %v5816_v35 = vsel %vm2674_vm11, 1.0, %v12707_v21 }
 0x3bc   :  { %6447 = vrcp.f32 %v9457_v5  ;;  %vm2672_vm13 = vcmp.gt.f32.partialorder %v2283_v42, 118.0  ;;  %v2465_v11 = vsel %vm9472_vm5, %v9329_v61, %v2461_v38  ;;  %v2504_v0 = vsub.f32 1.0, %v2503_v22 }
 0x3bd   :  { %v9481_v7 = vor.u32 1.1754944e-38, %v2513_v50  ;;  %v5798_v18 = vmul.f32 -1.442695, %v5782_v13  ;;  %v2518_v37 = vmul.f32 %v9459_v63, %v9395_v29  ;;  %6449 = vrcp.f32 %v9455_v19 }
 0x3be   :  { %v5815_v48 = vsel %vm2673_vm14, 1.0, %v12707_v21  ;;  %vm2863_vm10 = vcmp.gt.f32.partialorder %v9373_v62, %v6809_v4  ;;  %v2534_v53 = vsub.f32 1.0, %v2533_v60  ;;  %v2745_v23 = vperm.slane %v5816_v35, %v9090_v43 }
 0x3bf   :  { %6451 = vpow2.f32 %v5798_v18  ;;  %v5814_v12 = vsel %vm2672_vm13, 1.0, %v12707_v21  ;;  %v2495_v3 = vsel %vm9493_vm3, %v9356_v44, %v2491_v41  ;;  %v2470_v62 = vsel %vm9430_vm0, %v2469_v28, %v2465_v11  ;;  %v9514_v28 = vpop.permute.xlu2 %2802 }
 0x3c0   :  { %vm2537_vm15 = vweird.f32 %v9370_v6  ;;  %vm2538_vm6 = vweird.f32 %v9436_v58  ;;  %vm2507_vm8 = vweird.f32 %v9351_v36  ;;  %v2286_v2 = vadd.f32 1.0, %v2270_v34 }
 0x3c1   :  { %v2505_v55 = vmul.f32 %v9421_v45, %v2504_v0  ;;  %v2743_v42 = vperm.slane %v5815_v48, %v9086_v59  ;;  %v2742_v57 = vperm.slane %v5814_v12, %v9090_v43  ;;  %v5819_v38 = vsel %vm2863_vm10, 1.0, %v12707_v21 }
 0x3c2   :  { %v9511_v22 = vpop.eup %6447  ;;  %v2519_v44 = vsub.f32 1.0, %v2518_v37  ;;  %v5785_v40 = vadd.f32 -118.0, %v2286_v2  ;;  %vm2675_vm0 = vcmp.gt.f32.partialorder %v2286_v2, 118.0  ;;  %vm2862_vm11 = vcmp.gt.f32.partialorder %v2764_v51, %v6809_v4  ;;  %2912 = vadd.xlane.f32.xlu1 %v5819_v38 }
 0x3c3   :  { %v9519_v50 = vsel %vm9448_vm1, %v9425_v52, %v2495_v3  ;;  %v2535_v13 = vmul.f32 %v9436_v58, %v2534_v53  ;;  %v2526_v60 = vand.u32 2147483647, %v9395_v29  ;;  %v2563_v41 = vmul.f32 %v9511_v22, %v9457_v5  ;;  %v9525_v35 = vpop.eup %6449  ;;  %v9534_v0 = vpop.permute.xlu0 %2821 }
 0x3c4   :  { %vm2508_vm4 = vweird.f32 %v9421_v45  ;;  %vm9528_vm14 = vcmp.eq.f32.partialorder %v2511_v9, 8.507059e+37  ;;  %v2528_v47 = vand.u32 2147483648, %v9395_v29  ;;  %v5801_v52 = vmul.f32 -1.442695, %v5785_v40 }
 0x3c5   :  { %v5817_v11 = vsel %vm2675_vm0, 1.0, %v12707_v21  ;;  %v6452_v18 = vpop.eup %6451  ;;  %v2635_v37 = vperm.slane %v2470_v62, %v9090_v43  ;;  %v2744_v48 = vsel %vm2627_vm2, %v2743_v42, %v2742_v57  ;;  %v5818_v9 = vsel %vm2862_vm11, 1.0, %v12707_v21  ;;  %vm9562_vm10 = vmor %vm2507_vm8, %vm2508_vm4 }
 0x3c6   :  { %v2746_v61 = vperm.slane %v5817_v11, %v9086_v59  ;;  %v2506_v53 = vadd.f32 %v9421_v45, %v2505_v55  ;;  %v2520_v12 = vmul.f32 %v9459_v63, %v2519_v44  ;;  %v9544_v3 = vadd.f32 1.0, %v6452_v18  ;;  %2910 = vadd.xlane.f32.xlu2 %v5818_v9  ;;  %vm9588_vm8 = vmor %vm2537_vm15, %vm2538_vm6 }
 0x3c7   :  { %6453 = vpow2.f32 %v5801_v52  ;;  %v9547_v2 = vadd.f32 %v9436_v58, %v2535_v13  ;;  %v2564_v62 = vsub.f32 1.0, %v2563_v41  ;;  %vm12705_vm1 = vcmask 523648   ;;  %v2816_v18 = vpop.permute.xlu2 %2815 }
 0x3c8   :  { %v2783_v15 = vpop.permute.xlu1 %2782  ;;  %v2747_v42 = vsel %vm2627_vm2, %v2746_v61, %v2745_v23  ;;  %v2578_v57 = vmul.f32 %v9525_v35, %v9455_v19  ;;  %6455 = vrcp.f32 %v9544_v3  ;;  %vm12959_vm5 = vcmask 1046534  }
 0x3c9   :  { %v2753_v51 = vsel %vm12959_vm5, %v2744_v48, %v9453_v32  ;;  %vm2865_vm13 = vcmp.gt.f32.partialorder %v2783_v15, %v6850_v14  ;;  %v2638_v55 = vperm.slane %v9519_v50, %v9090_v43  ;;  %vm2522_vm3 = vweird.f32 %v9395_v29 }
 0x3ca   :  { %vm9567_vm0 = vcmp.eq.f32.partialorder %v2526_v60, 8.507059e+37  ;;  %vm12964_vm11 = vcmask 1047559   ;;  %v2510_v44 = vsel %vm9562_vm10, %v9421_v45, %v2506_v53  ;;  %v2521_v40 = vadd.f32 %v9459_v63, %v2520_v12 }
 0x3cb   :  { %v2754_v32 = vsel %vm12964_vm11, %v2747_v42, %v2753_v51  ;;  %vm2523_vm5 = vweird.f32 %v9459_v63  ;;  %v2529_v36 = vor.u32 1.1754944e-38, %v2528_v47  ;;  %v9582_v13 = vsel %vm2627_vm2, %v2636_v27, %v2635_v37 }
 0x3cc   :  { %2756 = vst.msk [vmem:[#allocation2 + $0x8] sm:$0xff] %vm12705_vm1, %v2754_v32  ;;  %v2586_v45 = vand.u32 2147483647, %v9455_v19  ;;  %v2565_v41 = vmul.f32 %v9511_v22, %v2564_v62  ;;  %v5821_v15 = vsel %vm2865_vm13, 1.0, %v12707_v21  ;;  %v2540_v54 = vsel %vm9588_vm8, %v9436_v58, %v9547_v2  ;;  %vm9610_vm6 = vmor %vm2522_vm3, %vm2523_vm5 }
 0x3cd   :  { %v6454_v52 = vpop.eup %6453  ;;  %v2579_v27 = vsub.f32 1.0, %v2578_v57  ;;  %v2588_v11 = vand.u32 2147483648, %v9455_v19  ;;  %v9604_v48 = vsel %vm9528_vm14, %v9481_v7, %v2510_v44  ;;  %v2525_v7 = vsel %vm9610_vm6, %v9459_v63, %v2521_v40 }
 0x3ce   :  { %v9614_v9 = vadd.f32 1.0, %v6454_v52  ;;  %v6456_v12 = vpop.eup %6455  ;;  %v2571_v34 = vand.u32 2147483647, %v9457_v5  ;;  %2916 = vadd.xlane.f32.xlu2 %v5821_v15  ;;  %v9624_v62 = vadd.s32 88, %v6798_v1  ;;  %v2566_v42 = vadd.f32 %v9511_v22, %v2565_v41 }
 0x3cf   :  { %vm2568_vm14 = vweird.f32 %v9511_v22  ;;  %v2548_v57 = vmul.f32 %v6456_v12, %v9544_v3  ;;  %vm9632_vm13 = vcmp.eq.f32.partialorder %v2541_v25, 8.507059e+37  ;;  %v2580_v51 = vmul.f32 %v9525_v35, %v2579_v27 }
 0x3d0   :  { %v2796_v47 = vpop.permute.xlu1 %2795  ;;  %6457 = vrcp.f32 %v9614_v9  ;;  %vm2582_vm10 = vweird.f32 %v9455_v19  ;;  %vm2567_vm3 = vweird.f32 %v9457_v5  ;;  %v2573_v38 = vand.u32 2147483648, %v9457_v5  ;;  %6167 = vset.pattern.permute.xlu1 %v9624_v62  ;;  %6170 = vset.pattern.permute.xlu0 %v9624_v62 }
 0x3d1   :  { %vm2867_vm15 = vcmp.gt.f32.partialorder %v2796_v47, %v6857_v20  ;;  %v9642_v32 = vadd.s32 80, %v6798_v1  ;;  %v2549_v6 = vsub.f32 1.0, %v2548_v57  ;;  %v2556_v25 = vand.u32 2147483647, %v9544_v3  ;;  %vm9654_vm6 = vmor %vm2567_vm3, %vm2568_vm14 }
 0x3d2   :  { %v5823_v53 = vsel %vm2867_vm15, 1.0, %v12707_v21  ;;  %vm2866_vm11 = vcmp.gt.f32.partialorder %v9441_v8, %v6857_v20  ;;  %vm2870_vm5 = vcmp.gt.f32.partialorder %v2816_v18, %v6862_v24  ;;  %v2530_v44 = vsel %vm9567_vm0, %v2529_v36, %v2525_v7  ;;  %v2835_v18 = vpop.permute.xlu2 %2834 }
 0x3d3   :  { %v2777_v37 = vpop.permute.xlu0 %2776  ;;  %2920 = vadd.xlane.f32.xlu1 %v5823_v53  ;;  %vm2583_vm15 = vweird.f32 %v9525_v35  ;;  %v2558_v41 = vand.u32 2147483648, %v9544_v3  ;;  %6166 = vset.pattern.permute.xlu2 %v9642_v32  ;;  %v2570_v8 = vsel %vm9654_vm6, %v9511_v22, %v2566_v42  ;;  %v2550_v23 = vmul.f32 %v6456_v12, %v2549_v6 }
 0x3d4   :  { %vm2864_vm4 = vcmp.gt.f32.partialorder %v2777_v37, %v6850_v14  ;;  %vm2553_vm0 = vweird.f32 %v6456_v12  ;;  %vm2868_vm14 = vcmp.gt.f32.partialorder %v9514_v28, %v6872_v33  ;;  %v2581_v15 = vadd.f32 %v9525_v35, %v2580_v51 }
 0x3d5   :  { %v5820_v29 = vsel %vm2864_vm4, 1.0, %v12707_v21  ;;  %vm9658_vm4 = vcmp.eq.f32.partialorder %v2571_v34, 8.507059e+37  ;;  %v2574_v47 = vor.u32 1.1754944e-38, %v2573_v38  ;;  %v5822_v52 = vsel %vm2866_vm11, 1.0, %v12707_v21 }
 0x3d6   :  { %2914 = vadd.xlane.f32.xlu0 %v5820_v29  ;;  %v5826_v27 = vsel %vm2870_vm5, 1.0, %v12707_v21  ;;  %v6458_v37 = vpop.eup %6457  ;;  %v2551_v61 = vadd.f32 %v6456_v12, %v2550_v23  ;;  %vm2552_vm3 = vweird.f32 %v9544_v3  ;;  %vm2557_vm7 = vcmp.eq.f32.partialorder %v2556_v25, 8.507059e+37  ;;  %2918 = vadd.xlane.f32.xlu2 %v5822_v52 }
 0x3d7   :  { %vm2873_vm6 = vcmp.gt.f32.partialorder %v2835_v18, %v6870_v31  ;;  %v2575_v22 = vsel %vm9658_vm4, %v2574_v47, %v2570_v8  ;;  %vm2554_vm1 = vmor %vm2552_vm3, %vm2553_vm0  ;;  %v2559_v53 = vor.u32 1.1754944e-38, %v2558_v41  ;;  %v2593_v7 = vmul.f32 %v6458_v37, %v9614_v9 }
 0x3d8   :  { %v2809_v36 = vpop.permute.xlu1 %2808  ;;  %v5824_v34 = vsel %vm2868_vm14, 1.0, %v12707_v21  ;;  %v2555_v29 = vsel %vm2554_vm1, %v6456_v12, %v2551_v61  ;;  %vm2597_vm11 = vweird.f32 %v9614_v9  ;;  %v2601_v3 = vand.u32 2147483647, %v9614_v9 }
 0x3d9   :  { %v2603_v42 = vand.u32 2147483648, %v9614_v9  ;;  %v2560_v57 = vsel %vm2557_vm7, %v2559_v53, %v2555_v29  ;;  %v2594_v51 = vsub.f32 1.0, %v2593_v7  ;;  %vm2598_vm5 = vweird.f32 %v6458_v37  ;;  %vm9700_vm7 = vmor %vm2582_vm10, %vm2583_vm15 }
 0x3da   :  { %vm2869_vm4 = vcmp.gt.f32.partialorder %v2809_v36, %v6872_v33  ;;  %v2545_v28 = vsel %vm9632_vm13, %v9463_v30, %v2540_v54  ;;  %v2639_v12 = vperm.slane %v9604_v48, %v9086_v59  ;;  %v2641_v38 = vperm.slane %v2530_v44, %v9090_v43  ;;  %vm9718_vm8 = vmor %vm2597_vm11, %vm2598_vm5 }
 0x3db   :  { %2926 = vadd.xlane.f32.xlu1 %v5826_v27  ;;  %v2589_v58 = vor.u32 1.1754944e-38, %v2588_v11  ;;  %v2585_v30 = vsel %vm9700_vm7, %v9525_v35, %v2581_v15  ;;  %v2595_v2 = vmul.f32 %v6458_v37, %v2594_v51  ;;  %vm2871_vm1 = vcmp.gt.f32.partialorder %v9534_v0, %v6862_v24  ;;  %v2855_v50 = vpop.permute.xlu0 %2854  ;;  %v2848_v27 = vpop.permute.xlu2 %2847 }
 0x3dc   :  { %v5829_v60 = vsel %vm2873_vm6, 1.0, %v12707_v21  ;;  %v2645_v54 = vperm.slane %v2575_v22, %v9086_v59  ;;  %v2644_v48 = vperm.slane %v2560_v57, %v9090_v43  ;;  %v2604_v63 = vor.u32 1.1754944e-38, %v2603_v42  ;;  %v3428_v22 = vld [vmem:[#allocation3] sm:$0xff] }
 0x3dd   :  { %v5825_v35 = vsel %vm2869_vm4, 1.0, %v12707_v21  ;;  %v2642_v44 = vperm.slane %v2545_v28, %v9086_v59  ;;  %vm2587_vm13 = vcmp.eq.f32.partialorder %v2586_v45, 8.507059e+37  ;;  %v2596_v5 = vadd.f32 %v6458_v37, %v2595_v2 }
 0x3de   :  { %2922 = vadd.xlane.f32.xlu0 %v5824_v34  ;;  %vm2602_vm10 = vcmp.eq.f32.partialorder %v2601_v3, 8.507059e+37  ;;  %v2634_v9 = vsel %vm2627_vm2, %v2633_v26, %v2632_v10  ;;  %v2640_v40 = vsel %vm2627_vm2, %v2639_v12, %v2638_v55  ;;  %v2590_v41 = vsel %vm2587_vm13, %v2589_v58, %v2585_v30  ;;  %2924 = vadd.xlane.f32.xlu2 %v5825_v35 }
 0x3df   :  { %v2651_v19 = vsel %vm12727_vm9, %v2634_v9, %v9411_v17  ;;  %v2643_v45 = vsel %vm2627_vm2, %v2642_v44, %v2641_v38  ;;  %v2600_v8 = vsel %vm9718_vm8, %v6458_v37, %v2596_v5  ;;  %v5827_v46 = vsel %vm2871_vm1, 1.0, %v12707_v21 }
 0x3e0   :  { %v2652_v10 = vsel %vm12725_vm12, %v9582_v13, %v2651_v19  ;;  %v2646_v16 = vsel %vm2627_vm2, %v2645_v54, %v2644_v48  ;;  %v2605_v26 = vsel %vm2602_vm10, %v2604_v63, %v2600_v8  ;;  %vm12979_vm15 = vcmask 1044484  }
 0x3e1   :  { %v2653_v17 = vsel %vm12979_vm15, %v2640_v40, %v2652_v10  ;;  %v2647_v55 = vperm.slane %v2590_v41, %v9090_v43  ;;  %v2648_v23 = vperm.slane %v2605_v26, %v9086_v59  ;;  %vm12980_vm14 = vcmask 1045509  }
 0x3e2   :  { %v2654_v36 = vsel %vm12980_vm14, %v2643_v45, %v2653_v17  ;;  %vm12981_vm3 = vcmask 1046534   ;;  %vm2876_vm6 = vcmp.gt.f32.partialorder %v2855_v50, %v6889_v49  ;;  %vm12982_vm11 = vcmask 1047559  }
 0x3e3   :  { %2932 = vadd.xlane.f32.xlu1 %v5829_v60  ;;  %v2655_v0 = vsel %vm12981_vm3, %v2646_v16, %v2654_v36  ;;  %v2649_v15 = vsel %vm2627_vm2, %v2648_v23, %v2647_v55  ;;  %vm12983_vm5 = vcmask 523648   ;;  %v5832_v59 = vsel %vm2876_vm6, 1.0, %v12707_v21 }
 0x3e4   :  { %v2656_v13 = vsel %vm12982_vm11, %v2649_v15, %v2655_v0  ;;  %vm2875_vm2 = vcmp.gt.f32.partialorder %v2848_v27, %v6879_v39  ;;  %v3429_v53 = vperm.slane %v3428_v22, 0  ;;  %v3481_v7 = vperm.slane %v3428_v22, 4 }
 0x3e5   :  { %2659 = vst.msk [vmem:[#allocation2] sm:$0xff] %vm12983_vm5, %v2656_v13  ;;  %v5831_v18 = vsel %vm2875_vm2, 1.0, %v12707_v21  ;;  %v3455_v34 = vperm.slane %v3428_v22, 2  ;;  %v3442_v29 = vperm.slane %v3428_v22, 1  ;;  %v3468_v3 = vperm.slane %v3428_v22, 3 }
 0x3e6   :  { %2928 = vadd.xlane.f32.xlu0 %v5827_v46  ;;  %v3520_v42 = vperm.slane %v3428_v22, 7  ;;  %v3494_v57 = vperm.slane %v3428_v22, 5  ;;  %v3507_v28 = vperm.slane %v3428_v22, 6  ;;  %vm3298_vm13 = vcmask 654912  }
 0x3e8   :  { %v2829_v25 = vpop.permute.xlu1 %2828 }
 0x3e9   :  { %vm2872_vm0 = vcmp.gt.f32.partialorder %v2829_v25, %v6870_v31 }
 0x3ea   :  { %v5828_v47 = vsel %vm2872_vm0, 1.0, %v12707_v21 }
 0x3eb   :  { %2930 = vadd.xlane.f32.xlu2 %v5828_v47  ;;  %2938 = vadd.xlane.f32.xlu1 %v5832_v59  ;;  %v9803_v59 = vadd.s32 4294967224, %v6970_v56 }
 0x3f0   :  { %v2842_v52 = vpop.permute.xlu1 %2841 }
 0x3f1   :  { %vm2874_vm4 = vcmp.gt.f32.partialorder %v2842_v52, %v6879_v39 }
 0x3f2   :  { %v5830_v43 = vsel %vm2874_vm4, 1.0, %v12707_v21 }
 0x3f3   :  { %2934 = vadd.xlane.f32.xlu0 %v5830_v43  ;;  %2936 = vadd.xlane.f32.xlu2 %v5831_v18  ;;  %v9806_v43 = vadd.s32 4294967232, %v6970_v56 }
 0x400   :  { %v2861_v37 = vpop.permute.xlu1 %2860 }
 0x401   :  { %vm2877_vm7 = vcmp.gt.f32.partialorder %v2861_v37, %v6889_v49 }
 0x402   :  { %v5833_v61 = vsel %vm2877_vm7, 1.0, %v12707_v21 }
 0x403   :  { %2940 = vadd.xlane.f32.xlu0 %v5833_v61 }
 0x404   :  { %3440 = vperm.xlu1 %6167, %v3429_v53  }
 0x40b   :  { %3434 = vperm.xlu2 %6166, %v3429_v53  }
 0x40c   :  { %6169 = vset.pattern.permute.xlu1 %v9642_v32 }
 0x413   :  { %6168 = vset.pattern.permute.xlu2 %v9624_v62 }
 0x414   :  { %3460 = vperm.xlu1 %6169, %v3455_v34  }
 0x417   :  { %3492 = vperm.xlu0 %6170, %v3481_v7  }
 0x41b   :  { %3453 = vperm.xlu2 %6168, %v3442_v29  }
 0x41c   :  { %3473 = vperm.xlu1 %6169, %v3468_v3  }
 0x41f   :  { %6171 = vset.pattern.permute.xlu0 %v9642_v32 }
 0x423   :  { %3466 = vperm.xlu2 %6168, %v3455_v34  }
 0x424   :  { %3486 = vperm.xlu1 %6169, %v3481_v7  }
 0x427   :  { %3447 = vperm.xlu0 %6171, %v3442_v29  }
 0x42b   :  { %3479 = vperm.xlu2 %6168, %v3468_v3  }
 0x42c   :  { %6173 = vset.pattern.permute.xlu1 %v9624_v62 }
 0x42f   :  { %3525 = vperm.xlu0 %6171, %v3520_v42  }
 0x433   :  { %6172 = vset.pattern.permute.xlu2 %v9642_v32 }
 0x434   :  { %3505 = vperm.xlu1 %6173, %v3494_v57  }
 0x435   :  { %v2913_v51 = vpop.xlane.xlu1 %2912 }
 0x436   :  { %v2943_v12 = vadd.f32 1.0, %v2913_v51 }
 0x438   :  { %v5835_v38 = vadd.f32 -118.0, %v2943_v12  ;;  %vm3332_vm1 = vcmp.gt.f32.partialorder %v2943_v12, 118.0 }
 0x439   :  { %v2911_v6 = vpop.xlane.xlu2 %2910  ;;  %v5867_v37 = vsel %vm3332_vm1, 1.0, %v12707_v21 }
 0x43a   :  { %v2942_v58 = vadd.f32 1.0, %v2911_v6  ;;  %v5851_v2 = vmul.f32 -1.442695, %v5835_v38 }
 0x43b   :  { %3499 = vperm.xlu2 %6172, %v3494_v57  }
 0x43c   :  { %3518 = vperm.xlu1 %6173, %v3507_v28   ;;  %v5834_v30 = vadd.f32 -118.0, %v2942_v58  ;;  %6459 = vpow2.f32 %v5851_v2  ;;  %vm3331_vm8 = vcmp.gt.f32.partialorder %v2942_v58, 118.0 }
 0x43d   :  { %v5866_v61 = vsel %vm3331_vm8, 1.0, %v12707_v21 }
 0x43e   :  { %v5850_v60 = vmul.f32 -1.442695, %v5834_v30  ;;  %v3395_v57 = vperm.slane %v5866_v61, %v9806_v43 }
 0x440   :  { %6461 = vpow2.f32 %v5850_v60 }
 0x441   :  { %v2917_v54 = vpop.xlane.xlu2 %2916 }
 0x442   :  { %v9772_v48 = vadd.f32 1.0, %v2917_v54  ;;  %v6460_v25 = vpop.eup %6459 }
 0x443   :  { %3512 = vperm.xlu2 %6172, %v3507_v28   ;;  %v9781_v19 = vadd.f32 1.0, %v6460_v25 }
 0x444   :  { %v5837_v32 = vadd.f32 -118.0, %v9772_v48  ;;  %vm3334_vm10 = vcmp.gt.f32.partialorder %v9772_v48, 118.0 }
 0x445   :  { %v3062_v6 = vand.u32 2147483647, %v9781_v19  ;;  %v3064_v58 = vand.u32 2147483648, %v9781_v19  ;;  %vm3058_vm14 = vweird.f32 %v9781_v19  ;;  %v5869_v60 = vsel %vm3334_vm10, 1.0, %v12707_v21 }
 0x446   :  { %v2921_v11 = vpop.xlane.xlu1 %2920  ;;  %v6462_v5 = vpop.eup %6461  ;;  %v5853_v9 = vmul.f32 -1.442695, %v5837_v32 }
 0x447   :  { %v9775_v63 = vadd.f32 1.0, %v2921_v11  ;;  %v9786_v46 = vadd.f32 1.0, %v6462_v5  ;;  %vm9851_vm11 = vcmp.eq.f32.partialorder %v3062_v6, 8.507059e+37 }
 0x448   :  { %6463 = vpow2.f32 %v5853_v9 }
 0x449   :  { %v2915_v35 = vpop.xlane.xlu0 %2914  ;;  %v5839_v40 = vadd.f32 -118.0, %v9775_v63  ;;  %v2919_v41 = vpop.xlane.xlu2 %2918  ;;  %6465 = vrcp.f32 %v9781_v19  ;;  %vm3336_vm15 = vcmp.gt.f32.partialorder %v9775_v63, 118.0  ;;  %v3047_v48 = vand.u32 2147483647, %v9786_v46 }
 0x44a   :  { %v9778_v44 = vadd.f32 1.0, %v2915_v35  ;;  %v9783_v45 = vadd.f32 1.0, %v2919_v41  ;;  %6467 = vrcp.f32 %v9786_v46  ;;  %v5871_v54 = vsel %vm3336_vm15, 1.0, %v12707_v21 }
 0x44b   :  { %6174 = vset.pattern.permute.xlu2 %v9624_v62  ;;  %v5855_v10 = vmul.f32 -1.442695, %v5839_v40  ;;  %v3065_v40 = vor.u32 1.1754944e-38, %v3064_v58  ;;  %v3399_v41 = vperm.slane %v5869_v60, %v9803_v59  ;;  %vm3043_vm5 = vweird.f32 %v9786_v46 }
 0x44c   :  { %v5836_v8 = vadd.f32 -118.0, %v9778_v44  ;;  %v5838_v62 = vadd.f32 -118.0, %v9783_v45  ;;  %vm3333_vm0 = vcmp.gt.f32.partialorder %v9778_v44, 118.0  ;;  %vm3335_vm6 = vcmp.gt.f32.partialorder %v9783_v45, 118.0 }
 0x44d   :  { %6469 = vpow2.f32 %v5855_v10  ;;  %v5868_v11 = vsel %vm3333_vm0, 1.0, %v12707_v21  ;;  %vm9871_vm2 = vcmp.eq.f32.partialorder %v3047_v48, 8.507059e+37  ;;  %vm12992_vm0 = vcmask 1041409  }
 0x44e   :  { %v5852_v16 = vmul.f32 -1.442695, %v5836_v8  ;;  %v2927_v26 = vpop.xlane.xlu1 %2926  ;;  %v5854_v50 = vmul.f32 -1.442695, %v5838_v62  ;;  %v6464_v55 = vpop.eup %6463  ;;  %v3049_v62 = vand.u32 2147483648, %v9786_v46 }
 0x44f   :  { %v9791_v17 = vadd.f32 1.0, %v2927_v26  ;;  %v9793_v23 = vpop.eup %6465  ;;  %v9798_v15 = vadd.f32 1.0, %v6464_v55  ;;  %v5870_v55 = vsel %vm3335_vm6, 1.0, %v12707_v21 }
 0x450   :  { %6471 = vpow2.f32 %v5852_v16  ;;  %v9796_v0 = vpop.eup %6467  ;;  %v3054_v47 = vmul.f32 %v9793_v23, %v9781_v19  ;;  %vm3059_vm3 = vweird.f32 %v9793_v23  ;;  %v3402_v16 = vperm.slane %v5871_v54, %v9803_v59 }
 0x451   :  { %6473 = vpow2.f32 %v5854_v50  ;;  %v5842_v36 = vadd.f32 -118.0, %v9791_v17  ;;  %v2925_v18 = vpop.xlane.xlu2 %2924  ;;  %v3039_v34 = vmul.f32 %v9796_v0, %v9786_v46  ;;  %v2923_v32 = vpop.xlane.xlu0 %2922  ;;  %vm9867_vm4 = vmor %vm3058_vm14, %vm3059_vm3  ;;  %vm3339_vm7 = vcmp.gt.f32.partialorder %v9791_v17, 118.0 }
 0x452   :  { %6475 = vrcp.f32 %v9798_v15  ;;  %v3055_v7 = vsub.f32 1.0, %v3054_v47  ;;  %v9817_v3 = vadd.f32 1.0, %v2925_v18  ;;  %v9861_v26 = vadd.f32 1.0, %v2923_v32 }
 0x453   :  { %3531 = vperm.xlu2 %6174, %v3520_v42   ;;  %v6470_v13 = vpop.eup %6469  ;;  %v5858_v27 = vmul.f32 -1.442695, %v5842_v36  ;;  %v3396_v42 = vperm.slane %v5867_v37, %v9803_v59  ;;  %v3040_v12 = vsub.f32 1.0, %v3039_v34  ;;  %v3398_v36 = vperm.slane %v5868_v11, %v9806_v43 }
 0x454   :  { %v9811_v22 = vadd.f32 1.0, %v6470_v13  ;;  %v3056_v28 = vmul.f32 %v9793_v23, %v3055_v7  ;;  %v5841_v30 = vadd.f32 -118.0, %v9817_v3  ;;  %vm3044_vm1 = vweird.f32 %v9796_v0 }
 0x455   :  { %6477 = vpow2.f32 %v5858_v27  ;;  %v9836_v2 = vsel %vm3298_vm13, %v3396_v42, %v3395_v57  ;;  %v3041_v25 = vmul.f32 %v9796_v0, %v3040_v12  ;;  %v3050_v61 = vor.u32 1.1754944e-38, %v3049_v62  ;;  %vm9898_vm8 = vmor %vm3043_vm5, %vm3044_vm1 }
 0x456   :  { %v6472_v52 = vpop.eup %6471  ;;  %6479 = vrcp.f32 %v9811_v22  ;;  %v3057_v35 = vadd.f32 %v9793_v23, %v3056_v28  ;;  %v5857_v8 = vmul.f32 -1.442695, %v5841_v30  ;;  %v5840_v7 = vadd.f32 -118.0, %v9861_v26  ;;  %v2933_v12 = vpop.xlane.xlu1 %2932 }
 0x457   :  { %v6474_v53 = vpop.eup %6473  ;;  %v9815_v29 = vadd.f32 1.0, %v6472_v52  ;;  %v3042_v19 = vadd.f32 %v9796_v0, %v3041_v25  ;;  %vm3088_vm10 = vweird.f32 %v9798_v15  ;;  %v3092_v57 = vand.u32 2147483647, %v9798_v15 }
 0x458   :  { %v9824_v51 = vadd.f32 1.0, %v6474_v53  ;;  %v9829_v38 = vpop.eup %6475  ;;  %v3061_v13 = vsel %vm9867_vm4, %v9793_v23, %v3057_v35  ;;  %v3094_v53 = vand.u32 2147483648, %v9798_v15  ;;  %v3401_v23 = vperm.slane %v5870_v55, %v9806_v43 }
 0x459   :  { %6481 = vrcp.f32 %v9815_v29  ;;  %v3084_v44 = vmul.f32 %v9829_v38, %v9798_v15  ;;  %v3066_v34 = vsel %vm9851_vm11, %v3065_v40, %v3061_v13  ;;  %v3400_v28 = vsel %vm3298_vm13, %v3399_v41, %v3398_v36  ;;  %v2929_v40 = vpop.xlane.xlu0 %2928 }
 0x45a   :  { %6483 = vrcp.f32 %v9824_v51  ;;  %v3046_v6 = vsel %vm9898_vm8, %v9796_v0, %v3042_v19  ;;  %v3124_v58 = vand.u32 2147483648, %v9811_v22  ;;  %v9914_v30 = vsel %vm3339_vm7, 1.0, %v12707_v21 }
 0x45b   :  { %v6478_v63 = vpop.eup %6477  ;;  %v3085_v47 = vsub.f32 1.0, %v3084_v44  ;;  %6485 = vpow2.f32 %v5857_v8  ;;  %v3095_v32 = vor.u32 1.1754944e-38, %v3094_v53  ;;  %v9919_v0 = vsel %vm3298_vm13, %v3402_v16, %v3401_v23 }
 0x45c   :  { %v9849_v5 = vpop.eup %6479  ;;  %v9889_v37 = vadd.f32 1.0, %v6478_v63  ;;  %v5856_v63 = vmul.f32 -1.442695, %v5840_v7  ;;  %v9921_v35 = vadd.f32 1.0, %v2933_v12  ;;  %v3297_v44 = vperm.slane %v3066_v34, %v9803_v59 }
 0x45d   :  { %v3114_v27 = vmul.f32 %v9849_v5, %v9811_v22  ;;  %v3086_v54 = vmul.f32 %v9829_v38, %v3085_v47  ;;  %vm3118_vm15 = vweird.f32 %v9811_v22  ;;  %v3122_v17 = vand.u32 2147483647, %v9811_v22 }
 0x45e   :  { %v2931_v60 = vpop.xlane.xlu2 %2930  ;;  %6487 = vrcp.f32 %v9889_v37  ;;  %v3419_v9 = vsel %vm12992_vm0, %v3400_v28, %v9836_v2  ;;  %v3051_v41 = vsel %vm9871_vm2, %v3050_v61, %v3046_v6  ;;  %vm9930_vm14 = vcmp.eq.f32.partialorder %v3092_v57, 8.507059e+37 }
 0x45f   :  { %v9856_v10 = vpop.eup %6481  ;;  %v3115_v48 = vsub.f32 1.0, %v3114_v27  ;;  %v9934_v62 = vor.u32 1.1754944e-38, %v3124_v58  ;;  %v3407_v45 = vperm.slane %v9914_v30, %v9806_v43  ;;  %v3087_v55 = vadd.f32 %v9829_v38, %v3086_v54 }
 0x460   :  { %v9883_v52 = vpop.eup %6483  ;;  %v3069_v18 = vmul.f32 %v9856_v10, %v9815_v29  ;;  %vm3089_vm3 = vweird.f32 %v9829_v38  ;;  %vm3103_vm6 = vweird.f32 %v9824_v51  ;;  %6489 = vpow2.f32 %v5856_v63 }
 0x461   :  { %v3099_v46 = vmul.f32 %v9883_v52, %v9824_v51  ;;  %v6486_v25 = vpop.eup %6485  ;;  %v3116_v2 = vmul.f32 %v9849_v5, %v3115_v48  ;;  %v5845_v13 = vadd.f32 -118.0, %v9921_v35  ;;  %v9946_v19 = vadd.f32 1.0, %v2929_v40  ;;  %vm9956_vm5 = vmor %vm3088_vm10, %vm3089_vm3 }
 0x462   :  { %v3070_v11 = vsub.f32 1.0, %v3069_v18  ;;  %v9943_v50 = vadd.f32 1.0, %v6486_v25  ;;  %v3295_v27 = vperm.slane %v3051_v41, %v9806_v43  ;;  %v3107_v18 = vand.u32 2147483647, %v9824_v51 }
 0x463   :  { %v3100_v16 = vsub.f32 1.0, %v3099_v46  ;;  %v3109_v61 = vand.u32 2147483648, %v9824_v51  ;;  %vm3073_vm11 = vweird.f32 %v9815_v29  ;;  %vm9960_vm4 = vcmp.eq.f32.partialorder %v3122_v17, 8.507059e+37 }
 0x464   :  { %v3071_v36 = vmul.f32 %v9856_v10, %v3070_v11  ;;  %v9948_v47 = vpop.eup %6487  ;;  %vm3074_vm2 = vweird.f32 %v9856_v10  ;;  %v3077_v34 = vand.u32 2147483647, %v9815_v29  ;;  %v3079_v42 = vand.u32 2147483648, %v9815_v29 }
 0x465   :  { %v3101_v7 = vmul.f32 %v9883_v52, %v3100_v16  ;;  %v3091_v15 = vsel %vm9956_vm5, %v9829_v38, %v3087_v55  ;;  %v3117_v57 = vadd.f32 %v9849_v5, %v3116_v2  ;;  %vm3119_vm7 = vweird.f32 %v9849_v5  ;;  %vm9989_vm8 = vmor %vm3073_vm11, %vm3074_vm2 }
 0x466   :  { %v3072_v28 = vadd.f32 %v9856_v10, %v3071_v36  ;;  %v3159_v12 = vmul.f32 %v9948_v47, %v9889_v37  ;;  %6491 = vrcp.f32 %v9943_v50  ;;  %v5861_v6 = vmul.f32 -1.442695, %v5845_v13  ;;  %v2937_v46 = vpop.xlane.xlu2 %2936  ;;  %v6490_v25 = vpop.eup %6489  ;;  %vm9997_vm10 = vmor %vm3118_vm15, %vm3119_vm7 }
 0x467   :  { %v5843_v58 = vadd.f32 -118.0, %v9946_v19  ;;  %v9979_v54 = vsel %vm3298_vm13, %v3297_v44, %v3295_v27  ;;  %vm9981_vm1 = vcmp.eq.f32.partialorder %v3107_v18, 8.507059e+37  ;;  %v3110_v48 = vor.u32 1.1754944e-38, %v3109_v61  ;;  %v2935_v16 = vpop.xlane.xlu0 %2934 }
 0x468   :  { %v9993_v63 = vadd.f32 1.0, %v2931_v60  ;;  %v3102_v17 = vadd.f32 %v9883_v52, %v3101_v7  ;;  %vm3104_vm0 = vweird.f32 %v9883_v52  ;;  %vm10003_vm3 = vcmp.eq.f32.partialorder %v3077_v34, 8.507059e+37 }
 0x469   :  { %v3080_v29 = vor.u32 1.1754944e-38, %v3079_v42  ;;  %v3096_v60 = vsel %vm9930_vm14, %v3095_v32, %v3091_v15  ;;  %v3121_v22 = vsel %vm9997_vm10, %v9849_v5, %v3117_v57  ;;  %vm3338_vm15 = vcmp.gt.f32.partialorder %v9817_v3, 118.0  ;;  %vm10020_vm11 = vmor %vm3103_vm6, %vm3104_vm0 }
 0x46a   :  { %v10013_v41 = vadd.f32 1.0, %v2937_v46  ;;  %v3076_v55 = vsel %vm9989_vm8, %v9856_v10, %v3072_v28  ;;  %v3160_v2 = vsub.f32 1.0, %v3159_v12  ;;  %6493 = vpow2.f32 %v5861_v6  ;;  %v2939_v10 = vpop.xlane.xlu1 %2938 }
 0x46b   :  { %v5859_v36 = vmul.f32 -1.442695, %v5843_v58  ;;  %v10026_v5 = vsel %vm12727_vm9, %v9919_v0, %v3419_v9  ;;  %v10028_v8 = vadd.f32 1.0, %v6490_v25  ;;  %vm3337_vm14 = vcmp.gt.f32.partialorder %v9861_v26, 118.0 }
 0x46c   :  { %v5844_v13 = vadd.f32 -118.0, %v9993_v63  ;;  %v10032_v27 = vpop.eup %6491  ;;  %v3106_v51 = vsel %vm10020_vm11, %v9883_v52, %v3102_v17  ;;  %vm3163_vm6 = vweird.f32 %v9889_v37  ;;  %v3167_v18 = vand.u32 2147483647, %v9889_v37 }
 0x46d   :  { %v10039_v61 = vadd.f32 1.0, %v2935_v16  ;;  %v3301_v0 = vperm.slane %v3096_v60, %v9803_v59  ;;  %v3126_v26 = vsel %vm9960_vm4, %v9934_v62, %v3121_v22  ;;  %v3081_v9 = vsel %vm10003_vm3, %v3080_v29, %v3076_v55 }
 0x46e   :  { %v5847_v53 = vadd.f32 -118.0, %v10013_v41  ;;  %v3161_v7 = vmul.f32 %v9948_v47, %v3160_v2  ;;  %v5872_v52 = vsel %vm3337_vm14, 1.0, %v12707_v21  ;;  %6495 = vpow2.f32 %v5859_v36  ;;  %v10073_v40 = vpop.permute.xlu2 %3434 }
 0x46f   :  { %v10050_v34 = vadd.f32 1.0, %v2939_v10  ;;  %v3111_v42 = vsel %vm9981_vm1, %v3110_v48, %v3106_v51  ;;  %v3144_v15 = vmul.f32 %v10032_v27, %v9943_v50  ;;  %6497 = vrcp.f32 %v10028_v8 }
 0x470   :  { %v5860_v62 = vmul.f32 -1.442695, %v5844_v13  ;;  %v6494_v23 = vpop.eup %6493  ;;  %v3169_v57 = vand.u32 2147483648, %v9889_v37  ;;  %v5873_v28 = vsel %vm3338_vm15, 1.0, %v12707_v21  ;;  %v5863_v12 = vmul.f32 -1.442695, %v5847_v53 }
 0x471   :  { %v5846_v6 = vadd.f32 -118.0, %v10039_v61  ;;  %v3304_v58 = vperm.slane %v3126_v26, %v9803_v59  ;;  %v3300_v46 = vperm.slane %v3081_v9, %v9806_v43  ;;  %v3404_v38 = vperm.slane %v5872_v52, %v9806_v43 }
 0x472   :  { %vm3340_vm5 = vcmp.gt.f32.partialorder %v9946_v19, 118.0  ;;  %v3303_v48 = vperm.slane %v3111_v42, %v9806_v43  ;;  %v3162_v11 = vadd.f32 %v9948_v47, %v3161_v7  ;;  %vm3164_vm4 = vweird.f32 %v9948_v47 }
 0x473   :  { %v5848_v3 = vadd.f32 -118.0, %v10050_v34  ;;  %v3145_v25 = vsub.f32 1.0, %v3144_v15  ;;  %v3405_v44 = vperm.slane %v5873_v28, %v9803_v59  ;;  %v10071_v17 = vadd.f32 1.0, %v6494_v23  ;;  %vm10089_vm7 = vmor %vm3163_vm6, %vm3164_vm4 }
 0x474   :  { %6499 = vpow2.f32 %v5860_v62  ;;  %v6496_v60 = vpop.eup %6495  ;;  %vm10077_vm2 = vcmp.eq.f32.partialorder %v3167_v18, 8.507059e+37  ;;  %v5875_v22 = vsel %vm3340_vm5, 1.0, %v12707_v21  ;;  %v5862_v16 = vmul.f32 -1.442695, %v5846_v6 }
 0x475   :  { %6501 = vpow2.f32 %v5863_v12  ;;  %v10082_v55 = vpop.eup %6497  ;;  %v3302_v2 = vsel %vm3298_vm13, %v3301_v0, %v3300_v46  ;;  %v3170_v32 = vor.u32 1.1754944e-38, %v3169_v57  ;;  %v3406_v13 = vsel %vm3298_vm13, %v3405_v44, %v3404_v38 }
 0x476   :  { %v10075_v29 = vpop.permute.xlu1 %3440  ;;  %vm3342_vm1 = vcmp.gt.f32.partialorder %v9921_v35, 118.0  ;;  %v10096_v10 = vsel %vm3298_vm13, %v3304_v58, %v3303_v48  ;;  %v3166_v51 = vsel %vm10089_vm7, %v9948_v47, %v3162_v11  ;;  %v3152_v18 = vand.u32 2147483647, %v9943_v50  ;;  %v10150_v48 = vpop.permute.xlu2 %3453 }
 0x477   :  { %v5864_v0 = vmul.f32 -1.442695, %v5848_v3  ;;  %v3146_v37 = vmul.f32 %v10032_v27, %v3145_v25  ;;  %6503 = vrcp.f32 %v10071_v17  ;;  %v10104_v26 = vadd.f32 1.0, %v6496_v60  ;;  %v2941_v19 = vpop.xlane.xlu0 %2940 }
 0x478   :  { %v3408_v9 = vperm.slane %v5875_v22, %v9803_v59  ;;  %v3154_v53 = vand.u32 2147483648, %v9943_v50  ;;  %v3129_v7 = vmul.f32 %v10082_v55, %v10028_v8  ;;  %vm3341_vm8 = vcmp.gt.f32.partialorder %v9993_v63, 118.0 }
 0x479   :  { %6505 = vpow2.f32 %v5862_v16  ;;  %vm13013_vm10 = vcmask 1041409   ;;  %vm3148_vm0 = vweird.f32 %v9943_v50  ;;  %v3421_v42 = vsel %vm12725_vm12, %v3406_v13, %v10026_v5 }
 0x47a   :  { %v6500_v47 = vpop.eup %6499  ;;  %v10113_v52 = vsel %vm13013_vm10, %v3302_v2, %v9979_v54  ;;  %v5877_v15 = vsel %vm3342_vm1, 1.0, %v12707_v21  ;;  %v10123_v23 = vsel %vm10077_vm2, %v3170_v32, %v3166_v51  ;;  %vm3149_vm3 = vweird.f32 %v10032_v27 }
 0x47b   :  { %v6502_v62 = vpop.eup %6501  ;;  %vm10126_vm15 = vcmp.eq.f32.partialorder %v3152_v18, 8.507059e+37  ;;  %6507 = vpow2.f32 %v5864_v0  ;;  %v3147_v54 = vadd.f32 %v10032_v27, %v3146_v37  ;;  %v3409_v35 = vsel %vm3298_vm13, %v3408_v9, %v3407_v45  ;;  %vm10156_vm14 = vmor %vm3148_vm0, %vm3149_vm3 }
 0x47c   :  { %6509 = vrcp.f32 %v10104_v26  ;;  %v5876_v5 = vsel %vm3341_vm8, 1.0, %v12707_v21  ;;  %v3155_v28 = vor.u32 1.1754944e-38, %v3154_v53  ;;  %v3130_v12 = vsub.f32 1.0, %v3129_v7 }
 0x47d   :  { %v10139_v6 = vadd.f32 1.0, %v6500_v47  ;;  %vm3345_vm11 = vcmp.gt.f32.partialorder %v10050_v34, 118.0  ;;  %v10142_v58 = vpop.eup %6503  ;;  %v3309_v46 = vperm.slane %v10123_v23, %v9806_v43  ;;  %v3139_v38 = vand.u32 2147483648, %v10028_v8 }
 0x47e   :  { %v3411_v30 = vperm.slane %v5877_v15, %v9803_v59  ;;  %v10148_v45 = vadd.f32 1.0, %v6502_v62  ;;  %vm3133_vm6 = vweird.f32 %v10028_v8  ;;  %v3137_v25 = vand.u32 2147483647, %v10028_v8 }
 0x47f   :  { %v6506_v11 = vpop.eup %6505  ;;  %vm13018_vm5 = vcmask 1044484   ;;  %v3410_v60 = vperm.slane %v5876_v5, %v9806_v43  ;;  %v3151_v22 = vsel %vm10156_vm14, %v10032_v27, %v3147_v54  ;;  %v3214_v16 = vand.u32 2147483648, %v10071_v17 }
 0x480   :  { %v3422_v44 = vsel %vm13018_vm5, %v3409_v35, %v3421_v42  ;;  %v10171_v50 = vsel %vm3345_vm11, 1.0, %v12707_v21  ;;  %v10173_v2 = vadd.f32 1.0, %v6506_v11  ;;  %v3131_v32 = vmul.f32 %v10082_v55, %v3130_v12 }
 0x481   :  { %v6508_v36 = vpop.eup %6507  ;;  %6511 = vrcp.f32 %v10139_v6  ;;  %vm3344_vm4 = vcmp.gt.f32.partialorder %v10013_v41, 118.0  ;;  %vm3343_vm2 = vcmp.gt.f32.partialorder %v10039_v61, 118.0  ;;  %v10181_v27 = vor.u32 1.1754944e-38, %v3139_v38 }
 0x482   :  { %v10179_v13 = vpop.eup %6509  ;;  %v3204_v34 = vmul.f32 %v10142_v58, %v10071_v17  ;;  %v3212_v51 = vand.u32 2147483647, %v10071_v17  ;;  %6513 = vrcp.f32 %v10148_v45  ;;  %v10189_v18 = vsel %vm10126_vm15, %v3155_v28, %v3151_v22 }
 0x483   :  { %v3412_v0 = vsel %vm3298_vm13, %v3411_v30, %v3410_v60  ;;  %6515 = vrcp.f32 %v10173_v2  ;;  %vm3533_vm7 = vcmp.gt.f32.partialorder %v10073_v40, %v6809_v4  ;;  %v10195_v41 = vadd.f32 1.0, %v6508_v36 }
 0x484   :  { %v3416_v61 = vperm.slane %v10171_v50, %v9806_v43  ;;  %v5879_v37 = vsel %vm3344_vm4, 1.0, %v12707_v21  ;;  %v5878_v9 = vsel %vm3343_vm2, 1.0, %v12707_v21  ;;  %v3132_v7 = vadd.f32 %v10082_v55, %v3131_v32 }
 0x485   :  { %vm3134_vm1 = vweird.f32 %v10082_v55  ;;  %v10205_v47 = vor.u32 1.1754944e-38, %v3214_v16  ;;  %v3174_v40 = vmul.f32 %v10179_v13, %v10104_v26  ;;  %v3307_v42 = vperm.slane %v10189_v18, %v9803_v59 }
 0x486   :  { %v10137_v57 = vpop.permute.xlu1 %3460  ;;  %vm10211_vm8 = vcmp.eq.f32.partialorder %v3137_v25, 8.507059e+37  ;;  %v3205_v62 = vsub.f32 1.0, %v3204_v34  ;;  %vm13021_vm10 = vcmask 1045509   ;;  %v5882_v54 = vsel %vm3533_vm7, 1.0, %v12707_v21  ;;  %vm10232_vm3 = vmor %vm3133_vm6, %vm3134_vm1 }
 0x487   :  { %v3423_v63 = vsel %vm13021_vm10, %v3412_v0, %v3422_v44  ;;  %v10217_v35 = vpop.eup %6511  ;;  %v3182_v5 = vand.u32 2147483647, %v10104_v26  ;;  %v3414_v28 = vperm.slane %v5879_v37, %v9803_v59  ;;  %v3413_v12 = vperm.slane %v5878_v9, %v9806_v43  ;;  %3581 = vadd.xlane.f32.xlu1 %v5882_v54 }
 0x488   :  { %vm3534_vm0 = vcmp.gt.f32.partialorder %v10075_v29, %v6809_v4  ;;  %v10226_v30 = vpop.eup %6513  ;;  %v3184_v3 = vand.u32 2147483648, %v10104_v26  ;;  %6517 = vrcp.f32 %v10195_v41  ;;  %v2957_v44 = vadd.f32 1.0, %v2941_v19  ;;  %v10239_v29 = vpop.permute.xlu2 %3466 }
 0x489   :  { %v10224_v38 = vpop.permute.xlu0 %3492  ;;  %v5883_v25 = vsel %vm3534_vm0, 1.0, %v12707_v21  ;;  %v10241_v60 = vpop.eup %6515  ;;  %v3136_v22 = vsel %vm10232_vm3, %v10082_v55, %v3132_v7  ;;  %vm3209_vm15 = vweird.f32 %v10142_v58  ;;  %v3175_v8 = vsub.f32 1.0, %v3174_v40 }
 0x48a   :  { %vm3536_vm11 = vcmp.gt.f32.partialorder %v10150_v48, %v6850_v14  ;;  %3583 = vadd.xlane.f32.xlu2 %v5883_v25  ;;  %v3206_v16 = vmul.f32 %v10142_v58, %v3205_v62  ;;  %vm3208_vm14 = vweird.f32 %v10071_v17  ;;  %v3189_v19 = vmul.f32 %v10217_v35, %v10139_v6 }
 0x48b   :  { %v5849_v50 = vadd.f32 -118.0, %v2957_v44  ;;  %vm3346_vm6 = vcmp.gt.f32.partialorder %v2957_v44, 118.0  ;;  %v3234_v36 = vmul.f32 %v10226_v30, %v10148_v45  ;;  %v3415_v55 = vsel %vm3298_vm13, %v3414_v28, %v3413_v12 }
 0x48c   :  { %v5881_v32 = vsel %vm3346_vm6, 1.0, %v12707_v21  ;;  %vm3537_vm5 = vcmp.gt.f32.partialorder %v10137_v57, %v6857_v20  ;;  %vm3178_vm4 = vweird.f32 %v10104_v26  ;;  %v3219_v48 = vmul.f32 %v10241_v60, %v10173_v2 }
 0x48d   :  { %v5885_v34 = vsel %vm3536_vm11, 1.0, %v12707_v21  ;;  %v5865_v0 = vmul.f32 -1.442695, %v5849_v50  ;;  %v3417_v37 = vperm.slane %v5881_v32, %v9803_v59  ;;  %v3176_v9 = vmul.f32 %v10179_v13, %v3175_v8 }
 0x48e   :  { %v10201_v53 = vpop.permute.xlu1 %3473  ;;  %v10265_v7 = vor.u32 1.1754944e-38, %v3184_v3  ;;  %v3197_v40 = vand.u32 2147483647, %v10139_v6  ;;  %vm12706_vm2 = vcmask 654848   ;;  %v10268_v62 = vpop.eup %6517  ;;  %vm13024_vm7 = vcmask 1046534  }
 0x48f   :  { %v3424_v57 = vsel %vm13024_vm7, %v3415_v55, %v3423_v63  ;;  %6519 = vpow2.f32 %v5865_v0  ;;  %v3418_v54 = vsel %vm3298_vm13, %v3417_v37, %v3416_v61  ;;  %v5886_v28 = vsel %vm3537_vm5, 1.0, %v12707_v21  ;;  %3587 = vadd.xlane.f32.xlu1 %v5885_v34  ;;  %vm10317_vm5 = vmor %vm3208_vm14, %vm3209_vm15 }
 0x490   :  { %v10278_v11 = vsel %vm10211_vm8, %v10181_v27, %v3136_v22  ;;  %v3190_v3 = vsub.f32 1.0, %v3189_v19  ;;  %v3199_v25 = vand.u32 2147483648, %v10139_v6  ;;  %vm13025_vm1 = vcmask 1047559   ;;  %v3480_v55 = vpop.permute.xlu2 %3479 }
 0x491   :  { %v3425_v44 = vsel %vm13025_vm1, %v3418_v54, %v3424_v57  ;;  %v10283_v63 = vadd.f32 %v10142_v58, %v3206_v16  ;;  %v3235_v61 = vsub.f32 1.0, %v3234_v36  ;;  %v3220_v50 = vsub.f32 1.0, %v3219_v48 }
 0x492   :  { %3427 = vst.msk [vmem:[#allocation2 + $0x8] sm:$0xff] %vm12706_vm2, %v3425_v44  ;;  %vm3193_vm8 = vweird.f32 %v10139_v6  ;;  %v3249_v27 = vmul.f32 %v10268_v62, %v10195_v41  ;;  %vm3538_vm0 = vcmp.gt.f32.partialorder %v10239_v29, %v6857_v20  ;;  %3589 = vadd.xlane.f32.xlu2 %v5886_v28  ;;  %vm10295_vm3 = vcmp.eq.f32.partialorder %v3212_v51, 8.507059e+37 }
 0x493   :  { %v3177_v16 = vadd.f32 %v10179_v13, %v3176_v9  ;;  %vm3179_vm11 = vweird.f32 %v10179_v13  ;;  %vm10301_vm6 = vcmp.eq.f32.partialorder %v3182_v5, 8.507059e+37  ;;  %v10306_v36 = vadd.s32 96, %v6798_v1 }
 0x494   :  { %v10309_v32 = vadd.s32 104, %v6798_v1  ;;  %v3306_v51 = vperm.slane %v10278_v11, %v9806_v43  ;;  %v3191_v5 = vmul.f32 %v10217_v35, %v3190_v3  ;;  %v10322_v34 = vor.u32 1.1754944e-38, %v3199_v25  ;;  %vm10345_vm15 = vmor %vm3178_vm4, %vm3179_vm11 }
 0x495   :  { %v3257_v0 = vand.u32 2147483647, %v10195_v41  ;;  %v6520_v37 = vpop.eup %6519  ;;  %v3211_v9 = vsel %vm10317_vm5, %v10142_v58, %v10283_v63  ;;  %vm10329_vm7 = vcmp.eq.f32.partialorder %v3197_v40, 8.507059e+37  ;;  %v3236_v17 = vmul.f32 %v10226_v30, %v3235_v61  ;;  %6175 = vset.pattern.permute.xlu2 %v10306_v36  ;;  %6177 = vset.pattern.permute.xlu0 %v10306_v36 }
 0x496   :  { %v10273_v12 = vpop.permute.xlu1 %3486  ;;  %v3221_v54 = vmul.f32 %v10241_v60, %v3220_v50  ;;  %v5887_v28 = vsel %vm3538_vm0, 1.0, %v12707_v21  ;;  %6176 = vset.pattern.permute.xlu1 %v10309_v32  ;;  %vm3194_vm14 = vweird.f32 %v10217_v35  ;;  %v3250_v40 = vsub.f32 1.0, %v3249_v27 }
 0x497   :  { %v10350_v11 = vadd.f32 1.0, %v6520_v37  ;;  %vm3540_vm1 = vcmp.gt.f32.partialorder %v3480_v55, %v6872_v33  ;;  %v3181_v29 = vsel %vm10345_vm15, %v10179_v13, %v3177_v16  ;;  %v3242_v26 = vand.u32 2147483647, %v10148_v45  ;;  %3591 = vadd.xlane.f32.xlu1 %v5887_v28  ;;  %vm10378_vm15 = vmor %vm3193_vm8, %vm3194_vm14 }
 0x498   :  { %vm3539_vm4 = vcmp.gt.f32.partialorder %v10201_v53, %v6872_v33  ;;  %v3192_v25 = vadd.f32 %v10217_v35, %v3191_v5  ;;  %vm3239_vm0 = vweird.f32 %v10226_v30  ;;  %v3244_v44 = vand.u32 2147483648, %v10148_v45  ;;  %v3500_v61 = vpop.permute.xlu2 %3499 }
 0x499   :  { %v3448_v8 = vpop.permute.xlu0 %3447  ;;  %6521 = vrcp.f32 %v10350_v11  ;;  %vm3253_vm11 = vweird.f32 %v10195_v41  ;;  %v3237_v13 = vadd.f32 %v10226_v30, %v3236_v17  ;;  %vm3224_vm5 = vweird.f32 %v10241_v60 }
 0x49a   :  { %vm3535_vm10 = vcmp.gt.f32.partialorder %v3448_v8, %v6850_v14  ;;  %v3222_v8 = vadd.f32 %v10241_v60, %v3221_v54  ;;  %v5889_v63 = vsel %vm3540_vm1, 1.0, %v12707_v21  ;;  %v3251_v27 = vmul.f32 %v10268_v62, %v3250_v40 }
 0x49b   :  { %v5884_v15 = vsel %vm3535_vm10, 1.0, %v12707_v21  ;;  %vm3238_vm10 = vweird.f32 %v10148_v45  ;;  %3595 = vadd.xlane.f32.xlu2 %v5889_v63  ;;  %vm3541_vm2 = vcmp.gt.f32.partialorder %v10273_v12, %v6862_v24  ;;  %v5888_v55 = vsel %vm3539_vm4, 1.0, %v12707_v21 }
 0x49c   :  { %3585 = vadd.xlane.f32.xlu0 %v5884_v15  ;;  %v3229_v15 = vand.u32 2147483648, %v10173_v2  ;;  %v10394_v6 = vsel %vm3298_vm13, %v3307_v42, %v3306_v51  ;;  %v3259_v16 = vand.u32 2147483648, %v10195_v41  ;;  %vm10401_vm8 = vmor %vm3238_vm10, %vm3239_vm0  ;;  %vm3223_vm14 = vweird.f32 %v10173_v2 }
 0x49d   :  { %v3227_v53 = vand.u32 2147483647, %v10173_v2  ;;  %v3216_v18 = vsel %vm10295_vm3, %v10205_v47, %v3211_v9  ;;  %v3186_v42 = vsel %vm10301_vm6, %v10265_v7, %v3181_v29  ;;  %vm3254_vm1 = vweird.f32 %v10268_v62  ;;  %vm10416_vm10 = vmor %vm3223_vm14, %vm3224_vm5 }
 0x49e   :  { %vm3543_vm4 = vcmp.gt.f32.partialorder %v3500_v61, %v6870_v31  ;;  %v3196_v2 = vsel %vm10378_vm15, %v10217_v35, %v3192_v25  ;;  %v3241_v47 = vsel %vm10401_vm8, %v10226_v30, %v3237_v13  ;;  %v3226_v7 = vsel %vm10416_vm10, %v10241_v60, %v3222_v8  ;;  %vm10450_vm15 = vmor %vm3253_vm11, %vm3254_vm1 }
 0x49f   :  { %v5890_v22 = vsel %vm3541_vm2, 1.0, %v12707_v21  ;;  %v6522_v19 = vpop.eup %6521  ;;  %v3252_v51 = vadd.f32 %v10268_v62, %v3251_v27  ;;  %vm3243_vm3 = vcmp.eq.f32.partialorder %v3242_v26, 8.507059e+37  ;;  %v3245_v5 = vor.u32 1.1754944e-38, %v3244_v44 }
 0x4a0   :  { %v3230_v37 = vor.u32 1.1754944e-38, %v3229_v15  ;;  %vm3228_vm6 = vcmp.eq.f32.partialorder %v3227_v53, 8.507059e+37  ;;  %v3264_v35 = vmul.f32 %v6522_v19, %v10350_v11  ;;  %vm3542_vm0 = vcmp.gt.f32.partialorder %v10224_v38, %v6862_v24  ;;  %3597 = vadd.xlane.f32.xlu1 %v5890_v22  ;;  %v3513_v29 = vpop.permute.xlu2 %3512  ;;  %v10515_v22 = vld [vmem:[#allocation3] sm:$0xff] }
 0x4a1   :  { %v5892_v30 = vsel %vm3543_vm4, 1.0, %v12707_v21  ;;  %v3201_v60 = vsel %vm10329_vm7, %v10322_v34, %v3196_v2  ;;  %v3246_v12 = vsel %vm3243_vm3, %v3245_v5, %v3241_v47  ;;  %v3274_v17 = vand.u32 2147483648, %v10350_v11 }
 0x4a2   :  { %v3231_v9 = vsel %vm3228_vm6, %v3230_v37, %v3226_v7  ;;  %v3265_v54 = vsub.f32 1.0, %v3264_v35  ;;  %vm3268_vm2 = vweird.f32 %v10350_v11  ;;  %vm3269_vm5 = vweird.f32 %v6522_v19 }
 0x4a3   :  { %v3272_v28 = vand.u32 2147483647, %v10350_v11  ;;  %v3310_v40 = vperm.slane %v3186_v42, %v9803_v59  ;;  %vm10456_vm7 = vcmp.eq.f32.partialorder %v3257_v0, 8.507059e+37  ;;  %3601 = vadd.xlane.f32.xlu2 %v5892_v30  ;;  %v5891_v26 = vsel %vm3542_vm0, 1.0, %v12707_v21  ;;  %vm10475_vm11 = vmor %vm3268_vm2, %vm3269_vm5 }
 0x4a4   :  { %3593 = vadd.xlane.f32.xlu0 %v5888_v55  ;;  %v3312_v25 = vperm.slane %v3201_v60, %v9806_v43  ;;  %v3256_v41 = vsel %vm10450_vm15, %v10268_v62, %v3252_v51  ;;  %v3260_v0 = vor.u32 1.1754944e-38, %v3259_v16  ;;  %v3266_v44 = vmul.f32 %v6522_v19, %v3265_v54 }
 0x4a5   :  { %v3316_v13 = vperm.slane %v3246_v12, %v9803_v59  ;;  %v3315_v8 = vperm.slane %v3231_v9, %v9806_v43  ;;  %v3275_v38 = vor.u32 1.1754944e-38, %v3274_v17  ;;  %v3313_v61 = vperm.slane %v3216_v18, %v9803_v59  ;;  %v3526_v18 = vpop.permute.xlu0 %3525 }
 0x4a6   :  { %v10361_v3 = vpop.permute.xlu1 %3505  ;;  %v3267_v62 = vadd.f32 %v6522_v19, %v3266_v44  ;;  %vm3273_vm1 = vcmp.eq.f32.partialorder %v3272_v28, 8.507059e+37  ;;  %v3322_v11 = vsel %vm12727_vm9, %v10096_v10, %v10113_v52  ;;  %v3311_v27 = vsel %vm3298_vm13, %v3310_v40, %v3309_v46 }
 0x4a7   :  { %vm3544_vm8 = vcmp.gt.f32.partialorder %v10361_v3, %v6870_v31  ;;  %v3261_v15 = vsel %vm10456_vm7, %v3260_v0, %v3256_v41  ;;  %v3314_v55 = vsel %vm3298_vm13, %v3313_v61, %v3312_v25  ;;  %vm3545_vm10 = vcmp.gt.f32.partialorder %v3513_v29, %v6879_v39 }
 0x4a8   :  { %v5893_v50 = vsel %vm3544_vm8, 1.0, %v12707_v21  ;;  %v3271_v16 = vsel %vm10475_vm11, %v6522_v19, %v3267_v62  ;;  %v3323_v10 = vsel %vm12725_vm12, %v10394_v6, %v3322_v11  ;;  %v3317_v52 = vsel %vm3298_vm13, %v3316_v13, %v3315_v8 }
 0x4a9   :  { %v3276_v23 = vsel %vm3273_vm1, %v3275_v38, %v3271_v16  ;;  %3603 = vadd.xlane.f32.xlu1 %v5893_v50  ;;  %vm13048_vm4 = vcmask 1044484   ;;  %v3318_v48 = vperm.slane %v3261_v15, %v9806_v43  ;;  %vm13049_vm3 = vcmask 1045509  }
 0x4aa   :  { %v3324_v46 = vsel %vm13048_vm4, %v3311_v27, %v3323_v10  ;;  %v3319_v53 = vperm.slane %v3276_v23, %v9803_v59  ;;  %v5894_v45 = vsel %vm3545_vm10, 1.0, %v12707_v21  ;;  %vm13050_vm6 = vcmask 1046534  }
 0x4ab   :  { %v3325_v42 = vsel %vm13049_vm3, %v3314_v55, %v3324_v46  ;;  %vm13051_vm0 = vcmask 1047559   ;;  %vm3547_vm2 = vcmp.gt.f32.partialorder %v3526_v18, %v6889_v49  ;;  %vm13052_vm5 = vcmask 654848  }
 0x4ac   :  { %3599 = vadd.xlane.f32.xlu0 %v5891_v26  ;;  %v3326_v47 = vsel %vm13050_vm6, %v3317_v52, %v3325_v42  ;;  %v3320_v6 = vsel %vm3298_vm13, %v3319_v53, %v3318_v48  ;;  %v5896_v59 = vsel %vm3547_vm2, 1.0, %v12707_v21  ;;  %v4100_v19 = vperm.slane %v10515_v22, 0 }
 0x4ad   :  { %v3532_v2 = vpop.permute.xlu2 %3531  ;;  %v3327_v7 = vsel %vm13051_vm0, %v3320_v6, %v3326_v47  ;;  %v4113_v51 = vperm.slane %v10515_v22, 1  ;;  %v10521_v5 = vperm.slane %v10515_v22, 4  ;;  %v4126_v37 = vperm.slane %v10515_v22, 2 }
 0x4ae   :  { %v3519_v58 = vpop.permute.xlu1 %3518  ;;  %3330 = vst.msk [vmem:[#allocation2] sm:$0xff] %vm13052_vm5, %v3327_v7  ;;  %vm3548_vm15 = vcmp.gt.f32.partialorder %v3532_v2, %v6889_v49  ;;  %v10528_v35 = vadd.s32 112, %v6798_v1  ;;  %v10531_v30 = vadd.s32 120, %v6798_v1  ;;  %v10536_v60 = vperm.slane %v10515_v22, 5 }
 0x4af   :  { %vm3546_vm14 = vcmp.gt.f32.partialorder %v3519_v58, %v6879_v39  ;;  %v5897_v43 = vsel %vm3548_vm15, 1.0, %v12707_v21  ;;  %v10542_v12 = vperm.slane %v10515_v22, 3  ;;  %v10589_v47 = vadd.s32 4294967216, %v6970_v56 }
 0x4b0   :  { %v5895_v3 = vsel %vm3546_vm14, 1.0, %v12707_v21  ;;  %vm3969_vm14 = vcmask 786112  }
 0x4b1   :  { %3607 = vadd.xlane.f32.xlu2 %v5895_v3  ;;  %3609 = vadd.xlane.f32.xlu1 %v5896_v59 }
 0x4b4   :  { %3605 = vadd.xlane.f32.xlu0 %v5894_v45 }
 0x4bc   :  { %3611 = vadd.xlane.f32.xlu0 %v5897_v43  ;;  %v10596_v43 = vadd.s32 4294967208, %v6970_v56 }
 0x4c9   :  { %4105 = vperm.xlu2 %6175, %v4100_v19  }
 0x4ca   :  { %4111 = vperm.xlu1 %6176, %v4100_v19  }
 0x4d0   :  { %4118 = vperm.xlu0 %6177, %v4113_v51  }
 0x4d1   :  { %6178 = vset.pattern.permute.xlu2 %v10309_v32 }
 0x4d2   :  { %6179 = vset.pattern.permute.xlu1 %v10306_v36 }
 0x4d8   :  { %4157 = vperm.xlu0 %6177, %v10521_v5  }
 0x4d9   :  { %4124 = vperm.xlu2 %6178, %v4113_v51  }
 0x4da   :  { %4131 = vperm.xlu1 %6179, %v4126_v37  }
 0x4e0   :  { %6190 = vset.pattern.permute.xlu0 %v10309_v32 }
 0x4e1   :  { %4137 = vperm.xlu2 %6178, %v4126_v37  }
 0x4e2   :  { %6180 = vset.pattern.permute.xlu1 %v10528_v35 }
 0x4e8   :  { %4176 = vperm.xlu0 %6190, %v10536_v60  }
 0x4e9   :  { %6181 = vset.pattern.permute.xlu2 %v10531_v30 }
 0x4ea   :  { %4776 = vperm.xlu1 %6180, %v4100_v19  }
 0x4f0   :  { %6195 = vset.pattern.permute.xlu0 %v10528_v35 }
 0x4f1   :  { %4782 = vperm.xlu2 %6181, %v4100_v19  }
 0x4f2   :  { %4789 = vperm.xlu1 %6180, %v4113_v51  }
 0x4f8   :  { %4841 = vperm.xlu0 %6195, %v10536_v60  }
 0x4f9   :  { %6182 = vset.pattern.permute.xlu2 %v10306_v36 }
 0x4fa   :  { %6183 = vset.pattern.permute.xlu1 %v10309_v32  ;;  %v3582_v1 = vpop.xlane.xlu1 %3581 }
 0x4fb   :  { %v3613_v17 = vadd.f32 1.0, %v3582_v1 }
 0x4fd   :  { %v3584_v9 = vpop.xlane.xlu2 %3583  ;;  %v5898_v58 = vadd.f32 -118.0, %v3613_v17  ;;  %vm4002_vm13 = vcmp.gt.f32.partialorder %v3613_v17, 118.0 }
 0x4fe   :  { %v10547_v54 = vadd.f32 1.0, %v3584_v9  ;;  %v5930_v59 = vsel %vm4002_vm13, 1.0, %v12707_v21 }
 0x4ff   :  { %v5914_v29 = vmul.f32 -1.442695, %v5898_v58 }
 0x500   :  { %v5899_v28 = vadd.f32 -118.0, %v10547_v54  ;;  %6196 = vset.pattern.permute.xlu0 %v10531_v30  ;;  %vm4003_vm7 = vcmp.gt.f32.partialorder %v10547_v54, 118.0 }
 0x501   :  { %4144 = vperm.xlu2 %6182, %v10542_v12  }
 0x502   :  { %4150 = vperm.xlu1 %6183, %v10542_v12   ;;  %v3588_v40 = vpop.xlane.xlu1 %3587  ;;  %v5915_v57 = vmul.f32 -1.442695, %v5899_v28  ;;  %v4066_v28 = vperm.slane %v5930_v59, %v10589_v47 }
 0x503   :  { %v10553_v34 = vadd.f32 1.0, %v3588_v40 }
 0x504   :  { %6523 = vpow2.f32 %v5915_v57 }
 0x505   :  { %v3590_v26 = vpop.xlane.xlu2 %3589  ;;  %v5901_v25 = vadd.f32 -118.0, %v10553_v34  ;;  %6525 = vpow2.f32 %v5914_v29  ;;  %vm4005_vm8 = vcmp.gt.f32.partialorder %v10553_v34, 118.0 }
 0x506   :  { %v10557_v41 = vadd.f32 1.0, %v3590_v26  ;;  %v10613_v57 = vsel %vm4005_vm8, 1.0, %v12707_v21 }
 0x507   :  { %v5917_v0 = vmul.f32 -1.442695, %v5901_v25 }
 0x508   :  { %4795 = vperm.xlu0 %6196, %v4113_v51   ;;  %v5902_v13 = vadd.f32 -118.0, %v10557_v41  ;;  %vm4006_vm11 = vcmp.gt.f32.partialorder %v10557_v41, 118.0 }
 0x509   :  { %6184 = vset.pattern.permute.xlu2 %v10528_v35  ;;  %6527 = vpow2.f32 %v5917_v0  ;;  %v5934_v26 = vsel %vm4006_vm11, 1.0, %v12707_v21 }
 0x50a   :  { %6185 = vset.pattern.permute.xlu1 %v10531_v30  ;;  %v6524_v44 = vpop.eup %6523  ;;  %v3592_v8 = vpop.xlane.xlu1 %3591  ;;  %v5918_v62 = vmul.f32 -1.442695, %v5902_v13 }
 0x50b   :  { %v6526_v63 = vpop.eup %6525  ;;  %v10560_v61 = vadd.f32 1.0, %v6524_v44  ;;  %v10567_v27 = vadd.f32 1.0, %v3592_v8 }
 0x50c   :  { %v10563_v50 = vadd.f32 1.0, %v6526_v63 }
 0x50d   :  { %6529 = vrcp.f32 %v10560_v61  ;;  %v5903_v10 = vadd.f32 -118.0, %v10567_v27  ;;  %vm4007_vm1 = vcmp.gt.f32.partialorder %v10567_v27, 118.0  ;;  %v3733_v8 = vand.u32 2147483647, %v10560_v61 }
 0x50e   :  { %v3596_v15 = vpop.xlane.xlu2 %3595  ;;  %6531 = vpow2.f32 %v5918_v62  ;;  %v3720_v29 = vand.u32 2147483648, %v10563_v50  ;;  %v3718_v41 = vand.u32 2147483647, %v10563_v50  ;;  %v3735_v63 = vand.u32 2147483648, %v10560_v61 }
 0x50f   :  { %v3586_v38 = vpop.xlane.xlu0 %3585  ;;  %v6528_v55 = vpop.eup %6527  ;;  %6533 = vrcp.f32 %v10563_v50  ;;  %v10573_v52 = vadd.f32 1.0, %v3596_v15  ;;  %v5919_v42 = vmul.f32 -1.442695, %v5903_v10  ;;  %v5935_v27 = vsel %vm4007_vm1, 1.0, %v12707_v21 }
 0x510   :  { %v10565_v11 = vadd.f32 1.0, %v3586_v38  ;;  %v10575_v23 = vadd.f32 1.0, %v6528_v55  ;;  %v4072_v15 = vperm.slane %v5934_v26, %v10589_v47  ;;  %vm3714_vm10 = vweird.f32 %v10563_v50 }
 0x511   :  { %4802 = vperm.xlu2 %6184, %v4126_v37   ;;  %v5905_v45 = vadd.f32 -118.0, %v10573_v52  ;;  %v3721_v10 = vor.u32 1.1754944e-38, %v3720_v29  ;;  %vm10641_vm3 = vcmp.eq.f32.partialorder %v3718_v41, 8.507059e+37  ;;  %vm3729_vm6 = vweird.f32 %v10560_v61 }
 0x512   :  { %4808 = vperm.xlu1 %6185, %v4126_v37   ;;  %v5900_v3 = vadd.f32 -118.0, %v10565_v11  ;;  %6535 = vrcp.f32 %v10575_v23  ;;  %v5931_v37 = vsel %vm4003_vm7, 1.0, %v12707_v21  ;;  %vm4004_vm4 = vcmp.gt.f32.partialorder %v10565_v11, 118.0 }
 0x513   :  { %v3598_v16 = vpop.xlane.xlu1 %3597  ;;  %v10581_v48 = vpop.eup %6529  ;;  %v5921_v1 = vmul.f32 -1.442695, %v5905_v45  ;;  %v4067_v58 = vperm.slane %v5931_v37, %v10596_v43  ;;  %vm10650_vm5 = vcmp.eq.f32.partialorder %v3733_v8, 8.507059e+37  ;;  %v4073_v37 = vperm.slane %v5935_v27, %v10596_v43 }
 0x514   :  { %v10578_v46 = vadd.f32 1.0, %v3598_v16  ;;  %v5916_v53 = vmul.f32 -1.442695, %v5900_v3  ;;  %v6532_v18 = vpop.eup %6531  ;;  %v3725_v6 = vmul.f32 %v10581_v48, %v10560_v61  ;;  %vm3730_vm0 = vweird.f32 %v10581_v48 }
 0x515   :  { %v10584_v2 = vpop.eup %6533  ;;  %v10598_v19 = vadd.f32 1.0, %v6532_v18  ;;  %v10627_v38 = vsel %vm3969_vm14, %v4067_v58, %v4066_v28  ;;  %vm10661_vm15 = vmor %vm3729_vm6, %vm3730_vm0  ;;  %v10677_v26 = vsel %vm4004_vm4, 1.0, %v12707_v21  ;;  %vm3759_vm7 = vweird.f32 %v10575_v23 }
 0x516   :  { %v5906_v7 = vadd.f32 -118.0, %v10578_v46  ;;  %6537 = vpow2.f32 %v5916_v53  ;;  %v3710_v51 = vmul.f32 %v10584_v2, %v10563_v50  ;;  %v3726_v9 = vsub.f32 1.0, %v3725_v6  ;;  %v3602_v18 = vpop.xlane.xlu2 %3601 }
 0x517   :  { %6539 = vpow2.f32 %v5919_v42  ;;  %v3594_v16 = vpop.xlane.xlu0 %3593  ;;  %vm3715_vm2 = vweird.f32 %v10584_v2  ;;  %v10658_v61 = vadd.f32 1.0, %v3602_v18  ;;  %vm4009_vm8 = vcmp.gt.f32.partialorder %v10573_v52, 118.0 }
 0x518   :  { %v5922_v17 = vmul.f32 -1.442695, %v5906_v7  ;;  %v10607_v54 = vpop.eup %6535  ;;  %6541 = vrcp.f32 %v10598_v19  ;;  %v3711_v40 = vsub.f32 1.0, %v3710_v51  ;;  %v3727_v44 = vmul.f32 %v10581_v48, %v3726_v9  ;;  %vm10685_vm13 = vmor %vm3714_vm10, %vm3715_vm2 }
 0x519   :  { %6186 = vset.pattern.permute.xlu2 %v10309_v32  ;;  %6543 = vpow2.f32 %v5921_v1  ;;  %v3755_v0 = vmul.f32 %v10607_v54, %v10575_v23  ;;  %v3736_v51 = vor.u32 1.1754944e-38, %v3735_v63  ;;  %vm3760_vm11 = vweird.f32 %v10607_v54 }
 0x51a   :  { %6187 = vset.pattern.permute.xlu1 %v10528_v35  ;;  %6545 = vpow2.f32 %v5922_v17  ;;  %v3712_v62 = vmul.f32 %v10584_v2, %v3711_v40  ;;  %v3728_v7 = vadd.f32 %v10581_v48, %v3727_v44  ;;  %v3763_v17 = vand.u32 2147483647, %v10575_v23  ;;  %vm10728_vm10 = vmor %vm3759_vm7, %vm3760_vm11 }
 0x51b   :  { %v3756_v6 = vsub.f32 1.0, %v3755_v0  ;;  %v10691_v0 = vsel %vm3969_vm14, %v4073_v37, %v4072_v15  ;;  %v5908_v8 = vadd.f32 -118.0, %v10658_v61  ;;  %v10713_v15 = vsel %vm4009_vm8, 1.0, %v12707_v21 }
 0x51c   :  { %v6538_v34 = vpop.eup %6537  ;;  %v3713_v9 = vadd.f32 %v10584_v2, %v3712_v62  ;;  %v3732_v29 = vsel %vm10661_vm15, %v10581_v48, %v3728_v7  ;;  %v3604_v48 = vpop.xlane.xlu1 %3603  ;;  %vm10700_vm1 = vcmp.eq.f32.partialorder %v3763_v17, 8.507059e+37  ;;  %v10717_v18 = vperm.slane %v10515_v22, 6 }
 0x51d   :  { %v6540_v25 = vpop.eup %6539  ;;  %v10632_v55 = vadd.f32 1.0, %v6538_v34  ;;  %v3757_v34 = vmul.f32 %v10607_v54, %v3756_v6  ;;  %v3737_v62 = vsel %vm10650_vm5, %v3736_v51, %v3732_v29  ;;  %v3778_v51 = vand.u32 2147483647, %v10598_v19 }
 0x51e   :  { %v10634_v3 = vpop.eup %6541  ;;  %v10637_v53 = vadd.f32 1.0, %v6540_v25  ;;  %v10679_v25 = vadd.f32 1.0, %v3594_v16  ;;  %v3717_v44 = vsel %vm10685_vm13, %v10584_v2, %v3713_v9  ;;  %v3780_v37 = vand.u32 2147483648, %v10598_v19  ;;  %4860 = vperm.xlu0 %6196, %v10717_v18  }
 0x51f   :  { %v6544_v42 = vpop.eup %6543  ;;  %6547 = vrcp.f32 %v10632_v55  ;;  %v3770_v58 = vmul.f32 %v10634_v3, %v10598_v19  ;;  %v3758_v2 = vadd.f32 %v10607_v54, %v3757_v34  ;;  %v3722_v7 = vsel %vm10641_vm3, %v3721_v10, %v3717_v44 }
 0x520   :  { %v6546_v1 = vpop.eup %6545  ;;  %6549 = vrcp.f32 %v10637_v53  ;;  %v10668_v40 = vadd.f32 1.0, %v6544_v42  ;;  %v5904_v16 = vadd.f32 -118.0, %v10679_v25  ;;  %v3600_v42 = vpop.xlane.xlu0 %3599  ;;  %v3795_v9 = vand.u32 2147483648, %v10637_v53 }
 0x521   :  { %4163 = vperm.xlu2 %6186, %v10521_v5   ;;  %v10694_v11 = vadd.f32 1.0, %v6546_v1  ;;  %v3771_v52 = vsub.f32 1.0, %v3770_v58  ;;  %v3968_v1 = vperm.slane %v3737_v62, %v10596_v43  ;;  %vm3774_vm4 = vweird.f32 %v10598_v19 }
 0x522   :  { %4815 = vperm.xlu1 %6187, %v10542_v12   ;;  %6551 = vrcp.f32 %v10668_v40  ;;  %vm4010_vm3 = vcmp.gt.f32.partialorder %v10578_v46, 118.0  ;;  %v5924_v10 = vmul.f32 -1.442695, %v5908_v8  ;;  %v3966_v28 = vperm.slane %v3722_v7, %v10589_v47 }
 0x523   :  { %6553 = vrcp.f32 %v10694_v11  ;;  %v3762_v58 = vsel %vm10728_vm10, %v10607_v54, %v3758_v2  ;;  %v5920_v34 = vmul.f32 -1.442695, %v5904_v16  ;;  %v3793_v41 = vand.u32 2147483647, %v10637_v53 }
 0x524   :  { %vm3775_vm6 = vweird.f32 %v10634_v3  ;;  %v3781_v44 = vor.u32 1.1754944e-38, %v3780_v37  ;;  %v10758_v8 = vsel %vm4010_vm3, 1.0, %v12707_v21  ;;  %v3608_v62 = vpop.xlane.xlu2 %3607  ;;  %vm10765_vm0 = vcmp.eq.f32.partialorder %v3778_v51, 8.507059e+37 }
 0x525   :  { %v10709_v27 = vpop.eup %6547  ;;  %6555 = vpow2.f32 %v5924_v10  ;;  %v10769_v2 = vadd.f32 1.0, %v3604_v48  ;;  %vm3789_vm2 = vweird.f32 %v10637_v53  ;;  %v10783_v10 = vadd.f32 1.0, %v3608_v62  ;;  %vm10804_vm13 = vmor %vm3774_vm4, %vm3775_vm6 }
 0x526   :  { %v10720_v6 = vpop.eup %6549  ;;  %v3740_v17 = vmul.f32 %v10709_v27, %v10632_v55  ;;  %6557 = vpow2.f32 %v5920_v34  ;;  %v3825_v50 = vand.u32 2147483648, %v10668_v40  ;;  %vm3744_vm5 = vweird.f32 %v10632_v55 }
 0x527   :  { %v3785_v46 = vmul.f32 %v10720_v6, %v10637_v53  ;;  %vm3790_vm15 = vweird.f32 %v10720_v6  ;;  %v5911_v56 = vadd.f32 -118.0, %v10783_v10  ;;  %vm3745_vm7 = vweird.f32 %v10709_v27 }
 0x528   :  { %v10753_v29 = vpop.eup %6551  ;;  %v3741_v37 = vsub.f32 1.0, %v3740_v17  ;;  %v3823_v17 = vand.u32 2147483647, %v10668_v40  ;;  %v10814_v49 = vor.u32 1.1754944e-38, %v3825_v50  ;;  %vm10822_vm11 = vcmp.eq.f32.partialorder %v3793_v41, 8.507059e+37  ;;  %vm10844_vm10 = vmor %vm3744_vm5, %vm3745_vm7 }
 0x529   :  { %6188 = vset.pattern.permute.xlu2 %v10531_v30  ;;  %v10771_v16 = vpop.eup %6553  ;;  %v3786_v51 = vsub.f32 1.0, %v3785_v46  ;;  %v3815_v48 = vmul.f32 %v10753_v29, %v10668_v40  ;;  %vm3820_vm4 = vweird.f32 %v10753_v29  ;;  %vm4008_vm3 = vcmp.gt.f32.partialorder %v10679_v25, 118.0 }
 0x52a   :  { %6189 = vset.pattern.permute.xlu1 %v10306_v36  ;;  %vm10855_vm6 = vcmp.eq.f32.partialorder %v3823_v17, 8.507059e+37  ;;  %vm4012_vm5 = vcmp.gt.f32.partialorder %v10658_v61, 118.0  ;;  %v13088_v61 = vperm.slane %v10713_v15, %v10596_v43 }
 0x52b   :  { %v6556_v13 = vpop.eup %6555  ;;  %v3816_v21 = vsub.f32 1.0, %v3815_v48 }
 0x52c   :  { %v6558_v31 = vpop.eup %6557  ;;  %v10835_v39 = vadd.f32 1.0, %v6556_v13 }
 0x52d   :  { %v10852_v13 = vadd.f32 1.0, %v6558_v31  ;;  %v3840_v31 = vand.u32 2147483648, %v10694_v11 }
 0x531   :  { %4821 = vperm.xlu2 %6188, %v10542_v12   ;;  %v3765_v12 = vand.u32 2147483648, %v10575_v23  ;;  %v3772_v23 = vmul.f32 %v10634_v3, %v3771_v52  ;;  %v10761_v52 = vsel %vm3969_vm14, %v3968_v1, %v3966_v28  ;;  %v3830_v28 = vmul.f32 %v10771_v16, %v10694_v11 }
 0x532   :  { %4170 = vperm.xlu1 %6189, %v10536_v60  }
 0x533   :  { %v3766_v63 = vor.u32 1.1754944e-38, %v3765_v12  ;;  %v10745_v12 = vadd.f32 1.0, %v3600_v42  ;;  %v10763_v42 = vor.u32 1.1754944e-38, %v3795_v9  ;;  %v3773_v59 = vadd.f32 %v10634_v3, %v3772_v23  ;;  %v3610_v9 = vpop.xlane.xlu1 %3609 }
 0x534   :  { %v3748_v23 = vand.u32 2147483647, %v10632_v55  ;;  %v10795_v46 = vadd.f32 1.0, %v3610_v9  ;;  %v3787_v9 = vmul.f32 %v10720_v6, %v3786_v51 }
 0x535   :  { %v10775_v7 = vsel %vm10700_vm1, %v3766_v63, %v3762_v58  ;;  %v5907_v1 = vadd.f32 -118.0, %v10745_v12  ;;  %v5909_v58 = vadd.f32 -118.0, %v10769_v2  ;;  %v3742_v63 = vmul.f32 %v10709_v27, %v3741_v37 }
 0x536   :  { %v3777_v34 = vsel %vm10804_vm13, %v10634_v3, %v3773_v59  ;;  %vm10817_vm8 = vcmp.eq.f32.partialorder %v3748_v23, 8.507059e+37  ;;  %v3750_v37 = vand.u32 2147483648, %v10632_v55  ;;  %vm3819_vm1 = vweird.f32 %v10668_v40 }
 0x537   :  { %v5923_v45 = vmul.f32 -1.442695, %v5907_v1  ;;  %v3606_v1 = vpop.xlane.xlu0 %3605  ;;  %v3831_v3 = vsub.f32 1.0, %v3830_v28  ;;  %v4069_v59 = vperm.slane %v10677_v26, %v10589_v47  ;;  %v5925_v48 = vmul.f32 -1.442695, %v5909_v58 }
 0x538   :  { %v5912_v50 = vadd.f32 -118.0, %v10795_v46  ;;  %v10832_v23 = vsel %vm10765_vm0, %v3781_v44, %v3777_v34  ;;  %v3743_v62 = vadd.f32 %v10709_v27, %v3742_v63  ;;  %v3788_v41 = vadd.f32 %v10720_v6, %v3787_v9  ;;  %vm10865_vm0 = vmor %vm3789_vm2, %vm3790_vm15 }
 0x539   :  { %6191 = vset.pattern.permute.xlu2 %v10528_v35  ;;  %6559 = vpow2.f32 %v5923_v45  ;;  %v3817_v28 = vmul.f32 %v10753_v29, %v3816_v21  ;;  %v5927_v44 = vmul.f32 -1.442695, %v5911_v56  ;;  %v10848_v54 = vadd.f32 1.0, %v3606_v1  ;;  %vm10901_vm15 = vmor %vm3819_vm1, %vm3820_vm4 }
 0x53a   :  { %6192 = vset.pattern.permute.xlu1 %v10531_v30  ;;  %v3832_v55 = vmul.f32 %v10771_v16, %v3831_v3  ;;  %v3838_v45 = vand.u32 2147483647, %v10694_v11  ;;  %6561 = vpow2.f32 %v5925_v48  ;;  %v5928_v56 = vmul.f32 -1.442695, %v5912_v50  ;;  %v10890_v50 = vpop.permute.xlu2 %4105 }
 0x53b   :  { %v3747_v25 = vsel %vm10844_vm10, %v10709_v27, %v3743_v62  ;;  %6563 = vrcp.f32 %v10835_v39  ;;  %v5910_v17 = vadd.f32 -118.0, %v10848_v54  ;;  %v3792_v58 = vsel %vm10865_vm0, %v10720_v6, %v3788_v41 }
 0x53c   :  { %v3818_v53 = vadd.f32 %v10753_v29, %v3817_v28  ;;  %v13079_v34 = vmov 0.0   ;;  %6565 = vpow2.f32 %v5927_v44  ;;  %vm3835_vm2 = vweird.f32 %v10771_v16  ;;  %v10961_v15 = vpop.permute.xlu1 %4111 }
 0x53d   :  { %v5936_v9 = vsel %vm4008_vm3, 1.0, %v13079_v34  ;;  %v13080_v1 = vperm.slane %v10613_v57, %v10596_v43  ;;  %6567 = vrcp.f32 %v10852_v13  ;;  %v3833_v3 = vadd.f32 %v10771_v16, %v3832_v55 }
 0x53e   :  { %6569 = vpow2.f32 %v5928_v56  ;;  %v5926_v48 = vmul.f32 -1.442695, %v5910_v17  ;;  %v3797_v62 = vsel %vm10822_vm11, %v10763_v42, %v3792_v58  ;;  %v3974_v57 = vperm.slane %v10832_v23, %v10589_v47 }
 0x53f   :  { %v4071_v27 = vsel %vm3969_vm14, %v13080_v1, %v4069_v59  ;;  %vm3834_vm13 = vweird.f32 %v10694_v11  ;;  %v4075_v19 = vperm.slane %v5936_v9, %v10589_v47  ;;  %v3822_v42 = vsel %vm10901_vm15, %v10753_v29, %v3818_v53 }
 0x540   :  { %vm10911_vm7 = vcmp.eq.f32.partialorder %v3838_v45, 8.507059e+37  ;;  %vm10923_vm11 = vmor %vm3834_vm13, %vm3835_vm2  ;;  %v3841_v28 = vor.u32 1.1754944e-38, %v3840_v31  ;;  %vm13087_vm1 = vcmask 1041409   ;;  %v5940_v44 = vsel %vm4012_vm5, 1.0, %v13079_v34 }
 0x541   :  { %4828 = vperm.xlu2 %6191, %v10521_v5   ;;  %v4090_v26 = vsel %vm13087_vm1, %v4071_v27, %v10627_v38  ;;  %v3975_v55 = vperm.slane %v3797_v62, %v10596_v43  ;;  %v3837_v45 = vsel %vm10923_vm11, %v10771_v16, %v3833_v3  ;;  %vm4013_vm10 = vcmp.gt.f32.partialorder %v10769_v2, 118.0  ;;  %vm13090_vm3 = vmmov %vm13087_vm1 }
 0x542   :  { %4834 = vperm.xlu1 %6192, %v10521_v5   ;;  %v3751_v5 = vor.u32 1.1754944e-38, %v3750_v37  ;;  %v6560_v37 = vpop.eup %6559  ;;  %6571 = vpow2.f32 %v5926_v48  ;;  %v10943_v38 = vsel %vm10855_vm6, %v10814_v49, %v3822_v42  ;;  %v4077_v63 = vsel %vm3969_vm14, %v13088_v61, %v4075_v19 }
 0x543   :  { %v6562_v41 = vpop.eup %6561  ;;  %v10915_v40 = vadd.f32 1.0, %v6560_v37  ;;  %v4081_v17 = vperm.slane %v5940_v44, %v10589_v47  ;;  %v4091_v49 = vsel %vm12727_vm9, %v10691_v0, %v4090_v26  ;;  %v10965_v21 = vsel %vm10911_vm7, %v3841_v28, %v3837_v45 }
 0x544   :  { %v3752_v6 = vsel %vm10817_vm8, %v3751_v5, %v3747_v25  ;;  %vm4011_vm8 = vcmp.gt.f32.partialorder %v10745_v12, 118.0  ;;  %v10919_v11 = vpop.eup %6563  ;;  %v10949_v31 = vadd.f32 1.0, %v6562_v41  ;;  %v10955_v25 = vsel %vm3969_vm14, %v3975_v55, %v3974_v57  ;;  %v10995_v41 = vpop.permute.xlu2 %4124 }
 0x545   :  { %v3971_v29 = vperm.slane %v3752_v6, %v10589_v47  ;;  %v6566_v5 = vpop.eup %6565  ;;  %v5939_v16 = vsel %vm4011_vm8, 1.0, %v13079_v34  ;;  %6573 = vrcp.f32 %v10915_v40  ;;  %v13089_v12 = vperm.slane %v10775_v7, %v10596_v43  ;;  %v3612_v6 = vpop.xlane.xlu0 %3611 }
 0x546   :  { %v10938_v56 = vpop.eup %6567  ;;  %v5941_v53 = vsel %vm4013_vm10, 1.0, %v13079_v34  ;;  %v10972_v9 = vadd.f32 1.0, %v6566_v5  ;;  %v3978_v0 = vperm.slane %v10943_v38, %v10596_v43  ;;  %v3860_v37 = vmul.f32 %v10919_v11, %v10835_v39 }
 0x547   :  { %v6570_v2 = vpop.eup %6569  ;;  %v3973_v58 = vsel %vm3969_vm14, %v13089_v12, %v3971_v29  ;;  %v4092_v1 = vsel %vm12725_vm12, %v4077_v63, %v4091_v49  ;;  %v4079_v27 = vperm.slane %v5939_v16, %v10596_v43  ;;  %v3800_v3 = vmul.f32 %v10938_v56, %v10852_v13 }
 0x548   :  { %6575 = vrcp.f32 %v10949_v31  ;;  %v10983_v7 = vadd.f32 1.0, %v6570_v2  ;;  %vm4014_vm4 = vcmp.gt.f32.partialorder %v10848_v54, 118.0  ;;  %v6572_v48 = vpop.eup %6571  ;;  %v3980_v62 = vperm.slane %v10965_v21, %v10589_v47 }
 0x549   :  { %6193 = vset.pattern.permute.xlu2 %v10306_v36  ;;  %v10991_v57 = vsel %vm13090_vm3, %v3973_v58, %v10761_v52  ;;  %v3870_v59 = vand.u32 2147483648, %v10835_v39  ;;  %v4082_v19 = vperm.slane %v5941_v53, %v10596_v43  ;;  %vm3864_vm6 = vweird.f32 %v10835_v39 }
 0x54a   :  { %6194 = vset.pattern.permute.xlu1 %v10309_v32  ;;  %v3810_v42 = vand.u32 2147483648, %v10852_v13  ;;  %6577 = vrcp.f32 %v10972_v9  ;;  %vm4015_vm0 = vcmp.gt.f32.partialorder %v10783_v10, 118.0  ;;  %v11002_v51 = vadd.f32 1.0, %v6572_v48 }
 0x54b   :  { %v11004_v52 = vpop.eup %6573  ;;  %v13091_v23 = vperm.slane %v10758_v8, %v10589_v47  ;;  %vm4016_vm2 = vcmp.gt.f32.partialorder %v10795_v46, 118.0  ;;  %v5942_v29 = vsel %vm4014_vm4, 1.0, %v13079_v34  ;;  %v3628_v26 = vadd.f32 1.0, %v3612_v6 }
 0x54c   :  { %v3861_v44 = vsub.f32 1.0, %v3860_v37  ;;  %v3868_v5 = vand.u32 2147483647, %v10835_v39  ;;  %v3801_v10 = vsub.f32 1.0, %v3800_v3  ;;  %6579 = vrcp.f32 %v10983_v7  ;;  %v11021_v46 = vpop.permute.xlu1 %4131 }
 0x54d   :  { %v4080_v28 = vsel %vm3969_vm14, %v4079_v27, %v13091_v23  ;;  %v11016_v55 = vor.u32 1.1754944e-38, %v3870_v59  ;;  %v4083_v45 = vsel %vm3969_vm14, %v4082_v19, %v4081_v17  ;;  %v5943_v8 = vsel %vm4015_vm0, 1.0, %v13079_v34 }
 0x54e   :  { %6581 = vrcp.f32 %v11002_v51  ;;  %v11023_v61 = vpop.eup %6575  ;;  %v3845_v54 = vmul.f32 %v11004_v52, %v10915_v40  ;;  %vm13092_vm5 = vcmask 1044484   ;;  %v5944_v16 = vsel %vm4016_vm2, 1.0, %v13079_v34 }
 0x54f   :  { %v4093_v63 = vsel %vm13092_vm5, %v4080_v28, %v4092_v1  ;;  %v4084_v2 = vperm.slane %v5942_v29, %v10589_v47  ;;  %vm3804_vm15 = vweird.f32 %v10852_v13  ;;  %v3808_v17 = vand.u32 2147483647, %v10852_v13  ;;  %v4119_v28 = vpop.permute.xlu0 %4118 }
 0x550   :  { %v11032_v49 = vor.u32 1.1754944e-38, %v3810_v42  ;;  %v5913_v12 = vadd.f32 -118.0, %v3628_v26  ;;  %vm4017_vm13 = vcmp.gt.f32.partialorder %v3628_v26, 118.0  ;;  %v11034_v58 = vpop.eup %6577  ;;  %v3862_v53 = vmul.f32 %v10919_v11, %v3861_v44 }
 0x551   :  { %4183 = vperm.xlu2 %6193, %v10717_v18   ;;  %vm3865_vm7 = vweird.f32 %v10919_v11  ;;  %vm11038_vm8 = vcmp.eq.f32.partialorder %v3868_v5, 8.507059e+37  ;;  %v3802_v1 = vmul.f32 %v10938_v56, %v3801_v10  ;;  %v4085_v27 = vperm.slane %v5943_v8, %v10596_v43  ;;  %v4138_v10 = vpop.permute.xlu2 %4137 }
 0x552   :  { %4189 = vperm.xlu1 %6194, %v10717_v18   ;;  %v3875_v3 = vmul.f32 %v11023_v61, %v10949_v31  ;;  %v4087_v6 = vperm.slane %v5944_v16, %v10589_v47  ;;  %vm13095_vm11 = vcmask 1045509   ;;  %v5929_v59 = vmul.f32 -1.442695, %v5913_v12  ;;  %v11050_v19 = vpop.eup %6579  ;;  %vm11074_vm3 = vmor %vm3864_vm6, %vm3865_vm7 }
 0x553   :  { %v4094_v48 = vsel %vm13095_vm11, %v4083_v45, %v4093_v63  ;;  %vm3805_vm1 = vweird.f32 %v10938_v56  ;;  %v3846_v42 = vsub.f32 1.0, %v3845_v54  ;;  %v4086_v23 = vsel %vm3969_vm14, %v4085_v27, %v4084_v2 }
 0x554   :  { %v11056_v29 = vpop.eup %6581  ;;  %v3885_v44 = vand.u32 2147483648, %v10949_v31  ;;  %v3905_v5 = vmul.f32 %v11034_v58, %v10972_v9  ;;  %6583 = vpow2.f32 %v5929_v59  ;;  %v3863_v45 = vadd.f32 %v10919_v11, %v3862_v53 }
 0x555   :  { %v3803_v8 = vadd.f32 %v10938_v56, %v3802_v1  ;;  %vm11064_vm10 = vcmp.eq.f32.partialorder %v3808_v17, 8.507059e+37  ;;  %v3890_v26 = vmul.f32 %v11056_v29, %v11002_v51  ;;  %vm4000_vm4 = vcmask 786048  }
 0x556   :  { %v3876_v16 = vsub.f32 1.0, %v3875_v3  ;;  %vm13100_vm0 = vcmask 1046534   ;;  %vm4206_vm2 = vcmp.gt.f32.partialorder %v4119_v28, %v6850_v14  ;;  %v3847_v53 = vmul.f32 %v11004_v52, %v3846_v42 }
 0x557   :  { %v4095_v2 = vsel %vm13100_vm0, %v4086_v23, %v4094_v48  ;;  %v3920_v1 = vmul.f32 %v11050_v19, %v10983_v7  ;;  %v3891_v27 = vsub.f32 1.0, %v3890_v26  ;;  %vm13101_vm5 = vcmask 1047559  }
 0x558   :  { %vm3879_vm6 = vweird.f32 %v10949_v31  ;;  %v3853_v3 = vand.u32 2147483647, %v10915_v40  ;;  %v3906_v59 = vsub.f32 1.0, %v3905_v5  ;;  %v3867_v48 = vsel %vm11074_vm3, %v10919_v11, %v3863_v45 }
 0x559   :  { %6197 = vset.pattern.permute.xlu2 %v10531_v30  ;;  %v3883_v23 = vand.u32 2147483647, %v10949_v31  ;;  %v3855_v28 = vand.u32 2147483648, %v10915_v40  ;;  %vm3850_vm7 = vweird.f32 %v11004_v52  ;;  %v11112_v13 = vperm.slane %v10515_v22, 7  ;;  %v11130_v22 = vpop.permute.xlu2 %4782 }
 0x55a   :  { %6198 = vset.pattern.permute.xlu1 %v10306_v36  ;;  %v5945_v36 = vsel %vm4017_vm13, 1.0, %v13079_v34  ;;  %vm11098_vm13 = vmor %vm3804_vm15, %vm3805_vm1  ;;  %v6584_v5 = vpop.eup %6583  ;;  %v3921_v45 = vsub.f32 1.0, %v3920_v1  ;;  %v3892_v26 = vmul.f32 %v11056_v29, %v3891_v27  ;;  %vm3849_vm15 = vweird.f32 %v10915_v40 }
 0x55b   :  { %v3807_v11 = vsel %vm11098_vm13, %v10938_v56, %v3803_v8  ;;  %v11117_v63 = vadd.f32 1.0, %v6584_v5  ;;  %v11122_v56 = vsel %vm11038_vm8, %v11016_v55, %v3867_v48  ;;  %vm11125_vm11 = vcmp.eq.f32.partialorder %v3853_v3, 8.507059e+37  ;;  %vm11146_vm0 = vmor %vm3849_vm15, %vm3850_vm7 }
 0x55c   :  { %v11081_v12 = vpop.permute.xlu1 %4776  ;;  %vm3880_vm1 = vweird.f32 %v11023_v61  ;;  %vm4209_vm8 = vcmp.gt.f32.partialorder %v4138_v10, %v6857_v20  ;;  %v3812_v40 = vsel %vm11064_vm10, %v11032_v49, %v3807_v11  ;;  %vm11140_vm3 = vcmp.eq.f32.partialorder %v3883_v23, 8.507059e+37 }
 0x55d   :  { %6585 = vrcp.f32 %v11117_v63  ;;  %v3915_v10 = vand.u32 2147483648, %v10972_v9  ;;  %v3922_v54 = vmul.f32 %v11050_v19, %v3921_v45  ;;  %vm3895_vm10 = vweird.f32 %v11056_v29 }
 0x55e   :  { %v3900_v27 = vand.u32 2147483648, %v11002_v51  ;;  %vm3909_vm13 = vweird.f32 %v10972_v9  ;;  %vm3894_vm7 = vweird.f32 %v11002_v51  ;;  %v3983_v21 = vperm.slane %v11122_v56, %v10589_v47 }
 0x55f   :  { %v3916_v23 = vor.u32 1.1754944e-38, %v3915_v10 }
 0x561   :  { %4847 = vperm.xlu2 %6197, %v10536_v60   ;;  %v4088_v60 = vperm.slane %v5945_v36, %v10596_v43  ;;  %v11103_v36 = vor.u32 1.1754944e-38, %v3885_v44  ;;  %v3848_v44 = vadd.f32 %v11004_v52, %v3847_v53  ;;  %v3893_v53 = vadd.f32 %v11056_v29, %v3892_v26  ;;  %v11207_v26 = vpop.permute.xlu2 %4144 }
 0x562   :  { %4196 = vperm.xlu1 %6198, %v11112_v13  }
 0x563   :  { %v4089_v17 = vsel %vm3969_vm14, %v4088_v60, %v4087_v6  ;;  %v5948_v6 = vsel %vm4206_vm2, 1.0, %v13079_v34  ;;  %v3877_v60 = vmul.f32 %v11023_v61, %v3876_v16  ;;  %v3856_v16 = vor.u32 1.1754944e-38, %v3855_v28 }
 0x564   :  { %v4096_v39 = vsel %vm13101_vm5, %v4089_v17, %v4095_v2  ;;  %4256 = vadd.xlane.f32.xlu0 %v5948_v6  ;;  %v3913_v17 = vand.u32 2147483647, %v10972_v9  ;;  %v3852_v49 = vsel %vm11146_vm0, %v11004_v52, %v3848_v44  ;;  %vm3910_vm2 = vweird.f32 %v11034_v58  ;;  %v4790_v3 = vpop.permute.xlu1 %4789  ;;  %vm11167_vm5 = vmor %vm3879_vm6, %vm3880_vm1  ;;  %v6586_v9 = vpop.eup %6585 }
 0x565   :  { %4098 = vst.msk [vmem:[#allocation2 + $0x8] sm:$0xff] %vm4000_vm4, %v4096_v39  ;;  %v3878_v55 = vadd.f32 %v11023_v61, %v3877_v60  ;;  %v5951_v39 = vsel %vm4209_vm8, 1.0, %v13079_v34  ;;  %v3898_v6 = vand.u32 2147483647, %v11002_v51  ;;  %v3857_v48 = vsel %vm11125_vm11, %v3856_v16, %v3852_v49  ;;  %vm11183_vm1 = vmor %vm3894_vm7, %vm3895_vm10 }
 0x566   :  { %vm11176_vm15 = vcmp.eq.f32.partialorder %v3913_v17, 8.507059e+37  ;;  %vm3924_vm6 = vweird.f32 %v10983_v7  ;;  %vm11190_vm8 = vmor %vm3909_vm13, %vm3910_vm2  ;;  %v3923_v28 = vadd.f32 %v11050_v19, %v3922_v54  ;;  %vm3925_vm11 = vweird.f32 %v11050_v19 }
 0x567   :  { %v3897_v5 = vsel %vm11183_vm1, %v11056_v29, %v3893_v53  ;;  %vm4877_vm0 = vcmp.gt.f32.partialorder %v4790_v3, %v6850_v14  ;;  %v3882_v11 = vsel %vm11167_vm5, %v11023_v61, %v3878_v55  ;;  %v3901_v44 = vor.u32 1.1754944e-38, %v3900_v27  ;;  %vm11215_vm2 = vmor %vm3924_vm6, %vm3925_vm11 }
 0x568   :  { %v3935_v45 = vmul.f32 %v6586_v9, %v11117_v63  ;;  %v3981_v8 = vperm.slane %v3857_v48, %v10596_v43  ;;  %v3930_v29 = vand.u32 2147483648, %v10983_v7  ;;  %vm3899_vm10 = vcmp.eq.f32.partialorder %v3898_v6, 8.507059e+37 }
 0x569   :  { %6199 = vset.pattern.permute.xlu2 %v10309_v32  ;;  %v3907_v32 = vmul.f32 %v11034_v58, %v3906_v59  ;;  %v3977_v59 = vperm.slane %v3812_v40, %v10589_v47  ;;  %v3902_v16 = vsel %vm3899_vm10, %v3901_v44, %v3897_v5  ;;  %v6012_v55 = vsel %vm4877_vm0, 1.0, %v13079_v34 }
 0x56a   :  { %6200 = vset.pattern.permute.xlu1 %v10528_v35  ;;  %v3936_v40 = vsub.f32 1.0, %v3935_v45  ;;  %v3887_v17 = vsel %vm11140_vm3, %v11103_v36, %v3882_v11  ;;  %vm3939_vm5 = vweird.f32 %v11117_v63  ;;  %vm3940_vm13 = vweird.f32 %v6586_v9 }
 0x56b   :  { %v3908_v1 = vadd.f32 %v11034_v58, %v3907_v32  ;;  %v3945_v32 = vand.u32 2147483648, %v11117_v63  ;;  %v3979_v2 = vsel %vm3969_vm14, %v3978_v0, %v3977_v59  ;;  %v3943_v54 = vand.u32 2147483647, %v11117_v63  ;;  %vm3941_vm7 = vmor %vm3939_vm5, %vm3940_vm13  ;;  %v4803_v59 = vpop.permute.xlu2 %4802 }
 0x56c   :  { %4262 = vadd.xlane.f32.xlu0 %v5951_v39  ;;  %v3937_v49 = vmul.f32 %v6586_v9, %v3936_v40  ;;  %v3982_v38 = vsel %vm3969_vm14, %v3981_v8, %v3980_v62  ;;  %v3931_v0 = vor.u32 1.1754944e-38, %v3930_v29  ;;  %v3986_v36 = vperm.slane %v3902_v16, %v10589_v47  ;;  %v13124_v40 = vld [vmem:[#allocation10_spill] sm:$0xff] }
 0x56d   :  { %v3912_v60 = vsel %vm11190_vm8, %v11034_v58, %v3908_v1  ;;  %v3928_v58 = vand.u32 2147483647, %v10983_v7  ;;  %v3927_v7 = vsel %vm11215_vm2, %v11050_v19, %v3923_v28  ;;  %v3946_v37 = vor.u32 1.1754944e-38, %v3945_v32 }
 0x56e   :  { %v3917_v10 = vsel %vm11176_vm15, %v3916_v23, %v3912_v60  ;;  %v3993_v19 = vsel %vm12727_vm9, %v10955_v25, %v10991_v57  ;;  %v3984_v53 = vperm.slane %v3887_v17, %v10596_v43  ;;  %v3938_v1 = vadd.f32 %v6586_v9, %v3937_v49 }
 0x56f   :  { %vm3929_vm3 = vcmp.eq.f32.partialorder %v3928_v58, 8.507059e+37  ;;  %v3994_v62 = vsel %vm12725_vm12, %v3979_v2, %v3993_v19  ;;  %v3987_v27 = vperm.slane %v3917_v10, %v10596_v43  ;;  %vm13120_vm15 = vcmask 1044484  }
 0x570   :  { %v3932_v39 = vsel %vm3929_vm3, %v3931_v0, %v3927_v7  ;;  %v3995_v25 = vsel %vm13120_vm15, %v3982_v38, %v3994_v62  ;;  %v3942_v57 = vsel %vm3941_vm7, %v6586_v9, %v3938_v1  ;;  %vm3944_vm6 = vcmp.eq.f32.partialorder %v3943_v54, 8.507059e+37 }
 0x571   :  { %4202 = vperm.xlu2 %6199, %v11112_v13   ;;  %v3947_v56 = vsel %vm3944_vm6, %v3946_v37, %v3942_v57  ;;  %v3985_v52 = vsel %vm3969_vm14, %v3984_v53, %v3983_v21  ;;  %v3989_v6 = vperm.slane %v3932_v39, %v10589_v47  ;;  %vm13121_vm8 = vcmask 1045509  }
 0x572   :  { %4854 = vperm.xlu1 %6200, %v10717_v18   ;;  %v3990_v63 = vperm.slane %v3947_v56, %v10596_v43  ;;  %v3996_v42 = vsel %vm13121_vm8, %v3985_v52, %v3995_v25  ;;  %vm13122_vm11 = vcmask 1046534   ;;  %v4158_v18 = vpop.permute.xlu0 %4157  ;;  %vm13123_vm0 = vcmask 1047559  }
 0x573   :  { %vm4212_vm10 = vcmp.gt.f32.partialorder %v4158_v18, %v6862_v24  ;;  %vm4204_vm2 = vcmp.gt.f32.partialorder %v10890_v50, %v6809_v4  ;;  %vm4207_vm5 = vcmp.gt.f32.partialorder %v10995_v41, %v6850_v14  ;;  %vm4205_vm13 = vcmp.gt.f32.partialorder %v10961_v15, %v6809_v4 }
 0x574   :  { %4927 = vadd.xlane.f32.xlu0 %v6012_v55  ;;  %v4151_v3 = vpop.permute.xlu1 %4150  ;;  %v3991_v31 = vsel %vm3969_vm14, %v3990_v63, %v3989_v6  ;;  %v5954_v43 = vsel %vm4212_vm10, 1.0, %v13079_v34  ;;  %v5946_v60 = vsel %vm4204_vm2, 1.0, %v13079_v34  ;;  %v5947_v8 = vsel %vm4205_vm13, 1.0, %v13079_v34  ;;  %v13125_v55 = vld [vmem:[#allocation9_spill] sm:$0xff] }
 0x575   :  { %vm4211_vm1 = vcmp.gt.f32.partialorder %v4151_v3, %v6872_v33  ;;  %vm4875_vm3 = vcmp.gt.f32.partialorder %v11081_v12, %v6809_v4  ;;  %vm4208_vm7 = vcmp.gt.f32.partialorder %v11021_v46, %v6857_v20  ;;  %vm4876_vm6 = vcmp.gt.f32.partialorder %v11130_v22, %v6809_v4 }
 0x576   :  { %v5953_v48 = vsel %vm4211_vm1, 1.0, %v13079_v34  ;;  %v6010_v50 = vsel %vm4875_vm3, 1.0, %v13079_v34  ;;  %v5950_v32 = vsel %vm4208_vm7, 1.0, %v13079_v34  ;;  %v6011_v61 = vsel %vm4876_vm6, 1.0, %v13079_v34 }
 0x577   :  { %vm4879_vm1 = vcmp.gt.f32.partialorder %v4803_v59, %v6857_v20  ;;  %vm4210_vm8 = vcmp.gt.f32.partialorder %v11207_v26, %v6872_v33 }
 0x578   :  { %v6014_v46 = vsel %vm4879_vm1, 1.0, %v13079_v34  ;;  %v5952_v58 = vsel %vm4210_vm8, 1.0, %v13079_v34 }
 0x579   :  { %6201 = vset.pattern.permute.xlu2 %v10528_v35  ;;  %v3988_v35 = vsel %vm3969_vm14, %v3987_v27, %v3986_v36 }
 0x57a   :  { %v3997_v23 = vsel %vm13122_vm11, %v3988_v35, %v3996_v42  ;;  %6202 = vset.pattern.permute.xlu1 %v10531_v30  ;;  %v4177_v30 = vpop.permute.xlu0 %4176 }
 0x57b   :  { %v3998_v9 = vsel %vm13123_vm0, %v3991_v31, %v3997_v23  ;;  %v4164_v47 = vpop.permute.xlu2 %4163 }
 0x57c   :  { %4266 = vadd.xlane.f32.xlu0 %v5953_v48  ;;  %4001 = vst.msk [vmem:[#allocation2] sm:$0xff] %vm4000_vm4, %v3998_v9  ;;  %vm4213_vm11 = vcmp.gt.f32.partialorder %v4164_v47, %v6862_v24 }
 0x57d   :  { %v5955_v4 = vsel %vm4213_vm11, 1.0, %v13079_v34 }
 0x581   :  { %4867 = vperm.xlu2 %6201, %v11112_v13  }
 0x582   :  { %4873 = vperm.xlu1 %6202, %v11112_v13   ;;  %v5949_v13 = vsel %vm4207_vm5, 1.0, %v13079_v34  ;;  %v4842_v44 = vpop.permute.xlu0 %4841  ;;  %vm4215_vm5 = vcmp.gt.f32.partialorder %v4177_v30, %v13125_v55 }
 0x583   :  { %v5957_v38 = vsel %vm4215_vm5, 1.0, %v13079_v34  ;;  %vm4885_vm3 = vcmp.gt.f32.partialorder %v4842_v44, %v13125_v55 }
 0x584   :  { %4268 = vadd.xlane.f32.xlu0 %v5954_v43  ;;  %v4809_v45 = vpop.permute.xlu1 %4808 }
 0x585   :  { %vm4880_vm0 = vcmp.gt.f32.partialorder %v4809_v45, %v6857_v20 }
 0x586   :  { %v6015_v16 = vsel %vm4880_vm0, 1.0, %v13079_v34 }
 0x58a   :  { %v4796_v29 = vpop.permute.xlu0 %4795 }
 0x58b   :  { %v4822_v51 = vpop.permute.xlu2 %4821  ;;  %vm4878_vm15 = vcmp.gt.f32.partialorder %v4796_v29, %v6850_v14 }
 0x58c   :  { %vm4882_vm14 = vcmp.gt.f32.partialorder %v4822_v51, %v6872_v33  ;;  %v6013_v15 = vsel %vm4878_vm15, 1.0, %v13079_v34 }
 0x58d   :  { %v6017_v28 = vsel %vm4882_vm14, 1.0, %v13079_v34 }
 0x58e   :  { %4937 = vadd.xlane.f32.xlu0 %v6017_v28 }
 0x592   :  { %v4861_v7 = vpop.permute.xlu0 %4860 }
 0x593   :  { %vm4888_vm15 = vcmp.gt.f32.partialorder %v4861_v7, %v13124_v40 }
 0x594   :  { %v4816_v41 = vpop.permute.xlu1 %4815  ;;  %v6023_v53 = vsel %vm4888_vm15, 1.0, %v13079_v34 }
 0x59b   :  { %v4829_v5 = vpop.permute.xlu2 %4828 }
 0x59c   :  { %vm4883_vm4 = vcmp.gt.f32.partialorder %v4829_v5, %v6862_v24 }
 0x59d   :  { %v6018_v11 = vsel %vm4883_vm4, 1.0, %v13079_v34  ;;  %vm4881_vm4 = vcmp.gt.f32.partialorder %v4816_v41, %v6872_v33  ;;  %v13126_v33 = vld [vmem:[#allocation11_spill] sm:$0xff] }
 0x59e   :  { %4939 = vadd.xlane.f32.xlu0 %v6018_v11  ;;  %v6016_v20 = vsel %vm4881_vm4, 1.0, %v13079_v34 }
 0x5a4   :  { %v4171_v12 = vpop.permute.xlu1 %4170 }
 0x5a5   :  { %vm4214_vm14 = vcmp.gt.f32.partialorder %v4171_v12, %v13125_v55 }
 0x5a6   :  { %v5956_v2 = vsel %vm4214_vm14, 1.0, %v13079_v34 }
 0x5aa   :  { %4252 = vadd.xlane.f32.xlu2 %v5946_v60 }
 0x5ab   :  { %v4184_v17 = vpop.permute.xlu2 %4183 }
 0x5ac   :  { %4254 = vadd.xlane.f32.xlu1 %v5947_v8  ;;  %vm4216_vm7 = vcmp.gt.f32.partialorder %v4184_v17, %v13124_v40 }
 0x5ad   :  { %v5958_v37 = vsel %vm4216_vm7, 1.0, %v13079_v34 }
 0x5b2   :  { %4258 = vadd.xlane.f32.xlu2 %v5949_v13 }
 0x5b4   :  { %4260 = vadd.xlane.f32.xlu1 %v5950_v32  ;;  %v4835_v14 = vpop.permute.xlu1 %4834 }
 0x5b5   :  { %vm4884_vm2 = vcmp.gt.f32.partialorder %v4835_v14, %v6862_v24  ;;  %v6020_v24 = vsel %vm4885_vm3, 1.0, %v13079_v34 }
 0x5b6   :  { %v6019_v10 = vsel %vm4884_vm2, 1.0, %v13079_v34 }
 0x5ba   :  { %4923 = vadd.xlane.f32.xlu2 %v6010_v50 }
 0x5bb   :  { %v4848_v49 = vpop.permute.xlu2 %4847 }
 0x5bc   :  { %4925 = vadd.xlane.f32.xlu1 %v6011_v61  ;;  %vm4886_vm1 = vcmp.gt.f32.partialorder %v4848_v49, %v13125_v55 }
 0x5bd   :  { %v6021_v62 = vsel %vm4886_vm1, 1.0, %v13079_v34 }
 0x5c2   :  { %4929 = vadd.xlane.f32.xlu2 %v6013_v15 }
 0x5c4   :  { %4264 = vadd.xlane.f32.xlu1 %v5952_v58  ;;  %v4190_v22 = vpop.permute.xlu1 %4189 }
 0x5c5   :  { %vm4217_vm10 = vcmp.gt.f32.partialorder %v4190_v22, %v13124_v40 }
 0x5c6   :  { %v5959_v26 = vsel %vm4217_vm10, 1.0, %v13079_v34 }
 0x5c7   :  { %4278 = vadd.xlane.f32.xlu0 %v5959_v26 }
 0x5ca   :  { %4931 = vadd.xlane.f32.xlu2 %v6014_v46 }
 0x5cb   :  { %v4203_v36 = vpop.permute.xlu2 %4202 }
 0x5cc   :  { %4933 = vadd.xlane.f32.xlu1 %v6015_v16  ;;  %vm4219_vm6 = vcmp.gt.f32.partialorder %v4203_v36, %v13126_v33 }
 0x5cd   :  { %v5961_v1 = vsel %vm4219_vm6, 1.0, %v13079_v34 }
 0x5d2   :  { %4270 = vadd.xlane.f32.xlu2 %v5955_v4 }
 0x5d4   :  { %4935 = vadd.xlane.f32.xlu1 %v6016_v20  ;;  %v4197_v54 = vpop.permute.xlu1 %4196 }
 0x5d5   :  { %vm4218_vm13 = vcmp.gt.f32.partialorder %v4197_v54, %v13126_v33 }
 0x5d6   :  { %v5960_v0 = vsel %vm4218_vm13, 1.0, %v13079_v34 }
 0x5d7   :  { %4280 = vadd.xlane.f32.xlu0 %v5960_v0  ;;  %v4257_v19 = vpop.xlane.xlu0 %4256 }
 0x5d8   :  { %v11329_v57 = vadd.f32 1.0, %v4257_v19 }
 0x5da   :  { %4272 = vadd.xlane.f32.xlu2 %v5956_v2  ;;  %v5964_v56 = vadd.f32 -118.0, %v11329_v57  ;;  %vm4675_vm10 = vcmp.gt.f32.partialorder %v11329_v57, 118.0  ;;  %v13127_v2 = vld [vmem:[#allocation12_spill] sm:$0xff] }
 0x5db   :  { %v4868_v21 = vpop.permute.xlu2 %4867  ;;  %v11370_v17 = vadd.s32 4294967200, %v13127_v2  ;;  %v11378_v49 = vadd.s32 4294967192, %v13127_v2  ;;  %v11382_v0 = vsel %vm4675_vm10, 1.0, %v13079_v34 }
 0x5dc   :  { %4274 = vadd.xlane.f32.xlu1 %v5957_v38  ;;  %vm4889_vm8 = vcmp.gt.f32.partialorder %v4868_v21, %v13126_v33  ;;  %v5980_v63 = vmul.f32 -1.442695, %v5964_v56 }
 0x5dd   :  { %v6024_v3 = vsel %vm4889_vm8, 1.0, %v13079_v34 }
 0x5de   :  { %6587 = vpow2.f32 %v5980_v63 }
 0x5df   :  { %4949 = vadd.xlane.f32.xlu0 %v6023_v53  ;;  %v4263_v27 = vpop.xlane.xlu0 %4262 }
 0x5e0   :  { %v11333_v52 = vadd.f32 1.0, %v4263_v27  ;;  %v11398_v27 = vadd.s32 4294967184, %v13127_v2 }
 0x5e2   :  { %4941 = vadd.xlane.f32.xlu2 %v6019_v10  ;;  %v5967_v23 = vadd.f32 -118.0, %v11333_v52  ;;  %vm4678_vm14 = vcmp.gt.f32.partialorder %v11333_v52, 118.0 }
 0x5e4   :  { %4276 = vadd.xlane.f32.xlu1 %v5958_v37  ;;  %v4855_v39 = vpop.permute.xlu1 %4854  ;;  %v5983_v18 = vmul.f32 -1.442695, %v5967_v23  ;;  %v6588_v47 = vpop.eup %6587  ;;  %v11387_v37 = vsel %vm4678_vm14, 1.0, %v13079_v34 }
 0x5e5   :  { %vm4887_vm11 = vcmp.gt.f32.partialorder %v4855_v39, %v13124_v40  ;;  %v4366_v5 = vadd.f32 1.0, %v6588_v47  ;;  %13128 = vst [vmem:[#allocation10_spill] sm:$0xff] %v11387_v37 }
 0x5e6   :  { %v6022_v25 = vsel %vm4887_vm11, 1.0, %v13079_v34  ;;  %6589 = vpow2.f32 %v5983_v18 }
 0x5e7   :  { %v4928_v59 = vpop.xlane.xlu0 %4927  ;;  %v4419_v38 = vand.u32 2147483647, %v4366_v5  ;;  %vm4415_vm4 = vweird.f32 %v4366_v5 }
 0x5e8   :  { %v11336_v42 = vadd.f32 1.0, %v4928_v59 }
 0x5e9   :  { %vm11406_vm3 = vcmp.eq.f32.partialorder %v4419_v38, 8.507059e+37 }
 0x5ea   :  { %4943 = vadd.xlane.f32.xlu2 %v6020_v24  ;;  %v6028_v31 = vadd.f32 -118.0, %v11336_v42  ;;  %vm5346_vm5 = vcmp.gt.f32.partialorder %v11336_v42, 118.0 }
 0x5eb   :  { %v11417_v23 = vsel %vm5346_vm5, 1.0, %v13079_v34 }
 0x5ec   :  { %4945 = vadd.xlane.f32.xlu1 %v6021_v62  ;;  %v6044_v43 = vmul.f32 -1.442695, %v6028_v31  ;;  %v6590_v60 = vpop.eup %6589 }
 0x5ed   :  { %v11345_v45 = vadd.f32 1.0, %v6590_v60 }
 0x5ee   :  { %6591 = vpow2.f32 %v6044_v43 }
 0x5ef   :  { %v4267_v48 = vpop.xlane.xlu0 %4266  ;;  %6593 = vrcp.f32 %v4366_v5  ;;  %v4464_v63 = vand.u32 2147483647, %v11345_v45  ;;  %vm4460_vm15 = vweird.f32 %v11345_v45 }
 0x5f0   :  { %v11340_v9 = vadd.f32 1.0, %v4267_v48  ;;  %v4466_v48 = vand.u32 2147483648, %v11345_v45 }
 0x5f1   :  { %vm11449_vm8 = vcmp.eq.f32.partialorder %v4464_v63, 8.507059e+37 }
 0x5f2   :  { %4282 = vadd.xlane.f32.xlu2 %v5961_v1  ;;  %v5969_v28 = vadd.f32 -118.0, %v11340_v9  ;;  %vm4680_vm7 = vcmp.gt.f32.partialorder %v11340_v9, 118.0 }
 0x5f4   :  { %4947 = vadd.xlane.f32.xlu1 %v6022_v25  ;;  %v4874_v35 = vpop.permute.xlu1 %4873  ;;  %v5985_v11 = vmul.f32 -1.442695, %v5969_v28  ;;  %v6592_v44 = vpop.eup %6591  ;;  %v5411_v28 = vperm.slane %v11417_v23, %v11398_v27 }
 0x5f5   :  { %vm4890_vm0 = vcmp.gt.f32.partialorder %v4874_v35, %v13126_v33  ;;  %v11350_v41 = vpop.eup %6593  ;;  %v11352_v29 = vadd.f32 1.0, %v6592_v44  ;;  %v4421_v33 = vand.u32 2147483648, %v4366_v5 }
 0x5f6   :  { %v6025_v6 = vsel %vm4890_vm0, 1.0, %v13079_v34  ;;  %6595 = vpow2.f32 %v5985_v11  ;;  %v4411_v12 = vmul.f32 %v11350_v41, %v4366_v5  ;;  %vm4416_vm2 = vweird.f32 %v11350_v41 }
 0x5f7   :  { %v4269_v51 = vpop.xlane.xlu0 %4268  ;;  %6597 = vrcp.f32 %v11345_v45  ;;  %vm11402_vm13 = vmor %vm4415_vm4, %vm4416_vm2  ;;  %v4422_v59 = vor.u32 1.1754944e-38, %v4421_v33  ;;  %v5090_v9 = vand.u32 2147483647, %v11352_v29  ;;  %v11439_v11 = vsel %vm4680_vm7, 1.0, %v13079_v34 }
 0x5f8   :  { %v11343_v30 = vadd.f32 1.0, %v4269_v51  ;;  %6599 = vrcp.f32 %v11352_v29  ;;  %v4412_v22 = vsub.f32 1.0, %v4411_v12  ;;  %13133 = vst [vmem:[#allocation9_spill] sm:$0xff] %v11439_v11  ;;  %vm5086_vm11 = vweird.f32 %v11352_v29 }
 0x5f9   :  { %vm11471_vm10 = vcmp.eq.f32.partialorder %v5090_v9, 8.507059e+37 }
 0x5fa   :  { %4951 = vadd.xlane.f32.xlu2 %v6024_v3  ;;  %v5970_v8 = vadd.f32 -118.0, %v11343_v30  ;;  %v4413_v7 = vmul.f32 %v11350_v41, %v4412_v22  ;;  %vm4681_vm1 = vcmp.gt.f32.partialorder %v11343_v30, 118.0 }
 0x5fc   :  { %4953 = vadd.xlane.f32.xlu1 %v6025_v6  ;;  %v5986_v32 = vmul.f32 -1.442695, %v5970_v8  ;;  %v6596_v15 = vpop.eup %6595  ;;  %v4414_v21 = vadd.f32 %v11350_v41, %v4413_v7  ;;  %v11476_v7 = vsel %vm4681_vm1, 1.0, %v13079_v34 }
 0x5fd   :  { %v11358_v58 = vadd.f32 1.0, %v6596_v15  ;;  %v11360_v4 = vpop.eup %6597  ;;  %v4467_v15 = vor.u32 1.1754944e-38, %v4466_v48  ;;  %13140 = vst [vmem:[#allocation11_spill] sm:$0xff] %v11476_v7 }
 0x5fe   :  { %6601 = vpow2.f32 %v5986_v32  ;;  %v11367_v55 = vpop.eup %6599  ;;  %v4456_v20 = vmul.f32 %v11360_v4, %v11345_v45  ;;  %v4418_v43 = vsel %vm11402_vm13, %v11350_v41, %v4414_v21  ;;  %vm4461_vm6 = vweird.f32 %v11360_v4 }
 0x5ff   :  { %6603 = vrcp.f32 %v11358_v58  ;;  %v5082_v53 = vmul.f32 %v11367_v55, %v11352_v29  ;;  %v11444_v44 = vsel %vm11406_vm3, %v4422_v59, %v4418_v43  ;;  %vm11467_vm0 = vmor %vm4460_vm15, %vm4461_vm6  ;;  %vm5087_vm14 = vweird.f32 %v11367_v55 }
 0x600   :  { %v4457_v19 = vsub.f32 1.0, %v4456_v20  ;;  %vm11503_vm4 = vmor %vm5086_vm11, %vm5087_vm14  ;;  %vm4490_vm13 = vweird.f32 %v11358_v58 }
 0x601   :  { %v4938_v13 = vpop.xlane.xlu0 %4937  ;;  %v5083_v47 = vsub.f32 1.0, %v5082_v53 }
 0x602   :  { %v11348_v50 = vadd.f32 1.0, %v4938_v13  ;;  %v4458_v18 = vmul.f32 %v11360_v4, %v4457_v19 }
 0x603   :  { %v5084_v41 = vmul.f32 %v11367_v55, %v5083_v47  ;;  %v4496_v47 = vand.u32 2147483648, %v11358_v58 }
 0x604   :  { %v6033_v61 = vadd.f32 -118.0, %v11348_v50  ;;  %v6602_v10 = vpop.eup %6601  ;;  %v4459_v8 = vadd.f32 %v11360_v4, %v4458_v18  ;;  %vm5351_vm2 = vcmp.gt.f32.partialorder %v11348_v50, 118.0 }
 0x605   :  { %v11392_v1 = vadd.f32 1.0, %v6602_v10  ;;  %v11400_v3 = vpop.eup %6603  ;;  %v5085_v45 = vadd.f32 %v11367_v55, %v5084_v41  ;;  %v11526_v50 = vsel %vm5351_vm2, 1.0, %v13079_v34 }
 0x606   :  { %v6049_v16 = vmul.f32 -1.442695, %v6033_v61  ;;  %v4486_v51 = vmul.f32 %v11400_v3, %v11358_v58  ;;  %vm4491_vm5 = vweird.f32 %v11400_v3  ;;  %13145 = vst [vmem:[#allocation14_spill] sm:$0xff] %v11526_v50 }
 0x607   :  { %v5089_v18 = vsel %vm11503_vm4, %v11367_v55, %v5085_v45  ;;  %vm11541_vm7 = vmor %vm4490_vm13, %vm4491_vm5  ;;  %vm4505_vm15 = vweird.f32 %v11392_v1  ;;  %vm12730_vm5 = vcmask 1048512  }
 0x608   :  { %6605 = vpow2.f32 %v6049_v16  ;;  %v4487_v12 = vsub.f32 1.0, %v4486_v51 }
 0x609   :  { %6607 = vrcp.f32 %v11392_v1 }
 0x60a   :  { %v4488_v19 = vmul.f32 %v11400_v3, %v4487_v12  ;;  %v4497_v12 = vor.u32 1.1754944e-38, %v4496_v47 }
 0x60c   :  { %v4489_v43 = vadd.f32 %v11400_v3, %v4488_v19 }
 0x60e   :  { %v6606_v6 = vpop.eup %6605  ;;  %v4493_v20 = vsel %vm11541_vm7, %v11400_v3, %v4489_v43  ;;  %vm13158_vm7 = vcmask 1041409  }
 0x60f   :  { %v11434_v5 = vadd.f32 1.0, %v6606_v6 }
 0x611   :  { %v4940_v46 = vpop.xlane.xlu0 %4939 }
 0x612   :  { %v11362_v40 = vadd.f32 1.0, %v4940_v46  ;;  %v11454_v46 = vpop.eup %6607 }
 0x613   :  { %v4501_v57 = vmul.f32 %v11454_v46, %v11392_v1  ;;  %vm4506_vm1 = vweird.f32 %v11454_v46 }
 0x614   :  { %v6034_v54 = vadd.f32 -118.0, %v11362_v40  ;;  %vm5352_vm6 = vcmp.gt.f32.partialorder %v11362_v40, 118.0  ;;  %vm11584_vm11 = vmor %vm4505_vm15, %vm4506_vm1 }
 0x615   :  { %v4502_v9 = vsub.f32 1.0, %v4501_v57 }
 0x616   :  { %v6050_v39 = vmul.f32 -1.442695, %v6034_v54 }
 0x617   :  { %v4503_v10 = vmul.f32 %v11454_v46, %v4502_v9 }
 0x618   :  { %6609 = vpow2.f32 %v6050_v39 }
 0x619   :  { %v11572_v47 = vadd.f32 %v11454_v46, %v4503_v10 }
 0x61d   :  { %v4253_v14 = vpop.xlane.xlu2 %4252 }
 0x61e   :  { %v11364_v26 = vadd.f32 1.0, %v4253_v14  ;;  %v5092_v14 = vand.u32 2147483648, %v11352_v29  ;;  %v6610_v30 = vpop.eup %6609 }
 0x61f   :  { %v4255_v36 = vpop.xlane.xlu1 %4254  ;;  %v11495_v59 = vadd.f32 1.0, %v6610_v30 }
 0x620   :  { %v5962_v24 = vadd.f32 -118.0, %v11364_v26  ;;  %v11419_v31 = vadd.f32 1.0, %v4255_v36  ;;  %v11484_v36 = vadd.s32 4294967176, %v13127_v2  ;;  %v5093_v25 = vor.u32 1.1754944e-38, %v5092_v14 }
 0x621   :  { %vm4673_vm4 = vcmp.gt.f32.partialorder %v11364_v26, 118.0 }
 0x622   :  { %v5978_v56 = vmul.f32 -1.442695, %v5962_v24  ;;  %v5963_v60 = vadd.f32 -118.0, %v11419_v31  ;;  %v4463_v24 = vsel %vm11467_vm0, %v11360_v4, %v4459_v8  ;;  %v11533_v41 = vsel %vm11471_vm10, %v5093_v25, %v5089_v18 }
 0x623   :  { %v11499_v2 = vsel %vm11449_vm8, %v4467_v15, %v4463_v24  ;;  %v5167_v18 = vand.u32 2147483648, %v11434_v5  ;;  %vm5161_vm8 = vweird.f32 %v11434_v5  ;;  %v11652_v22 = vsel %vm4673_vm4, 1.0, %v13079_v34 }
 0x624   :  { %6611 = vpow2.f32 %v5978_v56  ;;  %v5979_v54 = vmul.f32 -1.442695, %v5963_v60  ;;  %13141 = vst [vmem:[#allocation12_spill] sm:$0xff] %v11499_v2 }
 0x625   :  { %v4259_v52 = vpop.xlane.xlu2 %4258  ;;  %6613 = vrcp.f32 %v11434_v5 }
 0x626   :  { %v11429_v42 = vadd.f32 1.0, %v4259_v52  ;;  %v4494_v52 = vand.u32 2147483647, %v11358_v58  ;;  %6615 = vpow2.f32 %v5979_v54 }
 0x627   :  { %v4261_v13 = vpop.xlane.xlu1 %4260 }
 0x628   :  { %v5965_v61 = vadd.f32 -118.0, %v11429_v42  ;;  %v11487_v21 = vadd.f32 1.0, %v4261_v13  ;;  %vm11535_vm3 = vcmp.eq.f32.partialorder %v4494_v52, 8.507059e+37 }
 0x629   :  { %v11566_v52 = vsel %vm11535_vm3, %v4497_v12, %v4493_v20  ;;  %vm4674_vm3 = vcmp.gt.f32.partialorder %v11419_v31, 118.0 }
 0x62a   :  { %v6612_v33 = vpop.eup %6611  ;;  %v5981_v53 = vmul.f32 -1.442695, %v5965_v61  ;;  %v5966_v51 = vadd.f32 -118.0, %v11487_v21  ;;  %v4511_v61 = vand.u32 2147483648, %v11392_v1  ;;  %13150 = vst [vmem:[#allocation15_spill] sm:$0xff] %v11566_v52  ;;  %v11693_v16 = vsel %vm4674_vm3, 1.0, %v13079_v34 }
 0x62b   :  { %v11508_v6 = vadd.f32 1.0, %v6612_v33  ;;  %v11510_v48 = vpop.eup %6613 }
 0x62c   :  { %13144 = vst [vmem:[#allocation13_spill] sm:$0xff] %v11510_v48  ;;  %6617 = vpow2.f32 %v5981_v53  ;;  %v5157_v55 = vmul.f32 %v11510_v48, %v11434_v5  ;;  %v6616_v58 = vpop.eup %6615  ;;  %v5982_v14 = vmul.f32 -1.442695, %v5966_v51  ;;  %vm5162_vm14 = vweird.f32 %v11510_v48 }
 0x62d   :  { %v4924_v38 = vpop.xlane.xlu2 %4923  ;;  %6619 = vrcp.f32 %v11495_v59  ;;  %v11560_v3 = vadd.f32 1.0, %v6616_v58  ;;  %vm11633_vm13 = vmor %vm5161_vm8, %vm5162_vm14  ;;  %vm4385_vm15 = vweird.f32 %v11508_v6 }
 0x62e   :  { %v11489_v39 = vadd.f32 1.0, %v4924_v38  ;;  %6621 = vrcp.f32 %v11508_v6  ;;  %v5158_v19 = vsub.f32 1.0, %v5157_v55 }
 0x62f   :  { %v4926_v63 = vpop.xlane.xlu1 %4925 }
 0x630   :  { %v6026_v29 = vadd.f32 -118.0, %v11489_v39  ;;  %v4956_v13 = vadd.f32 1.0, %v4926_v63  ;;  %v11568_v63 = vor.u32 1.1754944e-38, %v4511_v61  ;;  %v5159_v9 = vmul.f32 %v11510_v48, %v5158_v19 }
 0x631   :  { %v11599_v61 = vor.u32 1.1754944e-38, %v5167_v18  ;;  %vm5344_vm10 = vcmp.gt.f32.partialorder %v11489_v39, 118.0 }
 0x632   :  { %v6042_v60 = vmul.f32 -1.442695, %v6026_v29  ;;  %v6027_v30 = vadd.f32 -118.0, %v4956_v13  ;;  %v6618_v33 = vpop.eup %6617  ;;  %v11576_v29 = vsel %vm5352_vm6, 1.0, %v13079_v34  ;;  %vm5345_vm0 = vcmp.gt.f32.partialorder %v4956_v13, 118.0 }
 0x633   :  { %v11557_v53 = vpop.eup %6619  ;;  %13151 = vst [vmem:[#allocation16_spill] sm:$0xff] %v11576_v29  ;;  %v11578_v43 = vadd.f32 1.0, %v6618_v33  ;;  %v11612_v10 = vadd.f32 %v11510_v48, %v5159_v9  ;;  %vm4676_vm6 = vcmp.gt.f32.partialorder %v11429_v42, 118.0 }
 0x634   :  { %6623 = vpow2.f32 %v6042_v60  ;;  %v6043_v25 = vmul.f32 -1.442695, %v6027_v30  ;;  %v11562_v56 = vpop.eup %6621  ;;  %v5172_v58 = vmul.f32 %v11557_v53, %v11495_v59  ;;  %13154 = vst [vmem:[#allocation17_spill] sm:$0xff] %v11599_v61  ;;  %v6059_v30 = vsel %vm5345_vm0, 1.0, %v13079_v34 }
 0x635   :  { %v4930_v38 = vpop.xlane.xlu2 %4929  ;;  %6625 = vpow2.f32 %v5982_v14  ;;  %v4381_v15 = vmul.f32 %v11562_v56, %v11508_v6  ;;  %13155 = vst [vmem:[#allocation18_spill] sm:$0xff] %v11612_v10  ;;  %v5409_v14 = vperm.slane %v6059_v30, %v11484_v36  ;;  %vm4386_vm1 = vweird.f32 %v11562_v56 }
 0x636   :  { %v4958_v57 = vadd.f32 1.0, %v4930_v38  ;;  %6627 = vpow2.f32 %v6043_v25  ;;  %v5173_v33 = vsub.f32 1.0, %v5172_v58  ;;  %v6058_v25 = vsel %vm5344_vm10, 1.0, %v13079_v34  ;;  %vm11707_vm8 = vmor %vm4385_vm15, %vm4386_vm1 }
 0x637   :  { %6629 = vrcp.f32 %v11560_v3  ;;  %v4382_v19 = vsub.f32 1.0, %v4381_v15  ;;  %v4265_v18 = vpop.xlane.xlu1 %4264  ;;  %v5182_v15 = vand.u32 2147483648, %v11495_v59  ;;  %v5408_v30 = vperm.slane %v6058_v25, %v11398_v27 }
 0x638   :  { %v6029_v55 = vadd.f32 -118.0, %v4958_v57  ;;  %vm5347_vm2 = vcmp.gt.f32.partialorder %v4958_v57, 118.0  ;;  %v4434_v29 = vand.u32 2147483647, %v11578_v43  ;;  %vm4430_vm10 = vweird.f32 %v11578_v43  ;;  %v13213_v57 = vld [vmem:[#allocation10_spill] sm:$0xff] }
 0x639   :  { %v6061_v9 = vsel %vm5347_vm2, 1.0, %v13079_v34  ;;  %v4383_v25 = vmul.f32 %v11562_v56, %v4382_v19  ;;  %v5410_v8 = vsel %vm12730_vm5, %v5409_v14, %v5408_v30  ;;  %v11670_v13 = vor.u32 1.1754944e-38, %v5182_v15 }
 0x63a   :  { %v6624_v40 = vpop.eup %6623  ;;  %v6045_v39 = vmul.f32 -1.442695, %v6029_v55  ;;  %v5412_v55 = vperm.slane %v6061_v9, %v11484_v36  ;;  %v5174_v9 = vmul.f32 %v11557_v53, %v5173_v33  ;;  %v4279_v62 = vpop.xlane.xlu0 %4278  ;;  %vm4400_vm1 = vweird.f32 %v11560_v3 }
 0x63b   :  { %v11589_v60 = vadd.f32 1.0, %v6624_v40  ;;  %v6626_v20 = vpop.eup %6625  ;;  %13160 = vst [vmem:[#allocation20_spill] sm:$0xff] %v11670_v13  ;;  %v11687_v15 = vadd.f32 %v11562_v56, %v4383_v25  ;;  %v11700_v25 = vsel %vm4676_vm6, 1.0, %v13079_v34 }
 0x63c   :  { %v6628_v38 = vpop.eup %6627  ;;  %v11624_v4 = vadd.f32 1.0, %v6626_v20  ;;  %v11640_v20 = vadd.f32 1.0, %v4265_v18  ;;  %v4391_v18 = vand.u32 2147483648, %v11508_v6  ;;  %v5413_v35 = vsel %vm12730_vm5, %v5412_v55, %v5411_v28 }
 0x63d   :  { %6631 = vrcp.f32 %v11589_v60  ;;  %v11617_v40 = vadd.f32 1.0, %v6628_v38  ;;  %v11621_v54 = vpop.eup %6629  ;;  %v11668_v38 = vsel %vm13158_vm7, %v5413_v35, %v5410_v8  ;;  %v4406_v55 = vand.u32 2147483648, %v11560_v3  ;;  %v4932_v24 = vpop.xlane.xlu2 %4931 }
 0x63e   :  { %6633 = vrcp.f32 %v11578_v43  ;;  %v4396_v33 = vmul.f32 %v11621_v54, %v11560_v3  ;;  %13159 = vst [vmem:[#allocation19_spill] sm:$0xff] %v11668_v38  ;;  %v5968_v28 = vadd.f32 -118.0, %v11640_v20  ;;  %v11684_v8 = vadd.f32 %v11557_v53, %v5174_v9 }
 0x63f   :  { %6635 = vpow2.f32 %v6045_v39  ;;  %v11695_v42 = vor.u32 1.1754944e-38, %v4391_v18  ;;  %v11734_v52 = vadd.f32 1.0, %v4932_v24  ;;  %vm5056_vm4 = vweird.f32 %v11589_v60  ;;  %v4934_v13 = vpop.xlane.xlu1 %4933 }
 0x640   :  { %6637 = vrcp.f32 %v11617_v40  ;;  %v5984_v45 = vmul.f32 -1.442695, %v5968_v28  ;;  %v5062_v28 = vand.u32 2147483648, %v11589_v60  ;;  %vm4401_vm2 = vweird.f32 %v11621_v54 }
 0x641   :  { %6639 = vrcp.f32 %v11624_v4  ;;  %13164 = vst [vmem:[#allocation22_spill] sm:$0xff] %v11734_v52  ;;  %vm5071_vm7 = vweird.f32 %v11617_v40 }
 0x642   :  { %v5063_v2 = vor.u32 1.1754944e-38, %v5062_v28 }
 0x643   :  { %v11627_v58 = vpop.eup %6631 }
 0x644   :  { %v11642_v39 = vpop.eup %6633  ;;  %v5052_v26 = vmul.f32 %v11627_v58, %v11589_v60  ;;  %vm5057_vm3 = vweird.f32 %v11627_v58 }
 0x645   :  { %v6636_v19 = vpop.eup %6635  ;;  %v4426_v23 = vmul.f32 %v11642_v39, %v11578_v43  ;;  %vm4431_vm14 = vweird.f32 %v11642_v39 }
 0x646   :  { %v11679_v30 = vadd.f32 1.0, %v6636_v19  ;;  %v11681_v35 = vpop.eup %6637  ;;  %v4397_v19 = vsub.f32 1.0, %v4396_v33  ;;  %v5053_v12 = vsub.f32 1.0, %v5052_v26  ;;  %v11712_v33 = vor.u32 1.1754944e-38, %v4406_v55 }
 0x647   :  { %v5067_v9 = vmul.f32 %v11681_v35, %v11617_v40  ;;  %v4427_v32 = vsub.f32 1.0, %v4426_v23  ;;  %v11703_v14 = vpop.eup %6639  ;;  %v11714_v23 = vadd.f32 1.0, %v4279_v62  ;;  %v5060_v55 = vand.u32 2147483647, %v11589_v60 }
 0x648   :  { %6641 = vrcp.f32 %v11679_v30  ;;  %v4398_v7 = vmul.f32 %v11621_v54, %v4397_v19  ;;  %v5054_v18 = vmul.f32 %v11627_v58, %v5053_v12  ;;  %v4441_v38 = vmul.f32 %v11703_v14, %v11624_v4 }
 0x649   :  { %v5068_v26 = vsub.f32 1.0, %v5067_v9  ;;  %13163 = vst [vmem:[#allocation21_spill] sm:$0xff] %v11714_v23  ;;  %v4428_v9 = vmul.f32 %v11642_v39, %v4427_v32  ;;  %6643 = vpow2.f32 %v5984_v45  ;;  %vm5072_vm0 = vweird.f32 %v11681_v35 }
 0x64a   :  { %v5975_v19 = vadd.f32 -118.0, %v11714_v23  ;;  %v5075_v32 = vand.u32 2147483647, %v11617_v40  ;;  %v5055_v45 = vadd.f32 %v11627_v58, %v5054_v18  ;;  %v4442_v11 = vsub.f32 1.0, %v4441_v38  ;;  %vm11755_vm6 = vmor %vm5071_vm7, %vm5072_vm0  ;;  %v4271_v18 = vpop.xlane.xlu2 %4270 }
 0x64b   :  { %v5069_v62 = vmul.f32 %v11681_v35, %v5068_v26  ;;  %v5077_v26 = vand.u32 2147483648, %v11617_v40  ;;  %vm11749_vm15 = vcmp.eq.f32.partialorder %v5060_v55, 8.507059e+37  ;;  %v6030_v55 = vadd.f32 -118.0, %v11734_v52  ;;  %vm11769_vm0 = vmor %vm5056_vm4, %vm5057_vm3 }
 0x64c   :  { %v5991_v38 = vmul.f32 -1.442695, %v5975_v19  ;;  %vm5076_vm7 = vcmp.eq.f32.partialorder %v5075_v32, 8.507059e+37  ;;  %v5105_v37 = vand.u32 2147483647, %v11679_v30  ;;  %v5059_v19 = vsel %vm11769_vm0, %v11627_v58, %v5055_v45  ;;  %vm11807_vm4 = vmor %vm4430_vm10, %vm4431_vm14 }
 0x64d   :  { %v5070_v50 = vadd.f32 %v11681_v35, %v5069_v62  ;;  %v11747_v62 = vadd.f32 %v11642_v39, %v4428_v9  ;;  %v5078_v10 = vor.u32 1.1754944e-38, %v5077_v26  ;;  %v11782_v60 = vadd.f32 1.0, %v4271_v18  ;;  %vm11831_vm10 = vmor %vm4400_vm1, %vm4401_vm2 }
 0x64e   :  { %v6642_v12 = vpop.eup %6641  ;;  %v4443_v32 = vmul.f32 %v11703_v14, %v4442_v11  ;;  %vm5101_vm3 = vweird.f32 %v11679_v30  ;;  %v11787_v52 = vadd.f32 1.0, %v4934_v13  ;;  %6645 = vpow2.f32 %v5991_v38 }
 0x64f   :  { %v5097_v24 = vmul.f32 %v6642_v12, %v11679_v30  ;;  %v5074_v40 = vsel %vm11755_vm6, %v11681_v35, %v5070_v50  ;;  %v6644_v61 = vpop.eup %6643  ;;  %v5107_v50 = vand.u32 2147483648, %v11679_v30  ;;  %vm11775_vm6 = vcmp.eq.f32.partialorder %v4434_v29, 8.507059e+37  ;;  %v4936_v30 = vpop.xlane.xlu1 %4935 }
 0x650   :  { %vm5102_vm9 = vweird.f32 %v6642_v12  ;;  %v5079_v26 = vsel %vm5076_vm7, %v5078_v10, %v5074_v40  ;;  %v13173_v29 = vand.u32 2147483647, %v11508_v6  ;;  %v6046_v45 = vmul.f32 -1.442695, %v6030_v55 }
 0x651   :  { %v5098_v9 = vsub.f32 1.0, %v5097_v24  ;;  %v5971_v18 = vadd.f32 -118.0, %v11782_v60  ;;  %v4399_v11 = vadd.f32 %v11621_v54, %v4398_v7  ;;  %v5064_v10 = vsel %vm11749_vm15, %v5063_v2, %v5059_v19  ;;  %vm5103_vm7 = vmor %vm5101_vm3, %vm5102_vm9 }
 0x652   :  { %vm11791_vm12 = vcmp.eq.f32.partialorder %v13173_v29, 8.507059e+37  ;;  %v5108_v13 = vor.u32 1.1754944e-38, %v5107_v50  ;;  %v11801_v6 = vadd.f32 1.0, %v6644_v61  ;;  %vm4446_vm0 = vweird.f32 %v11703_v14  ;;  %v13216_v29 = vld [vmem:[#allocation12_spill] sm:$0xff] }
 0x653   :  { %v5099_v24 = vmul.f32 %v6642_v12, %v5098_v9  ;;  %v5310_v7 = vperm.slane %v5079_v26, %v11484_v36  ;;  %vm5106_vm5 = vcmp.eq.f32.partialorder %v5105_v37, 8.507059e+37  ;;  %vm4640_vm15 = vcmask 917312  }
 0x654   :  { %v4433_v2 = vsel %vm11807_vm4, %v11642_v39, %v11747_v62  ;;  %v4444_v61 = vadd.f32 %v11703_v14, %v4443_v32  ;;  %v6031_v9 = vadd.f32 -118.0, %v11787_v52  ;;  %v13178_v38 = vand.u32 2147483647, %v11392_v1  ;;  %v6646_v19 = vpop.eup %6645 }
 0x655   :  { %v5100_v58 = vadd.f32 %v6642_v12, %v5099_v24  ;;  %6647 = vpow2.f32 %v6046_v45  ;;  %v5987_v37 = vmul.f32 -1.442695, %v5971_v18  ;;  %v13183_v1 = vand.u32 2147483648, %v11578_v43 }
 0x656   :  { %vm11821_vm9 = vcmp.eq.f32.partialorder %v13178_v38, 8.507059e+37  ;;  %v4449_v50 = vand.u32 2147483647, %v11624_v4  ;;  %6649 = vrcp.f32 %v11801_v6  ;;  %v13184_v24 = vand.u32 2147483647, %v11434_v5 }
 0x657   :  { %v5104_v40 = vsel %vm5103_vm7, %v6642_v12, %v5100_v58  ;;  %v5308_v12 = vperm.slane %v5064_v10, %v11398_v27  ;;  %v4437_v62 = vor.u32 1.1754944e-38, %v13183_v1  ;;  %v13187_v26 = vand.u32 2147483647, %v11495_v59  ;;  %v13211_v58 = vld [vmem:[#allocation20_spill] sm:$0xff] }
 0x658   :  { %v5109_v23 = vsel %vm5106_vm5, %v5108_v13, %v5104_v40  ;;  %vm4445_vm5 = vweird.f32 %v11624_v4  ;;  %vm11842_vm14 = vcmp.eq.f32.partialorder %v13184_v24, 8.507059e+37  ;;  %v4403_v43 = vsel %vm11831_vm10, %v11621_v54, %v4399_v11 }
 0x659   :  { %v5314_v28 = vperm.slane %v5109_v23, %v11484_v36  ;;  %vm11848_vm2 = vcmp.eq.f32.partialorder %v13187_v26, 8.507059e+37  ;;  %vm11857_vm1 = vmor %vm4445_vm5, %vm4446_vm0  ;;  %vm13192_vm4 = vcmask 1048512   ;;  %v13193_v45 = vperm.slane %v11533_v41, %v11398_v27  ;;  %v13210_v26 = vld [vmem:[#allocation17_spill] sm:$0xff] }
 0x65a   :  { %v5312_v5 = vsel %vm13192_vm4, %v5310_v7, %v5308_v12  ;;  %vm13194_vm3 = vmmov %vm13192_vm4  ;;  %6651 = vpow2.f32 %v5987_v37  ;;  %v4438_v10 = vsel %vm11775_vm6, %v4437_v62, %v4433_v2  ;;  %v4448_v54 = vsel %vm11857_vm1, %v11703_v14, %v4444_v61 }
 0x65b   :  { %v5315_v18 = vsel %vm13194_vm3, %v5314_v28, %v13193_v45  ;;  %vm13195_vm7 = vcmask 1041409   ;;  %v6047_v13 = vmul.f32 -1.442695, %v6031_v9  ;;  %v13196_v7 = vand.u32 2147483647, %v11560_v3  ;;  %v4281_v45 = vpop.xlane.xlu0 %4280 }
 0x65c   :  { %v11872_v11 = vsel %vm13195_vm7, %v5315_v18, %v5312_v5  ;;  %v4741_v41 = vperm.slane %v11700_v25, %v11378_v49  ;;  %v13197_v40 = vand.u32 2147483648, %v11624_v4  ;;  %vm13198_vm6 = vcmp.gt.f32.partialorder %v11487_v21, 118.0  ;;  %v6648_v4 = vpop.eup %6647 }
 0x65d   :  { %vm4405_vm0 = vcmp.eq.f32.partialorder %v13196_v7, 8.507059e+37  ;;  %v5998_v35 = vsel %vm13198_vm6, 1.0, %v13079_v34  ;;  %v13199_v14 = vsel %vm11707_vm8, %v11562_v56, %v11687_v15  ;;  %vm4450_vm10 = vcmp.eq.f32.partialorder %v4449_v50, 8.507059e+37  ;;  %v4273_v7 = vpop.xlane.xlu2 %4272 }
 0x65e   :  { %v4452_v23 = vor.u32 1.1754944e-38, %v13197_v40  ;;  %v4393_v3 = vsel %vm11791_vm12, %v11695_v42, %v13199_v14  ;;  %v4408_v2 = vsel %vm4405_vm0, %v11712_v33, %v4403_v43  ;;  %v11892_v25 = vadd.f32 1.0, %v6646_v19  ;;  %v11906_v42 = vpop.eup %6649  ;;  %v13208_v19 = vld [vmem:[#allocation18_spill] sm:$0xff]  ;;  %vm13212_vm12 = vmmov %vm13195_vm7 }
 0x65f   :  { %vm13200_vm5 = vweird.f32 %v11557_v53  ;;  %vm13201_vm1 = vweird.f32 %v11495_v59  ;;  %v4643_v56 = vperm.slane %v4438_v10, %v11378_v49  ;;  %vm4679_vm8 = vcmp.gt.f32.partialorder %v11640_v20, 118.0  ;;  %v13219_v40 = vld [vmem:[#allocation22_spill] sm:$0xff] }
 0x660   :  { %vm11898_vm4 = vmor %vm13201_vm1, %vm13200_vm5  ;;  %v4453_v15 = vsel %vm4450_vm10, %v4452_v23, %v4448_v54  ;;  %v11904_v48 = vadd.f32 1.0, %v4936_v30  ;;  %v4737_v59 = vperm.slane %v11652_v22, %v11370_v17  ;;  %v4738_v33 = vperm.slane %v11693_v16, %v11378_v49  ;;  %v6652_v61 = vpop.eup %6651  ;;  %v13218_v30 = vld [vmem:[#allocation21_spill] sm:$0xff] }
 0x661   :  { %v5179_v31 = vsel %vm11898_vm4, %v11557_v53, %v11684_v8  ;;  %6653 = vpow2.f32 %v6047_v13  ;;  %v4637_v9 = vperm.slane %v4393_v3, %v11370_v17  ;;  %v4639_v20 = vperm.slane %v4408_v2, %v11378_v49 }
 0x662   :  { %v13204_v38 = vperm.slane %v11382_v0, %v11370_v17  ;;  %v4743_v28 = vperm.slane %v5998_v35, %v11370_v17  ;;  %v4645_v53 = vperm.slane %v4453_v15, %v11370_v17  ;;  %v6000_v22 = vsel %vm4679_vm8, 1.0, %v13079_v34 }
 0x663   :  { %6655 = vrcp.f32 %v11892_v25  ;;  %v11926_v16 = vadd.f32 1.0, %v6648_v4  ;;  %v13205_v8 = vperm.slane %v11444_v44, %v11370_v17  ;;  %v4471_v0 = vmul.f32 %v11906_v42, %v11801_v6  ;;  %v13207_v44 = vld [vmem:[#allocation13_spill] sm:$0xff] }
 0x664   :  { %v4742_v12 = vsel %vm4640_vm15, %v4741_v41, %v13204_v38  ;;  %v11934_v39 = vadd.f32 1.0, %v6652_v61  ;;  %v6032_v1 = vadd.f32 -118.0, %v11904_v48  ;;  %v13206_v62 = vsel %vm11584_vm11, %v11454_v46, %v11572_v47  ;;  %vm13215_vm11 = vmmov %vm13195_vm7  ;;  %v13220_v4 = vld [vmem:[#allocation9_spill] sm:$0xff] }
 0x665   :  { %v4644_v37 = vsel %vm4640_vm15, %v4643_v56, %v13205_v8  ;;  %v11945_v50 = vsel %vm11821_vm9, %v11568_v63, %v13206_v62  ;;  %v13209_v24 = vsel %vm11633_vm13, %v13207_v44, %v13208_v19  ;;  %v11960_v51 = vsel %vm11848_vm2, %v13211_v58, %v5179_v31 }
 0x666   :  { %v11955_v43 = vsel %vm11842_vm14, %v13210_v26, %v13209_v24  ;;  %v4739_v46 = vsel %vm4640_vm15, %v4738_v33, %v4737_v59  ;;  %v4641_v63 = vsel %vm4640_vm15, %v4639_v20, %v4637_v9  ;;  %v13214_v55 = vperm.slane %v13213_v57, %v11378_v49 }
 0x667   :  { %v4761_v47 = vsel %vm13212_vm12, %v4742_v12, %v4739_v46  ;;  %v4746_v32 = vperm.slane %v6000_v22, %v11370_v17  ;;  %v6654_v18 = vpop.eup %6653  ;;  %v4663_v10 = vsel %vm13215_vm11, %v4644_v37, %v4641_v63  ;;  %v13217_v54 = vperm.slane %v13216_v29, %v11378_v49 }
 0x668   :  { %v4745_v5 = vsel %vm4640_vm15, %v13214_v55, %v4743_v28  ;;  %vm4686_vm13 = vcmp.gt.f32.partialorder %v13218_v30, 118.0  ;;  %6657 = vrcp.f32 %v11926_v16  ;;  %v4472_v41 = vsub.f32 1.0, %v4471_v0  ;;  %v4275_v28 = vpop.xlane.xlu1 %4274 }
 0x669   :  { %v4647_v13 = vsel %vm4640_vm15, %v13217_v54, %v4645_v53  ;;  %vm5348_vm9 = vcmp.gt.f32.partialorder %v13219_v40, 118.0  ;;  %6659 = vrcp.f32 %v11934_v39  ;;  %v6048_v23 = vmul.f32 -1.442695, %v6032_v1  ;;  %v11979_v35 = vpop.eup %6655 }
 0x66a   :  { %v4651_v14 = vperm.slane %v11945_v50, %v11370_v17  ;;  %v5320_v3 = vperm.slane %v11955_v43, %v11484_v36  ;;  %vm5349_vm14 = vcmp.gt.f32.partialorder %v11787_v52, 118.0  ;;  %v11986_v2 = vadd.f32 1.0, %v4281_v45 }
 0x66b   :  { %v13221_v21 = vperm.slane %v13220_v4, %v11378_v49  ;;  %v11993_v15 = vsel %vm4686_vm13, 1.0, %v13079_v34  ;;  %v11995_v31 = vadd.f32 1.0, %v6654_v18  ;;  %v11997_v59 = vadd.f32 1.0, %v4273_v7 }
 0x66c   :  { %v5322_v33 = vperm.slane %v11960_v51, %v11398_v27  ;;  %vm13222_vm2 = vcmask 1042434   ;;  %v6062_v9 = vsel %vm5348_vm9, 1.0, %v13079_v34  ;;  %v4473_v20 = vmul.f32 %v11906_v42, %v4472_v41 }
 0x66d   :  { %v4748_v56 = vsel %vm4640_vm15, %v13221_v21, %v4746_v32  ;;  %v12002_v61 = vsel %vm13222_vm2, %v4647_v13, %v4663_v10  ;;  %vm13223_vm3 = vmmov %vm13222_vm2  ;;  %v4576_v38 = vmul.f32 %v11979_v35, %v11892_v25  ;;  %v6063_v12 = vsel %vm5349_vm14, 1.0, %v13079_v34 }
 0x66e   :  { %v4762_v52 = vsel %vm13223_vm3, %v4745_v5, %v4761_v47  ;;  %6661 = vpow2.f32 %v6048_v23  ;;  %v12010_v53 = vpop.eup %6657  ;;  %v4479_v22 = vand.u32 2147483647, %v11801_v6  ;;  %vm13224_vm7 = vcmask 1043459   ;;  %vm13231_vm12 = vmmov %vm13222_vm2 }
 0x66f   :  { %v12014_v8 = vsel %vm13224_vm7, %v4748_v56, %v4762_v52  ;;  %v4756_v37 = vperm.slane %v11993_v15, %v11378_v49  ;;  %v5976_v0 = vadd.f32 -118.0, %v11986_v2  ;;  %v12019_v1 = vpop.eup %6659  ;;  %v4481_v62 = vand.u32 2147483648, %v11801_v6 }
 0x670   :  { %6663 = vrcp.f32 %v11995_v31  ;;  %vm4682_vm0 = vcmp.gt.f32.partialorder %v11782_v60, 118.0  ;;  %v5972_v44 = vadd.f32 -118.0, %v11997_v59  ;;  %vm4476_vm6 = vweird.f32 %v11906_v42 }
 0x671   :  { %v5414_v19 = vperm.slane %v6062_v9, %v11398_v27  ;;  %v5415_v24 = vperm.slane %v6063_v12, %v11484_v36  ;;  %v12028_v26 = vadd.f32 1.0, %v4275_v28  ;;  %v4474_v58 = vadd.f32 %v11906_v42, %v4473_v20  ;;  %v13230_v9 = vld [vmem:[#allocation19_spill] sm:$0xff] }
 0x672   :  { %v4577_v46 = vsub.f32 1.0, %v4576_v38  ;;  %v5112_v63 = vmul.f32 %v12010_v53, %v11926_v16  ;;  %v5988_v47 = vmul.f32 -1.442695, %v5972_v44  ;;  %v4516_v60 = vmul.f32 %v12019_v1, %v11934_v39  ;;  %v13234_v44 = vld [vmem:[#allocation11_spill] sm:$0xff] }
 0x673   :  { %v6003_v57 = vsel %vm4682_vm0, 1.0, %v13079_v34  ;;  %v5992_v55 = vmul.f32 -1.442695, %v5976_v0  ;;  %v5973_v5 = vadd.f32 -118.0, %v12028_v26  ;;  %vm4475_vm10 = vweird.f32 %v11801_v6 }
 0x674   :  { %v6662_v32 = vpop.eup %6661  ;;  %vm12038_vm5 = vcmp.eq.f32.partialorder %v4479_v22, 8.507059e+37  ;;  %v4586_v18 = vand.u32 2147483648, %v11892_v25  ;;  %6665 = vpow2.f32 %v5988_v47  ;;  %vm12045_vm1 = vmor %vm4475_vm10, %vm4476_vm6  ;;  %v4482_v29 = vor.u32 1.1754944e-38, %v4481_v62 }
 0x675   :  { %v4584_v54 = vand.u32 2147483647, %v11892_v25  ;;  %vm13229_vm4 = vcmask 1048512   ;;  %v5989_v30 = vmul.f32 -1.442695, %v5973_v5  ;;  %v4478_v7 = vsel %vm12045_vm1, %v11906_v42, %v4474_v58 }
 0x676   :  { %v5416_v13 = vsel %vm13229_vm4, %v5415_v24, %v5414_v19  ;;  %v12051_v6 = vpop.eup %6663  ;;  %v4578_v41 = vmul.f32 %v11979_v35, %v4577_v46  ;;  %v5113_v40 = vsub.f32 1.0, %v5112_v63  ;;  %v4750_v23 = vperm.slane %v6003_v57, %v11378_v49  ;;  %v4950_v57 = vpop.xlane.xlu0 %4949 }
 0x677   :  { %v5122_v4 = vand.u32 2147483648, %v11926_v16  ;;  %v4517_v21 = vsub.f32 1.0, %v4516_v60  ;;  %v12059_v56 = vadd.f32 1.0, %v6662_v32  ;;  %6667 = vpow2.f32 %v5992_v55  ;;  %v4942_v55 = vpop.xlane.xlu2 %4941 }
 0x678   :  { %vm4580_vm8 = vweird.f32 %v11892_v25  ;;  %v4587_v52 = vor.u32 1.1754944e-38, %v4586_v18  ;;  %v12064_v20 = vsel %vm13231_vm12, %v5416_v13, %v13230_v9  ;;  %6669 = vpow2.f32 %v5989_v30 }
 0x679   :  { %v4483_v42 = vsel %vm12038_vm5, %v4482_v29, %v4478_v7  ;;  %vm12068_vm11 = vcmp.eq.f32.partialorder %v4584_v54, 8.507059e+37  ;;  %vm5116_vm13 = vweird.f32 %v11926_v16  ;;  %v5120_v12 = vand.u32 2147483647, %v11926_v16 }
 0x67a   :  { %v5127_v28 = vmul.f32 %v12051_v6, %v11995_v31  ;;  %v6666_v22 = vpop.eup %6665  ;;  %v4579_v0 = vadd.f32 %v11979_v35, %v4578_v41  ;;  %vm4581_vm9 = vweird.f32 %v11979_v35  ;;  %v5114_v62 = vmul.f32 %v12010_v53, %v5113_v40 }
 0x67b   :  { %v13235_v19 = vperm.slane %v13234_v44, %v11370_v17  ;;  %v5123_v58 = vor.u32 1.1754944e-38, %v5122_v4  ;;  %v4518_v46 = vmul.f32 %v12019_v1, %v4517_v21  ;;  %6671 = vrcp.f32 %v12059_v56  ;;  %vm12092_vm3 = vmor %vm4580_vm8, %vm4581_vm9  ;;  %v13241_v4 = vld [vmem:[#allocation15_spill] sm:$0xff] }
 0x67c   :  { %vm5350_vm14 = vcmp.gt.f32.partialorder %v11904_v48, 118.0  ;;  %v4648_v63 = vperm.slane %v4483_v42, %v11370_v17  ;;  %vm5117_vm2 = vweird.f32 %v12010_v53  ;;  %v5135_v47 = vand.u32 2147483647, %v11995_v31  ;;  %v4277_v42 = vpop.xlane.xlu1 %4276 }
 0x67d   :  { %v4751_v24 = vsel %vm4640_vm15, %v4750_v23, %v13235_v19  ;;  %v5137_v60 = vand.u32 2147483648, %v11995_v31  ;;  %v6668_v5 = vpop.eup %6667  ;;  %vm12096_vm7 = vcmp.eq.f32.partialorder %v5120_v12, 8.507059e+37  ;;  %v5128_v18 = vsub.f32 1.0, %v5127_v28  ;;  %vm12135_vm1 = vmor %vm5116_vm13, %vm5117_vm2 }
 0x67e   :  { %v4524_v10 = vand.u32 2147483647, %v11934_v39  ;;  %vm13240_vm0 = vcmask 1044484   ;;  %v12105_v54 = vadd.f32 1.0, %v6666_v22  ;;  %v6670_v13 = vpop.eup %6669  ;;  %v4583_v25 = vsel %vm12092_vm3, %v11979_v35, %v4579_v0 }
 0x67f   :  { %v12103_v29 = vsel %vm13240_vm0, %v4751_v24, %v12014_v8  ;;  %v5115_v30 = vadd.f32 %v12010_v53, %v5114_v62  ;;  %v4526_v7 = vand.u32 2147483648, %v11934_v39  ;;  %v6064_v41 = vsel %vm5350_vm14, 1.0, %v13079_v34  ;;  %v4944_v32 = vpop.xlane.xlu2 %4943 }
 0x680   :  { %vm5131_vm6 = vweird.f32 %v11995_v31  ;;  %v4519_v8 = vadd.f32 %v12019_v1, %v4518_v46  ;;  %vm4521_vm10 = vweird.f32 %v12019_v1  ;;  %v12118_v40 = vadd.f32 1.0, %v6670_v13 }
 0x681   :  { %v12120_v23 = vadd.f32 1.0, %v4950_v57  ;;  %v13242_v35 = vperm.slane %v13241_v4, %v11378_v49  ;;  %v5138_v9 = vor.u32 1.1754944e-38, %v5137_v60  ;;  %vm4520_vm5 = vweird.f32 %v11934_v39  ;;  %v12129_v12 = vpop.eup %6671 }
 0x682   :  { %v12127_v48 = vadd.f32 1.0, %v6668_v5  ;;  %v5129_v22 = vmul.f32 %v12051_v6, %v5128_v18  ;;  %vm5132_vm4 = vweird.f32 %v12051_v6  ;;  %v5417_v0 = vperm.slane %v6064_v41, %v11398_v27  ;;  %vm12149_vm8 = vmor %vm4520_vm5, %vm4521_vm10 }
 0x683   :  { %v4650_v21 = vsel %vm4640_vm15, %v13242_v35, %v4648_v63  ;;  %6673 = vrcp.f32 %v12105_v54  ;;  %v12145_v39 = vsel %vm12068_vm11, %v4587_v52, %v4583_v25  ;;  %vm12153_vm12 = vcmp.eq.f32.partialorder %v4524_v10, 8.507059e+37 }
 0x684   :  { %v4527_v44 = vor.u32 1.1754944e-38, %v4526_v7  ;;  %6675 = vrcp.f32 %v12118_v40  ;;  %v5119_v19 = vsel %vm12135_vm1, %v12010_v53, %v5115_v30  ;;  %vm12161_vm13 = vcmp.eq.f32.partialorder %v5135_v47, 8.507059e+37  ;;  %v13251_v47 = vld [vmem:[#allocation14_spill] sm:$0xff] }
 0x685   :  { %v4523_v38 = vsel %vm12149_vm8, %v12019_v1, %v4519_v8  ;;  %vm4684_vm11 = vcmp.gt.f32.partialorder %v12028_v26, 118.0  ;;  %v6039_v24 = vadd.f32 -118.0, %v12120_v23  ;;  %v5142_v46 = vmul.f32 %v12129_v12, %v12059_v56 }
 0x686   :  { %6677 = vrcp.f32 %v12127_v48  ;;  %vm4687_vm9 = vcmp.gt.f32.partialorder %v11986_v2, 118.0  ;;  %v12174_v53 = vadd.f32 1.0, %v4942_v55  ;;  %v5130_v63 = vadd.f32 %v12051_v6, %v5129_v22 }
 0x687   :  { %v13252_v60 = vperm.slane %v13251_v47, %v11484_v36  ;;  %vm13253_vm14 = vcmask 1048512   ;;  %vm4683_vm2 = vcmp.gt.f32.partialorder %v11997_v59, 118.0  ;;  %v12182_v26 = vadd.f32 1.0, %v4277_v42 }
 0x688   :  { %vm13254_vm3 = vcmask 1043459   ;;  %v12188_v5 = vsel %vm12096_vm7, %v5123_v58, %v5119_v19  ;;  %v4528_v2 = vsel %vm12153_vm12, %v4527_v44, %v4523_v38  ;;  %v6005_v55 = vsel %vm4684_vm11, 1.0, %v13079_v34  ;;  %vm12207_vm7 = vmor %vm5131_vm6, %vm5132_vm4 }
 0x689   :  { %v5419_v1 = vsel %vm13253_vm14, %v13252_v60, %v5417_v0  ;;  %v4665_v57 = vsel %vm13254_vm3, %v4650_v21, %v12002_v61  ;;  %v12193_v18 = vpop.eup %6673  ;;  %v4658_v10 = vperm.slane %v12145_v39, %v11378_v49  ;;  %v12198_v13 = vsel %vm4687_vm9, 1.0, %v13079_v34  ;;  %vm13257_vm0 = vmmov %vm13254_vm3  ;;  %v4946_v0 = vpop.xlane.xlu1 %4945 }
 0x68a   :  { %v6055_v25 = vmul.f32 -1.442695, %v6039_v24  ;;  %v5974_v61 = vadd.f32 -118.0, %v12182_v26  ;;  %v12201_v45 = vpop.eup %6675  ;;  %v5143_v30 = vsub.f32 1.0, %v5142_v46  ;;  %v12213_v7 = vsel %vm13257_vm0, %v5419_v1, %v12064_v20 }
 0x68b   :  { %v6004_v41 = vsel %vm4683_vm2, 1.0, %v13079_v34  ;;  %v6035_v8 = vadd.f32 -118.0, %v12174_v53  ;;  %v5316_v4 = vperm.slane %v12188_v5, %v11398_v27  ;;  %v5134_v31 = vsel %vm12207_vm7, %v12051_v6, %v5130_v63 }
 0x68c   :  { %v4652_v35 = vperm.slane %v4528_v2, %v11378_v49  ;;  %v4753_v21 = vperm.slane %v6005_v55, %v11378_v49  ;;  %v12226_v42 = vpop.eup %6677  ;;  %v5150_v20 = vand.u32 2147483647, %v12059_v56  ;;  %v5152_v59 = vand.u32 2147483648, %v12059_v56 }
 0x68d   :  { %v4531_v28 = vmul.f32 %v12193_v18, %v12105_v54  ;;  %v5990_v22 = vmul.f32 -1.442695, %v5974_v61  ;;  %v4601_v16 = vand.u32 2147483648, %v12127_v48  ;;  %v4752_v62 = vperm.slane %v6004_v41, %v11370_v17 }
 0x68e   :  { %v4546_v6 = vmul.f32 %v12201_v45, %v12118_v40  ;;  %6679 = vpow2.f32 %v6055_v25  ;;  %v12238_v44 = vsel %vm12161_vm13, %v5138_v9, %v5134_v31  ;;  %v5144_v19 = vmul.f32 %v12129_v12, %v5143_v30 }
 0x68f   :  { %v6051_v38 = vmul.f32 -1.442695, %v6035_v8  ;;  %6681 = vpow2.f32 %v5990_v22  ;;  %v4653_v24 = vsel %vm4640_vm15, %v4652_v35, %v4651_v14  ;;  %v4591_v46 = vmul.f32 %v12226_v42, %v12127_v48 }
 0x690   :  { %v4754_v63 = vsel %vm4640_vm15, %v4753_v21, %v4752_v62  ;;  %v12248_v47 = vadd.f32 1.0, %v4946_v0  ;;  %v12250_v60 = vor.u32 1.1754944e-38, %v5152_v59  ;;  %v4758_v9 = vperm.slane %v12198_v13, %v11370_v17 }
 0x691   :  { %v4532_v52 = vsub.f32 1.0, %v4531_v28  ;;  %v12254_v1 = vadd.f32 1.0, %v4944_v32  ;;  %v5317_v50 = vperm.slane %v12238_v44, %v11484_v36  ;;  %v4599_v14 = vand.u32 2147483647, %v12127_v48  ;;  %v4283_v32 = vpop.xlane.xlu2 %4282 }
 0x692   :  { %v12259_v2 = vor.u32 1.1754944e-38, %v4601_v16  ;;  %v4547_v55 = vsub.f32 1.0, %v4546_v6  ;;  %vm13258_vm6 = vcmask 1044484   ;;  %v12265_v61 = vadd.f32 %v12129_v12, %v5144_v19 }
 0x693   :  { %v12262_v25 = vsel %vm13258_vm6, %v4653_v24, %v4665_v57  ;;  %vm13259_vm10 = vcmask 1045509   ;;  %6683 = vpow2.f32 %v6051_v38  ;;  %v4592_v41 = vsub.f32 1.0, %v4591_v46 }
 0x694   :  { %v12269_v58 = vsel %vm13259_vm10, %v4754_v63, %v12103_v29  ;;  %v6680_v30 = vpop.eup %6679  ;;  %vm4535_vm5 = vweird.f32 %v12105_v54  ;;  %vm5353_vm1 = vcmp.gt.f32.partialorder %v12174_v53, 118.0  ;;  %v6037_v8 = vadd.f32 -118.0, %v12248_v47 }
 0x695   :  { %v6682_v31 = vpop.eup %6681  ;;  %v4533_v57 = vmul.f32 %v12193_v18, %v4532_v52  ;;  %v4539_v35 = vand.u32 2147483647, %v12105_v54  ;;  %vm4685_vm4 = vcmp.gt.f32.partialorder %v12182_v26, 118.0  ;;  %v6036_v29 = vadd.f32 -118.0, %v12254_v1 }
 0x696   :  { %vm5147_vm8 = vweird.f32 %v12129_v12  ;;  %vm4595_vm12 = vweird.f32 %v12127_v48  ;;  %v4548_v21 = vmul.f32 %v12201_v45, %v4547_v55  ;;  %v12281_v59 = vadd.f32 1.0, %v6682_v31 }
 0x697   :  { %v6053_v28 = vmul.f32 -1.442695, %v6037_v8  ;;  %v4299_v22 = vadd.f32 1.0, %v4283_v32  ;;  %vm4596_vm13 = vweird.f32 %v12226_v42  ;;  %v4541_v0 = vand.u32 2147483648, %v12105_v54 }
 0x698   :  { %v4554_v16 = vand.u32 2147483647, %v12118_v40  ;;  %v12286_v62 = vadd.f32 1.0, %v6680_v30  ;;  %vm5357_vm11 = vcmp.gt.f32.partialorder %v12120_v23, 118.0  ;;  %vm5146_vm9 = vweird.f32 %v12059_v56  ;;  %v6108_v56 = vld [vmem:[#allocation5 + $0x10] sm:$0xff] }
 0x699   :  { %v4593_v6 = vmul.f32 %v12226_v42, %v4592_v41  ;;  %v4556_v19 = vand.u32 2147483648, %v12118_v40  ;;  %6685 = vrcp.f32 %v12281_v59  ;;  %v6006_v38 = vsel %vm4685_vm4, 1.0, %v13079_v34  ;;  %v6684_v24 = vpop.eup %6683  ;;  %vm12346_vm4 = vmor %vm4595_vm12, %vm4596_vm13  ;;  %v4952_v23 = vpop.xlane.xlu2 %4951 }
 0x69a   :  { %v4534_v46 = vadd.f32 %v12193_v18, %v4533_v57  ;;  %vm4536_vm14 = vweird.f32 %v12193_v18  ;;  %v6052_v63 = vmul.f32 -1.442695, %v6036_v29  ;;  %6687 = vpow2.f32 %v6053_v28  ;;  %vm12370_vm13 = vmor %vm5146_vm9, %vm5147_vm8 }
 0x69b   :  { %v4549_v52 = vadd.f32 %v12201_v45, %v4548_v21  ;;  %vm4551_vm2 = vweird.f32 %v12201_v45  ;;  %v5977_v55 = vadd.f32 -118.0, %v4299_v22  ;;  %vm4688_vm3 = vcmp.gt.f32.partialorder %v4299_v22, 118.0  ;;  %vm12313_vm6 = vmor %vm4535_vm5, %vm4536_vm14  ;;  %v4948_v22 = vpop.xlane.xlu1 %4947 }
 0x69c   :  { %vm12300_vm7 = vcmp.eq.f32.partialorder %v4599_v14, 8.507059e+37  ;;  %vm4550_vm0 = vweird.f32 %v12118_v40  ;;  %6689 = vrcp.f32 %v12286_v62  ;;  %v6067_v26 = vsel %vm5353_vm1, 1.0, %v13079_v34 }
 0x69d   :  { %v4755_v30 = vperm.slane %v6006_v38, %v11370_v17  ;;  %v4594_v41 = vadd.f32 %v12226_v42, %v4593_v6  ;;  %v12317_v14 = vadd.f32 1.0, %v6684_v24  ;;  %v5993_v31 = vmul.f32 -1.442695, %v5977_v55  ;;  %vm12329_vm5 = vmor %vm4550_vm0, %vm4551_vm2  ;;  %v6113_v24 = vld [vmem:[#allocation5 + $0x38] sm:$0xff] }
 0x69e   :  { %v6009_v40 = vsel %vm4688_vm3, 1.0, %v13079_v34  ;;  %v4538_v53 = vsel %vm12313_vm6, %v12193_v18, %v4534_v46  ;;  %vm12323_vm10 = vcmp.eq.f32.partialorder %v4539_v35, 8.507059e+37  ;;  %v4542_v29 = vor.u32 1.1754944e-38, %v4541_v0  ;;  %5508 = vmatpush.bf16.msra.mxu0 %v6113_v24 }
 0x69f   :  { %6691 = vpow2.f32 %v6052_v63  ;;  %v12333_v21 = vpop.eup %6685  ;;  %v4553_v28 = vsel %vm12329_vm5, %v12201_v45, %v4549_v52  ;;  %vm12338_vm1 = vcmp.eq.f32.partialorder %v4554_v16, 8.507059e+37  ;;  %v4557_v35 = vor.u32 1.1754944e-38, %v4556_v19 }
 0x6a0   :  { %6693 = vpow2.f32 %v5993_v31  ;;  %v6688_v0 = vpop.eup %6687  ;;  %v5421_v38 = vperm.slane %v6067_v26, %v11484_v36  ;;  %v4561_v45 = vmul.f32 %v12333_v21, %v12281_v59  ;;  %v4757_v16 = vsel %vm4640_vm15, %v4756_v37, %v4755_v30 }
 0x6a1   :  { %v4759_v19 = vperm.slane %v6009_v40, %v11378_v49  ;;  %v4598_v48 = vsel %vm12346_vm4, %v12226_v42, %v4594_v41  ;;  %v4543_v46 = vsel %vm12323_vm10, %v4542_v29, %v4538_v53  ;;  %6695 = vrcp.f32 %v12317_v14  ;;  %v6112_v29 = vld [vmem:[#allocation5 + $0x30] sm:$0xff] }
 0x6a2   :  { %vm4671_vm12 = vcmask 917248   ;;  %v12364_v63 = vpop.eup %6689  ;;  %v4558_v37 = vsel %vm12338_vm1, %v4557_v35, %v4553_v28  ;;  %v4562_v42 = vsub.f32 1.0, %v4561_v45  ;;  %v12380_v55 = vadd.f32 1.0, %v4948_v22  ;;  %5509 = vmatpush.bf16.msra.mxu0 %v6112_v29 }
 0x6a3   :  { %v4760_v52 = vsel %vm4640_vm15, %v4759_v19, %v4758_v9  ;;  %v5149_v26 = vsel %vm12370_vm13, %v12129_v12, %v12265_v61  ;;  %v12389_v30 = vsel %vm5357_vm11, 1.0, %v13079_v34  ;;  %vm13274_vm8 = vcmask 1046534   ;;  %v13275_v9 = vld [vmem:[#allocation16_spill] sm:$0xff] }
 0x6a4   :  { %v4766_v41 = vsel %vm13274_vm8, %v4757_v16, %v12269_v58  ;;  %v12393_v8 = vadd.f32 1.0, %v6688_v0  ;;  %v13276_v31 = vperm.slane %v13275_v9, %v11398_v27  ;;  %vm13277_vm9 = vcmask 1048512  }
 0x6a5   :  { %v6692_v13 = vpop.eup %6691  ;;  %vm5355_vm14 = vcmp.gt.f32.partialorder %v12248_v47, 118.0  ;;  %vm13278_vm2 = vcmask 1047559   ;;  %v6038_v57 = vadd.f32 -118.0, %v12380_v55  ;;  %v12405_v58 = vsel %vm12300_vm7, %v12259_v2, %v4598_v48  ;;  %v6111_v48 = vld [vmem:[#allocation5 + $0x28] sm:$0xff]  ;;  %vm13283_vm1 = vmmov %vm13277_vm9 }
 0x6a6   :  { %v5422_v40 = vsel %vm13277_vm9, %v5421_v38, %v13276_v31  ;;  %v4767_v53 = vsel %vm13278_vm2, %v4760_v52, %v4766_v41  ;;  %v6694_v54 = vpop.eup %6693  ;;  %v4654_v28 = vperm.slane %v4543_v46, %v11370_v17  ;;  %v4655_v18 = vperm.slane %v4558_v37, %v11378_v49  ;;  %5510 = vmatpush.bf16.msra.mxu0 %v6111_v48 }
 0x6a7   :  { %v5247_v35 = vmul.f32 %v12364_v63, %v12286_v62  ;;  %4769 = vst.msk [vmem:[#allocation2 + $0x8] sm:$0xff] %vm4671_vm12, %v4767_v53  ;;  %v4563_v22 = vmul.f32 %v12333_v21, %v4562_v42  ;;  %vm5354_vm11 = vcmp.gt.f32.partialorder %v12254_v1, 118.0  ;;  %v12414_v0 = vadd.f32 1.0, %v6694_v54  ;;  %v12416_v32 = vpop.eup %6695 }
 0x6a8   :  { %v6054_v6 = vmul.f32 -1.442695, %v6038_v57  ;;  %v12418_v2 = vadd.f32 1.0, %v6692_v13  ;;  %6697 = vrcp.f32 %v12393_v8  ;;  %v6069_v38 = vsel %vm5355_vm14, 1.0, %v13079_v34 }
 0x6a9   :  { %v4969_v45 = vadd.f32 1.0, %v4952_v23  ;;  %v4660_v16 = vperm.slane %v12405_v58, %v11370_v17  ;;  %v5427_v19 = vperm.slane %v12389_v30, %v11484_v36  ;;  %vm13279_vm3 = vcmask 1044484  }
 0x6aa   :  { %v5435_v24 = vsel %vm13279_vm3, %v5422_v40, %v12213_v7  ;;  %6699 = vrcp.f32 %v12414_v0  ;;  %v4656_v46 = vsel %vm4640_vm15, %v4655_v18, %v4654_v28  ;;  %v5248_v37 = vsub.f32 1.0, %v5247_v35  ;;  %v6110_v40 = vld [vmem:[#allocation5 + $0x20] sm:$0xff]  ;;  %v4954_v28 = vpop.xlane.xlu1 %4953 }
 0x6ab   :  { %v6068_v47 = vsel %vm5354_vm11, 1.0, %v13079_v34  ;;  %6701 = vpow2.f32 %v6054_v6  ;;  %v12437_v42 = vmul.f32 %v12416_v32, %v12317_v14  ;;  %v4564_v52 = vadd.f32 %v12333_v21, %v4563_v22  ;;  %5511 = vmatpush.bf16.msra.mxu0 %v6110_v40 }
 0x6ac   :  { %vm4566_vm7 = vweird.f32 %v12333_v21  ;;  %v5424_v7 = vperm.slane %v6069_v38, %v11484_v36  ;;  %v4569_v41 = vand.u32 2147483647, %v12281_v59  ;;  %v4571_v13 = vand.u32 2147483648, %v12281_v59 }
 0x6ad   :  { %6703 = vrcp.f32 %v12418_v2  ;;  %v6040_v1 = vadd.f32 -118.0, %v4969_v45  ;;  %v5255_v9 = vand.u32 2147483647, %v12286_v62  ;;  %vm4565_vm0 = vweird.f32 %v12281_v59 }
 0x6ae   :  { %v5423_v31 = vperm.slane %v6068_v47, %v11398_v27  ;;  %vm5356_vm6 = vcmp.gt.f32.partialorder %v12380_v55, 118.0  ;;  %v12449_v53 = vpop.eup %6697  ;;  %v12452_v57 = vmul.f32 %v12364_v63, %v5248_v37  ;;  %v5257_v23 = vand.u32 2147483648, %v12286_v62  ;;  %vm12458_vm10 = vmor %vm4565_vm0, %vm4566_vm7 }
 0x6af   :  { %v5197_v29 = vand.u32 2147483648, %v12317_v14  ;;  %v6056_v59 = vmul.f32 -1.442695, %v6040_v1  ;;  %vm13282_vm5 = vcmask 1045509   ;;  %v5188_v22 = vsub.f32 1.0, %v12437_v42  ;;  %v6109_v42 = vld [vmem:[#allocation5 + $0x18] sm:$0xff] }
 0x6b0   :  { %v6700_v18 = vpop.eup %6699  ;;  %v12464_v35 = vsel %vm13282_vm5, %v4656_v46, %v12262_v25  ;;  %v4568_v6 = vsel %vm12458_vm10, %v12333_v21, %v4564_v52  ;;  %v5425_v38 = vsel %vm13283_vm1, %v5424_v7, %v5423_v31  ;;  %vm4570_vm4 = vcmp.eq.f32.partialorder %v4569_v41, 8.507059e+37  ;;  %vm13284_vm9 = vmmov %vm13282_vm5  ;;  %5512 = vmatpush.bf16.msra.mxu0 %v6109_v42 }
 0x6b1   :  { %v6702_v48 = vpop.eup %6701  ;;  %v4572_v37 = vor.u32 1.1754944e-38, %v4571_v13  ;;  %v4606_v47 = vmul.f32 %v6700_v18, %v12414_v0  ;;  %v6070_v1 = vsel %vm5356_vm6, 1.0, %v13079_v34  ;;  %6705 = vpow2.f32 %v6056_v59  ;;  %vm13289_vm10 = vmmov %vm13283_vm1 }
 0x6b2   :  { %v12475_v25 = vadd.f32 1.0, %v6702_v48  ;;  %vm5358_vm8 = vcmp.gt.f32.partialorder %v4969_v45, 118.0  ;;  %v4970_v46 = vadd.f32 1.0, %v4954_v28  ;;  %v5436_v52 = vsel %vm13284_vm9, %v5425_v38, %v5435_v24 }
 0x6b3   :  { %v12477_v54 = vpop.eup %6703  ;;  %v4573_v21 = vsel %vm4570_vm4, %v4572_v37, %v4568_v6  ;;  %v4607_v7 = vsub.f32 1.0, %v4606_v47  ;;  %v4614_v41 = vand.u32 2147483647, %v12414_v0  ;;  %v5217_v13 = vmul.f32 %v12449_v53, %v12393_v8 }
 0x6b4   :  { %v4616_v55 = vand.u32 2147483648, %v12414_v0  ;;  %6707 = vrcp.f32 %v12475_v25  ;;  %v5426_v31 = vperm.slane %v6070_v1, %v11398_v27  ;;  %vm12488_vm14 = vcmp.eq.f32.partialorder %v5150_v20, 8.507059e+37  ;;  %5513 = vmatpush.bf16.msra.mxu0 %v6108_v56 }
 0x6b5   :  { %vm5252_vm2 = vweird.f32 %v12364_v63  ;;  %v4608_v24 = vmul.f32 %v6700_v18, %v4607_v7  ;;  %vm4611_vm11 = vweird.f32 %v6700_v18  ;;  %v6072_v59 = vsel %vm5358_vm8, 1.0, %v13079_v34 }
 0x6b6   :  { %v6041_v28 = vadd.f32 -118.0, %v4970_v46  ;;  %v4657_v6 = vperm.slane %v4573_v21, %v11370_v17  ;;  %v5202_v38 = vmul.f32 %v12477_v54, %v12418_v2  ;;  %vm4610_vm3 = vweird.f32 %v12414_v0  ;;  %v6107_v21 = vld [vmem:[#allocation5 + $0x8] sm:$0xff] }
 0x6b7   :  { %vm5359_vm7 = vcmp.gt.f32.partialorder %v4970_v46, 118.0  ;;  %v4609_v20 = vadd.f32 %v6700_v18, %v4608_v24  ;;  %vm12499_vm0 = vcmp.eq.f32.partialorder %v4614_v41, 8.507059e+37  ;;  %v6706_v45 = vpop.eup %6705  ;;  %vm4612_vm6 = vmor %vm4610_vm3, %vm4611_vm11  ;;  %v4617_v1 = vor.u32 1.1754944e-38, %v4616_v55 }
 0x6b8   :  { %v6057_v37 = vmul.f32 -1.442695, %v6041_v28  ;;  %v6073_v47 = vsel %vm5359_vm7, 1.0, %v13079_v34  ;;  %v5428_v42 = vsel %vm13289_vm10, %v5427_v19, %v5426_v31  ;;  %v5429_v0 = vperm.slane %v6072_v59, %v11398_v27  ;;  %5514 = vmatpush.bf16.msra.mxu0 %v6107_v21 }
 0x6b9   :  { %v5430_v46 = vperm.slane %v6073_v47, %v11484_v36  ;;  %v5218_v7 = vsub.f32 1.0, %v5217_v13  ;;  %v4613_v41 = vsel %vm4612_vm6, %v6700_v18, %v4609_v20  ;;  %v12510_v24 = vadd.f32 1.0, %v6706_v45 }
 0x6ba   :  { %6709 = vpow2.f32 %v6057_v37  ;;  %v12512_v34 = vpop.eup %6707  ;;  %v4659_v30 = vsel %vm4640_vm15, %v4658_v10, %v4657_v6  ;;  %v4618_v19 = vsel %vm12499_vm0, %v4617_v1, %v4613_v41  ;;  %vm5342_vm5 = vcmask 1048448   ;;  %v6106_v6 = vld [vmem:[#allocation5] sm:$0xff] }
 0x6bb   :  { %v5431_v55 = vsel %vm13283_vm1, %v5430_v46, %v5429_v0  ;;  %v4661_v31 = vperm.slane %v4618_v19, %v11378_v49  ;;  %v5232_v18 = vmul.f32 %v12512_v34, %v12475_v25  ;;  %vm13290_vm4 = vcmask 1046534  }
 0x6bc   :  { %v5437_v13 = vsel %vm13290_vm4, %v5428_v42, %v5436_v52  ;;  %6711 = vrcp.f32 %v12510_v24  ;;  %v5250_v39 = vadd.f32 %v12364_v63, %v12452_v57  ;;  %v5189_v10 = vmul.f32 %v12416_v32, %v5188_v22  ;;  %vm13292_vm9 = vmmov %vm13290_vm4  ;;  %5515 = vmatpush.bf16.msra.mxu0 %v6106_v6 }
 0x6bd   :  { %v5203_v59 = vsub.f32 1.0, %v5202_v38  ;;  %vm13291_vm8 = vcmask 1047559   ;;  %v4668_v49 = vsel %vm13292_vm9, %v4659_v30, %v12464_v35  ;;  %v5219_v56 = vmul.f32 %v12449_v53, %v5218_v7 }
 0x6be   :  { %v5438_v28 = vsel %vm13291_vm8, %v5431_v55, %v5437_v13  ;;  %v4662_v52 = vsel %vm4640_vm15, %v4661_v31, %v4660_v16  ;;  %v5233_v20 = vsub.f32 1.0, %v5232_v18  ;;  %v12546_v57 = vsel %vm12488_vm14, %v12250_v60, %v5149_v26  ;;  %vm13295_vm15 = vmmov %vm13291_vm8 }
 0x6bf   :  { %5440 = vst.msk [vmem:[#allocation2 + $0x8] sm:$0xff] %vm5342_vm5, %v5438_v28  ;;  %vm5251_vm11 = vweird.f32 %v12286_v62  ;;  %vm12551_vm3 = vcmp.eq.f32.partialorder %v5255_v9, 8.507059e+37  ;;  %v4669_v58 = vsel %vm13295_vm15, %v4662_v52, %v4668_v49  ;;  %v5258_v15 = vor.u32 1.1754944e-38, %v5257_v23 }
 0x6c0   :  { %v6710_v16 = vpop.eup %6709  ;;  %vm5191_vm13 = vweird.f32 %v12317_v14  ;;  %v5195_v12 = vand.u32 2147483647, %v12317_v14  ;;  %v5198_v60 = vor.u32 1.1754944e-38, %v5197_v29  ;;  %4672 = vst.msk [vmem:[#allocation2] sm:$0xff] %vm4671_vm12, %v4669_v58  ;;  %vm12565_vm14 = vmor %vm5251_vm11, %vm5252_vm2  ;;  %vm5192_vm7 = vweird.f32 %v12416_v32 }
 0x6c1   :  { %v5204_v62 = vmul.f32 %v12477_v54, %v5203_v59  ;;  %v5234_v26 = vmul.f32 %v12512_v34, %v5233_v20  ;;  %v12572_v9 = vadd.f32 1.0, %v6710_v16  ;;  %v5254_v29 = vsel %vm12565_vm14, %v12364_v63, %v5250_v39  ;;  %vm12589_vm0 = vmor %vm5191_vm13, %vm5192_vm7 }
 0x6c2   :  { %v12574_v23 = vpop.eup %6711  ;;  %v5190_v35 = vadd.f32 %v12416_v32, %v5189_v10  ;;  %v5220_v22 = vadd.f32 %v12449_v53, %v5219_v56  ;;  %vm5222_vm12 = vweird.f32 %v12449_v53  ;;  %vm5206_vm2 = vweird.f32 %v12418_v2 }
 0x6c3   :  { %v5227_v40 = vand.u32 2147483648, %v12393_v8  ;;  %v5262_v38 = vmul.f32 %v12574_v23, %v12510_v24  ;;  %6713 = vrcp.f32 %v12572_v9  ;;  %vm5207_vm6 = vweird.f32 %v12477_v54 }
 0x6c4   :  { %v5210_v63 = vand.u32 2147483647, %v12418_v2  ;;  %vm5221_vm10 = vweird.f32 %v12393_v8  ;;  %v5225_v37 = vand.u32 2147483647, %v12393_v8  ;;  %v5205_v47 = vadd.f32 %v12477_v54, %v5204_v62  ;;  %vm12619_vm8 = vmor %vm5206_vm2, %vm5207_vm6 }
 0x6c5   :  { %vm12598_vm1 = vmor %vm5221_vm10, %vm5222_vm12  ;;  %v5235_v14 = vadd.f32 %v12512_v34, %v5234_v26  ;;  %vm5237_vm4 = vweird.f32 %v12512_v34  ;;  %v5263_v1 = vsub.f32 1.0, %v5262_v38  ;;  %v5194_v0 = vsel %vm12589_vm0, %v12416_v32, %v5190_v35 }
 0x6c6   :  { %v12604_v42 = vld [vmem:[#allocation2 + $0x8] sm:$0xff]  ;;  %v5212_v46 = vand.u32 2147483648, %v12418_v2  ;;  %v5224_v8 = vsel %vm12598_vm1, %v12449_v53, %v5220_v22  ;;  %v5242_v21 = vand.u32 2147483648, %v12475_v25  ;;  %v5228_v41 = vor.u32 1.1754944e-38, %v5227_v40 }
 0x6c7   :  { %5530 = vadd.xlane.f32.xlu2 %v12604_v42  ;;  %vm5236_vm9 = vweird.f32 %v12475_v25  ;;  %v5240_v32 = vand.u32 2147483647, %v12475_v25  ;;  %v5264_v30 = vmul.f32 %v12574_v23, %v5263_v1  ;;  %v5319_v53 = vperm.slane %v12546_v57, %v11398_v27 }
 0x6c8   :  { %v5259_v19 = vsel %vm12551_vm3, %v5258_v15, %v5254_v29  ;;  %vm5196_vm11 = vcmp.eq.f32.partialorder %v5195_v12, 8.507059e+37  ;;  %vm5226_vm15 = vcmp.eq.f32.partialorder %v5225_v37, 8.507059e+37  ;;  %vm5238_vm13 = vmor %vm5236_vm9, %vm5237_vm4  ;;  %v5209_v31 = vsel %vm12619_vm8, %v12477_v54, %v5205_v47 }
 0x6c9   :  { %v6714_v2 = vpop.eup %6713  ;;  %v5199_v55 = vsel %vm5196_vm11, %v5198_v60, %v5194_v0  ;;  %v5229_v25 = vsel %vm5226_vm15, %v5228_v41, %v5224_v8  ;;  %v5239_v18 = vsel %vm5238_vm13, %v12512_v34, %v5235_v14  ;;  %v5243_v13 = vor.u32 1.1754944e-38, %v5242_v21 }
 0x6ca   :  { %v5265_v39 = vadd.f32 %v12574_v23, %v5264_v30  ;;  %vm5267_vm14 = vweird.f32 %v12574_v23  ;;  %v5277_v10 = vmul.f32 %v6714_v2, %v12572_v9  ;;  %vm5211_vm3 = vcmp.eq.f32.partialorder %v5210_v63, 8.507059e+37 }
 0x6cb   :  { %v5213_v59 = vor.u32 1.1754944e-38, %v5212_v46  ;;  %vm5241_vm7 = vcmp.eq.f32.partialorder %v5240_v32, 8.507059e+37  ;;  %v5272_v28 = vand.u32 2147483648, %v12510_v24  ;;  %vm5266_vm12 = vweird.f32 %v12510_v24 }
 0x6cc   :  { %v5244_v6 = vsel %vm5241_vm7, %v5243_v13, %v5239_v18  ;;  %v5270_v54 = vand.u32 2147483647, %v12510_v24  ;;  %v5278_v49 = vsub.f32 1.0, %v5277_v10  ;;  %v5323_v34 = vperm.slane %v5199_v55, %v11484_v36  ;;  %vm12644_vm2 = vmor %vm5266_vm12, %vm5267_vm14 }
 0x6cd   :  { %v5214_v56 = vsel %vm5211_vm3, %v5213_v59, %v5209_v31  ;;  %v5326_v52 = vperm.slane %v5229_v25, %v11484_v36  ;;  %v5287_v57 = vand.u32 2147483648, %v12572_v9  ;;  %v5269_v17 = vsel %vm12644_vm2, %v12574_v23, %v5265_v39 }
 0x6ce   :  { %v5279_v58 = vmul.f32 %v6714_v2, %v5278_v49  ;;  %vm5282_vm0 = vweird.f32 %v6714_v2  ;;  %v5285_v24 = vand.u32 2147483647, %v12572_v9  ;;  %vm13306_vm6 = vcmask 1048512  }
 0x6cf   :  { %v5318_v16 = vsel %vm13306_vm6, %v5317_v50, %v5316_v4  ;;  %vm13307_vm10 = vmmov %vm13306_vm6  ;;  %v5328_v12 = vperm.slane %v5244_v6, %v11398_v27  ;;  %v5273_v60 = vor.u32 1.1754944e-38, %v5272_v28  ;;  %v5325_v61 = vperm.slane %v5214_v56, %v11398_v27 }
 0x6d0   :  { %v5321_v15 = vsel %vm13307_vm10, %v5320_v3, %v5319_v53  ;;  %vm5271_vm1 = vcmp.eq.f32.partialorder %v5270_v54, 8.507059e+37  ;;  %v5280_v62 = vadd.f32 %v6714_v2, %v5279_v58  ;;  %vm5281_vm4 = vweird.f32 %v12572_v9  ;;  %vm13308_vm8 = vmmov %vm13306_vm6 }
 0x6d1   :  { %v5329_v5 = vperm.slane %v5259_v19, %v11484_v36  ;;  %v5324_v4 = vsel %vm13308_vm8, %v5323_v34, %v5322_v33  ;;  %v5274_v44 = vsel %vm5271_vm1, %v5273_v60, %v5269_v17  ;;  %vm5283_vm9 = vmor %vm5281_vm4, %vm5282_vm0  ;;  %v5288_v43 = vor.u32 1.1754944e-38, %v5287_v57 }
 0x6d2   :  { %vm13309_vm11 = vcmask 1042434   ;;  %vm13310_vm15 = vmmov %vm13306_vm6  ;;  %v5284_v26 = vsel %vm5283_vm9, %v6714_v2, %v5280_v62  ;;  %vm5286_vm13 = vcmp.eq.f32.partialorder %v5285_v24, 8.507059e+37  ;;  %vm13311_vm14 = vcmask 1043459  }
 0x6d3   :  { %v5335_v3 = vsel %vm13309_vm11, %v5318_v16, %v11872_v11  ;;  %v5327_v50 = vsel %vm13310_vm15, %v5326_v52, %v5325_v61  ;;  %vm13312_vm3 = vmmov %vm13306_vm6  ;;  %v5289_v29 = vsel %vm5286_vm13, %v5288_v43, %v5284_v26  ;;  %vm13313_vm7 = vcmask 1044484  }
 0x6d4   :  { %v5336_v23 = vsel %vm13311_vm14, %v5321_v15, %v5335_v3  ;;  %v5330_v9 = vsel %vm13312_vm3, %v5329_v5, %v5328_v12  ;;  %v5331_v51 = vperm.slane %v5274_v44, %v11398_v27  ;;  %v5332_v33 = vperm.slane %v5289_v29, %v11484_v36  ;;  %vm13316_vm0 = vmmov %vm13312_vm3 }
 0x6d5   :  { %v5337_v35 = vsel %vm13313_vm7, %v5324_v4, %v5336_v23  ;;  %vm13314_vm12 = vcmask 1045509   ;;  %vm13315_vm2 = vcmask 1046534   ;;  %vm13317_vm6 = vcmask 1047559  }
 0x6d6   :  { %v5338_v22 = vsel %vm13314_vm12, %v5327_v50, %v5337_v35  ;;  %v5333_v11 = vsel %vm13316_vm0, %v5332_v33, %v5331_v51  ;;  %v5533_v27 = vmul.f32 %v12604_v42, %v12604_v42  ;;  %vm5554_vm1 = vcmask 15368  }
 0x6d7   :  { %v5339_v40 = vsel %vm13315_vm2, %v5330_v9, %v5338_v22 }
 0x6d8   :  { %v5340_v38 = vsel %vm13317_vm6, %v5333_v11, %v5339_v40 }
 0x6d9   :  { %5343 = vst.msk [vmem:[#allocation2] sm:$0xff] %vm5342_vm5, %v5340_v38  ;;  %vm5552_vm5 = vcmask 7168  }
 0x6e0   :  { %v5441_v48 = vld [vmem:[#allocation2] sm:$0xff] }
 0x6e1   :  { %5528 = vadd.xlane.f32.xlu0 %v5441_v48  ;;  %v5532_v63 = vmul.f32 %v5441_v48, %v5441_v48  ;;  %v5443_v37 = vpack.c.bf16 %v12604_v42, %v5441_v48 }
 0x6e3   :  { %5534 = vadd.xlane.f32.xlu1 %v5532_v63  ;;  %5516 = vmatmul.bf16.vlgmr.msra.gmra.mxu0 %v5443_v37 }
 0x6e9   :  { %5536 = vadd.xlane.f32.xlu0 %v5533_v27 }
 0x73a   :  { %v5531_v21 = vpop.xlane.xlu2 %5530 }
 0x73b   :  { %v5539_v32 = vmul.f32 %v5531_v21, %v5531_v21 }
 0x754   :  { %v5529_v1 = vpop.xlane.xlu0 %5528 }
 0x755   :  { %v5538_v0 = vmul.f32 %v5529_v1, %v5529_v1 }
 0x756   :  { %v5535_v46 = vpop.xlane.xlu1 %5534 }
 0x757   :  { %v5540_v8 = vsub.f32 %v5538_v0, %v5535_v46 }
 0x759   :  { %v5542_v7 = vadd.f32 1e-08, %v5540_v8  ;;  %vm5548_vm10 = vcmp.eq.f32.partialorder %v5540_v8, 0.0 }
 0x75b   :  { %6715 = vrcp.f32 %v5542_v7 }
 0x75c   :  { %v5537_v41 = vpop.xlane.xlu0 %5536 }
 0x75d   :  { %v5541_v30 = vsub.f32 %v5539_v32, %v5537_v41 }
 0x75f   :  { %v5543_v53 = vadd.f32 1e-08, %v5541_v30  ;;  %vm5549_vm4 = vcmp.eq.f32.partialorder %v5541_v30, 0.0 }
 0x760   :  { %v5517_v36 = vpop.f32.mrf.mxu0 }
 0x761   :  { %v5522_v47 = vmul.f32 %v5517_v36, %v5441_v48  ;;  %v6716_v19 = vpop.eup %6715  ;;  %6717 = vrcp.f32 %v5543_v53 }
 0x763   :  { %5524 = vadd.xlane.f32.xlu2 %v5522_v47 }
 0x768   :  { %v5519_v45 = vpop.f32.mrf.mxu0 }
 0x769   :  { %v5523_v14 = vmul.f32 %v5519_v45, %v12604_v42  ;;  %v6718_v42 = vpop.eup %6717 }
 0x76b   :  { %5526 = vadd.xlane.f32.xlu1 %v5523_v14 }
 0x7d6   :  { %v5525_v2 = vpop.xlane.xlu2 %5524 }
 0x7d7   :  { %v5546_v55 = vmul.f32 %v6716_v19, %v5525_v2 }
 0x7d9   :  { %v5550_v31 = vsel %vm5548_vm10, 0.0, %v5546_v55 }
 0x7da   :  { %5553 = vst.msk [vmem:[%s12697_s2] sm:$0xff] %vm5552_vm5, %v5550_v31 }
 0x7de   :  { %v5527_v25 = vpop.xlane.xlu1 %5526 }
 0x7df   :  { %v5547_v18 = vmul.f32 %v6718_v42, %v5527_v25 }
 0x7e1   :  { %v5551_v13 = vsel %vm5549_vm4, 0.0, %v5547_v18 }
 0x7e2   :  { %5555 = vst.msk [vmem:[%s12697_s2] sm:$0xff] %vm5554_vm1, %v5551_v13 }
 0x7e3   :  { %5560 = vsyncpa [#allocation4], 1 }
 0x7e4   :  { %5561 = vsyncpa [#allocation6], 1 }

</bundles_post_ra>
